<compile_context>
chip_gen: v6e
topology: v6e:2x2x1
jax: 0.10.0
libtpu: 0.0.40
codegen_flags: <defaults>
</compile_context>

<pallas_src>
import functools

import jax
import jax.numpy as jnp
from jax import lax
from jax.experimental import pallas as pl
from jax.experimental.pallas import tpu as pltpu

SMOOTH_L1_BETA = 1.0      # TODO(synk): stands in for CFG.smooth_l1_beta
TEMPERATURE = 2.0         # module default temperature=2
SOFT_LAMBDA = 0.9         # module default soft_lambda=0.9
EPS = 1e-7

TM = 128                  # anchors per grid step (lane-dense block)
KT = 512                  # k-tile for the per-anchor comparison build
NUM_CORE_SPLITS = 2       # parallel grid axis (2 TensorCores on v7x; serial elsewhere)
USE_BF16_MXU = False      # optional v6e/v7x: bf16 masks / w for the per-anchor matvecs
                          # (numerics caveat from review; default off)


def _smooth_l1(x, beta):
    a = jnp.abs(x)
    return jnp.where(a < beta, 0.5 * a * a / beta, a - 0.5 * beta)


def _rnc_rot_mix_kernel(feat_blk_ref, lab_blk_ref, lab_t_blk_ref,
                        feat_t_ref, r_all_ref, lab_ref, lab_t_ref,
                        out_ref,
                        acc_ref, w_scr, rr_scr, tr_scr, rc_scr, tc_scr,
                        *, n_true, d_rot, d_trans, tm, kt, mxu_dtype):
    c = pl.program_id(0)              # "core" (parallel) axis
    b = pl.program_id(1)              # anchor-block (arbitrary) axis
    nblk_inner = pl.num_programs(1)
    n_pad = feat_t_ref.shape[1]
    d_lab = d_rot + d_trans
    blk = c * nblk_inner + b
    i0 = blk * tm

    @pl.when(b == 0)
    def _init():
        acc_ref[...] = jnp.zeros_like(acc_ref)

    feat_blk = feat_blk_ref[...]          # (TM, d_f)     anchor features
    lab_blk = lab_blk_ref[...]            # (TM, d_lab)   anchor labels
    lab_t_blk = lab_t_blk_ref[...]        # (d_lab, TM)   anchor labels, transposed
    feat_t = feat_t_ref[...]              # (d_f, n_pad)  all features, transposed
    r_all = r_all_ref[...]                # (1, n_pad)    precomputed row norms
    lab_all = lab_ref[...]                # (n_pad, d_lab)
    lab_t = lab_t_ref[...]                # (d_lab, n_pad)

    # ---- feature distances on the MXU (Gram trick), lane-dense (TM, n_pad) ----
    r_blk = jnp.sum(feat_blk * feat_blk, axis=-1, keepdims=True)           # (TM, 1)
    gram = jnp.dot(feat_blk, feat_t, preferred_element_type=jnp.float32)   # (TM, n_pad)
    dist2 = jnp.maximum(r_blk + r_all - 2.0 * gram, 0.0)
    logits = -jnp.sqrt(dist2) * (1.0 / TEMPERATURE)
    logits = logits - jnp.max(logits, axis=-1, keepdims=True)              # row max
    exp_logits = jnp.exp(logits)

    # ---- off-diagonal / batch-padding mask ----
    col_i = jax.lax.broadcasted_iota(jnp.int32, (tm, n_pad), 1)
    row_i = jax.lax.broadcasted_iota(jnp.int32, (tm, n_pad), 0) + i0
    valid = jnp.logical_and(row_i < n_true, col_i < n_true)
    offdiag = jnp.logical_and(col_i != row_i, valid).astype(jnp.float32)   # (TM, n_pad)

    w_scr[...] = exp_logits * offdiag     # exp logits restricted to valid k != i

    # ---- label differences, computed directly in BOTH layouts (no transposes) ----
    rot_rows = jnp.zeros((tm, n_pad), jnp.float32)     # rd[a, j] (j on lanes)
    trans_rows = jnp.zeros((tm, n_pad), jnp.float32)
    rot_cols = jnp.zeros((n_pad, tm), jnp.float32)     # rd[a, k] (k on sublanes)
    trans_cols = jnp.zeros((n_pad, tm), jnp.float32)
    for d in range(d_lab):                # d_lab is tiny (e.g. 7)
        a_col = lab_blk[:, d:d + 1]       # (TM, 1)
        a_row = lab_t_blk[d:d + 1, :]     # (1, TM)
        k_row = lab_t[d:d + 1, :]         # (1, n_pad)
        k_col = lab_all[:, d:d + 1]       # (n_pad, 1)
        row_term = _smooth_l1(a_col - k_row, SMOOTH_L1_BETA)   # (TM, n_pad)
        col_term = _smooth_l1(k_col - a_row, SMOOTH_L1_BETA)   # (n_pad, TM)
        if d < d_rot:
            rot_rows = rot_rows + row_term
            rot_cols = rot_cols + col_term
        else:
            trans_rows = trans_rows + row_term
            trans_cols = trans_cols + col_term
    rr_scr[...] = rot_rows * (1.0 / d_rot)
    tr_scr[...] = trans_rows * (1.0 / d_trans)
    rc_scr[...] = rot_cols * (1.0 / d_rot)
    tc_scr[...] = trans_cols * (1.0 / d_trans)

    # (1 + lambda) * logits term, accumulated lane-dense once per block.
    logit_sum_row = jnp.sum(logits * offdiag, axis=0, keepdims=True)       # (1, n_pad)

    col_row = jax.lax.broadcasted_iota(jnp.int32, (1, n_pad), 1)
    nkt = n_pad // kt
    one = jnp.asarray(1.0, mxu_dtype)
    zero = jnp.asarray(0.0, mxu_dtype)

    # ---- per-anchor denominators: k-tiled (KT, n_pad) comparison slices +
    #      MXU matvecs; log/mask epilogue folded into the loop ----
    def anchor_body(a, acc_row):
        onehot = (jax.lax.broadcasted_iota(jnp.int32, (tm, 1), 0) == a
                  ).astype(jnp.float32)                       # (TM, 1)
        w_row = w_scr[pl.ds(a, 1), :]                         # (1, n_pad)
        rd_row = rr_scr[pl.ds(a, 1), :]                       # rd[a, j] on lanes
        td_row = tr_scr[pl.ds(a, 1), :]
        d_rot_acc = jnp.zeros((1, n_pad), jnp.float32)
        d_hard_acc = jnp.zeros((1, n_pad), jnp.float32)
        for t in range(nkt):                                  # static k-tiling
            ks = slice(t * kt, (t + 1) * kt)
            # rd[a, k] / td[a, k] (k on sublanes) extracted via one-hot matvec
            rd_col = jnp.dot(rc_scr[ks, :], onehot,
                             preferred_element_type=jnp.float32)   # (kt, 1)
            td_col = jnp.dot(tc_scr[ks, :], onehot,
                             preferred_element_type=jnp.float32)   # (kt, 1)
            # M[k, j] = (rd[a, j] <= rd[a, k]); hard mask fused via where
            m_rot = jnp.where(rd_row <= rd_col, one, zero)         # (kt, n_pad)
            m_hard = jnp.where(td_row <= td_col, m_rot, zero)
            w_t = w_row[:, ks].astype(mxu_dtype)                   # (1, kt)
            d_rot_acc = d_rot_acc + jnp.dot(
                w_t, m_rot, preferred_element_type=jnp.float32)
            d_hard_acc = d_hard_acc + jnp.dot(
                w_t, m_hard, preferred_element_type=jnp.float32)
        a_glob = i0 + a
        mask_row = jnp.logical_and(col_row != a_glob,
                                   col_row < n_true).astype(jnp.float32)
        contrib = (jnp.log(d_hard_acc + EPS)
                   + SOFT_LAMBDA * jnp.log(d_rot_acc + EPS)) * mask_row
        return acc_row + contrib

    n_valid = jnp.clip(n_true - i0, 0, tm)   # skip fully/partially padded anchors
    loop_acc = lax.fori_loop(0, n_valid, anchor_body,
                             jnp.zeros((1, n_pad), jnp.float32))

    acc_ref[...] = acc_ref[...] + loop_acc - (1.0 + SOFT_LAMBDA) * logit_sum_row

    @pl.when(b == nblk_inner - 1)
    def _finalize():
        scale = 1.0 / (n_true * (n_true - 1))
        loss_core = jnp.sum(acc_ref[...]) * scale
        rr = jax.lax.broadcasted_iota(jnp.int32, (8, 128), 0)
        cc = jax.lax.broadcasted_iota(jnp.int32, (8, 128), 1)
        out_ref[...] = jnp.where(jnp.logical_and(rr == 0, cc == 0),
                                 loss_core, 0.0)


def rnc_loss_rot_mix(rot_feat, rot, trans):
    """Pallas TPU implementation of RnCLoss_rot_mix.forward (scalar loss)."""
    rot_feat = jnp.asarray(rot_feat, jnp.float32)
    rot = jnp.asarray(rot, jnp.float32)
    trans = jnp.asarray(trans, jnp.float32)

    n, d_f = rot_feat.shape
    d_rot = rot.shape[1]
    d_trans = trans.shape[1]
    d_lab = d_rot + d_trans
    # TODO(synk): n == 1 divides by zero in 1/(n*(n-1)), same as the reference.

    tm = TM
    ncores = NUM_CORE_SPLITS
    nblk = pl.cdiv(n, tm)
    nblk_inner = pl.cdiv(nblk, ncores)
    nblk_total = ncores * nblk_inner
    n_pad = nblk_total * tm              # multiple of 128 -> lane-dense everywhere

    kt = min(KT, n_pad)
    while n_pad % kt != 0:
        kt //= 2

    # concatenate labels (one padded array serves both diff layouts)
    lab = jnp.concatenate([rot, trans], axis=1)                  # (n, d_lab)
    if n_pad != n:
        pad = n_pad - n
        rot_feat = jnp.pad(rot_feat, ((0, pad), (0, 0)))
        lab = jnp.pad(lab, ((0, pad), (0, 0)))

    feat_t = rot_feat.T                                          # (d_f, n_pad)
    lab_t = lab.T                                                # (d_lab, n_pad)
    r_all = jnp.sum(rot_feat * rot_feat, axis=-1)[None, :]       # (1, n_pad)

    mxu_dtype = jnp.bfloat16 if USE_BF16_MXU else jnp.float32
    kernel = functools.partial(_rnc_rot_mix_kernel, n_true=n, d_rot=d_rot,
                               d_trans=d_trans, tm=tm, kt=kt,
                               mxu_dtype=mxu_dtype)

    # VMEM budget sized from the actual shapes (not hard-coded).
    f32b = 4
    vmem_need = f32b * (
        2 * (d_f * n_pad + n_pad + n_pad * d_lab + d_lab * n_pad)   # resident inputs
        + 2 * (tm * d_f + tm * d_lab + d_lab * tm)                  # per-block inputs
        + (3 * tm * n_pad + 2 * n_pad * tm + n_pad)                 # scratch
        + 6 * kt * n_pad                                            # per-anchor masks/temps
        + 4 * tm * n_pad)                                           # block-level temps
    vmem_limit = int(min(max(int(1.25 * vmem_need) + (2 << 20), 32 << 20),
                         96 << 20))
    # TODO(synk): for very large n the (TM, n_pad) scratches may still exceed
    # v7x's 64 MiB physical VMEM; shrink TM/KT in that regime.

    blk_idx = lambda c, b: c * nblk_inner + b

    out = pl.pallas_call(
        kernel,
        out_shape=jax.ShapeDtypeStruct((ncores * 8, 128), jnp.float32),
        grid=(ncores, nblk_inner),
        in_specs=[
            pl.BlockSpec((tm, d_f), lambda c, b: (blk_idx(c, b), 0)),     # anchor feats
            pl.BlockSpec((tm, d_lab), lambda c, b: (blk_idx(c, b), 0)),   # anchor labels
            pl.BlockSpec((d_lab, tm), lambda c, b: (0, blk_idx(c, b))),   # anchor labels^T
            pl.BlockSpec((d_f, n_pad), lambda c, b: (0, 0)),              # all feats^T
            pl.BlockSpec((1, n_pad), lambda c, b: (0, 0)),                # row norms
            pl.BlockSpec((n_pad, d_lab), lambda c, b: (0, 0)),            # all labels
            pl.BlockSpec((d_lab, n_pad), lambda c, b: (0, 0)),            # all labels^T
        ],
        out_specs=pl.BlockSpec((8, 128), lambda c, b: (c, 0)),
        scratch_shapes=[
            pltpu.VMEM((1, n_pad), jnp.float32),     # per-core lane-dense accumulator
            pltpu.VMEM((tm, n_pad), jnp.float32),    # w rows
            pltpu.VMEM((tm, n_pad), jnp.float32),    # rot diff rows
            pltpu.VMEM((tm, n_pad), jnp.float32),    # trans diff rows
            pltpu.VMEM((n_pad, tm), jnp.float32),    # rot diff cols
            pltpu.VMEM((n_pad, tm), jnp.float32),    # trans diff cols
        ],
        compiler_params=pltpu.CompilerParams(
            dimension_semantics=("parallel", "arbitrary"),
            vmem_limit_bytes=vmem_limit,
        ),
    )(rot_feat, lab, lab_t, feat_t, r_all, lab, lab_t)

    # one partial loss per core; sum them (2 scalars)
    return jnp.sum(out[0::8, 0])
    # TODO(synk): the PyTorch NaN/Inf guard (`return None`) is Python-level
    # control flow and is left to the caller.


def rnc_loss_rot_mix_ref(rot_feat, rot, trans):
    """Pure-JAX reference (same math as the PyTorch module, exact pairwise)."""
    n = rot_feat.shape[0]
    rot_diff = jnp.mean(_smooth_l1(rot[:, None, :] - rot[None, :, :],
                                   SMOOTH_L1_BETA), axis=-1)
    trans_diff = jnp.mean(_smooth_l1(trans[:, None, :] - trans[None, :, :],
                                     SMOOTH_L1_BETA), axis=-1)
    logits = -jnp.linalg.norm(rot_feat[:, None, :] - rot_feat[None, :, :],
                              axis=-1) / TEMPERATURE
    logits = logits - jnp.max(logits, axis=1, keepdims=True)
    exp_logits = jnp.exp(logits)
    mask = 1.0 - jnp.eye(n, dtype=jnp.float32)
    cmp_rot = (rot_diff[:, None, :] >= rot_diff[:, :, None]).astype(jnp.float32)
    cmp_trans = (trans_diff[:, None, :] >= trans_diff[:, :, None]).astype(jnp.float32)
    w = (exp_logits * mask)[:, None, :]
    denom_rot = jnp.sum(cmp_rot * w, axis=-1) + EPS
    denom_hard = jnp.sum(cmp_rot * cmp_trans * w, axis=-1) + EPS
    pos_rot = (logits - jnp.log(denom_rot)) * mask
    pos_hard = (logits - jnp.log(denom_hard)) * mask
    scale = 1.0 / (n * (n - 1))
    return -(jnp.sum(pos_hard) * scale) - SOFT_LAMBDA * (jnp.sum(pos_rot) * scale)


if __name__ == "__main__":
    key = jax.random.PRNGKey(0)
    k1, k2, k3 = jax.random.split(key, 3)
    n, d_feat, d_rot, d_trans = 64, 32, 4, 3
    rot_feat = jax.random.normal(k1, (n, d_feat), dtype=jnp.float32)
    rot = jax.random.normal(k2, (n, d_rot), dtype=jnp.float32)
    trans = jax.random.normal(k3, (n, d_trans), dtype=jnp.float32)

    loss = jax.block_until_ready(rnc_loss_rot_mix(rot_feat, rot, trans))
    loss_ref = jax.block_until_ready(rnc_loss_rot_mix_ref(rot_feat, rot, trans))
    assert jnp.isfinite(loss), "loss is NaN/Inf"
    assert jnp.allclose(loss, loss_ref, rtol=1e-3, atol=1e-3), (loss, loss_ref)

    # batch not divisible by the anchor block: exercises padding / masking path
    n2 = 20
    loss2 = jax.block_until_ready(
        rnc_loss_rot_mix(rot_feat[:n2], rot[:n2], trans[:n2]))
    loss2_ref = jax.block_until_ready(
        rnc_loss_rot_mix_ref(rot_feat[:n2], rot[:n2], trans[:n2]))
    assert jnp.isfinite(loss2), "loss2 is NaN/Inf"
    assert jnp.allclose(loss2, loss2_ref, rtol=1e-3, atol=1e-3), (loss2, loss2_ref)

    # batch > TM: exercises the multi-block / both-core path
    n3 = 200
    k4, k5, k6 = jax.random.split(jax.random.PRNGKey(1), 3)
    rot_feat3 = jax.random.normal(k4, (n3, d_feat), dtype=jnp.float32)
    rot3 = jax.random.normal(k5, (n3, d_rot), dtype=jnp.float32)
    trans3 = jax.random.normal(k6, (n3, d_trans), dtype=jnp.float32)
    loss3 = jax.block_until_ready(rnc_loss_rot_mix(rot_feat3, rot3, trans3))
    loss3_ref = jax.block_until_ready(rnc_loss_rot_mix_ref(rot_feat3, rot3, trans3))
    assert jnp.isfinite(loss3), "loss3 is NaN/Inf"
    assert jnp.allclose(loss3, loss3_ref, rtol=1e-3, atol=1e-3), (loss3, loss3_ref)

    print("KERNEL_OK")
</pallas_src>

<mosaic_0001>
module attributes {stable_mosaic.version = 11 : i64} {
  func.func @_rnc_rot_mix_kernel(%arg0: i32, %arg1: i32, %arg2: memref<128x32xf32, #tpu.memory_space<vmem>>, %arg3: memref<128x7xf32, #tpu.memory_space<vmem>>, %arg4: memref<7x128xf32, #tpu.memory_space<vmem>>, %arg5: memref<32x256xf32, #tpu.memory_space<vmem>>, %arg6: memref<1x256xf32, #tpu.memory_space<vmem>>, %arg7: memref<256x7xf32, #tpu.memory_space<vmem>>, %arg8: memref<7x256xf32, #tpu.memory_space<vmem>>, %arg9: memref<8x128xf32, #tpu.memory_space<vmem>>, %arg10: memref<1x256xf32, #tpu.memory_space<vmem>>, %arg11: memref<128x256xf32, #tpu.memory_space<vmem>>, %arg12: memref<128x256xf32, #tpu.memory_space<vmem>>, %arg13: memref<128x256xf32, #tpu.memory_space<vmem>>, %arg14: memref<256x128xf32, #tpu.memory_space<vmem>>, %arg15: memref<256x128xf32, #tpu.memory_space<vmem>>) attributes {dimension_semantics = [#tpu.dimension_semantics<parallel>, #tpu.dimension_semantics<arbitrary>], iteration_bounds = array<i64: 2, 1>, scalar_prefetch = 0 : i64, scratch_operands = 6 : i64, tpu.core_type = #tpu.core_type<tc>, window_params = [{transform_indices = @transform_0, window_bounds = array<i64: 128, 32>}, {transform_indices = @transform_1, window_bounds = array<i64: 128, 7>}, {transform_indices = @transform_2, window_bounds = array<i64: 7, 128>}, {pipeline_mode = #tpu.pipeline_mode<synchronous>, transform_indices = @transform_3, window_bounds = array<i64: 32, 256>}, {pipeline_mode = #tpu.pipeline_mode<synchronous>, transform_indices = @transform_4, window_bounds = array<i64: 1, 256>}, {pipeline_mode = #tpu.pipeline_mode<synchronous>, transform_indices = @transform_5, window_bounds = array<i64: 256, 7>}, {pipeline_mode = #tpu.pipeline_mode<synchronous>, transform_indices = @transform_6, window_bounds = array<i64: 7, 256>}, {transform_indices = @transform_7, window_bounds = array<i64: 8, 128>}]} {
    %c1_i32 = arith.constant 1 : i32
    %0 = arith.muli %arg0, %c1_i32 : i32
    %1 = arith.addi %0, %arg1 : i32
    %c128_i32 = arith.constant 128 : i32
    %2 = arith.muli %1, %c128_i32 : i32
    %c0_i32 = arith.constant 0 : i32
    %3 = arith.cmpi eq, %arg1, %c0_i32 : i32
    %4 = arith.extui %3 : i1 to i32
    %c0_i32_0 = arith.constant 0 : i32
    %5 = arith.cmpi ne, %4, %c0_i32_0 : i32
    scf.if %5 {
      %cst_111 = arith.constant 0.000000e+00 : f32
      %324 = vector.broadcast %cst_111 : f32 to vector<1x256xf32>
      %c0_112 = arith.constant 0 : index
      %c0_113 = arith.constant 0 : index
      %325 = vector.load %arg10[%c0_112, %c0_113] : memref<1x256xf32, #tpu.memory_space<vmem>>, vector<1x256xf32>
      tpu.vector_store %arg10[%c0_112, %c0_113], %324 {strides = array<i32>} : memref<1x256xf32, #tpu.memory_space<vmem>>, vector<1x256xf32>,
    } else {
    }
    %c0 = arith.constant 0 : index
    %c0_1 = arith.constant 0 : index
    %6 = vector.load %arg2[%c0, %c0_1] : memref<128x32xf32, #tpu.memory_space<vmem>>, vector<128x32xf32>
    %c0_2 = arith.constant 0 : index
    %c0_3 = arith.constant 0 : index
    %7 = vector.load %arg3[%c0_2, %c0_3] : memref<128x7xf32, #tpu.memory_space<vmem>>, vector<128x7xf32>
    %c0_4 = arith.constant 0 : index
    %c0_5 = arith.constant 0 : index
    %8 = vector.load %arg4[%c0_4, %c0_5] : memref<7x128xf32, #tpu.memory_space<vmem>>, vector<7x128xf32>
    %c0_6 = arith.constant 0 : index
    %c0_7 = arith.constant 0 : index
    %9 = vector.load %arg5[%c0_6, %c0_7] : memref<32x256xf32, #tpu.memory_space<vmem>>, vector<32x256xf32>
    %c0_8 = arith.constant 0 : index
    %c0_9 = arith.constant 0 : index
    %10 = vector.load %arg6[%c0_8, %c0_9] : memref<1x256xf32, #tpu.memory_space<vmem>>, vector<1x256xf32>
    %c0_10 = arith.constant 0 : index
    %c0_11 = arith.constant 0 : index
    %11 = vector.load %arg7[%c0_10, %c0_11] : memref<256x7xf32, #tpu.memory_space<vmem>>, vector<256x7xf32>
    %c0_12 = arith.constant 0 : index
    %c0_13 = arith.constant 0 : index
    %12 = vector.load %arg8[%c0_12, %c0_13] : memref<7x256xf32, #tpu.memory_space<vmem>>, vector<7x256xf32>
    %13 = arith.mulf %6, %6 : vector<128x32xf32>
    %cst = arith.constant dense<0.000000e+00> : vector<128xf32>
    %14 = vector.multi_reduction <add>, %13, %cst [1] : vector<128x32xf32> to vector<128xf32>
    %15 = vector.shape_cast %14 : vector<128xf32> to vector<128x1xf32>
    %cst_14 = arith.constant dense<0.000000e+00> : vector<128x256xf32>
    %16 = tpu.matmul %6, %9, %cst_14 {dimension_numbers = #tpu.dot_dimension_numbers<[1], [0], [0], [1], [0, 0, 1, 1], [], []>} : vector<128x32xf32>, vector<32x256xf32>, vector<128x256xf32> -> vector<128x256xf32>
    %17 = vector.broadcast %15 : vector<128x1xf32> to vector<128x256xf32>
    %18 = vector.broadcast %10 : vector<1x256xf32> to vector<128x256xf32>
    %19 = arith.addf %17, %18 : vector<128x256xf32>
    %cst_15 = arith.constant 2.000000e+00 : f32
    %20 = vector.broadcast %cst_15 : f32 to vector<128x256xf32>
    %21 = arith.mulf %20, %16 : vector<128x256xf32>
    %22 = arith.subf %19, %21 : vector<128x256xf32>
    %cst_16 = arith.constant 0.000000e+00 : f32
    %23 = vector.broadcast %cst_16 : f32 to vector<128x256xf32>
    %24 = arith.maximumf %22, %23 : vector<128x256xf32>
    %25 = math.sqrt %24 : vector<128x256xf32>
    %cst_17 = arith.constant 0.000000e+00 : f32
    %26 = vector.broadcast %cst_17 : f32 to vector<128x256xf32>
    %27 = arith.subf %26, %25 : vector<128x256xf32>
    %cst_18 = arith.constant 5.000000e-01 : f32
    %28 = vector.broadcast %cst_18 : f32 to vector<128x256xf32>
    %29 = arith.mulf %27, %28 : vector<128x256xf32>
    %cst_19 = arith.constant dense<0xFF800000> : vector<128xf32>
    %30 = vector.multi_reduction <maximumf>, %29, %cst_19 [1] : vector<128x256xf32> to vector<128xf32>
    %31 = vector.shape_cast %30 : vector<128xf32> to vector<128x1xf32>
    %32 = vector.broadcast %31 : vector<128x1xf32> to vector<128x256xf32>
    %33 = arith.subf %29, %32 : vector<128x256xf32>
    %34 = math.exp %33 : vector<128x256xf32>
    %35 = tpu.iota {dimensions = array<i32: 1>} : vector<128x256xi32>
    %36 = tpu.iota {dimensions = array<i32: 0>} : vector<128x256xi32>
    %37 = vector.broadcast %2 : i32 to vector<128x256xi32>
    %38 = arith.addi %36, %37 : vector<128x256xi32>
    %c64_i32 = arith.constant 64 : i32
    %39 = vector.broadcast %c64_i32 : i32 to vector<128x256xi32>
    %40 = arith.cmpi slt, %38, %39 : vector<128x256xi32>
    %c64_i32_20 = arith.constant 64 : i32
    %41 = vector.broadcast %c64_i32_20 : i32 to vector<128x256xi32>
    %42 = arith.cmpi slt, %35, %41 : vector<128x256xi32>
    %43 = arith.andi %40, %42 : vector<128x256xi1>
    %44 = arith.cmpi ne, %35, %38 : vector<128x256xi32>
    %45 = arith.andi %44, %43 : vector<128x256xi1>
    %46 = arith.extui %45 : vector<128x256xi1> to vector<128x256xi32>
    %47 = arith.sitofp %46 : vector<128x256xi32> to vector<128x256xf32>
    %48 = arith.mulf %34, %47 : vector<128x256xf32>
    %c0_21 = arith.constant 0 : index
    %c0_22 = arith.constant 0 : index
    %49 = vector.load %arg11[%c0_21, %c0_22] : memref<128x256xf32, #tpu.memory_space<vmem>>, vector<128x256xf32>
    tpu.vector_store %arg11[%c0_21, %c0_22], %48 {strides = array<i32>} : memref<128x256xf32, #tpu.memory_space<vmem>>, vector<128x256xf32>,
    %cst_23 = arith.constant 0.000000e+00 : f32
    %50 = vector.broadcast %cst_23 : f32 to vector<128x256xf32>
    %cst_24 = arith.constant 0.000000e+00 : f32
    %51 = vector.broadcast %cst_24 : f32 to vector<128x256xf32>
    %cst_25 = arith.constant 0.000000e+00 : f32
    %52 = vector.broadcast %cst_25 : f32 to vector<256x128xf32>
    %cst_26 = arith.constant 0.000000e+00 : f32
    %53 = vector.broadcast %cst_26 : f32 to vector<256x128xf32>
    %54 = vector.extract_strided_slice %7 {offsets = [0, 0], sizes = [128, 1], strides = [1, 1]} : vector<128x7xf32> to vector<128x1xf32>
    %55 = vector.extract_strided_slice %8 {offsets = [0, 0], sizes = [1, 128], strides = [1, 1]} : vector<7x128xf32> to vector<1x128xf32>
    %56 = vector.extract_strided_slice %12 {offsets = [0, 0], sizes = [1, 256], strides = [1, 1]} : vector<7x256xf32> to vector<1x256xf32>
    %57 = vector.extract_strided_slice %11 {offsets = [0, 0], sizes = [256, 1], strides = [1, 1]} : vector<256x7xf32> to vector<256x1xf32>
    %58 = vector.broadcast %54 : vector<128x1xf32> to vector<128x256xf32>
    %59 = vector.broadcast %56 : vector<1x256xf32> to vector<128x256xf32>
    %60 = arith.subf %58, %59 : vector<128x256xf32>
    %61 = math.absf %60 : vector<128x256xf32>
    %cst_27 = arith.constant 1.000000e+00 : f32
    %62 = vector.broadcast %cst_27 : f32 to vector<128x256xf32>
    %63 = arith.cmpf olt, %61, %62 : vector<128x256xf32>
    %cst_28 = arith.constant 5.000000e-01 : f32
    %64 = vector.broadcast %cst_28 : f32 to vector<128x256xf32>
    %65 = arith.mulf %64, %61 : vector<128x256xf32>
    %66 = arith.mulf %65, %61 : vector<128x256xf32>
    %cst_29 = arith.constant 1.000000e+00 : f32
    %67 = vector.broadcast %cst_29 : f32 to vector<128x256xf32>
    %68 = arith.divf %66, %67 : vector<128x256xf32>
    %cst_30 = arith.constant 5.000000e-01 : f32
    %69 = vector.broadcast %cst_30 : f32 to vector<128x256xf32>
    %70 = arith.subf %61, %69 : vector<128x256xf32>
    %71 = arith.select %63, %68, %70 : vector<128x256xi1>, vector<128x256xf32>
    %72 = vector.broadcast %57 : vector<256x1xf32> to vector<256x128xf32>
    %73 = vector.broadcast %55 : vector<1x128xf32> to vector<256x128xf32>
    %74 = arith.subf %72, %73 : vector<256x128xf32>
    %75 = math.absf %74 : vector<256x128xf32>
    %cst_31 = arith.constant 1.000000e+00 : f32
    %76 = vector.broadcast %cst_31 : f32 to vector<256x128xf32>
    %77 = arith.cmpf olt, %75, %76 : vector<256x128xf32>
    %cst_32 = arith.constant 5.000000e-01 : f32
    %78 = vector.broadcast %cst_32 : f32 to vector<256x128xf32>
    %79 = arith.mulf %78, %75 : vector<256x128xf32>
    %80 = arith.mulf %79, %75 : vector<256x128xf32>
    %cst_33 = arith.constant 1.000000e+00 : f32
    %81 = vector.broadcast %cst_33 : f32 to vector<256x128xf32>
    %82 = arith.divf %80, %81 : vector<256x128xf32>
    %cst_34 = arith.constant 5.000000e-01 : f32
    %83 = vector.broadcast %cst_34 : f32 to vector<256x128xf32>
    %84 = arith.subf %75, %83 : vector<256x128xf32>
    %85 = arith.select %77, %82, %84 : vector<256x128xi1>, vector<256x128xf32>
    %86 = arith.addf %50, %71 : vector<128x256xf32>
    %87 = arith.addf %52, %85 : vector<256x128xf32>
    %88 = vector.extract_strided_slice %7 {offsets = [0, 1], sizes = [128, 1], strides = [1, 1]} : vector<128x7xf32> to vector<128x1xf32>
    %89 = vector.extract_strided_slice %8 {offsets = [1, 0], sizes = [1, 128], strides = [1, 1]} : vector<7x128xf32> to vector<1x128xf32>
    %90 = vector.extract_strided_slice %12 {offsets = [1, 0], sizes = [1, 256], strides = [1, 1]} : vector<7x256xf32> to vector<1x256xf32>
    %91 = vector.extract_strided_slice %11 {offsets = [0, 1], sizes = [256, 1], strides = [1, 1]} : vector<256x7xf32> to vector<256x1xf32>
    %92 = vector.broadcast %88 : vector<128x1xf32> to vector<128x256xf32>
    %93 = vector.broadcast %90 : vector<1x256xf32> to vector<128x256xf32>
    %94 = arith.subf %92, %93 : vector<128x256xf32>
    %95 = math.absf %94 : vector<128x256xf32>
    %cst_35 = arith.constant 1.000000e+00 : f32
    %96 = vector.broadcast %cst_35 : f32 to vector<128x256xf32>
    %97 = arith.cmpf olt, %95, %96 : vector<128x256xf32>
    %cst_36 = arith.constant 5.000000e-01 : f32
    %98 = vector.broadcast %cst_36 : f32 to vector<128x256xf32>
    %99 = arith.mulf %98, %95 : vector<128x256xf32>
    %100 = arith.mulf %99, %95 : vector<128x256xf32>
    %cst_37 = arith.constant 1.000000e+00 : f32
    %101 = vector.broadcast %cst_37 : f32 to vector<128x256xf32>
    %102 = arith.divf %100, %101 : vector<128x256xf32>
    %cst_38 = arith.constant 5.000000e-01 : f32
    %103 = vector.broadcast %cst_38 : f32 to vector<128x256xf32>
    %104 = arith.subf %95, %103 : vector<128x256xf32>
    %105 = arith.select %97, %102, %104 : vector<128x256xi1>, vector<128x256xf32>
    %106 = vector.broadcast %91 : vector<256x1xf32> to vector<256x128xf32>
    %107 = vector.broadcast %89 : vector<1x128xf32> to vector<256x128xf32>
    %108 = arith.subf %106, %107 : vector<256x128xf32>
    %109 = math.absf %108 : vector<256x128xf32>
    %cst_39 = arith.constant 1.000000e+00 : f32
    %110 = vector.broadcast %cst_39 : f32 to vector<256x128xf32>
    %111 = arith.cmpf olt, %109, %110 : vector<256x128xf32>
    %cst_40 = arith.constant 5.000000e-01 : f32
    %112 = vector.broadcast %cst_40 : f32 to vector<256x128xf32>
    %113 = arith.mulf %112, %109 : vector<256x128xf32>
    %114 = arith.mulf %113, %109 : vector<256x128xf32>
    %cst_41 = arith.constant 1.000000e+00 : f32
    %115 = vector.broadcast %cst_41 : f32 to vector<256x128xf32>
    %116 = arith.divf %114, %115 : vector<256x128xf32>
    %cst_42 = arith.constant 5.000000e-01 : f32
    %117 = vector.broadcast %cst_42 : f32 to vector<256x128xf32>
    %118 = arith.subf %109, %117 : vector<256x128xf32>
    %119 = arith.select %111, %116, %118 : vector<256x128xi1>, vector<256x128xf32>
    %120 = arith.addf %86, %105 : vector<128x256xf32>
    %121 = arith.addf %87, %119 : vector<256x128xf32>
    %122 = vector.extract_strided_slice %7 {offsets = [0, 2], sizes = [128, 1], strides = [1, 1]} : vector<128x7xf32> to vector<128x1xf32>
    %123 = vector.extract_strided_slice %8 {offsets = [2, 0], sizes = [1, 128], strides = [1, 1]} : vector<7x128xf32> to vector<1x128xf32>
    %124 = vector.extract_strided_slice %12 {offsets = [2, 0], sizes = [1, 256], strides = [1, 1]} : vector<7x256xf32> to vector<1x256xf32>
    %125 = vector.extract_strided_slice %11 {offsets = [0, 2], sizes = [256, 1], strides = [1, 1]} : vector<256x7xf32> to vector<256x1xf32>
    %126 = vector.broadcast %122 : vector<128x1xf32> to vector<128x256xf32>
    %127 = vector.broadcast %124 : vector<1x256xf32> to vector<128x256xf32>
    %128 = arith.subf %126, %127 : vector<128x256xf32>
    %129 = math.absf %128 : vector<128x256xf32>
    %cst_43 = arith.constant 1.000000e+00 : f32
    %130 = vector.broadcast %cst_43 : f32 to vector<128x256xf32>
    %131 = arith.cmpf olt, %129, %130 : vector<128x256xf32>
    %cst_44 = arith.constant 5.000000e-01 : f32
    %132 = vector.broadcast %cst_44 : f32 to vector<128x256xf32>
    %133 = arith.mulf %132, %129 : vector<128x256xf32>
    %134 = arith.mulf %133, %129 : vector<128x256xf32>
    %cst_45 = arith.constant 1.000000e+00 : f32
    %135 = vector.broadcast %cst_45 : f32 to vector<128x256xf32>
    %136 = arith.divf %134, %135 : vector<128x256xf32>
    %cst_46 = arith.constant 5.000000e-01 : f32
    %137 = vector.broadcast %cst_46 : f32 to vector<128x256xf32>
    %138 = arith.subf %129, %137 : vector<128x256xf32>
    %139 = arith.select %131, %136, %138 : vector<128x256xi1>, vector<128x256xf32>
    %140 = vector.broadcast %125 : vector<256x1xf32> to vector<256x128xf32>
    %141 = vector.broadcast %123 : vector<1x128xf32> to vector<256x128xf32>
    %142 = arith.subf %140, %141 : vector<256x128xf32>
    %143 = math.absf %142 : vector<256x128xf32>
    %cst_47 = arith.constant 1.000000e+00 : f32
    %144 = vector.broadcast %cst_47 : f32 to vector<256x128xf32>
    %145 = arith.cmpf olt, %143, %144 : vector<256x128xf32>
    %cst_48 = arith.constant 5.000000e-01 : f32
    %146 = vector.broadcast %cst_48 : f32 to vector<256x128xf32>
    %147 = arith.mulf %146, %143 : vector<256x128xf32>
    %148 = arith.mulf %147, %143 : vector<256x128xf32>
    %cst_49 = arith.constant 1.000000e+00 : f32
    %149 = vector.broadcast %cst_49 : f32 to vector<256x128xf32>
    %150 = arith.divf %148, %149 : vector<256x128xf32>
    %cst_50 = arith.constant 5.000000e-01 : f32
    %151 = vector.broadcast %cst_50 : f32 to vector<256x128xf32>
    %152 = arith.subf %143, %151 : vector<256x128xf32>
    %153 = arith.select %145, %150, %152 : vector<256x128xi1>, vector<256x128xf32>
    %154 = arith.addf %120, %139 : vector<128x256xf32>
    %155 = arith.addf %121, %153 : vector<256x128xf32>
    %156 = vector.extract_strided_slice %7 {offsets = [0, 3], sizes = [128, 1], strides = [1, 1]} : vector<128x7xf32> to vector<128x1xf32>
    %157 = vector.extract_strided_slice %8 {offsets = [3, 0], sizes = [1, 128], strides = [1, 1]} : vector<7x128xf32> to vector<1x128xf32>
    %158 = vector.extract_strided_slice %12 {offsets = [3, 0], sizes = [1, 256], strides = [1, 1]} : vector<7x256xf32> to vector<1x256xf32>
    %159 = vector.extract_strided_slice %11 {offsets = [0, 3], sizes = [256, 1], strides = [1, 1]} : vector<256x7xf32> to vector<256x1xf32>
    %160 = vector.broadcast %156 : vector<128x1xf32> to vector<128x256xf32>
    %161 = vector.broadcast %158 : vector<1x256xf32> to vector<128x256xf32>
    %162 = arith.subf %160, %161 : vector<128x256xf32>
    %163 = math.absf %162 : vector<128x256xf32>
    %cst_51 = arith.constant 1.000000e+00 : f32
    %164 = vector.broadcast %cst_51 : f32 to vector<128x256xf32>
    %165 = arith.cmpf olt, %163, %164 : vector<128x256xf32>
    %cst_52 = arith.constant 5.000000e-01 : f32
    %166 = vector.broadcast %cst_52 : f32 to vector<128x256xf32>
    %167 = arith.mulf %166, %163 : vector<128x256xf32>
    %168 = arith.mulf %167, %163 : vector<128x256xf32>
    %cst_53 = arith.constant 1.000000e+00 : f32
    %169 = vector.broadcast %cst_53 : f32 to vector<128x256xf32>
    %170 = arith.divf %168, %169 : vector<128x256xf32>
    %cst_54 = arith.constant 5.000000e-01 : f32
    %171 = vector.broadcast %cst_54 : f32 to vector<128x256xf32>
    %172 = arith.subf %163, %171 : vector<128x256xf32>
    %173 = arith.select %165, %170, %172 : vector<128x256xi1>, vector<128x256xf32>
    %174 = vector.broadcast %159 : vector<256x1xf32> to vector<256x128xf32>
    %175 = vector.broadcast %157 : vector<1x128xf32> to vector<256x128xf32>
    %176 = arith.subf %174, %175 : vector<256x128xf32>
    %177 = math.absf %176 : vector<256x128xf32>
    %cst_55 = arith.constant 1.000000e+00 : f32
    %178 = vector.broadcast %cst_55 : f32 to vector<256x128xf32>
    %179 = arith.cmpf olt, %177, %178 : vector<256x128xf32>
    %cst_56 = arith.constant 5.000000e-01 : f32
    %180 = vector.broadcast %cst_56 : f32 to vector<256x128xf32>
    %181 = arith.mulf %180, %177 : vector<256x128xf32>
    %182 = arith.mulf %181, %177 : vector<256x128xf32>
    %cst_57 = arith.constant 1.000000e+00 : f32
    %183 = vector.broadcast %cst_57 : f32 to vector<256x128xf32>
    %184 = arith.divf %182, %183 : vector<256x128xf32>
    %cst_58 = arith.constant 5.000000e-01 : f32
    %185 = vector.broadcast %cst_58 : f32 to vector<256x128xf32>
    %186 = arith.subf %177, %185 : vector<256x128xf32>
    %187 = arith.select %179, %184, %186 : vector<256x128xi1>, vector<256x128xf32>
    %188 = arith.addf %154, %173 : vector<128x256xf32>
    %189 = arith.addf %155, %187 : vector<256x128xf32>
    %190 = vector.extract_strided_slice %7 {offsets = [0, 4], sizes = [128, 1], strides = [1, 1]} : vector<128x7xf32> to vector<128x1xf32>
    %191 = vector.extract_strided_slice %8 {offsets = [4, 0], sizes = [1, 128], strides = [1, 1]} : vector<7x128xf32> to vector<1x128xf32>
    %192 = vector.extract_strided_slice %12 {offsets = [4, 0], sizes = [1, 256], strides = [1, 1]} : vector<7x256xf32> to vector<1x256xf32>
    %193 = vector.extract_strided_slice %11 {offsets = [0, 4], sizes = [256, 1], strides = [1, 1]} : vector<256x7xf32> to vector<256x1xf32>
    %194 = vector.broadcast %190 : vector<128x1xf32> to vector<128x256xf32>
    %195 = vector.broadcast %192 : vector<1x256xf32> to vector<128x256xf32>
    %196 = arith.subf %194, %195 : vector<128x256xf32>
    %197 = math.absf %196 : vector<128x256xf32>
    %cst_59 = arith.constant 1.000000e+00 : f32
    %198 = vector.broadcast %cst_59 : f32 to vector<128x256xf32>
    %199 = arith.cmpf olt, %197, %198 : vector<128x256xf32>
    %cst_60 = arith.constant 5.000000e-01 : f32
    %200 = vector.broadcast %cst_60 : f32 to vector<128x256xf32>
    %201 = arith.mulf %200, %197 : vector<128x256xf32>
    %202 = arith.mulf %201, %197 : vector<128x256xf32>
    %cst_61 = arith.constant 1.000000e+00 : f32
    %203 = vector.broadcast %cst_61 : f32 to vector<128x256xf32>
    %204 = arith.divf %202, %203 : vector<128x256xf32>
    %cst_62 = arith.constant 5.000000e-01 : f32
    %205 = vector.broadcast %cst_62 : f32 to vector<128x256xf32>
    %206 = arith.subf %197, %205 : vector<128x256xf32>
    %207 = arith.select %199, %204, %206 : vector<128x256xi1>, vector<128x256xf32>
    %208 = vector.broadcast %193 : vector<256x1xf32> to vector<256x128xf32>
    %209 = vector.broadcast %191 : vector<1x128xf32> to vector<256x128xf32>
    %210 = arith.subf %208, %209 : vector<256x128xf32>
    %211 = math.absf %210 : vector<256x128xf32>
    %cst_63 = arith.constant 1.000000e+00 : f32
    %212 = vector.broadcast %cst_63 : f32 to vector<256x128xf32>
    %213 = arith.cmpf olt, %211, %212 : vector<256x128xf32>
    %cst_64 = arith.constant 5.000000e-01 : f32
    %214 = vector.broadcast %cst_64 : f32 to vector<256x128xf32>
    %215 = arith.mulf %214, %211 : vector<256x128xf32>
    %216 = arith.mulf %215, %211 : vector<256x128xf32>
    %cst_65 = arith.constant 1.000000e+00 : f32
    %217 = vector.broadcast %cst_65 : f32 to vector<256x128xf32>
    %218 = arith.divf %216, %217 : vector<256x128xf32>
    %cst_66 = arith.constant 5.000000e-01 : f32
    %219 = vector.broadcast %cst_66 : f32 to vector<256x128xf32>
    %220 = arith.subf %211, %219 : vector<256x128xf32>
    %221 = arith.select %213, %218, %220 : vector<256x128xi1>, vector<256x128xf32>
    %222 = arith.addf %51, %207 : vector<128x256xf32>
    %223 = arith.addf %53, %221 : vector<256x128xf32>
    %224 = vector.extract_strided_slice %7 {offsets = [0, 5], sizes = [128, 1], strides = [1, 1]} : vector<128x7xf32> to vector<128x1xf32>
    %225 = vector.extract_strided_slice %8 {offsets = [5, 0], sizes = [1, 128], strides = [1, 1]} : vector<7x128xf32> to vector<1x128xf32>
    %226 = vector.extract_strided_slice %12 {offsets = [5, 0], sizes = [1, 256], strides = [1, 1]} : vector<7x256xf32> to vector<1x256xf32>
    %227 = vector.extract_strided_slice %11 {offsets = [0, 5], sizes = [256, 1], strides = [1, 1]} : vector<256x7xf32> to vector<256x1xf32>
    %228 = vector.broadcast %224 : vector<128x1xf32> to vector<128x256xf32>
    %229 = vector.broadcast %226 : vector<1x256xf32> to vector<128x256xf32>
    %230 = arith.subf %228, %229 : vector<128x256xf32>
    %231 = math.absf %230 : vector<128x256xf32>
    %cst_67 = arith.constant 1.000000e+00 : f32
    %232 = vector.broadcast %cst_67 : f32 to vector<128x256xf32>
    %233 = arith.cmpf olt, %231, %232 : vector<128x256xf32>
    %cst_68 = arith.constant 5.000000e-01 : f32
    %234 = vector.broadcast %cst_68 : f32 to vector<128x256xf32>
    %235 = arith.mulf %234, %231 : vector<128x256xf32>
    %236 = arith.mulf %235, %231 : vector<128x256xf32>
    %cst_69 = arith.constant 1.000000e+00 : f32
    %237 = vector.broadcast %cst_69 : f32 to vector<128x256xf32>
    %238 = arith.divf %236, %237 : vector<128x256xf32>
    %cst_70 = arith.constant 5.000000e-01 : f32
    %239 = vector.broadcast %cst_70 : f32 to vector<128x256xf32>
    %240 = arith.subf %231, %239 : vector<128x256xf32>
    %241 = arith.select %233, %238, %240 : vector<128x256xi1>, vector<128x256xf32>
    %242 = vector.broadcast %227 : vector<256x1xf32> to vector<256x128xf32>
    %243 = vector.broadcast %225 : vector<1x128xf32> to vector<256x128xf32>
    %244 = arith.subf %242, %243 : vector<256x128xf32>
    %245 = math.absf %244 : vector<256x128xf32>
    %cst_71 = arith.constant 1.000000e+00 : f32
    %246 = vector.broadcast %cst_71 : f32 to vector<256x128xf32>
    %247 = arith.cmpf olt, %245, %246 : vector<256x128xf32>
    %cst_72 = arith.constant 5.000000e-01 : f32
    %248 = vector.broadcast %cst_72 : f32 to vector<256x128xf32>
    %249 = arith.mulf %248, %245 : vector<256x128xf32>
    %250 = arith.mulf %249, %245 : vector<256x128xf32>
    %cst_73 = arith.constant 1.000000e+00 : f32
    %251 = vector.broadcast %cst_73 : f32 to vector<256x128xf32>
    %252 = arith.divf %250, %251 : vector<256x128xf32>
    %cst_74 = arith.constant 5.000000e-01 : f32
    %253 = vector.broadcast %cst_74 : f32 to vector<256x128xf32>
    %254 = arith.subf %245, %253 : vector<256x128xf32>
    %255 = arith.select %247, %252, %254 : vector<256x128xi1>, vector<256x128xf32>
    %256 = arith.addf %222, %241 : vector<128x256xf32>
    %257 = arith.addf %223, %255 : vector<256x128xf32>
    %258 = vector.extract_strided_slice %7 {offsets = [0, 6], sizes = [128, 1], strides = [1, 1]} : vector<128x7xf32> to vector<128x1xf32>
    %259 = vector.extract_strided_slice %8 {offsets = [6, 0], sizes = [1, 128], strides = [1, 1]} : vector<7x128xf32> to vector<1x128xf32>
    %260 = vector.extract_strided_slice %12 {offsets = [6, 0], sizes = [1, 256], strides = [1, 1]} : vector<7x256xf32> to vector<1x256xf32>
    %261 = vector.extract_strided_slice %11 {offsets = [0, 6], sizes = [256, 1], strides = [1, 1]} : vector<256x7xf32> to vector<256x1xf32>
    %262 = vector.broadcast %258 : vector<128x1xf32> to vector<128x256xf32>
    %263 = vector.broadcast %260 : vector<1x256xf32> to vector<128x256xf32>
    %264 = arith.subf %262, %263 : vector<128x256xf32>
    %265 = math.absf %264 : vector<128x256xf32>
    %cst_75 = arith.constant 1.000000e+00 : f32
    %266 = vector.broadcast %cst_75 : f32 to vector<128x256xf32>
    %267 = arith.cmpf olt, %265, %266 : vector<128x256xf32>
    %cst_76 = arith.constant 5.000000e-01 : f32
    %268 = vector.broadcast %cst_76 : f32 to vector<128x256xf32>
    %269 = arith.mulf %268, %265 : vector<128x256xf32>
    %270 = arith.mulf %269, %265 : vector<128x256xf32>
    %cst_77 = arith.constant 1.000000e+00 : f32
    %271 = vector.broadcast %cst_77 : f32 to vector<128x256xf32>
    %272 = arith.divf %270, %271 : vector<128x256xf32>
    %cst_78 = arith.constant 5.000000e-01 : f32
    %273 = vector.broadcast %cst_78 : f32 to vector<128x256xf32>
    %274 = arith.subf %265, %273 : vector<128x256xf32>
    %275 = arith.select %267, %272, %274 : vector<128x256xi1>, vector<128x256xf32>
    %276 = vector.broadcast %261 : vector<256x1xf32> to vector<256x128xf32>
    %277 = vector.broadcast %259 : vector<1x128xf32> to vector<256x128xf32>
    %278 = arith.subf %276, %277 : vector<256x128xf32>
    %279 = math.absf %278 : vector<256x128xf32>
    %cst_79 = arith.constant 1.000000e+00 : f32
    %280 = vector.broadcast %cst_79 : f32 to vector<256x128xf32>
    %281 = arith.cmpf olt, %279, %280 : vector<256x128xf32>
    %cst_80 = arith.constant 5.000000e-01 : f32
    %282 = vector.broadcast %cst_80 : f32 to vector<256x128xf32>
    %283 = arith.mulf %282, %279 : vector<256x128xf32>
    %284 = arith.mulf %283, %279 : vector<256x128xf32>
    %cst_81 = arith.constant 1.000000e+00 : f32
    %285 = vector.broadcast %cst_81 : f32 to vector<256x128xf32>
    %286 = arith.divf %284, %285 : vector<256x128xf32>
    %cst_82 = arith.constant 5.000000e-01 : f32
    %287 = vector.broadcast %cst_82 : f32 to vector<256x128xf32>
    %288 = arith.subf %279, %287 : vector<256x128xf32>
    %289 = arith.select %281, %286, %288 : vector<256x128xi1>, vector<256x128xf32>
    %290 = arith.addf %256, %275 : vector<128x256xf32>
    %291 = arith.addf %257, %289 : vector<256x128xf32>
    %cst_83 = arith.constant 2.500000e-01 : f32
    %292 = vector.broadcast %cst_83 : f32 to vector<128x256xf32>
    %293 = arith.mulf %188, %292 : vector<128x256xf32>
    %c0_84 = arith.constant 0 : index
    %c0_85 = arith.constant 0 : index
    %294 = vector.load %arg12[%c0_84, %c0_85] : memref<128x256xf32, #tpu.memory_space<vmem>>, vector<128x256xf32>
    tpu.vector_store %arg12[%c0_84, %c0_85], %293 {strides = array<i32>} : memref<128x256xf32, #tpu.memory_space<vmem>>, vector<128x256xf32>,
    %cst_86 = arith.constant 0.333333343 : f32
    %295 = vector.broadcast %cst_86 : f32 to vector<128x256xf32>
    %296 = arith.mulf %290, %295 : vector<128x256xf32>
    %c0_87 = arith.constant 0 : index
    %c0_88 = arith.constant 0 : index
    %297 = vector.load %arg13[%c0_87, %c0_88] : memref<128x256xf32, #tpu.memory_space<vmem>>, vector<128x256xf32>
    tpu.vector_store %arg13[%c0_87, %c0_88], %296 {strides = array<i32>} : memref<128x256xf32, #tpu.memory_space<vmem>>, vector<128x256xf32>,
    %cst_89 = arith.constant 2.500000e-01 : f32
    %298 = vector.broadcast %cst_89 : f32 to vector<256x128xf32>
    %299 = arith.mulf %189, %298 : vector<256x128xf32>
    %c0_90 = arith.constant 0 : index
    %c0_91 = arith.constant 0 : index
    %300 = vector.load %arg14[%c0_90, %c0_91] : memref<256x128xf32, #tpu.memory_space<vmem>>, vector<256x128xf32>
    tpu.vector_store %arg14[%c0_90, %c0_91], %299 {strides = array<i32>} : memref<256x128xf32, #tpu.memory_space<vmem>>, vector<256x128xf32>,
    %cst_92 = arith.constant 0.333333343 : f32
    %301 = vector.broadcast %cst_92 : f32 to vector<256x128xf32>
    %302 = arith.mulf %291, %301 : vector<256x128xf32>
    %c0_93 = arith.constant 0 : index
    %c0_94 = arith.constant 0 : index
    %303 = vector.load %arg15[%c0_93, %c0_94] : memref<256x128xf32, #tpu.memory_space<vmem>>, vector<256x128xf32>
    tpu.vector_store %arg15[%c0_93, %c0_94], %302 {strides = array<i32>} : memref<256x128xf32, #tpu.memory_space<vmem>>, vector<256x128xf32>,
    %304 = arith.mulf %33, %47 : vector<128x256xf32>
    %cst_95 = arith.constant dense<0.000000e+00> : vector<256xf32>
    %305 = vector.multi_reduction <add>, %304, %cst_95 [0] : vector<128x256xf32> to vector<256xf32>
    %306 = vector.shape_cast %305 : vector<256xf32> to vector<1x256xf32>
    %307 = tpu.iota {dimensions = array<i32: 1>} : vector<1x256xi32>
    %c64_i32_96 = arith.constant 64 : i32
    %308 = arith.subi %c64_i32_96, %2 : i32
    %c0_i32_97 = arith.constant 0 : i32
    %c128_i32_98 = arith.constant 128 : i32
    %309 = arith.maxsi %c0_i32_97, %308 : i32
    %310 = arith.minsi %c128_i32_98, %309 : i32
    %cst_99 = arith.constant 0.000000e+00 : f32
    %311 = vector.broadcast %cst_99 : f32 to vector<1x256xf32>
    %cst_100 = arith.constant 1.000000e+00 : f32
    %cst_101 = arith.constant 0.000000e+00 : f32
    %c0_i32_102 = arith.constant 0 : i32
    %312 = arith.subi %310, %c0_i32_102 : i32
    %313 = arith.addi %c0_i32_102, %312 : i32
    %c1_i32_103 = arith.constant 1 : i32
    %314 = scf.for %arg16 = %c0_i32_102 to %313 step %c1_i32_103 iter_args(%arg17 = %311) -> (vector<1x256xf32>)  : i32 {
      %324 = tpu.iota {dimensions = array<i32: 0>} : vector<128x1xi32>
      %325 = vector.broadcast %arg16 : i32 to vector<128x1xi32>
      %326 = arith.cmpi eq, %324, %325 : vector<128x1xi32>
      %327 = arith.extui %326 : vector<128x1xi1> to vector<128x1xi32>
      %328 = arith.sitofp %327 : vector<128x1xi32> to vector<128x1xf32>
      %329 = arith.index_cast %arg16 : i32 to index
      %c0_111 = arith.constant 0 : index
      %330 = vector.load %arg11[%329, %c0_111] : memref<128x256xf32, #tpu.memory_space<vmem>>, vector<1x256xf32>
      %331 = arith.index_cast %arg16 : i32 to index
      %c0_112 = arith.constant 0 : index
      %332 = vector.load %arg12[%331, %c0_112] : memref<128x256xf32, #tpu.memory_space<vmem>>, vector<1x256xf32>
      %333 = arith.index_cast %arg16 : i32 to index
      %c0_113 = arith.constant 0 : index
      %334 = vector.load %arg13[%333, %c0_113] : memref<128x256xf32, #tpu.memory_space<vmem>>, vector<1x256xf32>
      %cst_114 = arith.constant 0.000000e+00 : f32
      %335 = vector.broadcast %cst_114 : f32 to vector<1x256xf32>
      %cst_115 = arith.constant 0.000000e+00 : f32
      %336 = vector.broadcast %cst_115 : f32 to vector<1x256xf32>
      %c0_116 = arith.constant 0 : index
      %c0_117 = arith.constant 0 : index
      %337 = vector.load %arg14[%c0_116, %c0_117] : memref<256x128xf32, #tpu.memory_space<vmem>>, vector<256x128xf32>
      %cst_118 = arith.constant dense<0.000000e+00> : vector<256x1xf32>
      %338 = tpu.matmul %337, %328, %cst_118 {dimension_numbers = #tpu.dot_dimension_numbers<[1], [0], [0], [1], [0, 0, 1, 1], [], []>} : vector<256x128xf32>, vector<128x1xf32>, vector<256x1xf32> -> vector<256x1xf32>
      %c0_119 = arith.constant 0 : index
      %c0_120 = arith.constant 0 : index
      %339 = vector.load %arg15[%c0_119, %c0_120] : memref<256x128xf32, #tpu.memory_space<vmem>>, vector<256x128xf32>
      %cst_121 = arith.constant dense<0.000000e+00> : vector<256x1xf32>
      %340 = tpu.matmul %339, %328, %cst_121 {dimension_numbers = #tpu.dot_dimension_numbers<[1], [0], [0], [1], [0, 0, 1, 1], [], []>} : vector<256x128xf32>, vector<128x1xf32>, vector<256x1xf32> -> vector<256x1xf32>
      %341 = vector.broadcast %332 : vector<1x256xf32> to vector<256x256xf32>
      %342 = vector.broadcast %338 : vector<256x1xf32> to vector<256x256xf32>
      %343 = arith.cmpf ole, %341, %342 : vector<256x256xf32>
      %344 = vector.broadcast %cst_100 : f32 to vector<256x256xf32>
      %345 = vector.broadcast %cst_101 : f32 to vector<256x256xf32>
      %346 = arith.select %343, %344, %345 : vector<256x256xi1>, vector<256x256xf32>
      %347 = vector.broadcast %334 : vector<1x256xf32> to vector<256x256xf32>
      %348 = vector.broadcast %340 : vector<256x1xf32> to vector<256x256xf32>
      %349 = arith.cmpf ole, %347, %348 : vector<256x256xf32>
      %350 = vector.broadcast %cst_101 : f32 to vector<256x256xf32>
      %351 = arith.select %349, %346, %350 : vector<256x256xi1>, vector<256x256xf32>
      %cst_122 = arith.constant dense<0.000000e+00> : vector<1x256xf32>
      %352 = tpu.matmul %330, %346, %cst_122 {dimension_numbers = #tpu.dot_dimension_numbers<[1], [0], [0], [1], [0, 0, 1, 1], [], []>} : vector<1x256xf32>, vector<256x256xf32>, vector<1x256xf32> -> vector<1x256xf32>
      %353 = arith.addf %335, %352 : vector<1x256xf32>
      %cst_123 = arith.constant dense<0.000000e+00> : vector<1x256xf32>
      %354 = tpu.matmul %330, %351, %cst_123 {dimension_numbers = #tpu.dot_dimension_numbers<[1], [0], [0], [1], [0, 0, 1, 1], [], []>} : vector<1x256xf32>, vector<256x256xf32>, vector<1x256xf32> -> vector<1x256xf32>
      %355 = arith.addf %336, %354 : vector<1x256xf32>
      %356 = arith.addi %2, %arg16 : i32
      %357 = vector.broadcast %356 : i32 to vector<1x256xi32>
      %358 = arith.cmpi ne, %307, %357 : vector<1x256xi32>
      %c64_i32_124 = arith.constant 64 : i32
      %359 = vector.broadcast %c64_i32_124 : i32 to vector<1x256xi32>
      %360 = arith.cmpi slt, %307, %359 : vector<1x256xi32>
      %361 = arith.andi %358, %360 : vector<1x256xi1>
      %362 = arith.extui %361 : vector<1x256xi1> to vector<1x256xi32>
      %363 = arith.sitofp %362 : vector<1x256xi32> to vector<1x256xf32>
      %cst_125 = arith.constant 1.000000e-07 : f32
      %364 = vector.broadcast %cst_125 : f32 to vector<1x256xf32>
      %365 = arith.addf %355, %364 : vector<1x256xf32>
      %366 = math.log %365 : vector<1x256xf32>
      %cst_126 = arith.constant 1.000000e-07 : f32
      %367 = vector.broadcast %cst_126 : f32 to vector<1x256xf32>
      %368 = arith.addf %353, %367 : vector<1x256xf32>
      %369 = math.log %368 : vector<1x256xf32>
      %cst_127 = arith.constant 0.899999976 : f32
      %370 = vector.broadcast %cst_127 : f32 to vector<1x256xf32>
      %371 = arith.mulf %370, %369 : vector<1x256xf32>
      %372 = arith.addf %366, %371 : vector<1x256xf32>
      %373 = arith.mulf %372, %363 : vector<1x256xf32>
      %374 = arith.addf %arg17, %373 : vector<1x256xf32>
      scf.yield %374 : vector<1x256xf32>
    }
    %c0_104 = arith.constant 0 : index
    %c0_105 = arith.constant 0 : index
    %315 = vector.load %arg10[%c0_104, %c0_105] : memref<1x256xf32, #tpu.memory_space<vmem>>, vector<1x256xf32>
    %316 = arith.addf %315, %314 : vector<1x256xf32>
    %cst_106 = arith.constant 1.900000e+00 : f32
    %317 = vector.broadcast %cst_106 : f32 to vector<1x256xf32>
    %318 = arith.mulf %317, %306 : vector<1x256xf32>
    %319 = arith.subf %316, %318 : vector<1x256xf32>
    %c0_107 = arith.constant 0 : index
    %c0_108 = arith.constant 0 : index
    %320 = vector.load %arg10[%c0_107, %c0_108] : memref<1x256xf32, #tpu.memory_space<vmem>>, vector<1x256xf32>
    tpu.vector_store %arg10[%c0_107, %c0_108], %319 {strides = array<i32>} : memref<1x256xf32, #tpu.memory_space<vmem>>, vector<1x256xf32>,
    %c0_i32_109 = arith.constant 0 : i32
    %321 = arith.cmpi eq, %arg1, %c0_i32_109 : i32
    %322 = arith.extui %321 : i1 to i32
    %c0_i32_110 = arith.constant 0 : i32
    %323 = arith.cmpi ne, %322, %c0_i32_110 : i32
    scf.if %323 {
      %c0_111 = arith.constant 0 : index
      %c0_112 = arith.constant 0 : index
      %324 = vector.load %arg10[%c0_111, %c0_112] : memref<1x256xf32, #tpu.memory_space<vmem>>, vector<1x256xf32>
      %325 = vector.shape_cast %324 : vector<1x256xf32> to vector<1x1x256xf32>
      %cst_113 = arith.constant dense<0.000000e+00> : vector<1xf32>
      %326 = vector.multi_reduction <add>, %325, %cst_113 [1, 2] : vector<1x1x256xf32> to vector<1xf32>
      %327 = vector.shape_cast %326 : vector<1xf32> to vector<1x1x1xf32>
      %328 = vector.extract %327[0, 0, 0] : f32 from vector<1x1x1xf32>
      %cst_114 = arith.constant 2.48015887E-4 : f32
      %329 = arith.mulf %328, %cst_114 : f32
      %330 = tpu.iota {dimensions = array<i32: 0>} : vector<8x128xi32>
      %331 = tpu.iota {dimensions = array<i32: 1>} : vector<8x128xi32>
      %c0_i32_115 = arith.constant 0 : i32
      %332 = vector.broadcast %c0_i32_115 : i32 to vector<8x128xi32>
      %333 = arith.cmpi eq, %330, %332 : vector<8x128xi32>
      %c0_i32_116 = arith.constant 0 : i32
      %334 = vector.broadcast %c0_i32_116 : i32 to vector<8x128xi32>
      %335 = arith.cmpi eq, %331, %334 : vector<8x128xi32>
      %336 = arith.andi %333, %335 : vector<8x128xi1>
      %cst_117 = arith.constant 0.000000e+00 : f32
      %337 = vector.broadcast %329 : f32 to vector<8x128xf32>
      %338 = vector.broadcast %cst_117 : f32 to vector<8x128xf32>
      %339 = arith.select %336, %337, %338 : vector<8x128xi1>, vector<8x128xf32>
      %c0_118 = arith.constant 0 : index
      %c0_119 = arith.constant 0 : index
      %340 = vector.load %arg9[%c0_118, %c0_119] : memref<8x128xf32, #tpu.memory_space<vmem>>, vector<8x128xf32>
      tpu.vector_store %arg9[%c0_118, %c0_119], %339 {strides = array<i32>} : memref<8x128xf32, #tpu.memory_space<vmem>>, vector<8x128xf32>,
    } else {
    }
    return
  }
  func.func @transform_0(%arg0: i32, %arg1: i32) -> (i32, i32) {
    %c1_i32 = arith.constant 1 : i32
    %0 = arith.muli %arg0, %c1_i32 : i32
    %1 = arith.addi %0, %arg1 : i32
    %c0_i32 = arith.constant 0 : i32
    %c0_i32_0 = arith.constant 0 : i32
    return %1, %c0_i32 : i32, i32
  }
  func.func @transform_1(%arg0: i32, %arg1: i32) -> (i32, i32) {
    %c1_i32 = arith.constant 1 : i32
    %0 = arith.muli %arg0, %c1_i32 : i32
    %1 = arith.addi %0, %arg1 : i32
    %c0_i32 = arith.constant 0 : i32
    %c0_i32_0 = arith.constant 0 : i32
    return %1, %c0_i32 : i32, i32
  }
  func.func @transform_2(%arg0: i32, %arg1: i32) -> (i32, i32) {
    %c1_i32 = arith.constant 1 : i32
    %0 = arith.muli %arg0, %c1_i32 : i32
    %1 = arith.addi %0, %arg1 : i32
    %c0_i32 = arith.constant 0 : i32
    %c0_i32_0 = arith.constant 0 : i32
    return %c0_i32, %1 : i32, i32
  }
  func.func @transform_3(%arg0: i32, %arg1: i32) -> (i32, i32) {
    %c0_i32 = arith.constant 0 : i32
    %c0_i32_0 = arith.constant 0 : i32
    %c0_i32_1 = arith.constant 0 : i32
    return %c0_i32, %c0_i32_0 : i32, i32
  }
  func.func @transform_4(%arg0: i32, %arg1: i32) -> (i32, i32) {
    %c0_i32 = arith.constant 0 : i32
    %c0_i32_0 = arith.constant 0 : i32
    %c0_i32_1 = arith.constant 0 : i32
    return %c0_i32, %c0_i32_0 : i32, i32
  }
  func.func @transform_5(%arg0: i32, %arg1: i32) -> (i32, i32) {
    %c0_i32 = arith.constant 0 : i32
    %c0_i32_0 = arith.constant 0 : i32
    %c0_i32_1 = arith.constant 0 : i32
    return %c0_i32, %c0_i32_0 : i32, i32
  }
  func.func @transform_6(%arg0: i32, %arg1: i32) -> (i32, i32) {
    %c0_i32 = arith.constant 0 : i32
    %c0_i32_0 = arith.constant 0 : i32
    %c0_i32_1 = arith.constant 0 : i32
    return %c0_i32, %c0_i32_0 : i32, i32
  }
  func.func @transform_7(%arg0: i32, %arg1: i32) -> (i32, i32) {
    %c0_i32 = arith.constant 0 : i32
    %c0_i32_0 = arith.constant 0 : i32
    return %arg0, %c0_i32 : i32, i32
  }
}

</mosaic_0001>

<bundles_post_ra>
// kernel: tpu_custom_call.1
= control target key start
LH: loop header
LB: loop body
LE: loop exit
PB: predicated region body
PF: predicated region fallthrough
CT: control target
= control target key end

     0   :  { %12 = vsyncpa [#allocation9], 0  ;;  %s16806_s0 = inlined_call_operand.vmem [shape: f32[256,32], index: 0, kind: input, shape index: {}]   ;;  %s16807_s1 = inlined_call_operand.vmem [shape: f32[256,7], index: 1, kind: input, shape index: {}]   ;;  %s16808_s2 = inlined_call_operand.vmem [shape: f32[7,256], index: 2, kind: input, shape index: {}]   ;;  %s16809_s3 = inlined_call_operand.vmem [shape: f32[32,256], index: 3, kind: input, shape index: {}]   ;;  %s16810_s4 = inlined_call_operand.vmem [shape: f32[1,256], index: 4, kind: input, shape index: {}]   ;;  %s16811_s5 = inlined_call_operand.vmem [shape: f32[256,7], index: 5, kind: input, shape index: {}]   ;;  %s16812_s6 = inlined_call_operand.vmem [shape: f32[7,256], index: 6, kind: input, shape index: {}]   ;;  %s16813_s7 = inlined_call_operand.hbm [shape: f32[16,128], index: 7, kind: output, shape index: {}]  }
   0x1   :  { %14 = vsyncpa [#allocation9 + $0x1], 0  ;;  %s10069_s24 = smov 0   ;;  %s10071_s25 = smov 0  }
   0x2   :  { %s10073_s26 = smov 0   ;;  %s10075_s27 = smov 0  }
   0x3   :  { %s10077_s28 = smov 0   ;;  %s10079_s29 = smov 0  }
   0x4 LB: > { %s8524_s30 = sadd.s32 4294967295, %s9994_s29   ;;  %s8525_s8 = sadd.s32 4294967294, %s9994_s29   ;;  %s9994_s29 = sphi %s10079_s29, %s20_s29   ;;  %s9990_s28 = sphi %s10077_s28, %s17620_s28   ;;  %s9986_s27 = sphi %s10075_s27, %s17619_s27   ;;  %s9982_s26 = sphi %s10073_s26, %s17618_s26   ;;  %s9978_s25 = sphi %s10071_s25, %s17617_s25   ;;  %s9974_s24 = sphi %s10069_s24, %s17616_s24  }
   0x5   : > { %s32_s9 = sadd.s32 1, %s9990_s28  ;;  %s207_s10 = sadd.s32 1, %s9982_s26 }
   0x6   : > { %p34_p0 = scmp.ge.s32.totalorder %s32_s9, 2  ;;  %p217_p1 = scmp.ne.s32.totalorder %s9982_s26, %s9978_s25 }
   0x7   : > { %p218_p2 = scmp.eq.s32.totalorder %s8524_s30, 1  ;;  %p223_p3 = scmp.ne.s32.totalorder %s9978_s25, %s9974_s24 }
   0x8   : > { %s17622_s9 = smov (%p34_p0, %s32_s9), 0  ;;  %p224_p5 = scmp.eq.s32.totalorder %s8525_s8, 1 }
   0x9   : > { %p10109_p4 = por %p218_p2, %p217_p1  ;;  %s204_s12 = ssub.s32 %s9990_s28, %s17622_s9 }
   0xa   : > { %p8528_p6 = scmp.ge.s32.totalorder %s9994_s29, 1  ;;  %p205_p7 = scmp.eq.s32.totalorder %s204_s12, 0 }
   0xb   : > { %p10116_p8 = por %p224_p5, %p223_p3  ;;  %p285_p9 = scmp.lt.s32.totalorder %s9994_s29, 3 }
   0xc   : > { %s10122_s14 = scalar_select %p205_p7, %s9982_s26, %s207_s10  }
   0xd   : > { %p286_p10 = pnand %p8528_p6, %p285_p9 }
   0xf   : > { %289 = sbr.rel (%p286_p10) target bundleno = 2253 (0x8cd), region = 48 }
  0x14   : > { %s326_s15 = sand.u32 1, %s9978_s25   ;;  %v402_v0 = vld [vmem:[%s16809_s3 + $0x38] sm:$0xff]  ;;  %v401_v1 = vld [vmem:[%s16809_s3 + $0x30] sm:$0xff]  ;;  %v400_v2 = vld [vmem:[%s16809_s3 + $0x28] sm:$0xff]  ;;  %s8530_s22 = sshll.u32 %s9986_s27, 4  ;;  %vm454_vm0 = vcmask 261120  }
  0x15   : > { %s10137_s23 = sshll.u32 %s326_s15, 3  ;;  %575 = vmatprep.subr.mxu0 %v402_v0  ;;  %9464 = vmatprep.subr.mxu1 %v402_v0  ;;  %v399_v3 = vld [vmem:[%s16809_s3 + $0x20] sm:$0xff]  ;;  %p331_p11 = scmp.lt.s32.totalorder %s8530_s22, 31  ;;  %v398_v4 = vld [vmem:[%s16809_s3 + $0x18] sm:$0xff]  ;;  %v397_v5 = vld [vmem:[%s16809_s3 + $0x10] sm:$0xff]  ;;  %v16814_v15 = vmov 0.0  }
  0x16   : > { %576 = vmatpush1.msra.mxu0 %v401_v1  ;;  %9468 = vmatpush1.msra.mxu1 %v401_v1  ;;  %v396_v6 = vld [vmem:[%s16809_s3 + $0x8] sm:$0xff]  ;;  %v395_v7 = vld [vmem:[%s16809_s3] sm:$0xff]  ;;  %v10017_v29 = vmov 0   ;;  %p346_p12 = scmp.lt.s32.totalorder %s9986_s27, 1  ;;  %s11542_s16 = sshll.u32 %s9986_s27, 7 }
  0x17   : > { %577 = vmatprep.subr.mxu0 %v400_v2  ;;  %9465 = vmatprep.subr.mxu1 %v400_v2  ;;  %s17624_s22 = smov (!%p331_p11, %s8530_s22), 31 }
  0x18   : > { %578 = vmatpush1.msra.mxu0 %v399_v3  ;;  %9469 = vmatpush1.msra.mxu1 %v399_v3  ;;  %s8531_s30 = sshll.u32 %s17624_s22, 3 }
  0x19   : > { %579 = vmatprep.subr.mxu0 %v398_v4  ;;  %9466 = vmatprep.subr.mxu1 %v398_v4  ;;  %s10162_s12 = scalar_lea.vmem %s16806_s0, %s8531_s30  ;;  %s10243_s18 = scalar_lea.vmem %s16807_s1, %s8531_s30 }
  0x1a   : > { %580 = vmatpush1.msra.mxu0 %v397_v5  ;;  %9470 = vmatpush1.msra.mxu1 %v397_v5  ;;  %v362_v8 = vld [vmem:[%s10162_s12] sm:$0xff]  ;;  %v364_v10 = vld [vmem:[%s10162_s12 + $0x10] sm:$0xff]  ;;  %v363_v13 = vld [vmem:[%s10162_s12 + $0x8] sm:$0xff]  ;;  %s347_s30 = scalar_select %p346_p12, %s9986_s27, 1 }
  0x1b   : > { %581 = vmatprep.subr.mxu0 %v396_v6  ;;  %9467 = vmatprep.subr.mxu1 %v396_v6  ;;  %v370_v9 = vld [vmem:[%s10162_s12 + $0x40] sm:$0xff]  ;;  %v440_v11 = vmul.f32 %v364_v10, %v364_v10  ;;  %v438_v12 = vmul.f32 %v362_v8, %v362_v8  ;;  %v365_v14 = vld [vmem:[%s10162_s12 + $0x18] sm:$0xff]  ;;  %v439_v17 = vmul.f32 %v363_v13, %v363_v13  ;;  %v10172_v18 = vld [vmem:[%s10162_s12 + $0x28] sm:$0xff] }
  0x1c   : > { %582 = vmatpush1.msra.mxu0 %v395_v7  ;;  %9471 = vmatpush1.msra.mxu1 %v395_v7  ;;  %v441_v16 = vmul.f32 %v365_v14, %v365_v14  ;;  %v366_v19 = vld [vmem:[%s10162_s12 + $0x20] sm:$0xff]  ;;  %v371_v22 = vld [vmem:[%s10162_s12 + $0x48] sm:$0xff]  ;;  %v443_v25 = vmul.f32 %v10172_v18, %v10172_v18  ;;  %v10187_v27 = vld [vmem:[%s10162_s12 + $0x38] sm:$0xff]  ;;  %v446_v39 = vmul.f32 %v370_v9, %v370_v9  ;;  %s8534_s17 = sshll.u32 %s347_s30, 3 }
  0x1d   : > { %615 = vmatprep.mubr.f32.mxu0 %v16814_v15  ;;  %663 = vmatprep.mubr.f32.mxu1 %v16814_v15  ;;  %v461_v20 = vsel %vm454_vm0, %v440_v11, 0.0  ;;  %v455_v21 = vsel %vm454_vm0, %v438_v12, 0.0  ;;  %v458_v24 = vsel %vm454_vm0, %v439_v17, 0.0  ;;  %v442_v26 = vmul.f32 %v366_v19, %v366_v19  ;;  %v368_v28 = vld [vmem:[%s10162_s12 + $0x30] sm:$0xff]  ;;  %v373_v35 = vld [vmem:[%s10162_s12 + $0x58] sm:$0xff]  ;;  %v374_v40 = vld [vmem:[%s10162_s12 + $0x60] sm:$0xff]  ;;  %s10551_s30 = scalar_lea.vmem %s16808_s2, %s8534_s17 }
  0x1e   : > { %8536 = vmatmul.mubr.msk.f32.vlgmr.msra.gmra.mxu0 %vm454_vm0, %v362_v8  ;;  %8544 = vmatmul.mubr.msk.f32.vlgmr.msra.gmra.mxu1 %vm454_vm0, %v370_v9  ;;  %v464_v23 = vsel %vm454_vm0, %v441_v16, 0.0  ;;  %v372_v30 = vld [vmem:[%s10162_s12 + $0x50] sm:$0xff]  ;;  %v470_v31 = vsel %vm454_vm0, %v443_v25, 0.0  ;;  %v445_v33 = vmul.f32 %v10187_v27, %v10187_v27  ;;  %v444_v34 = vmul.f32 %v368_v28, %v368_v28  ;;  %v375_v45 = vld [vmem:[%s10162_s12 + $0x68] sm:$0xff]  ;;  %v377_v50 = vld [vmem:[%s10162_s12 + $0x78] sm:$0xff]  ;;  %s11553_s17 = ssub.s32 64, %s11542_s16 }
  0x1f   : > { %462 = vadd.xlane.f32.xlu1 %v461_v20  ;;  %456 = vadd.xlane.f32.xlu0 %v455_v21  ;;  %v467_v32 = vsel %vm454_vm0, %v442_v26, 0.0  ;;  %v447_v38 = vmul.f32 %v371_v22, %v371_v22  ;;  %v479_v42 = vsel %vm454_vm0, %v446_v39, 0.0  ;;  %v449_v43 = vmul.f32 %v373_v35, %v373_v35  ;;  %v376_v51 = vld [vmem:[%s10162_s12 + $0x70] sm:$0xff]  ;;  %v10246_v58 = vld [vmem:[%s10243_s18 + $0x8] sm:$0xff]  ;;  %v10253_v60 = vld [vmem:[%s10243_s18] sm:$0xff]  ;;  %p6953_p13 = scmp.gt.s32.totalorder %s11553_s17, 0 }
  0x20   : > { %621 = vmatprep.mubr.f32.mxu0 %v16814_v15  ;;  %669 = vmatprep.mubr.f32.mxu1 %v16814_v15  ;;  %v476_v36 = vsel %vm454_vm0, %v445_v33, 0.0  ;;  %v473_v37 = vsel %vm454_vm0, %v444_v34, 0.0  ;;  %v448_v44 = vmul.f32 %v372_v30, %v372_v30  ;;  %v451_v48 = vmul.f32 %v375_v45, %v375_v45  ;;  %v10250_v59 = vld [vmem:[%s10243_s18 + $0x10] sm:$0xff]  ;;  %v10258_v61 = vld [vmem:[%s10243_s18 + $0x18] sm:$0xff]  ;;  %v10261_v62 = vld [vmem:[%s10243_s18 + $0x48] sm:$0xff]  ;;  %p9016_p0 = scmp.lt.s32.totalorder %s11553_s17, 128 }
  0x21   : > { %9582 = vset.pattern.permute.xlu1 %v10017_v29  ;;  %9581 = vset.pattern.permute.xlu0 %v10017_v29  ;;  %v482_v41 = vsel %vm454_vm0, %v447_v38, 0.0  ;;  %v488_v46 = vsel %vm454_vm0, %v449_v43, 0.0  ;;  %v450_v49 = vmul.f32 %v374_v40, %v374_v40  ;;  %v453_v54 = vmul.f32 %v377_v50, %v377_v50  ;;  %v10266_v63 = vld [vmem:[%s10243_s18 + $0x20] sm:$0xff]  ;;  %v10269_v0 = vld [vmem:[%s10243_s18 + $0x58] sm:$0xff]  ;;  %v10274_v1 = vld [vmem:[%s10243_s18 + $0x28] sm:$0xff]  ;;  %s6954_s19 = scalar_select %p6953_p13, %s11553_s17, 0 }
  0x22   : > { %8537 = vmatmul.mubr.msk.f32.gmra.mxu0 %vm454_vm0, %v363_v13  ;;  %8545 = vmatmul.mubr.msk.f32.gmra.mxu1 %vm454_vm0, %v371_v22  ;;  %v485_v47 = vsel %vm454_vm0, %v448_v44, 0.0  ;;  %v494_v52 = vsel %vm454_vm0, %v451_v48, 0.0  ;;  %v452_v55 = vmul.f32 %v376_v51, %v376_v51  ;;  %v10277_v2 = vld [vmem:[%s10243_s18 + $0x68] sm:$0xff]  ;;  %v10282_v3 = vld [vmem:[%s10243_s18 + $0x30] sm:$0xff]  ;;  %v10285_v4 = vld [vmem:[%s10243_s18 + $0x78] sm:$0xff]  ;;  %v10018_v39 = vmov 1  }
  0x23   : > { %465 = vadd.xlane.f32.xlu1 %v464_v23  ;;  %459 = vadd.xlane.f32.xlu0 %v458_v24  ;;  %v491_v53 = vsel %vm454_vm0, %v450_v49, 0.0  ;;  %v500_v56 = vsel %vm454_vm0, %v453_v54, 0.0  ;;  %v10290_v5 = vld [vmem:[%s10243_s18 + $0x38] sm:$0xff]  ;;  %v10295_v6 = vld [vmem:[%s16811_s5 + $0x8] sm:$0xff]  ;;  %v10300_v7 = vld [vmem:[%s10243_s18 + $0x40] sm:$0xff]  ;;  %s17626_s19 = smov (!%p9016_p0, %s6954_s19), 128 }
  0x24   : > { %627 = vmatprep.mubr.f32.mxu0 %v16814_v15  ;;  %675 = vmatprep.mubr.f32.mxu1 %v16814_v15  ;;  %v497_v57 = vsel %vm454_vm0, %v452_v55, 0.0  ;;  %v10305_v8 = vld [vmem:[%s16811_s5 + $0x18] sm:$0xff]  ;;  %v10310_v9 = vld [vmem:[%s10243_s18 + $0x50] sm:$0xff]  ;;  %v10320_v11 = vld [vmem:[%s10243_s18 + $0x60] sm:$0xff]  ;;  %p9021_p1 = scmp.le.s32.totalorder %s17626_s19, 0 }
  0x25   : > { %v10325_v12 = vld [vmem:[%s16811_s5 + $0x38] sm:$0xff]  ;;  %v10330_v13 = vld [vmem:[%s10243_s18 + $0x70] sm:$0xff]  ;;  %v10342_v16 = vld [vmem:[%s16811_s5] sm:$0xff] }
  0x26   : > { %8538 = vmatmul.mubr.msk.f32.gmra.mxu0 %vm454_vm0, %v364_v10  ;;  %8546 = vmatmul.mubr.msk.f32.gmra.mxu1 %vm454_vm0, %v372_v30  ;;  %v10315_v10 = vld [vmem:[%s16811_s5 + $0x28] sm:$0xff]  ;;  %v10347_v17 = vld [vmem:[%s16811_s5 + $0x58] sm:$0xff]  ;;  %v10366_v20 = vld [vmem:[%s16811_s5 + $0x20] sm:$0xff] }
  0x27   : > { %471 = vadd.xlane.f32.xlu1 %v470_v31  ;;  %468 = vadd.xlane.f32.xlu0 %v467_v32  ;;  %v10371_v21 = vld [vmem:[%s16811_s5 + $0x78] sm:$0xff]  ;;  %v10378_v22 = vld [vmem:[%s16811_s5 + $0x30] sm:$0xff]  ;;  %v10383_v23 = vld [vmem:[%s16811_s5 + $0x88] sm:$0xff] }
  0x28   : > { %633 = vmatprep.mubr.f32.mxu0 %v16814_v15  ;;  %681 = vmatprep.mubr.f32.mxu1 %v16814_v15  ;;  %v10390_v24 = vld [vmem:[%s16811_s5 + $0x40] sm:$0xff]  ;;  %v10395_v25 = vld [vmem:[%s16811_s5 + $0x98] sm:$0xff]  ;;  %v10402_v26 = vld [vmem:[%s16811_s5 + $0x50] sm:$0xff] }
  0x29   : > { %v427_v29 = vld [vmem:[%s16811_s5 + $0xb8] sm:$0xff]  ;;  %v10420_v30 = vld [vmem:[%s16811_s5 + $0x70] sm:$0xff]  ;;  %v429_v31 = vld [vmem:[%s16811_s5 + $0xc8] sm:$0xff] }
  0x2a   : > { %8539 = vmatmul.mubr.msk.f32.gmra.mxu0 %vm454_vm0, %v365_v14  ;;  %8547 = vmatmul.mubr.msk.f32.gmra.mxu1 %vm454_vm0, %v373_v35  ;;  %v10335_v14 = vld [vmem:[%s16811_s5 + $0x48] sm:$0xff]  ;;  %v10429_v32 = vld [vmem:[%s16811_s5 + $0x80] sm:$0xff]  ;;  %v431_v33 = vld [vmem:[%s16811_s5 + $0xd8] sm:$0xff] }
  0x2b   : > { %477 = vadd.xlane.f32.xlu1 %v476_v36  ;;  %474 = vadd.xlane.f32.xlu0 %v473_v37  ;;  %v10438_v34 = vld [vmem:[%s16811_s5 + $0x90] sm:$0xff]  ;;  %v433_v35 = vld [vmem:[%s16811_s5 + $0xe8] sm:$0xff]  ;;  %v424_v36 = vld [vmem:[%s16811_s5 + $0xa0] sm:$0xff] }
  0x2c   : > { %639 = vmatprep.mubr.f32.mxu0 %v16814_v15  ;;  %687 = vmatprep.mubr.f32.mxu1 %v16814_v15  ;;  %v435_v37 = vld [vmem:[%s16811_s5 + $0xf8] sm:$0xff]  ;;  %v426_v38 = vld [vmem:[%s16811_s5 + $0xb0] sm:$0xff]  ;;  %v432_v43 = vld [vmem:[%s16811_s5 + $0xe0] sm:$0xff] }
  0x2e   : > { %8540 = vmatmul.mubr.msk.f32.gmra.mxu0 %vm454_vm0, %v366_v19  ;;  %8548 = vmatmul.mubr.msk.f32.gmra.mxu1 %vm454_vm0, %v374_v40  ;;  %v10359_v19 = vld [vmem:[%s16811_s5 + $0x68] sm:$0xff]  ;;  %v428_v40 = vld [vmem:[%s16811_s5 + $0xc0] sm:$0xff] }
  0x2f   : > { %483 = vadd.xlane.f32.xlu1 %v482_v41  ;;  %480 = vadd.xlane.f32.xlu0 %v479_v42  ;;  %v430_v42 = vld [vmem:[%s16811_s5 + $0xd0] sm:$0xff] }
  0x30   : > { %645 = vmatprep.mubr.f32.mxu0 %v16814_v15  ;;  %693 = vmatprep.mubr.f32.mxu1 %v16814_v15 }
  0x32   : > { %8541 = vmatmul.mubr.msk.f32.gmra.mxu0 %vm454_vm0, %v10172_v18  ;;  %8549 = vmatmul.mubr.msk.f32.gmra.mxu1 %vm454_vm0, %v375_v45  ;;  %v10354_v18 = vld [vmem:[%s16811_s5 + $0x10] sm:$0xff] }
  0x33   : > { %489 = vadd.xlane.f32.xlu1 %v488_v46  ;;  %486 = vadd.xlane.f32.xlu0 %v485_v47  ;;  %v434_v45 = vld [vmem:[%s16811_s5 + $0xf0] sm:$0xff] }
  0x34   : > { %651 = vmatprep.mubr.f32.mxu0 %v16814_v15  ;;  %699 = vmatprep.mubr.f32.mxu1 %v16814_v15 }
  0x36   : > { %8542 = vmatmul.mubr.msk.f32.gmra.mxu0 %vm454_vm0, %v368_v28  ;;  %8550 = vmatmul.mubr.msk.f32.gmra.mxu1 %vm454_vm0, %v376_v51  ;;  %v10411_v28 = vld [vmem:[%s16811_s5 + $0x60] sm:$0xff] }
  0x37   : > { %495 = vadd.xlane.f32.xlu1 %v494_v52  ;;  %492 = vadd.xlane.f32.xlu0 %v491_v53  ;;  %v16925_v52 = vmov 0 }
  0x38   : > { %657 = vmatprep.mubr.f32.mxu0 %v16814_v15  ;;  %705 = vmatprep.mubr.f32.mxu1 %v16814_v15 }
  0x3a   : > { %8543 = vmatmul.mubr.msk.f32.gmra.mxu0 %vm454_vm0, %v10187_v27  ;;  %8551 = vmatmul.mubr.msk.f32.gmra.mxu1 %vm454_vm0, %v377_v50  ;;  %v425_v27 = vld [vmem:[%s16811_s5 + $0xa8] sm:$0xff]  ;;  %v16816_v50 = vlaneseq }
  0x3b   : > { %501 = vadd.xlane.f32.xlu1 %v500_v56  ;;  %498 = vadd.xlane.f32.xlu0 %v497_v57 }
  0x3c   : > { %vm10487_vm1 = vcmp.lt.s32.totalorder %v16816_v50, 256 }
  0x3d   : > { %v16926_v52 = vsel %vm10487_vm1, 4294967295, %v16925_v52  ;;  %361 = vst.msk [vmem:[#allocation2] sm:$0x3] %vm10487_vm1, %v16814_v15 }
  0x3e   : > { %16927 = vst [vmem:[#allocation11_spill] sm:$0xff] %v16926_v52 }
  0x4c   : > { %1569 = vperm.xlu1 %9582, %v10246_v58  }
  0x50   : > { %1574 = vperm.xlu1 %9582, %v10250_v59  }
  0x51   : > { %1564 = vperm.xlu0 %9581, %v10253_v60  }
  0x54   : > { %1579 = vperm.xlu1 %9582, %v10258_v61  }
  0x55   : > { %1609 = vperm.xlu0 %9581, %v10261_v62  }
  0x58   : > { %1584 = vperm.xlu1 %9582, %v10266_v63  }
  0x59   : > { %1619 = vperm.xlu0 %9581, %v10269_v0  }
  0x5c   : > { %1589 = vperm.xlu1 %9582, %v10274_v1  }
  0x5d   : > { %1629 = vperm.xlu0 %9581, %v10277_v2  }
  0x60   : > { %1594 = vperm.xlu1 %9582, %v10282_v3  }
  0x61   : > { %1639 = vperm.xlu0 %9581, %v10285_v4  }
  0x64   : > { %1599 = vperm.xlu1 %9582, %v10290_v5  }
  0x65   : > { %1881 = vperm.xlu0 %9581, %v10295_v6  }
  0x68   : > { %1604 = vperm.xlu1 %9582, %v10300_v7  }
  0x69   : > { %1891 = vperm.xlu0 %9581, %v10305_v8  }
  0x6c   : > { %1614 = vperm.xlu1 %9582, %v10310_v9  }
  0x6d   : > { %1901 = vperm.xlu0 %9581, %v10315_v10  }
  0x70   : > { %1624 = vperm.xlu1 %9582, %v10320_v11  }
  0x71   : > { %1911 = vperm.xlu0 %9581, %v10325_v12  }
  0x74   : > { %1634 = vperm.xlu1 %9582, %v10330_v13  }
  0x75   : > { %1921 = vperm.xlu0 %9581, %v10335_v14  }
  0x78   : > { %1876 = vperm.xlu1 %9582, %v10342_v16  }
  0x79   : > { %1931 = vperm.xlu0 %9581, %v10347_v17  }
  0x7c   : > { %1886 = vperm.xlu1 %9582, %v10354_v18  }
  0x7d   : > { %1941 = vperm.xlu0 %9581, %v10359_v19  }
  0x80   : > { %1896 = vperm.xlu1 %9582, %v10366_v20  }
  0x81   : > { %1951 = vperm.xlu0 %9581, %v10371_v21  }
  0x84   : > { %1906 = vperm.xlu1 %9582, %v10378_v22  }
  0x85   : > { %1961 = vperm.xlu0 %9581, %v10383_v23  }
  0x88   : > { %1916 = vperm.xlu1 %9582, %v10390_v24  }
  0x89   : > { %1971 = vperm.xlu0 %9581, %v10395_v25  }
  0x8c   : > { %1926 = vperm.xlu1 %9582, %v10402_v26  }
  0x8d   : > { %1981 = vperm.xlu0 %9581, %v425_v27  }
  0x90   : > { %1936 = vperm.xlu1 %9582, %v10411_v28  }
  0x91   : > { %1991 = vperm.xlu0 %9581, %v427_v29  }
  0x94   : > { %1946 = vperm.xlu1 %9582, %v10420_v30  }
  0x95   : > { %2001 = vperm.xlu0 %9581, %v429_v31  }
  0x98   : > { %1956 = vperm.xlu1 %9582, %v10429_v32  }
  0x99   : > { %2011 = vperm.xlu0 %9581, %v431_v33  }
  0x9c   : > { %1966 = vperm.xlu1 %9582, %v10438_v34  }
  0x9d   : > { %2021 = vperm.xlu0 %9581, %v433_v35  }
  0xa0   : > { %1976 = vperm.xlu1 %9582, %v424_v36  }
  0xa1   : > { %2031 = vperm.xlu0 %9581, %v435_v37  }
  0xa4   : > { %1986 = vperm.xlu1 %9582, %v426_v38  }
  0xa5   : > { %9584 = vset.pattern.permute.xlu0 %v10018_v39 }
  0xa6   : > { %2331 = vperm.xlu0 %9584, %v10246_v58  }
  0xa8   : > { %1996 = vperm.xlu1 %9582, %v428_v40   ;;  %v10457_v41 = vpop.xlane.xlu1 %462  ;;  %v10472_v46 = vpop.xlane.xlu0 %456 }
  0xaa   : > { %2343 = vperm.xlu0 %9584, %v10266_v63  }
  0xac   : > { %2006 = vperm.xlu1 %9582, %v430_v42   ;;  %v10466_v44 = vpop.xlane.xlu1 %465  ;;  %v10478_v48 = vpop.xlane.xlu0 %459 }
  0xae   : > { %2351 = vperm.xlu0 %9584, %v10282_v3   ;;  %v403_v3 = vld [vmem:[%s16810_s4] sm:$0x3] }
  0xb0   : > { %2016 = vperm.xlu1 %9582, %v432_v43   ;;  %v10475_v47 = vpop.xlane.xlu1 %471  ;;  %v469_v51 = vpop.xlane.xlu0 %468 }
  0xb2   : > { %2359 = vperm.xlu0 %9584, %v10300_v7  }
  0xb4   : > { %2026 = vperm.xlu1 %9582, %v434_v45   ;;  %v10481_v49 = vpop.xlane.xlu1 %477  ;;  %v10498_v54 = vpop.xlane.xlu0 %474 }
  0xb6   : > { %2367 = vperm.xlu0 %9584, %v10310_v9  }
  0xb8   : > { %9583 = vset.pattern.permute.xlu1 %v10018_v39  ;;  %v10491_v53 = vpop.xlane.xlu1 %483  ;;  %v10505_v56 = vpop.xlane.xlu0 %480 }
  0xb9   : > { %2327 = vperm.xlu1 %9583, %v10253_v60  }
  0xba   : > { %2375 = vperm.xlu0 %9584, %v10320_v11  }
  0xbc   : > { %v10501_v55 = vpop.xlane.xlu1 %489  ;;  %v10513_v58 = vpop.xlane.xlu0 %486 }
  0xbd   : > { %2335 = vperm.xlu1 %9583, %v10250_v59   ;;  %v10518_v59 = vshrl.u32 %v16816_v50, 7 }
  0xbe   : > { %2383 = vperm.xlu0 %9584, %v10330_v13   ;;  %v394_v13 = vld [vmem:[%s10551_s30] sm:$0x7f] }
  0xbf   : > { %16928 = vst [vmem:[#allocation12_spill] sm:$0xff] %v10518_v59  ;;  %v10531_v63 = vsub.s32 0, %v10518_v59 }
  0xc0   : > { %v10508_v57 = vpop.xlane.xlu1 %495 }
  0xc1   : > { %2339 = vperm.xlu1 %9583, %v10258_v61   ;;  %v436_v61 = vld [vmem:[%s16812_s6] sm:$0x7f]  ;;  %16929 = vst [vmem:[#allocation13_spill] sm:$0xff] %v10531_v63  ;;  %v716_v9 = vrot.slane %v403_v3, %v10531_v63  ;;  %v10577_v27 = vrot.slane %v394_v13, %v10531_v63 }
  0xc2   : > { %2623 = vperm.xlu0 %9584, %v10342_v16  }
  0xc3   : > { %v10591_v31 = vadd.f32 %v716_v9, %v10478_v48  ;;  %v10594_v33 = vadd.f32 %v716_v9, %v10475_v47  ;;  %v10604_v38 = vadd.f32 %v716_v9, %v469_v51  ;;  %v10619_v43 = vadd.f32 %v716_v9, %v10498_v54 }
  0xc4   : > { %v10520_v60 = vpop.xlane.xlu1 %501 }
  0xc5   : > { %2347 = vperm.xlu1 %9583, %v10274_v1   ;;  %v10536_v1 = vpop.xlane.xlu0 %492  ;;  %16931 = vst [vmem:[#allocation15_spill] sm:$0xff] %v10604_v38  ;;  %16935 = vst [vmem:[#allocation19_spill] sm:$0xff] %v10619_v43 }
  0xc6   : > { %2631 = vperm.xlu0 %9584, %v10354_v18  }
  0xc8   : > { %v1570_v7 = vpop.permute.xlu1 %1569 }
  0xc9   : > { %2355 = vperm.xlu1 %9583, %v10290_v5   ;;  %v10543_v5 = vrot.slane %v436_v61, %v10531_v63 }
  0xca   : > { %2639 = vperm.xlu0 %9584, %v10366_v20   ;;  %v10562_v20 = vpop.xlane.xlu0 %498 }
  0xcb   : > { %v1652_v16 = vsub.f32 %v1570_v7, %v10543_v5 }
  0xcd   : > { %2363 = vperm.xlu1 %9583, %v10261_v62   ;;  %v437_v62 = vld [vmem:[%s16812_s6 + $0x8] sm:$0x7f]  ;;  %v1684_v35 = vand.u32 2147483647, %v1652_v16  ;;  %v10655_v16 = vadd.f32 %v716_v9, %v10513_v58 }
  0xce   : > { %2647 = vperm.xlu0 %9584, %v10378_v22   ;;  %v10566_v22 = vadd.f32 %v716_v9, %v10457_v41  ;;  %v1565_v45 = vpop.permute.xlu0 %1564 }
  0xcf   : > { %v1748_v61 = vmul.f32 0.5, %v1684_v35  ;;  %vm1716_vm2 = vcmp.lt.f32.partialorder %v1684_v35, 1.0 }
  0xd1   : > { %2371 = vperm.xlu1 %9583, %v10269_v0   ;;  %v10534_v0 = vsub.s32 1, %v10518_v59 }
  0xd2   : > { %2655 = vperm.xlu0 %9584, %v10390_v24   ;;  %v10573_v24 = vadd.f32 %v716_v9, %v10472_v46 }
  0xd3   : > { %16930 = vst [vmem:[#allocation14_spill] sm:$0xff] %v10534_v0  ;;  %v10556_v11 = vrot.slane %v403_v3, %v10534_v0  ;;  %v10640_v3 = vadd.f32 %v716_v9, %v10501_v55 }
  0xd5   : > { %2379 = vperm.xlu1 %9583, %v10277_v2   ;;  %v10546_v2 = vrot.slane %v437_v62, %v10531_v63  ;;  %v10588_v29 = vadd.f32 %v10556_v11, %v10472_v46  ;;  %v10602_v37 = vadd.f32 %v10556_v11, %v10475_v47  ;;  %v10607_v39 = vadd.f32 %v10556_v11, %v469_v51 }
  0xd6   : > { %2663 = vperm.xlu0 %9584, %v10402_v26   ;;  %v1575_v26 = vpop.permute.xlu1 %1574  ;;  %v10616_v42 = vadd.f32 %v10556_v11, %v10481_v49  ;;  %v10624_v46 = vadd.f32 %v716_v9, %v10491_v53  ;;  %v1650_v47 = vsub.f32 %v1565_v45, %v10543_v5  ;;  %v10637_v51 = vadd.f32 %v716_v9, %v10505_v56 }
  0xd7   : > { %v1653_v18 = vsub.f32 %v1570_v7, %v10546_v2  ;;  %16932 = vst [vmem:[#allocation16_spill] sm:$0xff] %v10607_v39  ;;  %v1654_v40 = vsub.f32 %v1575_v26, %v10543_v5  ;;  %v10648_v7 = vadd.f32 %v10556_v11, %v10505_v56  ;;  %v10667_v56 = vadd.f32 %v716_v9, %v10536_v1 }
  0xd8   : > { %16934 = vst [vmem:[#allocation18_spill] sm:$0xff] %v10616_v42  ;;  %v10674_v15 = vadd.f32 %v10556_v11, %v10536_v1 }
  0xd9   : > { %2387 = vperm.xlu1 %9583, %v10285_v4   ;;  %v10570_v4 = vadd.f32 %v10556_v11, %v10457_v41  ;;  %v1685_v36 = vand.u32 2147483647, %v1653_v18  ;;  %v10612_v41 = vadd.f32 %v716_v9, %v10481_v49  ;;  %v10634_v49 = vadd.f32 %v10556_v11, %v10491_v53  ;;  %16938 = vst [vmem:[#allocation22_spill] sm:$0xff] %v10667_v56 }
  0xda   : > { %2671 = vperm.xlu0 %9584, %v10411_v28   ;;  %v10580_v28 = vadd.f32 %v716_v9, %v10466_v44  ;;  %v1580_v62 = vpop.permute.xlu1 %1579  ;;  %v1686_v13 = vand.u32 2147483647, %v1654_v40  ;;  %v10652_v53 = vadd.f32 %v716_v9, %v10508_v57  ;;  %v10659_v18 = vadd.f32 %v10556_v11, %v10513_v58  ;;  %16940 = vst [vmem:[#allocation24_spill] sm:$0xff] %v10674_v15 }
  0xdb   : > { %16933 = vst [vmem:[#allocation17_spill] sm:$0xff] %v10612_v41  ;;  %v1780_v58 = vmul.f32 %v1748_v61, %v1684_v35  ;;  %v8571_v52 = vadd.f32 -0.5, %v1685_v36  ;;  %v1656_v1 = vsub.f32 %v1580_v62, %v10543_v5  ;;  %vm1717_vm3 = vcmp.lt.f32.partialorder %v1685_v36, 1.0 }
  0xdc   : > { %v1750_v50 = vmul.f32 0.5, %v1686_v13  ;;  %v8572_v42 = vadd.f32 -0.5, %v1686_v13  ;;  %vm1718_vm6 = vcmp.lt.f32.partialorder %v1686_v13, 1.0 }
  0xdd   : > { %2627 = vperm.xlu1 %9583, %v10295_v6   ;;  %v10584_v6 = vadd.f32 %v10556_v11, %v10466_v44  ;;  %v1655_v44 = vsub.f32 %v1575_v26, %v10546_v2 }
  0xde   : > { %2679 = vperm.xlu0 %9584, %v10420_v30   ;;  %v10598_v30 = vadd.f32 %v10556_v11, %v10478_v48  ;;  %v1651_v48 = vsub.f32 %v1565_v45, %v10546_v2  ;;  %v10670_v45 = vadd.f32 %v716_v9, %v10520_v60  ;;  %v1585_v59 = vpop.permute.xlu1 %1584 }
  0xdf   : > { %v1687_v26 = vand.u32 2147483647, %v1655_v44 }
  0xe0   : > { %v1683_v40 = vand.u32 2147483647, %v1651_v48  ;;  %16939 = vst [vmem:[#allocation23_spill] sm:$0xff] %v10670_v45  ;;  %v8570_v48 = vadd.f32 -0.5, %v1684_v35  ;;  %v1782_v35 = vmul.f32 %v1750_v50, %v1686_v13 }
  0xe1   : > { %2635 = vperm.xlu1 %9583, %v10305_v8   ;;  %v10628_v8 = vadd.f32 %v10556_v11, %v10498_v54  ;;  %v10644_v54 = vadd.f32 %v10556_v11, %v10501_v55  ;;  %v10664_v55 = vadd.f32 %v10556_v11, %v10508_v57  ;;  %v10681_v57 = vadd.f32 %v716_v9, %v10562_v20 }
  0xe2   : > { %2687 = vperm.xlu0 %9584, %v10429_v32   ;;  %v1749_v32 = vmul.f32 0.5, %v1685_v36  ;;  %v1751_v63 = vmul.f32 0.5, %v1687_v26  ;;  %v10686_v0 = vsel %vm1716_vm2, %v1780_v58, %v8570_v48  ;;  %v10692_v9 = vadd.f32 %v10556_v11, %v10562_v20 }
  0xe3   : > { %16936 = vst [vmem:[#allocation20_spill] sm:$0xff] %v10628_v8  ;;  %16937 = vst [vmem:[#allocation21_spill] sm:$0xff] %v10644_v54  ;;  %v1688_v58 = vand.u32 2147483647, %v1656_v1  ;;  %vm1715_vm5 = vcmp.lt.f32.partialorder %v1683_v40, 1.0  ;;  %vm1719_vm7 = vcmp.lt.f32.partialorder %v1687_v26, 1.0 }
  0xe4   : > { %v1781_v44 = vmul.f32 %v1749_v32, %v1685_v36  ;;  %16942 = vst [vmem:[#allocation26_spill] sm:$0xff] %v10681_v57  ;;  %v1747_v32 = vmul.f32 0.5, %v1683_v40  ;;  %16943 = vst [vmem:[#allocation27_spill] sm:$0xff] %v10686_v0  ;;  %v1658_v36 = vsub.f32 %v1585_v59, %v10543_v5  ;;  %v1783_v45 = vmul.f32 %v1751_v63, %v1687_v26 }
  0xe5   : > { %2643 = vperm.xlu1 %9583, %v10315_v10   ;;  %v1682_v10 = vand.u32 2147483647, %v1650_v47  ;;  %v1610_v47 = vpop.permute.xlu0 %1609  ;;  %16945 = vst [vmem:[#allocation29_spill] sm:$0xff] %v10692_v9  ;;  %v8573_v0 = vadd.f32 -0.5, %v1687_v26  ;;  %v10699_v9 = vpop.f32.mrf.mxu1  ;;  %vm1720_vm8 = vcmp.lt.f32.partialorder %v1688_v58, 1.0  ;;  %v8574_v13 = vadd.f32 -0.5, %v1688_v58 }
  0xe6   : > { %2695 = vperm.xlu0 %9584, %v10438_v34   ;;  %v10678_v34 = vadd.f32 %v10556_v11, %v10520_v60  ;;  %v1657_v60 = vsub.f32 %v1580_v62, %v10546_v2  ;;  %v1669_v41 = vsub.f32 %v1610_v47, %v10546_v2  ;;  %v1779_v48 = vmul.f32 %v1747_v32, %v1683_v40 }
  0xe7   : > { %v1746_v61 = vmul.f32 0.5, %v1682_v10  ;;  %v8568_v62 = vadd.f32 -0.5, %v1682_v10  ;;  %vm1714_vm4 = vcmp.lt.f32.partialorder %v1682_v10, 1.0  ;;  %v1690_v63 = vand.u32 2147483647, %v1658_v36 }
  0xe8   : > { %16941 = vst [vmem:[#allocation25_spill] sm:$0xff] %v10678_v34  ;;  %v10688_v34 = vsel %vm1717_vm3, %v1781_v44, %v8571_v52  ;;  %v1659_v52 = vsub.f32 %v1585_v59, %v10546_v2  ;;  %v1689_v11 = vand.u32 2147483647, %v1657_v60  ;;  %v10704_v59 = vsel %vm1718_vm6, %v1782_v35, %v8572_v42 }
  0xe9   : > { %2651 = vperm.xlu1 %9583, %v10325_v12   ;;  %16944 = vst [vmem:[#allocation28_spill] sm:$0xff] %v10688_v34  ;;  %v1668_v12 = vsub.f32 %v1610_v47, %v10543_v5  ;;  %v1778_v44 = vmul.f32 %v1746_v61, %v1682_v10  ;;  %v8569_v34 = vadd.f32 -0.5, %v1683_v40  ;;  %v1620_v20 = vpop.permute.xlu0 %1619  ;;  %v10701_v47 = vpop.f32.mrf.mxu0  ;;  %16946 = vst [vmem:[#allocation30_spill] sm:$0xff] %v10704_v59  ;;  %v1752_v61 = vmul.f32 0.5, %v1688_v58 }
  0xea   : > { %v10706_v1 = vsel %vm1719_vm7, %v1783_v45, %v8573_v0  ;;  %v1691_v32 = vand.u32 2147483647, %v1659_v52  ;;  %v1753_v40 = vmul.f32 0.5, %v1689_v11  ;;  %vm1721_vm9 = vcmp.lt.f32.partialorder %v1689_v11, 1.0 }
  0xeb   : > { %v1700_v50 = vand.u32 2147483647, %v1668_v12  ;;  %16947 = vst [vmem:[#allocation31_spill] sm:$0xff] %v10706_v1  ;;  %v10708_v60 = vsel %vm1714_vm4, %v1778_v44, %v8568_v62  ;;  %v10710_v10 = vsel %vm1715_vm5, %v1779_v48, %v8569_v34  ;;  %v1590_v12 = vpop.permute.xlu1 %1589  ;;  %v10713_v36 = vpop.f32.mrf.mxu0  ;;  %v8575_v0 = vadd.f32 -0.5, %v1689_v11 }
  0xec   : > { %16948 = vst [vmem:[#allocation32_spill] sm:$0xff] %v10708_v60  ;;  %16949 = vst [vmem:[#allocation33_spill] sm:$0xff] %v10710_v10  ;;  %v1754_v45 = vmul.f32 0.5, %v1690_v63  ;;  %v1673_v35 = vsub.f32 %v1620_v20, %v10546_v2  ;;  %v1784_v34 = vmul.f32 %v1752_v61, %v1688_v58  ;;  %v1755_v62 = vmul.f32 0.5, %v1691_v32 }
  0xed   : > { %2659 = vperm.xlu1 %9583, %v10335_v14   ;;  %v1701_v14 = vand.u32 2147483647, %v1669_v41  ;;  %v1764_v26 = vmul.f32 0.5, %v1700_v50  ;;  %v1672_v41 = vsub.f32 %v1620_v20, %v10543_v5  ;;  %v1660_v52 = vsub.f32 %v1590_v12, %v10543_v5  ;;  %v1630_v48 = vpop.permute.xlu0 %1629  ;;  %v10724_v20 = vpop.f32.mrf.mxu0 }
  0xee   : > { %v1661_v44 = vsub.f32 %v1590_v12, %v10546_v2  ;;  %v1785_v1 = vmul.f32 %v1753_v40, %v1689_v11  ;;  %vm1732_vm10 = vcmp.lt.f32.partialorder %v1700_v50, 1.0  ;;  %v1676_v59 = vsub.f32 %v1630_v48, %v10543_v5 }
  0xef   : > { %v1765_v42 = vmul.f32 0.5, %v1701_v14  ;;  %vm1733_vm11 = vcmp.lt.f32.partialorder %v1701_v14, 1.0  ;;  %v1796_v10 = vmul.f32 %v1764_v26, %v1700_v50  ;;  %v8586_v60 = vadd.f32 -0.5, %v1700_v50 }
  0xf0   : > { %v8587_v8 = vadd.f32 -0.5, %v1701_v14  ;;  %v1704_v43 = vand.u32 2147483647, %v1672_v41  ;;  %v1786_v61 = vmul.f32 %v1754_v45, %v1690_v63  ;;  %v1705_v15 = vand.u32 2147483647, %v1673_v35 }
  0xf1   : > { %2667 = vperm.xlu1 %9583, %v10347_v17   ;;  %v10715_v17 = vpop.f32.mrf.mxu1  ;;  %v1677_v39 = vsub.f32 %v1630_v48, %v10546_v2  ;;  %v10729_v40 = vsel %vm1720_vm8, %v1784_v34, %v8574_v13  ;;  %v1787_v12 = vmul.f32 %v1755_v62, %v1691_v32  ;;  %v1692_v38 = vand.u32 2147483647, %v1660_v52  ;;  %v10737_v48 = vpop.f32.mrf.mxu0 }
  0xf2   : > { %16950 = vst [vmem:[#allocation34_spill] sm:$0xff] %v10729_v40  ;;  %v1693_v26 = vand.u32 2147483647, %v1661_v44  ;;  %v10732_v56 = vsel %vm1721_vm9, %v1785_v1, %v8575_v0  ;;  %vm1722_vm12 = vcmp.lt.f32.partialorder %v1690_v63, 1.0  ;;  %v8576_v41 = vadd.f32 -0.5, %v1690_v63  ;;  %v1595_v0 = vpop.permute.xlu1 %1594 }
  0xf3   : > { %v10722_v57 = vpop.f32.mrf.mxu1  ;;  %16951 = vst [vmem:[#allocation35_spill] sm:$0xff] %v10732_v56  ;;  %v1708_v54 = vand.u32 2147483647, %v1676_v59  ;;  %vm1723_vm13 = vcmp.lt.f32.partialorder %v1691_v32, 1.0  ;;  %v8577_v45 = vadd.f32 -0.5, %v1691_v32  ;;  %v1768_v35 = vmul.f32 0.5, %v1704_v43 }
  0xf4   : > { %v10744_v13 = vsel %vm1722_vm12, %v1786_v61, %v8576_v41  ;;  %v1769_v11 = vmul.f32 0.5, %v1705_v15  ;;  %v1709_v1 = vand.u32 2147483647, %v1677_v39  ;;  %vm1736_vm14 = vcmp.lt.f32.partialorder %v1704_v43, 1.0  ;;  %v10752_v39 = vpop.f32.mrf.mxu0 }
  0xf5   : > { %2675 = vperm.xlu1 %9583, %v10359_v19   ;;  %v1797_v19 = vmul.f32 %v1765_v42, %v1701_v14  ;;  %v10735_v42 = vsel %vm1732_vm10, %v1796_v10, %v8586_v60  ;;  %16954 = vst [vmem:[#allocation38_spill] sm:$0xff] %v10744_v13  ;;  %v10747_v50 = vsel %vm1723_vm13, %v1787_v12, %v8577_v45  ;;  %v1756_v63 = vmul.f32 0.5, %v1692_v38 }
  0xf6   : > { %16952 = vst [vmem:[#allocation36_spill] sm:$0xff] %v10735_v42  ;;  %16955 = vst [vmem:[#allocation39_spill] sm:$0xff] %v10747_v50  ;;  %v1757_v59 = vmul.f32 0.5, %v1693_v26  ;;  %vm1737_vm15 = vcmp.lt.f32.partialorder %v1705_v15, 1.0  ;;  %v8590_v32 = vadd.f32 -0.5, %v1704_v43  ;;  %v8591_v60 = vadd.f32 -0.5, %v1705_v15  ;;  %v1600_v40 = vpop.permute.xlu1 %1599 }
  0xf7   : > { %v10742_v58 = vsel %vm1733_vm11, %v1797_v19, %v8587_v8  ;;  %v1772_v10 = vmul.f32 0.5, %v1708_v54  ;;  %v1800_v34 = vmul.f32 %v1768_v35, %v1704_v43  ;;  %vm1724_vm0 = vcmp.lt.f32.partialorder %v1692_v38, 1.0  ;;  %v1640_v19 = vpop.permute.xlu0 %1639 }
  0xf8   : > { %16953 = vst [vmem:[#allocation37_spill] sm:$0xff] %v10742_v58  ;;  %vm1725_vm2 = vcmp.lt.f32.partialorder %v1693_v26, 1.0  ;;  %v1662_v8 = vsub.f32 %v1595_v0, %v10543_v5  ;;  %v1801_v62 = vmul.f32 %v1769_v11, %v1705_v15  ;;  %v1773_v52 = vmul.f32 0.5, %v1709_v1 }
  0xf9   : > { %2683 = vperm.xlu1 %9583, %v10371_v21   ;;  %v10739_v21 = vpop.f32.mrf.mxu1  ;;  %v1663_v44 = vsub.f32 %v1595_v0, %v10546_v2  ;;  %v1788_v61 = vmul.f32 %v1756_v63, %v1692_v38  ;;  %v1789_v12 = vmul.f32 %v1757_v59, %v1693_v26  ;;  %v8579_v41 = vadd.f32 -0.5, %v1693_v26 }
  0xfa   : > { %v1680_v45 = vsub.f32 %v1640_v19, %v10543_v5  ;;  %v1804_v35 = vmul.f32 %v1772_v10, %v1708_v54  ;;  %v8594_v58 = vadd.f32 -0.5, %v1708_v54  ;;  %v771_v42 = vmul.f32 2.0, %v10699_v9 }
  0xfb   : > { %v10750_v14 = vpop.f32.mrf.mxu1  ;;  %v1681_v56 = vsub.f32 %v1640_v19, %v10546_v2  ;;  %v10760_v11 = vsel %vm1736_vm14, %v1800_v34, %v8590_v32  ;;  %vm1740_vm3 = vcmp.lt.f32.partialorder %v1708_v54, 1.0  ;;  %v1694_v0 = vand.u32 2147483647, %v1662_v8 }
  0xfc   : > { %16956 = vst [vmem:[#allocation40_spill] sm:$0xff] %v10760_v11  ;;  %v755_v50 = vmul.f32 2.0, %v10701_v47  ;;  %v10768_v59 = vsel %vm1737_vm15, %v1801_v62, %v8591_v60  ;;  %v1805_v10 = vmul.f32 %v1773_v52, %v1709_v1  ;;  %v8595_v13 = vadd.f32 -0.5, %v1709_v1 }
  0xfd   : > { %2691 = vperm.xlu1 %9583, %v10383_v23   ;;  %v8578_v23 = vadd.f32 -0.5, %v1692_v38  ;;  %v10765_v63 = vpop.f32.mrf.mxu1  ;;  %16957 = vst [vmem:[#allocation41_spill] sm:$0xff] %v10768_v59  ;;  %v1695_v9 = vand.u32 2147483647, %v1663_v44  ;;  %v10774_v43 = vsel %vm1725_vm2, %v1789_v12, %v8579_v41  ;;  %vm1741_vm4 = vcmp.lt.f32.partialorder %v1709_v1, 1.0 }
  0xfe   : > { %16959 = vst [vmem:[#allocation43_spill] sm:$0xff] %v10774_v43  ;;  %v1712_v54 = vand.u32 2147483647, %v1680_v45  ;;  %v10776_v32 = vsel %vm1740_vm3, %v1804_v35, %v8594_v58  ;;  %v803_v47 = vsub.f32 %v10637_v51, %v771_v42  ;;  %v1713_v34 = vand.u32 2147483647, %v1681_v56 }
  0xff   : > { %v10771_v19 = vsel %vm1724_vm0, %v1788_v61, %v8578_v23  ;;  %16960 = vst [vmem:[#allocation44_spill] sm:$0xff] %v10776_v32  ;;  %v1664_v15 = vsub.f32 %v1600_v40, %v10543_v5  ;;  %v1758_v60 = vmul.f32 0.5, %v1694_v0  ;;  %v787_v8 = vsub.f32 %v10573_v24, %v755_v50  ;;  %v10783_v23 = vpop.f32.mrf.mxu1  ;;  %v1882_v50 = vpop.permute.xlu0 %1881 }
 0x100   : > { %16958 = vst [vmem:[#allocation42_spill] sm:$0xff] %v10771_v19  ;;  %v756_v62 = vmul.f32 2.0, %v10713_v36  ;;  %v1665_v38 = vsub.f32 %v1600_v40, %v10546_v2  ;;  %v10787_v1 = vsel %vm1741_vm4, %v1805_v10, %v8595_v13  ;;  %vm1726_vm5 = vcmp.lt.f32.partialorder %v1694_v0, 1.0 }
 0x101   : > { %2699 = vperm.xlu1 %9583, %v10395_v25   ;;  %v10763_v25 = vpop.f32.mrf.mxu0  ;;  %16961 = vst [vmem:[#allocation45_spill] sm:$0xff] %v10787_v1  ;;  %vm1727_vm6 = vcmp.lt.f32.partialorder %v1695_v9, 1.0  ;;  %v1759_v58 = vmul.f32 0.5, %v1695_v9  ;;  %v8580_v51 = vadd.f32 -0.5, %v1694_v0  ;;  %v8581_v56 = vadd.f32 -0.5, %v1695_v9  ;;  %v10798_v35 = vpop.f32.mrf.mxu1 }
 0x102   : > { %v1776_v42 = vmul.f32 0.5, %v1712_v54  ;;  %v772_v52 = vmul.f32 2.0, %v10715_v17  ;;  %v10790_v44 = vmax.f32 %v803_v47, 0.0  ;;  %v1777_v24 = vmul.f32 0.5, %v1713_v34 }
 0x103   : > { %v10785_v26 = vpop.f32.mrf.mxu0  ;;  %v1696_v36 = vand.u32 2147483647, %v1664_v15  ;;  %v773_v40 = vmul.f32 2.0, %v10722_v57  ;;  %v1790_v61 = vmul.f32 %v1758_v60, %v1694_v0  ;;  %v10793_v12 = vmax.f32 %v787_v8, 0.0 }
 0x104   : > { %v788_v13 = vsub.f32 %v10588_v29, %v756_v62  ;;  %v1697_v41 = vand.u32 2147483647, %v1665_v38  ;;  %v1791_v10 = vmul.f32 %v1759_v58, %v1695_v9  ;;  %vm1744_vm7 = vcmp.lt.f32.partialorder %v1712_v54, 1.0  ;;  %v1605_v62 = vpop.permute.xlu1 %1604 }
 0x105   : > { %v10796_v45 = vpop.f32.mrf.mxu0  ;;  %vm1745_vm8 = vcmp.lt.f32.partialorder %v1713_v34, 1.0  ;;  %v2039_v17 = vsub.f32 %v1882_v50, %v10577_v27  ;;  %v1808_v47 = vmul.f32 %v1776_v42, %v1712_v54  ;;  %v8598_v15 = vadd.f32 -0.5, %v1712_v54  ;;  %v10808_v50 = vpop.f32.mrf.mxu1 }
 0x106   : > { %v804_v57 = vsub.f32 %v10648_v7, %v772_v52  ;;  %v757_v60 = vmul.f32 2.0, %v10724_v20  ;;  %v1809_v8 = vmul.f32 %v1777_v24, %v1713_v34  ;;  %v8599_v1 = vadd.f32 -0.5, %v1713_v34 }
 0x107   : > { %v1760_v32 = vmul.f32 0.5, %v1696_v36  ;;  %v805_v29 = vsub.f32 %v10624_v46, %v773_v40  ;;  %9595 = vrsqrt.f32 %v10790_v44  ;;  %v10805_v38 = vmax.f32 %v788_v13, 0.0  ;;  %v10810_v42 = vpop.f32.mrf.mxu0 }
 0x108   : > { %v1761_v58 = vmul.f32 0.5, %v1697_v41  ;;  %v758_v59 = vmul.f32 2.0, %v10737_v48  ;;  %v10813_v7 = vsel %vm1726_vm5, %v1790_v61, %v8580_v51  ;;  %v10816_v20 = vsel %vm1727_vm6, %v1791_v10, %v8581_v56  ;;  %v1892_v56 = vpop.permute.xlu0 %1891 }
 0x109   : > { %16962 = vst [vmem:[#allocation46_spill] sm:$0xff] %v10813_v7  ;;  %16963 = vst [vmem:[#allocation47_spill] sm:$0xff] %v10816_v20  ;;  %9597 = vrsqrt.f32 %v10793_v12  ;;  %v2071_v46 = vand.u32 2147483647, %v2039_v17  ;;  %v10820_v52 = vsel %vm1744_vm7, %v1808_v47, %v8598_v15  ;;  %v10822_v24 = vmax.f32 %v804_v57, 0.0  ;;  %v10834_v10 = vpop.f32.mrf.mxu0 }
 0x10a   : > { %16964 = vst [vmem:[#allocation48_spill] sm:$0xff] %v10820_v52  ;;  %v789_v48 = vsub.f32 %v10591_v31, %v757_v60  ;;  %v774_v40 = vmul.f32 2.0, %v10739_v21  ;;  %v10827_v13 = vsel %vm1745_vm8, %v1809_v8, %v8599_v1  ;;  %v1792_v0 = vmul.f32 %v1760_v32, %v1696_v36  ;;  %v10836_v31 = vpop.f32.mrf.mxu1 }
 0x10b   : > { %16965 = vst [vmem:[#allocation49_spill] sm:$0xff] %v10827_v13  ;;  %v10829_v51 = vmax.f32 %v805_v29, 0.0  ;;  %v1666_v9 = vsub.f32 %v1605_v62, %v10543_v5  ;;  %9599 = vrsqrt.f32 %v10805_v38  ;;  %vm1728_vm9 = vcmp.lt.f32.partialorder %v1696_v36, 1.0 }
 0x10c   : > { %v1793_v54 = vmul.f32 %v1761_v58, %v1697_v41  ;;  %v790_v61 = vsub.f32 %v10598_v30, %v758_v59  ;;  %v8582_v21 = vadd.f32 -0.5, %v1696_v36  ;;  %v2135_v34 = vmul.f32 0.5, %v2071_v46  ;;  %v695_v29 = vpop.f32.mrf.mxu1 }
 0x10d   : > { %v1667_v1 = vsub.f32 %v1605_v62, %v10546_v2  ;;  %v2041_v32 = vsub.f32 %v1892_v56, %v10577_v27  ;;  %9601 = vrsqrt.f32 %v10822_v24  ;;  %v8583_v17 = vadd.f32 -0.5, %v1697_v41  ;;  %v647_v62 = vpop.f32.mrf.mxu0  ;;  %v1615_v56 = vpop.permute.xlu1 %1614 }
 0x10e   : > { %v10841_v47 = vmax.f32 %v789_v48, 0.0  ;;  %v806_v15 = vsub.f32 %v10634_v49, %v774_v40  ;;  %vm1729_vm10 = vcmp.lt.f32.partialorder %v1697_v41, 1.0  ;;  %v10844_v57 = vsel %vm1728_vm9, %v1792_v0, %v8582_v21 }
 0x10f   : > { %16966 = vst [vmem:[#allocation50_spill] sm:$0xff] %v10844_v57  ;;  %9603 = vrsqrt.f32 %v10829_v51  ;;  %v10847_v30 = vand.u32 2147483647, %v1666_v9  ;;  %v10849_v59 = vsel %vm1729_vm10, %v1793_v54, %v8583_v17  ;;  %v10851_v36 = vmax.f32 %v790_v61, 0.0 }
 0x110   : > { %16967 = vst [vmem:[#allocation51_spill] sm:$0xff] %v10849_v59  ;;  %v775_v60 = vmul.f32 2.0, %v10750_v14  ;;  %v759_v8 = vmul.f32 2.0, %v10752_v39  ;;  %v2167_v58 = vmul.f32 %v2135_v34, %v2071_v46  ;;  %v8601_v48 = vadd.f32 -0.5, %v2071_v46 }
 0x111   : > { %v1699_v49 = vand.u32 2147483647, %v1667_v1  ;;  %v10855_v41 = vand.u32 2147483647, %v2041_v32  ;;  %9605 = vrsqrt.f32 %v10841_v47  ;;  %vm2103_vm11 = vcmp.lt.f32.partialorder %v2071_v46, 1.0  ;;  %v649_v32 = vpop.f32.mrf.mxu0 }
 0x112   : > { %v10858_v40 = vmax.f32 %v806_v15, 0.0  ;;  %v760_v0 = vmul.f32 2.0, %v10763_v25  ;;  %v1762_v9 = vmul.f32 0.5, %v10847_v30  ;;  %v776_v14 = vmul.f32 2.0, %v10765_v63 }
 0x113   : > { %v10863_v39 = vmul.f32 2.0, %v695_v29  ;;  %v10865_v54 = vmul.f32 2.0, %v647_v62  ;;  %9607 = vrsqrt.f32 %v10851_v36  ;;  %vm1730_vm12 = vcmp.lt.f32.partialorder %v10847_v30, 1.0 }
 0x114   : > { %16968 = vst [vmem:[#allocation52_spill] sm:$0xff] %v10858_v40  ;;  %v807_v61 = vsub.f32 %v10655_v16, %v775_v60  ;;  %v791_v46 = vsub.f32 %v10566_v22, %v759_v8  ;;  %v10871_v21 = vpop.eup %9595  ;;  %v10873_v25 = vsel %vm2103_vm11, %v2167_v58, %v8601_v48  ;;  %v1763_v34 = vmul.f32 0.5, %v1699_v49  ;;  %v697_v60 = vpop.f32.mrf.mxu1 }
 0x115   : > { %16969 = vst [vmem:[#allocation53_spill] sm:$0xff] %v10873_v25  ;;  %v8584_v63 = vadd.f32 -0.5, %v10847_v30  ;;  %v2137_v1 = vmul.f32 0.5, %v10855_v41  ;;  %v792_v15 = vsub.f32 %v10570_v4, %v760_v0  ;;  %v1670_v29 = vsub.f32 %v1615_v56, %v10543_v5  ;;  %v1902_v0 = vpop.permute.xlu0 %1901 }
 0x116   : > { %v10877_v17 = vpop.eup %9597  ;;  %9609 = vrsqrt.f32 %v10858_v40  ;;  %v1794_v8 = vmul.f32 %v1762_v9, %v10847_v30  ;;  %v8585_v62 = vadd.f32 -0.5, %v1699_v49  ;;  %v808_v58 = vsub.f32 %v10659_v18, %v776_v14 }
 0x117   : > { %v10888_v48 = vmax.f32 %v807_v61, 0.0  ;;  %v10890_v25 = vmax.f32 %v791_v46, 0.0  ;;  %v1671_v4 = vsub.f32 %v1615_v56, %v10546_v2  ;;  %v10893_v13 = vmul.f32 2.0, %v649_v32  ;;  %v1625_v56 = vpop.permute.xlu1 %1624 }
 0x118   : > { %v10895_v16 = vpop.eup %9599  ;;  %v1795_v22 = vmul.f32 %v1763_v34, %v1699_v49  ;;  %v8603_v52 = vadd.f32 -0.5, %v10855_v41  ;;  %v2043_v11 = vsub.f32 %v1902_v0, %v10577_v27  ;;  %v10899_v9 = vmul.f32 2.0, %v697_v60 }
 0x119   : > { %v2169_v18 = vmul.f32 %v2137_v1, %v10855_v41  ;;  %v10902_v14 = vmax.f32 %v792_v15, 0.0  ;;  %v1702_v61 = vand.u32 2147483647, %v1670_v29  ;;  %v777_v46 = vmul.f32 2.0, %v10783_v23 }
 0x11a   : > { %v10905_v59 = vpop.eup %9601  ;;  %v10907_v32 = vmax.f32 %v808_v58, 0.0  ;;  %v761_v34 = vmul.f32 2.0, %v10785_v26  ;;  %vm1731_vm13 = vcmp.lt.f32.partialorder %v1699_v49, 1.0  ;;  %9611 = vrsqrt.f32 %v10888_v48 }
 0x11b   : > { %vm2105_vm14 = vcmp.lt.f32.partialorder %v10855_v41, 1.0  ;;  %v1703_v23 = vand.u32 2147483647, %v1671_v4  ;;  %v10920_v1 = vsel %vm1730_vm12, %v1794_v8, %v8584_v63  ;;  %v10922_v15 = vsel %vm1731_vm13, %v1795_v22, %v8585_v62 }
 0x11c   : > { %v10914_v0 = vpop.eup %9603  ;;  %16970 = vst [vmem:[#allocation54_spill] sm:$0xff] %v10920_v1  ;;  %16971 = vst [vmem:[#allocation55_spill] sm:$0xff] %v10922_v15  ;;  %9613 = vrsqrt.f32 %v10890_v25  ;;  %v2075_v26 = vand.u32 2147483647, %v2043_v11  ;;  %v1766_v29 = vmul.f32 0.5, %v1702_v61  ;;  %v809_v58 = vsub.f32 %v10640_v3, %v777_v46  ;;  %v1635_v3 = vpop.permute.xlu1 %1634  ;;  %v16974_v15 = vld [vmem:[#allocation21_spill] sm:$0xff] }
 0x11d   : > { %9615 = vrsqrt.f32 %v10902_v14  ;;  %v762_v49 = vmul.f32 2.0, %v10796_v45  ;;  %v10930_v41 = vsel %vm2105_vm14, %v2169_v18, %v8603_v52  ;;  %vm1734_vm15 = vcmp.lt.f32.partialorder %v1702_v61, 1.0  ;;  %v1912_v46 = vpop.permute.xlu0 %1911 }
 0x11e   : > { %v10928_v60 = vpop.eup %9605  ;;  %16972 = vst [vmem:[#allocation56_spill] sm:$0xff] %v10930_v41  ;;  %9617 = vrsqrt.f32 %v10907_v32  ;;  %v793_v30 = vsub.f32 %v10580_v28, %v761_v34  ;;  %vm1735_vm0 = vcmp.lt.f32.partialorder %v1703_v23, 1.0  ;;  %v1767_v63 = vmul.f32 0.5, %v1703_v23 }
 0x11f   : > { %v778_v11 = vmul.f32 2.0, %v10798_v35  ;;  %v1674_v22 = vsub.f32 %v1625_v56, %v10543_v5  ;;  %v1675_v8 = vsub.f32 %v1625_v56, %v10546_v2  ;;  %v8588_v45 = vadd.f32 -0.5, %v1702_v61 }
 0x120   : > { %v10937_v62 = vpop.eup %9607  ;;  %v8589_v4 = vadd.f32 -0.5, %v1703_v23  ;;  %v2139_v52 = vmul.f32 0.5, %v2075_v26  ;;  %v779_v18 = vmul.f32 2.0, %v10808_v50  ;;  %v1798_v57 = vmul.f32 %v1766_v29, %v1702_v61 }
 0x121   : > { %v10940_v41 = vmax.f32 %v809_v58, 0.0  ;;  %v794_v28 = vsub.f32 %v10584_v6, %v762_v49  ;;  %v2045_v35 = vsub.f32 %v1912_v46, %v10577_v27  ;;  %v10944_v34 = vmax.f32 %v793_v30, 0.0  ;;  %v16975_v49 = vld [vmem:[#allocation22_spill] sm:$0xff] }
 0x122   : > { %vm2107_vm2 = vcmp.lt.f32.partialorder %v2075_v26, 1.0  ;;  %v763_v56 = vmul.f32 2.0, %v10810_v42  ;;  %v1678_v43 = vsub.f32 %v1635_v3, %v10543_v5  ;;  %v810_v1 = vsub.f32 %v16974_v15, %v778_v11  ;;  %v16976_v15 = vld [vmem:[#allocation15_spill] sm:$0xff] }
 0x123   : > { %v10948_v19 = vpop.eup %9609  ;;  %v1706_v50 = vand.u32 2147483647, %v1674_v22  ;;  %v1707_v20 = vand.u32 2147483647, %v1675_v8  ;;  %v764_v29 = vmul.f32 2.0, %v10834_v10  ;;  %v1799_v58 = vmul.f32 %v1767_v63, %v1703_v23 }
 0x124   : > { %16973 = vst [vmem:[#allocation57_spill] sm:$0xff] %v10948_v19  ;;  %v2171_v7 = vmul.f32 %v2139_v52, %v2075_v26  ;;  %v8605_v6 = vadd.f32 -0.5, %v2075_v26  ;;  %v811_v46 = vsub.f32 %v16975_v49, %v779_v18  ;;  %v10953_v30 = vmax.f32 %v794_v28, 0.0  ;;  %v16977_v52 = vld [vmem:[#allocation16_spill] sm:$0xff] }
 0x125   : > { %v2077_v40 = vand.u32 2147483647, %v2045_v35  ;;  %v780_v42 = vmul.f32 2.0, %v10836_v31  ;;  %v1679_v5 = vsub.f32 %v1635_v3, %v10546_v2  ;;  %v10958_v19 = vsel %vm1734_vm15, %v1798_v57, %v8588_v45  ;;  %v1922_v35 = vpop.permute.xlu0 %1921 }
 0x126   : > { %9619 = vrsqrt.f32 %v10940_v41  ;;  %v795_v11 = vsub.f32 %v16976_v15, %v763_v56  ;;  %v1710_v10 = vand.u32 2147483647, %v1678_v43  ;;  %v10962_v63 = vmax.f32 %v810_v1, 0.0  ;;  %v16979_v1 = vld [vmem:[#allocation24_spill] sm:$0xff] }
 0x127   : > { %v1770_v22 = vmul.f32 0.5, %v1706_v50  ;;  %v1771_v8 = vmul.f32 0.5, %v1707_v20  ;;  %v796_v18 = vsub.f32 %v16977_v52, %v764_v29  ;;  %v10965_v28 = vpop.eup %9611  ;;  %v10968_v31 = vsel %vm1735_vm0, %v1799_v58, %v8589_v4 }
 0x128   : > { %9621 = vrsqrt.f32 %v10944_v34  ;;  %v10972_v2 = vsel %vm2107_vm2, %v2171_v7, %v8605_v6  ;;  %v10974_v57 = vmax.f32 %v811_v46, 0.0  ;;  %v2141_v43 = vmul.f32 0.5, %v2077_v40 }
 0x129   : > { %16978 = vst [vmem:[#allocation21_spill] sm:$0xff] %v10972_v2  ;;  %v10976_v61 = vpop.eup %9613  ;;  %9623 = vrsqrt.f32 %v10953_v30  ;;  %v812_v3 = vsub.f32 %v16979_v1, %v780_v42  ;;  %v1711_v45 = vand.u32 2147483647, %v1679_v5  ;;  %vm1738_vm3 = vcmp.lt.f32.partialorder %v1706_v50, 1.0 }
 0x12a   : > { %v10980_v56 = vpop.eup %9615  ;;  %v10982_v23 = vmax.f32 %v795_v11, 0.0  ;;  %v1774_v4 = vmul.f32 0.5, %v1710_v10  ;;  %v2047_v7 = vsub.f32 %v1922_v35, %v10577_v27  ;;  %9625 = vrsqrt.f32 %v10962_v63 }
 0x12b   : > { %v10985_v26 = vpop.eup %9617  ;;  %v1802_v29 = vmul.f32 %v1770_v22, %v1706_v50  ;;  %v1803_v58 = vmul.f32 %v1771_v8, %v1707_v20  ;;  %v10988_v6 = vmax.f32 %v796_v18, 0.0  ;;  %vm1739_vm4 = vcmp.lt.f32.partialorder %v1707_v20, 1.0 }
 0x12c   : > { %v8592_v49 = vadd.f32 -0.5, %v1706_v50  ;;  %v8593_v46 = vadd.f32 -0.5, %v1707_v20  ;;  %9627 = vrsqrt.f32 %v10974_v57  ;;  %v2173_v42 = vmul.f32 %v2141_v43, %v2077_v40 }
 0x12d   : > { %v8607_v5 = vadd.f32 -0.5, %v2077_v40  ;;  %v10991_v15 = vmax.f32 %v812_v3, 0.0  ;;  %v1775_v11 = vmul.f32 0.5, %v1711_v45  ;;  %9629 = vrsqrt.f32 %v10982_v23  ;;  %v1877_v3 = vpop.permute.xlu1 %1876 }
 0x12e   : > { %vm2109_vm5 = vcmp.lt.f32.partialorder %v2077_v40, 1.0  ;;  %v1806_v52 = vmul.f32 %v1774_v4, %v1710_v10  ;;  %v2079_v1 = vand.u32 2147483647, %v2047_v7  ;;  %v10995_v22 = vsel %vm1738_vm3, %v1802_v29, %v8592_v49 }
 0x12f   : > { %16980 = vst [vmem:[#allocation22_spill] sm:$0xff] %v10995_v22  ;;  %v10997_v8 = vsel %vm1739_vm4, %v1803_v58, %v8593_v46  ;;  %9631 = vrsqrt.f32 %v10988_v6  ;;  %v16982_v20 = vsub.f32 %v10652_v53, %v10863_v39  ;;  %vm1742_vm6 = vcmp.lt.f32.partialorder %v1710_v10, 1.0 }
 0x130   : > { %16981 = vst [vmem:[#allocation15_spill] sm:$0xff] %v10997_v8  ;;  %v8596_v43 = vadd.f32 -0.5, %v1710_v10  ;;  %v852_v40 = vmul.f32 %v10877_v17, %v10793_v12  ;;  %vm853_vm7 = vcmp.eq.f32.partialorder %v10793_v12, inf  ;;  %v11008_v50 = vsel %vm2109_vm5, %v2173_v42, %v8607_v5 }
 0x131   : > { %v11003_v18 = vmax.f32 %v16982_v20, 0.0  ;;  %16983 = vst [vmem:[#allocation16_spill] sm:$0xff] %v11008_v50  ;;  %9633 = vrsqrt.f32 %v10991_v15  ;;  %vm1743_vm8 = vcmp.lt.f32.partialorder %v1711_v45, 1.0  ;;  %v1807_v35 = vmul.f32 %v1775_v11, %v1711_v45 }
 0x132   : > { %v8597_v4 = vadd.f32 -0.5, %v1711_v45  ;;  %v11011_v7 = vsel %vm1742_vm6, %v1806_v52, %v8596_v43  ;;  %v16985_v53 = vsub.f32 %v10594_v33, %v10865_v54  ;;  %v2143_v10 = vmul.f32 0.5, %v2079_v1  ;;  %v701_v45 = vpop.f32.mrf.mxu1 }
 0x133   : > { %16984 = vst [vmem:[#allocation24_spill] sm:$0xff] %v11011_v7  ;;  %v11018_v29 = vpop.eup %9619  ;;  %9635 = vrsqrt.f32 %v11003_v18  ;;  %vm2111_vm9 = vcmp.lt.f32.partialorder %v2079_v1, 1.0  ;;  %v2038_v17 = vsub.f32 %v1877_v3, %v10577_v27  ;;  %v854_v58 = vsel %vm853_vm7, %v10793_v12, %v852_v40 }
 0x134   : > { %v11016_v39 = vmax.f32 %v16985_v53, 0.0  ;;  %v8609_v49 = vadd.f32 -0.5, %v2079_v1  ;;  %vm855_vm10 = vcmp.eq.f32.partialorder %v10793_v12, 0.0  ;;  %v856_v46 = vand.u32 2147483648, %v10793_v12  ;;  %v653_v12 = vpop.f32.mrf.mxu0  ;;  %v703_v7 = vpop.f32.mrf.mxu1 }
 0x135   : > { %v859_v33 = vmul.f32 %v10895_v16, %v10805_v38  ;;  %v11027_v54 = vpop.eup %9621  ;;  %v11030_v42 = vsel %vm1743_vm8, %v1807_v35, %v8597_v4  ;;  %vm860_vm11 = vcmp.eq.f32.partialorder %v10805_v38, inf  ;;  %vm862_vm12 = vcmp.eq.f32.partialorder %v10805_v38, 0.0 }
 0x136   : > { %16986 = vst [vmem:[#allocation58_spill] sm:$0xff] %v11030_v42  ;;  %v863_v5 = vand.u32 2147483648, %v10805_v38  ;;  %v11035_v11 = vpop.eup %9623  ;;  %9637 = vrsqrt.f32 %v11016_v39  ;;  %v2175_v52 = vmul.f32 %v2143_v10, %v2079_v1  ;;  %v857_v20 = vsel %vm855_vm10, %v856_v46, %v854_v58 }
 0x137   : > { %v861_v16 = vsel %vm860_vm11, %v10805_v38, %v859_v33  ;;  %v11039_v43 = vand.u32 2147483647, %v2038_v17  ;;  %v1075_v40 = vsub.f32 0.0, %v857_v20  ;;  %v964_v35 = vmul.f32 %v10871_v21, %v10790_v44  ;;  %v11043_v4 = vpop.eup %9625  ;;  %v1932_v38 = vpop.permute.xlu0 %1931 }
 0x138   : > { %v864_v3 = vsel %vm862_vm12, %v863_v5, %v861_v16  ;;  %v783_v53 = vmul.f32 2.0, %v701_v45  ;;  %vm965_vm13 = vcmp.eq.f32.partialorder %v10790_v44, inf  ;;  %vm967_vm14 = vcmp.eq.f32.partialorder %v10790_v44, 0.0 }
 0x139   : > { %v1076_v50 = vsub.f32 0.0, %v864_v3  ;;  %v11047_v10 = vpop.eup %9627  ;;  %v767_v58 = vmul.f32 2.0, %v653_v12  ;;  %v11049_v17 = vmul.f32 0.5, %v1075_v40  ;;  %v966_v46 = vsel %vm965_vm13, %v10790_v44, %v964_v35  ;;  %v655_v12 = vpop.f32.mrf.mxu0 }
 0x13a   : > { %v968_v33 = vand.u32 2147483648, %v10790_v44  ;;  %v16988_v21 = vsub.f32 %v10602_v37, %v10893_v13  ;;  %v16989_v20 = vsub.f32 %v10664_v55, %v10899_v9  ;;  %v2049_v45 = vsub.f32 %v1932_v38, %v10577_v27  ;;  %v11066_v40 = vpop.eup %9629 }
 0x13b   : > { %16987 = vst [vmem:[#allocation59_spill] sm:$0xff] %v11049_v17  ;;  %v11064_v3 = vmul.f32 0.5, %v1076_v50  ;;  %v11069_v35 = vsel %vm2111_vm9, %v2175_v52, %v8609_v49  ;;  %v2134_v2 = vmul.f32 0.5, %v11039_v43  ;;  %v768_v37 = vmul.f32 2.0, %v655_v12  ;;  %v16992_v52 = vld [vmem:[#allocation26_spill] sm:$0xff] }
 0x13c   : > { %v11056_v5 = vmax.f32 %v16988_v21, 0.0  ;;  %v11061_v16 = vmax.f32 %v16989_v20, 0.0  ;;  %16991 = vst [vmem:[#allocation61_spill] sm:$0xff] %v11069_v35  ;;  %v969_v13 = vsel %vm967_vm14, %v968_v33, %v966_v46  ;;  %v11074_v21 = vpop.eup %9631  ;;  %vm2102_vm15 = vcmp.lt.f32.partialorder %v11039_v43, 1.0  ;;  %v16993_v46 = vld [vmem:[#allocation19_spill] sm:$0xff] }
 0x13d   : > { %16990 = vst [vmem:[#allocation60_spill] sm:$0xff] %v11064_v3  ;;  %v1139_v55 = vmax.f32 %v11049_v17, %v11064_v3  ;;  %v971_v9 = vmul.f32 %v10905_v59, %v10822_v24  ;;  %vm972_vm0 = vcmp.eq.f32.partialorder %v10822_v24, inf  ;;  %v8600_v1 = vadd.f32 -0.5, %v11039_v43 }
 0x13e   : > { %vm974_vm2 = vcmp.eq.f32.partialorder %v10822_v24, 0.0  ;;  %v975_v50 = vand.u32 2147483648, %v10822_v24  ;;  %v1091_v44 = vsub.f32 0.0, %v969_v13  ;;  %v11085_v49 = vpop.eup %9633  ;;  %9639 = vrsqrt.f32 %v11056_v5  ;;  %v16994_v13 = vld [vmem:[#allocation20_spill] sm:$0xff] }
 0x13f   : > { %v815_v38 = vsub.f32 %v16992_v52, %v783_v53  ;;  %v799_v33 = vsub.f32 %v16993_v46, %v767_v58  ;;  %1140 = vmax.xlane.f32.xlu0 %v1139_v55  ;;  %v973_v59 = vsel %vm972_vm0, %v10822_v24, %v971_v9  ;;  %v2166_v20 = vmul.f32 %v2134_v2, %v11039_v43 }
 0x140   : > { %v2081_v12 = vand.u32 2147483647, %v2049_v45  ;;  %v976_v35 = vsel %vm974_vm2, %v975_v50, %v973_v59  ;;  %v880_v3 = vmul.f32 %v10976_v61, %v10890_v25  ;;  %v11094_v17 = vpop.eup %9635  ;;  %v800_v42 = vsub.f32 %v16994_v13, %v768_v37  ;;  %v707_v50 = vpop.f32.mrf.mxu1 }
 0x141   : > { %v1092_v8 = vsub.f32 0.0, %v976_v35  ;;  %v11097_v22 = vmul.f32 0.5, %v1091_v44  ;;  %vm881_vm3 = vcmp.eq.f32.partialorder %v10890_v25, inf  ;;  %v784_v53 = vmul.f32 2.0, %v703_v7  ;;  %v16997_v44 = vld [vmem:[#allocation29_spill] sm:$0xff] }
 0x142   : > { %v882_v24 = vsel %vm881_vm3, %v10890_v25, %v880_v3  ;;  %v884_v2 = vand.u32 2147483648, %v10890_v25  ;;  %v887_v58 = vmul.f32 %v10980_v56, %v10902_v14  ;;  %9641 = vrsqrt.f32 %v11061_v16  ;;  %v1887_v3 = vpop.permute.xlu1 %1886 }
 0x143   : > { %16995 = vst [vmem:[#allocation26_spill] sm:$0xff] %v11097_v22  ;;  %v11105_v61 = vmax.f32 %v815_v38, 0.0  ;;  %v11107_v45 = vmul.f32 0.5, %v1092_v8  ;;  %vm883_vm4 = vcmp.eq.f32.partialorder %v10890_v25, 0.0  ;;  %v11110_v35 = vpop.eup %9637  ;;  %v11112_v37 = vmax.f32 %v799_v33, 0.0  ;;  %v659_v38 = vpop.f32.mrf.mxu0 }
 0x144   : > { %vm2113_vm5 = vcmp.lt.f32.partialorder %v2081_v12, 1.0  ;;  %v2145_v7 = vmul.f32 0.5, %v2081_v12  ;;  %v885_v55 = vsel %vm883_vm4, %v884_v2, %v882_v24  ;;  %v11116_v9 = vsel %vm2102_vm15, %v2166_v20, %v8600_v1  ;;  %v1942_v24 = vpop.permute.xlu0 %1941 }
 0x145   : > { %16996 = vst [vmem:[#allocation19_spill] sm:$0xff] %v11107_v45  ;;  %v8611_v56 = vadd.f32 -0.5, %v2081_v12  ;;  %v1163_v8 = vmax.f32 %v11097_v22, %v11107_v45  ;;  %vm888_vm6 = vcmp.eq.f32.partialorder %v10902_v14, inf  ;;  %v11121_v25 = vmax.f32 %v800_v42, 0.0 }
 0x146   : > { %v816_v52 = vsub.f32 %v16997_v44, %v784_v53  ;;  %v889_v46 = vsel %vm888_vm6, %v10902_v14, %v887_v58  ;;  %v891_v33 = vand.u32 2147483648, %v10902_v14  ;;  %v2040_v43 = vsub.f32 %v1887_v3, %v10577_v27 }
 0x147   : > { %1164 = vmax.xlane.f32.xlu0 %v1163_v8  ;;  %vm890_vm7 = vcmp.eq.f32.partialorder %v10902_v14, 0.0  ;;  %v1079_v1 = vsub.f32 0.0, %v885_v55  ;;  %v992_v59 = vmul.f32 %v10965_v28, %v10888_v48  ;;  %9643 = vrsqrt.f32 %v11105_v61 }
 0x148   : > { %v785_v42 = vmul.f32 2.0, %v707_v50  ;;  %v892_v20 = vsel %vm890_vm7, %v891_v33, %v889_v46  ;;  %vm993_vm8 = vcmp.eq.f32.partialorder %v10888_v48, inf  ;;  %v2177_v13 = vmul.f32 %v2145_v7, %v2081_v12  ;;  %v661_v33 = vpop.f32.mrf.mxu0 }
 0x149   : > { %v769_v53 = vmul.f32 2.0, %v659_v38  ;;  %v1080_v2 = vsub.f32 0.0, %v892_v20  ;;  %v994_v58 = vsel %vm993_vm8, %v10888_v48, %v992_v59  ;;  %vm995_vm9 = vcmp.eq.f32.partialorder %v10888_v48, 0.0  ;;  %v17002_v59 = vld [vmem:[#allocation17_spill] sm:$0xff] }
 0x14a   : > { %v996_v14 = vand.u32 2147483648, %v10888_v48  ;;  %v999_v3 = vmul.f32 %v10985_v26, %v10907_v32  ;;  %vm1000_vm10 = vcmp.eq.f32.partialorder %v10907_v32, inf  ;;  %v11138_v28 = vand.u32 2147483647, %v2040_v43  ;;  %v17000_v48 = vld [vmem:[#allocation23_spill] sm:$0xff] }
 0x14b   : > { %v2051_v55 = vsub.f32 %v1942_v24, %v10577_v27  ;;  %v11141_v50 = vmul.f32 0.5, %v1079_v1  ;;  %v11143_v7 = vmul.f32 0.5, %v1080_v2  ;;  %v11145_v8 = vpop.eup %9639  ;;  %9645 = vrsqrt.f32 %v11112_v37 }
 0x14c   : > { %v11148_v44 = vmax.f32 %v816_v52, 0.0  ;;  %v817_v38 = vsub.f32 %v17000_v48, %v785_v42  ;;  %v997_v46 = vsel %vm995_vm9, %v996_v14, %v994_v58  ;;  %v11152_v26 = vsel %vm2113_vm5, %v2177_v13, %v8611_v56  ;;  %v1952_v56 = vpop.permute.xlu0 %1951  ;;  %v1897_v14 = vpop.permute.xlu1 %1896 }
 0x14d   : > { %16998 = vst [vmem:[#allocation20_spill] sm:$0xff] %v11141_v50  ;;  %16999 = vst [vmem:[#allocation29_spill] sm:$0xff] %v11143_v7  ;;  %v1145_v43 = vmax.f32 %v11141_v50, %v11143_v7  ;;  %v1001_v1 = vsel %vm1000_vm10, %v10907_v32, %v999_v3  ;;  %vm1002_vm11 = vcmp.eq.f32.partialorder %v10907_v32, 0.0  ;;  %9647 = vrsqrt.f32 %v11121_v25 }
 0x14e   : > { %17001 = vst [vmem:[#allocation23_spill] sm:$0xff] %v11152_v26  ;;  %v801_v20 = vsub.f32 %v17002_v59, %v769_v53  ;;  %v1003_v52 = vand.u32 2147483648, %v10907_v32  ;;  %v1095_v24 = vsub.f32 0.0, %v997_v46  ;;  %v2136_v42 = vmul.f32 0.5, %v11138_v28  ;;  %v709_v59 = vpop.f32.mrf.mxu1 }
 0x14f   : > { %v2083_v12 = vand.u32 2147483647, %v2051_v55  ;;  %1146 = vmax.xlane.f32.xlu0 %v1145_v43  ;;  %v908_v13 = vmul.f32 %v11066_v40, %v10982_v23  ;;  %vm909_vm12 = vcmp.eq.f32.partialorder %v10982_v23, inf  ;;  %v11165_v2 = vpop.eup %9641  ;;  %9649 = vrsqrt.f32 %v11148_v44 }
 0x150   : > { %v11168_v58 = vmax.f32 %v817_v38, 0.0  ;;  %v770_v53 = vmul.f32 2.0, %v661_v33  ;;  %v1004_v3 = vsel %vm1002_vm11, %v1003_v52, %v1001_v1  ;;  %v11172_v55 = vmul.f32 0.5, %v1095_v24 }
 0x151   : > { %v1096_v48 = vsub.f32 0.0, %v1004_v3  ;;  %v910_v46 = vsel %vm909_vm12, %v10982_v23, %v908_v13  ;;  %vm911_vm13 = vcmp.eq.f32.partialorder %v10982_v23, 0.0  ;;  %vm2104_vm14 = vcmp.lt.f32.partialorder %v11138_v28, 1.0  ;;  %v17006_v3 = vld [vmem:[#allocation18_spill] sm:$0xff] }
 0x152   : > { %17003 = vst [vmem:[#allocation17_spill] sm:$0xff] %v11168_v58  ;;  %17004 = vst [vmem:[#allocation62_spill] sm:$0xff] %v11172_v55  ;;  %v8602_v40 = vadd.f32 -0.5, %v11138_v28  ;;  %v11178_v43 = vmax.f32 %v801_v20, 0.0  ;;  %vm2115_vm15 = vcmp.lt.f32.partialorder %v2083_v12, 1.0  ;;  %v912_v38 = vand.u32 2147483648, %v10982_v23  ;;  %v11191_v23 = vpop.permute.xlu0 %1961 }
 0x153   : > { %v2168_v33 = vmul.f32 %v2136_v42, %v11138_v28  ;;  %v2147_v32 = vmul.f32 0.5, %v2083_v12  ;;  %v8613_v1 = vadd.f32 -0.5, %v2083_v12  ;;  %v11182_v52 = vmul.f32 0.5, %v1096_v48 }
 0x154   : > { %9651 = vrsqrt.f32 %v11168_v58  ;;  %v913_v24 = vsel %vm911_vm13, %v912_v38, %v910_v46  ;;  %v915_v13 = vmul.f32 %v11074_v21, %v10988_v6  ;;  %vm916_vm0 = vcmp.eq.f32.partialorder %v10988_v6, inf  ;;  %v11188_v20 = vpop.eup %9643  ;;  %v1907_v38 = vpop.permute.xlu1 %1906 }
 0x155   : > { %17005 = vst [vmem:[#allocation63_spill] sm:$0xff] %v11182_v52  ;;  %v802_v26 = vsub.f32 %v17006_v3, %v770_v53  ;;  %v1169_v42 = vmax.f32 %v11172_v55, %v11182_v52  ;;  %vm918_vm2 = vcmp.eq.f32.partialorder %v10988_v6, 0.0  ;;  %v919_v48 = vand.u32 2147483648, %v10988_v6 }
 0x156   : > { %v786_v7 = vmul.f32 2.0, %v709_v59  ;;  %v2042_v46 = vsub.f32 %v1897_v14, %v10577_v27  ;;  %v917_v21 = vsel %vm916_vm0, %v10988_v6, %v915_v13  ;;  %v1083_v50 = vsub.f32 0.0, %v913_v24 }
 0x157   : > { %v2179_v45 = vmul.f32 %v2147_v32, %v2083_v12  ;;  %v2053_v22 = vsub.f32 %v1952_v56, %v10577_v27  ;;  %1170 = vmax.xlane.f32.xlu0 %v1169_v42  ;;  %v920_v53 = vsel %vm918_vm2, %v919_v48, %v917_v21  ;;  %v1020_v3 = vmul.f32 %v11047_v10, %v10974_v57  ;;  %v17008_v32 = vld [vmem:[#allocation25_spill] sm:$0xff] }
 0x158   : > { %9653 = vrsqrt.f32 %v11178_v43  ;;  %v1084_v52 = vsub.f32 0.0, %v920_v53  ;;  %v11203_v55 = vmul.f32 0.5, %v1083_v50  ;;  %vm1021_vm3 = vcmp.eq.f32.partialorder %v10974_v57, inf  ;;  %v9646_v14 = vpop.eup %9645  ;;  %v11224_v53 = vpop.permute.xlu0 %1971 }
 0x159   : > { %v11206_v59 = vmax.f32 %v802_v26, 0.0  ;;  %v1022_v6 = vsel %vm1021_vm3, %v10974_v57, %v1020_v3  ;;  %vm1023_vm4 = vcmp.eq.f32.partialorder %v10974_v57, 0.0  ;;  %v1024_v56 = vand.u32 2147483648, %v10974_v57 }
 0x15a   : > { %17007 = vst [vmem:[#allocation18_spill] sm:$0xff] %v11203_v55  ;;  %v818_v24 = vsub.f32 %v17008_v32, %v786_v7  ;;  %v2074_v13 = vand.u32 2147483647, %v2042_v46  ;;  %v2044_v10 = vsub.f32 %v1907_v38, %v10577_v27  ;;  %v11213_v42 = vmul.f32 0.5, %v1084_v52  ;;  %v9648_v50 = vpop.eup %9647  ;;  %v1917_v46 = vpop.permute.xlu1 %1916 }
 0x15b   : > { %v11217_v48 = vsel %vm2104_vm14, %v2168_v33, %v8602_v40  ;;  %v11220_v26 = vsel %vm2115_vm15, %v2179_v45, %v8613_v1  ;;  %v11222_v21 = vand.u32 2147483647, %v2053_v22  ;;  %v1025_v57 = vsel %vm1023_vm4, %v1024_v56, %v1022_v6 }
 0x15c   : > { %17009 = vst [vmem:[#allocation25_spill] sm:$0xff] %v11213_v42  ;;  %17010 = vst [vmem:[#allocation64_spill] sm:$0xff] %v11220_v26  ;;  %v2055_v7 = vsub.f32 %v11191_v23, %v10577_v27  ;;  %v1151_v52 = vmax.f32 %v11203_v55, %v11213_v42  ;;  %v1027_v28 = vmul.f32 %v11085_v49, %v10991_v15  ;;  %vm1028_vm5 = vcmp.eq.f32.partialorder %v10991_v15, inf  ;;  %v9650_v12 = vpop.eup %9649 }
 0x15d   : > { %9655 = vrsqrt.f32 %v11206_v59  ;;  %vm1030_vm6 = vcmp.eq.f32.partialorder %v10991_v15, 0.0  ;;  %v1031_v22 = vand.u32 2147483648, %v10991_v15  ;;  %v1099_v45 = vsub.f32 0.0, %v1025_v57  ;;  %v11248_v57 = vpop.permute.xlu0 %1981 }
 0x15e   : > { %v11236_v40 = vmax.f32 %v818_v24, 0.0  ;;  %v2138_v33 = vmul.f32 0.5, %v2074_v13  ;;  %v11238_v1 = vand.u32 2147483647, %v2044_v10  ;;  %1152 = vmax.xlane.f32.xlu0 %v1151_v52  ;;  %v1029_v23 = vsel %vm1028_vm5, %v10991_v15, %v1027_v28 }
 0x15f   : > { %vm2106_vm7 = vcmp.lt.f32.partialorder %v2074_v13, 1.0  ;;  %v2046_v49 = vsub.f32 %v1917_v46, %v10577_v27  ;;  %v1032_v38 = vsel %vm1030_vm6, %v1031_v22, %v1029_v23  ;;  %v936_v3 = vmul.f32 %v9646_v14, %v11112_v37  ;;  %v1927_v22 = vpop.permute.xlu1 %1926 }
 0x160   : > { %17011 = vst [vmem:[#allocation65_spill] sm:$0xff] %v11236_v40  ;;  %v8604_v6 = vadd.f32 -0.5, %v2074_v13  ;;  %v1100_v56 = vsub.f32 0.0, %v1032_v38  ;;  %v11243_v32 = vmul.f32 0.5, %v1099_v45  ;;  %vm937_vm8 = vcmp.eq.f32.partialorder %v11112_v37, inf }
 0x161   : > { %v11246_v24 = vpop.eup %9651  ;;  %v938_v10 = vsel %vm937_vm8, %v11112_v37, %v936_v3  ;;  %vm939_vm9 = vcmp.eq.f32.partialorder %v11112_v37, 0.0  ;;  %v940_v15 = vand.u32 2147483648, %v11112_v37  ;;  %v943_v46 = vmul.f32 %v9648_v50, %v11121_v25 }
 0x162   : > { %17012 = vst [vmem:[#allocation66_spill] sm:$0xff] %v11243_v32  ;;  %17013 = vst [vmem:[#allocation67_spill] sm:$0xff] %v11246_v24  ;;  %v2170_v52 = vmul.f32 %v2138_v33, %v2074_v13  ;;  %v2149_v14 = vmul.f32 0.5, %v11222_v21  ;;  %v11255_v28 = vand.u32 2147483647, %v2055_v7  ;;  %v11257_v45 = vmul.f32 0.5, %v1100_v56 }
 0x163   : > { %9657 = vrsqrt.f32 %v11236_v40  ;;  %vm2117_vm10 = vcmp.lt.f32.partialorder %v11222_v21, 1.0  ;;  %v8615_v23 = vadd.f32 -0.5, %v11222_v21  ;;  %v11262_v38 = vand.u32 2147483647, %v2046_v49 }
 0x164   : > { %17014 = vst [vmem:[#allocation68_spill] sm:$0xff] %v11257_v45  ;;  %v941_v3 = vsel %vm939_vm9, %v940_v15, %v938_v10  ;;  %v2140_v37 = vmul.f32 0.5, %v11238_v1  ;;  %v1175_v50 = vmax.f32 %v11243_v32, %v11257_v45  ;;  %vm944_vm11 = vcmp.eq.f32.partialorder %v11121_v25, inf }
 0x165   : > { %vm946_vm12 = vcmp.eq.f32.partialorder %v11121_v25, 0.0  ;;  %v11269_v7 = vpop.eup %9653  ;;  %vm2108_vm13 = vcmp.lt.f32.partialorder %v11238_v1, 1.0  ;;  %v8606_v33 = vadd.f32 -0.5, %v11238_v1  ;;  %v945_v56 = vsel %vm944_vm11, %v11121_v25, %v943_v46  ;;  %v11285_v46 = vpop.permute.xlu0 %1991 }
 0x166   : > { %v947_v49 = vand.u32 2147483648, %v11121_v25  ;;  %v1087_v10 = vsub.f32 0.0, %v941_v3  ;;  %v11276_v15 = vsel %vm2106_vm7, %v2170_v52, %v8604_v6  ;;  %v2181_v26 = vmul.f32 %v2149_v14, %v11222_v21  ;;  %1176 = vmax.xlane.f32.xlu0 %v1175_v50  ;;  %v1937_v6 = vpop.permute.xlu1 %1936 }
 0x167   : > { %v2151_v45 = vmul.f32 0.5, %v11255_v28  ;;  %v1048_v32 = vmul.f32 %v11188_v20, %v11105_v61  ;;  %v2142_v42 = vmul.f32 0.5, %v11262_v38  ;;  %v2057_v55 = vsub.f32 %v11224_v53, %v10577_v27 }
 0x168   : > { %v948_v25 = vsel %vm946_vm12, %v947_v49, %v945_v56  ;;  %vm1049_vm14 = vcmp.eq.f32.partialorder %v11105_v61, inf  ;;  %v2048_v13 = vsub.f32 %v1927_v22, %v10577_v27  ;;  %v11289_v14 = vmul.f32 0.5, %v1087_v10 }
 0x169   : > { %v1088_v52 = vsub.f32 0.0, %v948_v25  ;;  %v1050_v3 = vsel %vm1049_vm14, %v11105_v61, %v1048_v32  ;;  %vm1051_vm15 = vcmp.eq.f32.partialorder %v11105_v61, 0.0  ;;  %v1052_v20 = vand.u32 2147483648, %v11105_v61  ;;  %v11312_v58 = vpop.permute.xlu0 %2001 }
 0x16a   : > { %17015 = vst [vmem:[#allocation69_spill] sm:$0xff] %v11289_v14  ;;  %v1055_v50 = vmul.f32 %v9650_v12, %v11148_v44  ;;  %vm1056_vm0 = vcmp.eq.f32.partialorder %v11148_v44, inf  ;;  %v11296_v53 = vpop.eup %9655  ;;  %v2172_v56 = vmul.f32 %v2140_v37, %v11238_v1  ;;  %vm2119_vm2 = vcmp.lt.f32.partialorder %v11255_v28, 1.0 }
 0x16b   : > { %v8617_v22 = vadd.f32 -0.5, %v11255_v28  ;;  %v11301_v49 = vmul.f32 0.5, %v1088_v52  ;;  %v2183_v32 = vmul.f32 %v2151_v45, %v11255_v28  ;;  %v2174_v10 = vmul.f32 %v2142_v42, %v11262_v38 }
 0x16c   : > { %v2059_v61 = vsub.f32 %v11248_v57, %v10577_v27  ;;  %v1053_v12 = vsel %vm1051_vm15, %v1052_v20, %v1050_v3  ;;  %v2050_v25 = vsub.f32 %v1937_v6, %v10577_v27  ;;  %v1057_v37 = vsel %vm1056_vm0, %v11148_v44, %v1055_v50  ;;  %v1947_v3 = vpop.permute.xlu1 %1946 }
 0x16d   : > { %17016 = vst [vmem:[#allocation70_spill] sm:$0xff] %v11301_v49  ;;  %v1157_v40 = vmax.f32 %v11289_v14, %v11301_v49  ;;  %vm1058_vm3 = vcmp.eq.f32.partialorder %v11148_v44, 0.0  ;;  %v2089_v24 = vand.u32 2147483647, %v2057_v55  ;;  %v2080_v52 = vand.u32 2147483647, %v2048_v13 }
 0x16e   : > { %v1059_v45 = vand.u32 2147483648, %v11148_v44  ;;  %v1103_v42 = vsub.f32 0.0, %v1053_v12  ;;  %v11317_v57 = vsel %vm2117_vm10, %v2181_v26, %v8615_v23  ;;  %v11321_v6 = vsel %vm2108_vm13, %v2172_v56, %v8606_v33  ;;  %v2012_v12 = vpop.permute.xlu0 %2011 }
 0x16f   : > { %17017 = vst [vmem:[#allocation71_spill] sm:$0xff] %v11317_v57  ;;  %vm2110_vm4 = vcmp.lt.f32.partialorder %v11262_v38, 1.0  ;;  %1158 = vmax.xlane.f32.xlu0 %v1157_v40  ;;  %v866_v55 = vmul.f32 %v10928_v60, %v10841_v47  ;;  %v11328_v13 = vsel %vm2119_vm2, %v2183_v32, %v8617_v22  ;;  %v8608_v44 = vadd.f32 -0.5, %v11262_v38 }
 0x170   : > { %17018 = vst [vmem:[#allocation72_spill] sm:$0xff] %v11328_v13  ;;  %v2091_v21 = vand.u32 2147483647, %v2059_v61  ;;  %v1060_v26 = vsel %vm1058_vm3, %v1059_v45, %v1057_v37  ;;  %v11331_v23 = vpop.eup %9657  ;;  %v2082_v1 = vand.u32 2147483647, %v2050_v25  ;;  %v11333_v20 = vmul.f32 0.5, %v1103_v42  ;;  %v1957_v45 = vpop.permute.xlu1 %1956 }
 0x171   : > { %v1104_v33 = vsub.f32 0.0, %v1060_v26  ;;  %vm867_vm5 = vcmp.eq.f32.partialorder %v10841_v47, inf  ;;  %v11336_v40 = vsel %vm2110_vm4, %v2174_v10, %v8608_v44  ;;  %v2153_v50 = vmul.f32 0.5, %v2089_v24 }
 0x172   : > { %17019 = vst [vmem:[#allocation73_spill] sm:$0xff] %v11333_v20  ;;  %v2144_v60 = vmul.f32 0.5, %v2080_v52  ;;  %v870_v28 = vand.u32 2147483648, %v10841_v47  ;;  %v2061_v56 = vsub.f32 %v11285_v46, %v10577_v27  ;;  %v868_v22 = vsel %vm867_vm5, %v10841_v47, %v866_v55 }
 0x173   : > { %v11341_v38 = vmul.f32 0.5, %v1104_v33  ;;  %vm869_vm6 = vcmp.eq.f32.partialorder %v10841_v47, 0.0  ;;  %vm2121_vm7 = vcmp.lt.f32.partialorder %v2089_v24, 1.0  ;;  %v8619_v32 = vadd.f32 -0.5, %v2089_v24 }
 0x174   : > { %vm2112_vm8 = vcmp.lt.f32.partialorder %v2080_v52, 1.0  ;;  %v8610_v61 = vadd.f32 -0.5, %v2080_v52  ;;  %v2155_v10 = vmul.f32 0.5, %v2091_v21  ;;  %v2146_v25 = vmul.f32 0.5, %v2082_v1 }
 0x175   : > { %17020 = vst [vmem:[#allocation74_spill] sm:$0xff] %v11341_v38  ;;  %v2052_v37 = vsub.f32 %v1947_v3, %v10577_v27  ;;  %v1181_v42 = vmax.f32 %v11333_v20, %v11341_v38  ;;  %v2185_v46 = vmul.f32 %v2153_v50, %v2089_v24  ;;  %v2176_v44 = vmul.f32 %v2144_v60, %v2080_v52 }
 0x176   : > { %v871_v26 = vsel %vm869_vm6, %v870_v28, %v868_v22  ;;  %v873_v55 = vmul.f32 %v10937_v62, %v10851_v36  ;;  %v2093_v47 = vand.u32 2147483647, %v2061_v56  ;;  %vm874_vm9 = vcmp.eq.f32.partialorder %v10851_v36, inf  ;;  %v11359_v56 = vpop.permute.xlu0 %2021 }
 0x177   : > { %1182 = vmax.xlane.f32.xlu0 %v1181_v42  ;;  %vm876_vm10 = vcmp.eq.f32.partialorder %v10851_v36, 0.0  ;;  %v877_v33 = vand.u32 2147483648, %v10851_v36  ;;  %v8621_v13 = vadd.f32 -0.5, %v2091_v21  ;;  %v2063_v3 = vsub.f32 %v11312_v58, %v10577_v27 }
 0x178   : > { %v875_v57 = vsel %vm874_vm9, %v10851_v36, %v873_v55  ;;  %v1077_v50 = vsub.f32 0.0, %v871_v26  ;;  %v2187_v60 = vmul.f32 %v2155_v10, %v2091_v21  ;;  %v2178_v28 = vmul.f32 %v2146_v25, %v2082_v1  ;;  %v1967_v10 = vpop.permute.xlu1 %1966  ;;  %v17024_v55 = vld [vmem:[#allocation57_spill] sm:$0xff] }
 0x179   : > { %v2084_v22 = vand.u32 2147483647, %v2052_v37  ;;  %v878_v38 = vsel %vm876_vm10, %v877_v33, %v875_v57  ;;  %v11357_v62 = vsel %vm2121_vm7, %v2185_v46, %v8619_v32  ;;  %vm2123_vm11 = vcmp.lt.f32.partialorder %v2091_v21, 1.0 }
 0x17a   : > { %17021 = vst [vmem:[#allocation75_spill] sm:$0xff] %v11357_v62  ;;  %v1078_v42 = vsub.f32 0.0, %v878_v38  ;;  %v11361_v20 = vmul.f32 0.5, %v1077_v50  ;;  %v11364_v49 = vsel %vm2112_vm8, %v2176_v44, %v8610_v61  ;;  %v8612_v58 = vadd.f32 -0.5, %v2082_v1  ;;  %v11383_v44 = vpop.permute.xlu0 %2031 }
 0x17b   : > { %v2157_v14 = vmul.f32 0.5, %v2093_v47  ;;  %v2054_v36 = vsub.f32 %v1957_v45, %v10577_v27  ;;  %vm2114_vm12 = vcmp.lt.f32.partialorder %v2082_v1, 1.0  ;;  %v2095_v25 = vand.u32 2147483647, %v2063_v3 }
 0x17c   : > { %v11367_v57 = vmul.f32 0.5, %v1078_v42  ;;  %v978_v24 = vmul.f32 %v10914_v0, %v10829_v51  ;;  %v11371_v21 = vsel %vm2123_vm11, %v2187_v60, %v8621_v13  ;;  %v11373_v38 = vsel %vm2114_vm12, %v2178_v28, %v8612_v58 }
 0x17d   : > { %17022 = vst [vmem:[#allocation76_spill] sm:$0xff] %v11371_v21  ;;  %vm2125_vm13 = vcmp.lt.f32.partialorder %v2093_v47, 1.0  ;;  %v2148_v52 = vmul.f32 0.5, %v2084_v22  ;;  %v8623_v32 = vadd.f32 -0.5, %v2093_v47  ;;  %v2065_v61 = vsub.f32 %v2012_v12, %v10577_v27  ;;  %v17023_v12 = vld [vmem:[#allocation52_spill] sm:$0xff] }
 0x17e   : > { %v2056_v37 = vsub.f32 %v1967_v10, %v10577_v27  ;;  %v1142_v1 = vmax.f32 %v11361_v20, %v11367_v57  ;;  %v2189_v45 = vmul.f32 %v2157_v14, %v2093_v47  ;;  %v11379_v46 = vand.u32 2147483647, %v2054_v36 }
 0x17f   : > { %vm979_vm14 = vcmp.eq.f32.partialorder %v10829_v51, inf  ;;  %v982_v0 = vand.u32 2147483648, %v10829_v51  ;;  %v2159_v13 = vmul.f32 0.5, %v2095_v25  ;;  %vm981_vm15 = vcmp.eq.f32.partialorder %v10829_v51, 0.0 }
 0x180   : > { %1143 = vmax.xlane.f32.xlu1 %v1142_v1  ;;  %v980_v26 = vsel %vm979_vm14, %v10829_v51, %v978_v24  ;;  %v985_v33 = vmul.f32 %v17024_v55, %v17023_v12  ;;  %vm2116_vm0 = vcmp.lt.f32.partialorder %v2084_v22, 1.0  ;;  %v2180_v3 = vmul.f32 %v2148_v52, %v2084_v22  ;;  %v1977_v1 = vpop.permute.xlu1 %1976 }
 0x181   : > { %v983_v14 = vsel %vm981_vm15, %v982_v0, %v980_v26  ;;  %vm986_vm2 = vcmp.eq.f32.partialorder %v17023_v12, inf  ;;  %v2097_v50 = vand.u32 2147483647, %v2065_v61  ;;  %v2088_v60 = vand.u32 2147483647, %v2056_v37 }
 0x182   : > { %v987_v28 = vsel %vm986_vm2, %v17023_v12, %v985_v33  ;;  %v989_v42 = vand.u32 2147483648, %v17023_v12  ;;  %v8614_v58 = vadd.f32 -0.5, %v2084_v22  ;;  %v2150_v36 = vmul.f32 0.5, %v11379_v46 }
 0x183   : > { %vm988_vm3 = vcmp.eq.f32.partialorder %v17023_v12, 0.0  ;;  %v1093_v51 = vsub.f32 0.0, %v983_v14  ;;  %v11395_v10 = vsel %vm2125_vm13, %v2189_v45, %v8623_v32  ;;  %v2191_v24 = vmul.f32 %v2159_v13, %v2095_v25  ;;  %v11404_v32 = vpop.permute.xlu0 %2331 }
 0x184   : > { %17025 = vst [vmem:[#allocation52_spill] sm:$0xff] %v11395_v10  ;;  %v8625_v52 = vadd.f32 -0.5, %v2095_v25  ;;  %v990_v0 = vsel %vm988_vm3, %v989_v42, %v987_v28  ;;  %v11398_v61 = vsel %vm2116_vm0, %v2180_v3, %v8614_v58  ;;  %vm2127_vm4 = vcmp.lt.f32.partialorder %v2095_v25, 1.0 }
 0x185   : > { %17026 = vst [vmem:[#allocation57_spill] sm:$0xff] %v11398_v61  ;;  %v1094_v37 = vsub.f32 0.0, %v990_v0  ;;  %v894_v26 = vmul.f32 %v11027_v54, %v10944_v34  ;;  %vm2118_vm5 = vcmp.lt.f32.partialorder %v11379_v46, 1.0  ;;  %v8616_v12 = vadd.f32 -0.5, %v11379_v46 }
 0x186   : > { %v2161_v55 = vmul.f32 0.5, %v2097_v50  ;;  %v2152_v47 = vmul.f32 0.5, %v2088_v60  ;;  %v2182_v45 = vmul.f32 %v2150_v36, %v11379_v46  ;;  %v2067_v22 = vsub.f32 %v11359_v56, %v10577_v27  ;;  %v1987_v36 = vpop.permute.xlu1 %1986 }
 0x187   : > { %v11409_v13 = vmul.f32 0.5, %v1093_v51  ;;  %v11411_v25 = vmul.f32 0.5, %v1094_v37  ;;  %v11413_v33 = vsel %vm2127_vm4, %v2191_v24, %v8625_v52  ;;  %vm2129_vm6 = vcmp.lt.f32.partialorder %v2097_v50, 1.0  ;;  %v11430_v37 = vpop.permute.xlu0 %2343 }
 0x188   : > { %17027 = vst [vmem:[#allocation77_spill] sm:$0xff] %v11413_v33  ;;  %v2058_v54 = vsub.f32 %v1977_v1, %v10577_v27  ;;  %vm895_vm7 = vcmp.eq.f32.partialorder %v10944_v34, inf  ;;  %v8627_v3 = vadd.f32 -0.5, %v2097_v50  ;;  %v8618_v14 = vadd.f32 -0.5, %v2088_v60 }
 0x189   : > { %v1166_v28 = vmax.f32 %v11409_v13, %v11411_v25  ;;  %v896_v42 = vsel %vm895_vm7, %v10944_v34, %v894_v26  ;;  %v2193_v58 = vmul.f32 %v2161_v55, %v2097_v50  ;;  %v2184_v56 = vmul.f32 %v2152_v47, %v2088_v60 }
 0x18a   : > { %v898_v51 = vand.u32 2147483648, %v10944_v34  ;;  %v901_v24 = vmul.f32 %v11035_v11, %v10953_v30  ;;  %v11423_v52 = vand.u32 2147483647, %v2067_v22  ;;  %vm897_vm8 = vcmp.eq.f32.partialorder %v10944_v34, 0.0  ;;  %v9723_v34 = vld [vmem:[%s16811_s5 + $0xa0] sm:$0xff] }
 0x18b   : > { %1167 = vmax.xlane.f32.xlu1 %v1166_v28  ;;  %vm902_vm9 = vcmp.eq.f32.partialorder %v10953_v30, inf  ;;  %v905_v1 = vand.u32 2147483648, %v10953_v30  ;;  %v11428_v0 = vand.u32 2147483647, %v2058_v54  ;;  %vm904_vm10 = vcmp.eq.f32.partialorder %v10953_v30, 0.0 }
 0x18c   : > { %v899_v26 = vsel %vm897_vm8, %v898_v51, %v896_v42  ;;  %v903_v55 = vsel %vm902_vm9, %v10953_v30, %v901_v24  ;;  %vm2120_vm11 = vcmp.lt.f32.partialorder %v2088_v60, 1.0  ;;  %v2069_v11 = vsub.f32 %v11383_v44, %v10577_v27  ;;  %v9724_v51 = vld [vmem:[%s16812_s6] sm:$0x7f]  ;;  %v17031_v24 = vld [vmem:[#allocation14_spill] sm:$0xff] }
 0x18d   : > { %v906_v47 = vsel %vm904_vm10, %v905_v1, %v903_v55  ;;  %v1081_v22 = vsub.f32 0.0, %v899_v26  ;;  %2703 = vperm.xlu0 %9584, %v9723_v34   ;;  %v11441_v54 = vsel %vm2118_vm5, %v2182_v45, %v8616_v12  ;;  %v11444_v28 = vsel %vm2129_vm6, %v2193_v58, %v8627_v3  ;;  %v1997_v12 = vpop.permute.xlu1 %1996  ;;  %v9725_v58 = vld [vmem:[%s16812_s6 + $0x8] sm:$0x7f]  ;;  %v9726_v26 = vld [vmem:[%s16811_s5 + $0xb0] sm:$0xff] }
 0x18e   : > { %17028 = vst [vmem:[#allocation78_spill] sm:$0xff] %v11441_v54  ;;  %17029 = vst [vmem:[#allocation79_spill] sm:$0xff] %v11444_v28  ;;  %v11446_v42 = vsel %vm2120_vm11, %v2184_v56, %v8618_v14  ;;  %v1082_v30 = vsub.f32 0.0, %v906_v47  ;;  %v2163_v60 = vmul.f32 0.5, %v11423_v52  ;;  %v2060_v44 = vsub.f32 %v1987_v36, %v10577_v27 }
 0x18f   : > { %17030 = vst [vmem:[#allocation80_spill] sm:$0xff] %v11446_v42  ;;  %v11454_v1 = vrot.slane %v9724_v51, %v17031_v24  ;;  %v1006_v46 = vmul.f32 %v11018_v29, %v10940_v41  ;;  %v2154_v50 = vmul.f32 0.5, %v11428_v0  ;;  %v11459_v45 = vmul.f32 0.5, %v1081_v22  ;;  %v9730_v42 = vld [vmem:[%s16811_s5 + $0xf0] sm:$0xff] }
 0x190   : > { %v11461_v3 = vmul.f32 0.5, %v1082_v30  ;;  %vm1007_vm12 = vcmp.eq.f32.partialorder %v10940_v41, inf  ;;  %v11464_v14 = vand.u32 2147483647, %v2069_v11  ;;  %v11470_v56 = vrot.slane %v9725_v58, %v17031_v24  ;;  %v11480_v11 = vpop.permute.xlu0 %2351 }
 0x191   : > { %v1008_v29 = vsel %vm1007_vm12, %v10940_v41, %v1006_v46  ;;  %v1013_v36 = vmul.f32 %v11043_v4, %v10962_v63  ;;  %2711 = vperm.xlu0 %9584, %v9726_v26   ;;  %vm2131_vm13 = vcmp.lt.f32.partialorder %v11423_v52, 1.0  ;;  %v8629_v55 = vadd.f32 -0.5, %v11423_v52 }
 0x192   : > { %v1148_v47 = vmax.f32 %v11459_v45, %v11461_v3  ;;  %v1010_v22 = vand.u32 2147483648, %v10940_v41  ;;  %v2195_v34 = vmul.f32 %v2163_v60, %v11423_v52  ;;  %v11486_v30 = vand.u32 2147483647, %v2060_v44  ;;  %v9728_v52 = vld [vmem:[%s16811_s5 + $0xd0] sm:$0xff] }
 0x193   : > { %v2400_v4 = vsub.f32 %v11404_v32, %v11454_v1  ;;  %vm1009_vm14 = vcmp.eq.f32.partialorder %v10940_v41, 0.0  ;;  %v2186_v51 = vmul.f32 %v2154_v50, %v11428_v0  ;;  %v2062_v46 = vsub.f32 %v1997_v12, %v10577_v27  ;;  %v9727_v41 = vld [vmem:[%s16811_s5 + $0xc0] sm:$0xff]  ;;  %v2007_v12 = vpop.permute.xlu1 %2006 }
 0x194   : > { %1149 = vmax.xlane.f32.xlu1 %v1148_v47  ;;  %v1011_v58 = vsel %vm1009_vm14, %v1010_v22, %v1008_v29  ;;  %vm1014_vm15 = vcmp.eq.f32.partialorder %v10962_v63, inf  ;;  %v2165_v26 = vmul.f32 0.5, %v11464_v14  ;;  %v2401_v60 = vsub.f32 %v11404_v32, %v11470_v56  ;;  %v11518_v10 = vpop.permute.xlu0 %2359 }
 0x195   : > { %v1015_v44 = vsel %vm1014_vm15, %v10962_v63, %v1013_v36  ;;  %v1017_v28 = vand.u32 2147483648, %v10962_v63  ;;  %2719 = vperm.xlu0 %9584, %v9727_v41   ;;  %vm2122_vm0 = vcmp.lt.f32.partialorder %v11428_v0, 1.0  ;;  %v8620_v50 = vadd.f32 -0.5, %v11428_v0 }
 0x196   : > { %vm1016_vm2 = vcmp.eq.f32.partialorder %v10962_v63, 0.0  ;;  %v1097_v29 = vsub.f32 0.0, %v1011_v58  ;;  %v2156_v47 = vmul.f32 0.5, %v11486_v30  ;;  %v11506_v32 = vand.u32 2147483647, %v2400_v4 }
 0x197   : > { %v2406_v36 = vsub.f32 %v11430_v37, %v11454_v1  ;;  %v1018_v22 = vsel %vm1016_vm2, %v1017_v28, %v1015_v44  ;;  %v11512_v33 = vsel %vm2131_vm13, %v2195_v34, %v8629_v55  ;;  %v11514_v41 = vand.u32 2147483647, %v2062_v46 }
 0x198   : > { %17032 = vst [vmem:[#allocation81_spill] sm:$0xff] %v11512_v33  ;;  %v2407_v0 = vsub.f32 %v11430_v37, %v11470_v56  ;;  %v1098_v63 = vsub.f32 0.0, %v1018_v22  ;;  %v11520_v58 = vsel %vm2122_vm0, %v2186_v51, %v8620_v50  ;;  %v2197_v4 = vmul.f32 %v2165_v26, %v11464_v14 }
 0x199   : > { %17033 = vst [vmem:[#allocation82_spill] sm:$0xff] %v11520_v58  ;;  %v8631_v21 = vadd.f32 -0.5, %v11464_v14  ;;  %v11524_v28 = vand.u32 2147483647, %v2401_v60  ;;  %2727 = vperm.xlu0 %9584, %v9728_v52   ;;  %vm2133_vm3 = vcmp.lt.f32.partialorder %v11464_v14, 1.0  ;;  %v11530_v37 = vmul.f32 0.5, %v1097_v29  ;;  %v11548_v29 = vpop.permute.xlu1 %2016 }
 0x19a   : > { %v11532_v55 = vmul.f32 0.5, %v1098_v63  ;;  %v922_v34 = vmul.f32 %v11110_v35, %v11016_v39  ;;  %v2188_v51 = vmul.f32 %v2156_v47, %v11486_v30  ;;  %v8622_v46 = vadd.f32 -0.5, %v11486_v30 }
 0x19b   : > { %17034 = vst [vmem:[#allocation83_spill] sm:$0xff] %v11530_v37  ;;  %v2496_v26 = vmul.f32 0.5, %v11506_v32  ;;  %v11539_v60 = vand.u32 2147483647, %v2406_v36  ;;  %v2158_v14 = vmul.f32 0.5, %v11514_v41  ;;  %v2064_v50 = vsub.f32 %v2007_v12, %v10577_v27  ;;  %v9729_v12 = vld [vmem:[%s16811_s5 + $0xe0] sm:$0xff] }
 0x19c   : > { %17035 = vst [vmem:[#allocation84_spill] sm:$0xff] %v11532_v55  ;;  %v11545_v44 = vand.u32 2147483647, %v2407_v0  ;;  %v1172_v35 = vmax.f32 %v11530_v37, %v11532_v55  ;;  %v11555_v47 = vsel %vm2133_vm3, %v2197_v4, %v8631_v21  ;;  %vm2124_vm4 = vcmp.lt.f32.partialorder %v11486_v30, 1.0  ;;  %v11569_v0 = vpop.permute.xlu0 %2367 }
 0x19d   : > { %17036 = vst [vmem:[#allocation85_spill] sm:$0xff] %v11555_v47  ;;  %vm2464_vm5 = vcmp.lt.f32.partialorder %v11506_v32, 1.0  ;;  %v2497_v36 = vmul.f32 0.5, %v11524_v28  ;;  %vm923_vm6 = vcmp.eq.f32.partialorder %v11016_v39, inf  ;;  %2735 = vperm.xlu0 %9584, %v9729_v12   ;;  %vm2465_vm7 = vcmp.lt.f32.partialorder %v11524_v28, 1.0 }
 0x19e   : > { %v8634_v21 = vadd.f32 -0.5, %v11506_v32  ;;  %v8624_v22 = vadd.f32 -0.5, %v11514_v41  ;;  %1173 = vmax.xlane.f32.xlu1 %v1172_v35  ;;  %v924_v63 = vsel %vm923_vm6, %v11016_v39, %v922_v34  ;;  %v2528_v4 = vmul.f32 %v2496_v26, %v11506_v32 }
 0x19f   : > { %v8635_v52 = vadd.f32 -0.5, %v11524_v28  ;;  %v2502_v12 = vmul.f32 0.5, %v11539_v60  ;;  %v926_v47 = vand.u32 2147483648, %v11016_v39  ;;  %v2190_v33 = vmul.f32 %v2158_v14, %v11514_v41 }
 0x1a0   : > { %v2503_v58 = vmul.f32 0.5, %v11545_v44  ;;  %v2096_v62 = vand.u32 2147483647, %v2064_v50  ;;  %vm925_vm8 = vcmp.eq.f32.partialorder %v11016_v39, 0.0  ;;  %v2529_v35 = vmul.f32 %v2497_v36, %v11524_v28  ;;  %v11593_v50 = vpop.permute.xlu1 %2026  ;;  %v11603_v61 = vpop.permute.xlu0 %2375 }
 0x1a1   : > { %vm2470_vm9 = vcmp.lt.f32.partialorder %v11539_v60, 1.0  ;;  %v927_v34 = vsel %vm925_vm8, %v926_v47, %v924_v63  ;;  %v929_v26 = vmul.f32 %v11145_v8, %v11056_v5  ;;  %2743 = vperm.xlu0 %9584, %v9730_v42   ;;  %v8640_v14 = vadd.f32 -0.5, %v11539_v60 }
 0x1a2   : > { %v8641_v39 = vadd.f32 -0.5, %v11545_v44  ;;  %vm930_vm10 = vcmp.eq.f32.partialorder %v11056_v5, inf  ;;  %v933_v47 = vand.u32 2147483648, %v11056_v5  ;;  %v2534_v8 = vmul.f32 %v2502_v12, %v11539_v60 }
 0x1a3   : > { %v931_v36 = vsel %vm930_vm10, %v11056_v5, %v929_v26  ;;  %vm932_vm11 = vcmp.eq.f32.partialorder %v11056_v5, 0.0  ;;  %v1085_v42 = vsub.f32 0.0, %v927_v34  ;;  %v2535_v63 = vmul.f32 %v2503_v58, %v11545_v44 }
 0x1a4   : > { %v2160_v54 = vmul.f32 0.5, %v2096_v62  ;;  %v2410_v55 = vsub.f32 %v11480_v11, %v11454_v1  ;;  %v934_v37 = vsel %vm932_vm11, %v933_v47, %v931_v36  ;;  %vm2126_vm12 = vcmp.lt.f32.partialorder %v11514_v41, 1.0  ;;  %v11629_v28 = vpop.permute.xlu1 %2327 }
 0x1a5   : > { %vm2471_vm13 = vcmp.lt.f32.partialorder %v11545_v44, 1.0  ;;  %v2411_v12 = vsub.f32 %v11480_v11, %v11470_v56  ;;  %v1086_v26 = vsub.f32 0.0, %v934_v37  ;;  %v11611_v5 = vsel %vm2124_vm4, %v2188_v51, %v8622_v46 }
 0x1a6   : > { %17037 = vst [vmem:[#allocation86_spill] sm:$0xff] %v11611_v5  ;;  %v2592_v58 = vsel %vm2464_vm5, %v2528_v4, %v8634_v21  ;;  %v2593_v34 = vsel %vm2465_vm7, %v2529_v35, %v8635_v52  ;;  %v11617_v47 = vsel %vm2126_vm12, %v2190_v33, %v8624_v22  ;;  %v2598_v41 = vsel %vm2470_vm9, %v2534_v8, %v8640_v14  ;;  %v17041_v33 = vld [vmem:[#allocation27_spill] sm:$0xff]  ;;  %v17043_v4 = vld [vmem:[#allocation28_spill] sm:$0xff]  ;;  %v17045_v52 = vld [vmem:[#allocation38_spill] sm:$0xff] }
 0x1a7   : > { %17038 = vst [vmem:[#allocation87_spill] sm:$0xff] %v11617_v47  ;;  %v11621_v44 = vmul.f32 0.5, %v1085_v42  ;;  %v11623_v36 = vmul.f32 0.5, %v1086_v26  ;;  %v1034_v11 = vmul.f32 %v11094_v17, %v11003_v18  ;;  %v2599_v30 = vsel %vm2471_vm13, %v2535_v63, %v8641_v39  ;;  %v17047_v14 = vld [vmem:[#allocation39_spill] sm:$0xff] }
 0x1a8   : > { %v2192_v37 = vmul.f32 %v2160_v54, %v2096_v62  ;;  %v2442_v51 = vand.u32 2147483647, %v2410_v55  ;;  %v2066_v32 = vsub.f32 %v11548_v29, %v10577_v27  ;;  %v11632_v46 = vadd.f32 %v2592_v58, %v17041_v33  ;;  %v11644_v29 = vpop.permute.xlu0 %2383 }
 0x1a9   : > { %17039 = vst [vmem:[#allocation88_spill] sm:$0xff] %v11621_v44  ;;  %17040 = vst [vmem:[#allocation89_spill] sm:$0xff] %v11623_v36  ;;  %v2443_v60 = vand.u32 2147483647, %v2411_v12  ;;  %v2414_v21 = vsub.f32 %v11518_v10, %v11454_v1  ;;  %v1154_v22 = vmax.f32 %v11621_v44, %v11623_v36  ;;  %v11639_v17 = vadd.f32 %v2593_v34, %v17043_v4 }
 0x1aa   : > { %17042 = vst [vmem:[#allocation27_spill] sm:$0xff] %v11632_v46  ;;  %v8626_v54 = vadd.f32 -0.5, %v2096_v62  ;;  %v2415_v55 = vsub.f32 %v11518_v10, %v11470_v56  ;;  %vm1035_vm14 = vcmp.eq.f32.partialorder %v11003_v18, inf  ;;  %v11647_v35 = vadd.f32 %v2598_v41, %v17045_v52 }
 0x1ab   : > { %17044 = vst [vmem:[#allocation28_spill] sm:$0xff] %v11639_v17  ;;  %v11650_v39 = vadd.f32 %v2599_v30, %v17047_v14  ;;  %vm2128_vm15 = vcmp.lt.f32.partialorder %v2096_v62, 1.0  ;;  %1155 = vmax.xlane.f32.xlu1 %v1154_v22  ;;  %v1036_v8 = vsel %vm1035_vm14, %v11003_v18, %v1034_v11  ;;  %v2506_v63 = vmul.f32 0.5, %v2442_v51  ;;  %v11659_v30 = vpop.permute.xlu1 %2335 }
 0x1ac   : > { %17046 = vst [vmem:[#allocation38_spill] sm:$0xff] %v11647_v35  ;;  %v11653_v42 = vsel %vm2128_vm15, %v2192_v37, %v8626_v54  ;;  %v2098_v12 = vand.u32 2147483647, %v2066_v32  ;;  %v1038_v10 = vand.u32 2147483648, %v11003_v18  ;;  %v2507_v26 = vmul.f32 0.5, %v2443_v60  ;;  %v11669_v22 = vpop.permute.xlu0 %2623 }
 0x1ad   : > { %17048 = vst [vmem:[#allocation39_spill] sm:$0xff] %v11650_v39  ;;  %17049 = vst [vmem:[#allocation90_spill] sm:$0xff] %v11653_v42  ;;  %v2446_v58 = vand.u32 2147483647, %v2414_v21  ;;  %vm1037_vm0 = vcmp.eq.f32.partialorder %v11003_v18, 0.0  ;;  %v1041_v34 = vmul.f32 %v11165_v2, %v11061_v16  ;;  %vm1042_vm2 = vcmp.eq.f32.partialorder %v11061_v16, inf }
 0x1ae   : > { %v2447_v41 = vand.u32 2147483647, %v2415_v55  ;;  %v1039_v62 = vsel %vm1037_vm0, %v1038_v10, %v1036_v8  ;;  %v1045_v11 = vand.u32 2147483648, %v11061_v16  ;;  %v2418_v37 = vsub.f32 %v11569_v0, %v11454_v1 }
 0x1af   : > { %v1043_v32 = vsel %vm1042_vm2, %v11061_v16, %v1041_v34  ;;  %vm1044_vm3 = vcmp.eq.f32.partialorder %v11061_v16, 0.0  ;;  %v1101_v33 = vsub.f32 0.0, %v1039_v62  ;;  %vm2474_vm4 = vcmp.lt.f32.partialorder %v2442_v51, 1.0 }
 0x1b0   : > { %v8644_v18 = vadd.f32 -0.5, %v2442_v51  ;;  %v2419_v2 = vsub.f32 %v11569_v0, %v11470_v56  ;;  %v1046_v21 = vsel %vm1044_vm3, %v1045_v11, %v1043_v32  ;;  %vm2475_vm5 = vcmp.lt.f32.partialorder %v2443_v60, 1.0  ;;  %v11679_v32 = vpop.permute.xlu1 %2339 }
 0x1b1   : > { %v2538_v4 = vmul.f32 %v2506_v63, %v2442_v51  ;;  %v2068_v54 = vsub.f32 %v11593_v50, %v10577_v27  ;;  %v1102_v55 = vsub.f32 0.0, %v1046_v21  ;;  %v2539_v52 = vmul.f32 %v2507_v26, %v2443_v60  ;;  %v17052_v51 = vld [vmem:[#allocation46_spill] sm:$0xff] }
 0x1b2   : > { %v8645_v14 = vadd.f32 -0.5, %v2443_v60  ;;  %v2162_v8 = vmul.f32 0.5, %v2098_v12  ;;  %v2510_v10 = vmul.f32 0.5, %v2446_v58  ;;  %v2511_v16 = vmul.f32 0.5, %v2447_v41 }
 0x1b3   : > { %v2450_v34 = vand.u32 2147483647, %v2418_v37  ;;  %v11673_v62 = vmul.f32 0.5, %v1101_v33  ;;  %v11675_v39 = vmul.f32 0.5, %v1102_v55  ;;  %vm2130_vm6 = vcmp.lt.f32.partialorder %v2098_v12, 1.0 }
 0x1b4   : > { %v8628_v0 = vadd.f32 -0.5, %v2098_v12  ;;  %v2451_v11 = vand.u32 2147483647, %v2419_v2  ;;  %v2398_v63 = vsub.f32 %v11629_v28, %v11454_v1  ;;  %v2602_v27 = vsel %vm2474_vm4, %v2538_v4, %v8644_v18  ;;  %v11687_v2 = vpop.permute.xlu0 %2631 }
 0x1b5   : > { %17050 = vst [vmem:[#allocation91_spill] sm:$0xff] %v11673_v62  ;;  %17051 = vst [vmem:[#allocation92_spill] sm:$0xff] %v11675_v39  ;;  %v2100_v50 = vand.u32 2147483647, %v2068_v54  ;;  %v2399_v26 = vsub.f32 %v11629_v28, %v11470_v56  ;;  %v1178_v37 = vmax.f32 %v11673_v62, %v11675_v39  ;;  %v2603_v33 = vsel %vm2475_vm5, %v2539_v52, %v8645_v14  ;;  %v17054_v54 = vld [vmem:[#allocation47_spill] sm:$0xff] }
 0x1b6   : > { %v2194_v21 = vmul.f32 %v2162_v8, %v2098_v12  ;;  %v2542_v55 = vmul.f32 %v2510_v10, %v2446_v58  ;;  %v8648_v35 = vadd.f32 -0.5, %v2446_v58  ;;  %vm2478_vm7 = vcmp.lt.f32.partialorder %v2446_v58, 1.0 }
 0x1b7   : > { %v2543_v17 = vmul.f32 %v2511_v16, %v2447_v41  ;;  %v8649_v46 = vadd.f32 -0.5, %v2447_v41  ;;  %v2514_v42 = vmul.f32 0.5, %v2450_v34  ;;  %1179 = vmax.xlane.f32.xlu1 %v1178_v37  ;;  %v11690_v18 = vadd.f32 %v2602_v27, %v17052_v51  ;;  %v11704_v16 = vpop.permute.xlu1 %2347 }
 0x1b8   : > { %vm2479_vm8 = vcmp.lt.f32.partialorder %v2447_v41, 1.0  ;;  %v2515_v28 = vmul.f32 0.5, %v2451_v11  ;;  %v2430_v4 = vand.u32 2147483647, %v2398_v63  ;;  %v11693_v47 = vadd.f32 %v2603_v33, %v17054_v54 }
 0x1b9   : > { %17053 = vst [vmem:[#allocation46_spill] sm:$0xff] %v11690_v18  ;;  %v2164_v60 = vmul.f32 0.5, %v2100_v50  ;;  %v2431_v52 = vand.u32 2147483647, %v2399_v26  ;;  %v2422_v14 = vsub.f32 %v11603_v61, %v11454_v1  ;;  %v11698_v58 = vsel %vm2130_vm6, %v2194_v21, %v8628_v0  ;;  %v11708_v21 = vpop.permute.xlu0 %2639 }
 0x1ba   : > { %17055 = vst [vmem:[#allocation47_spill] sm:$0xff] %v11693_v47  ;;  %17056 = vst [vmem:[#allocation93_spill] sm:$0xff] %v11698_v58  ;;  %v2606_v8 = vsel %vm2478_vm7, %v2542_v55, %v8648_v35  ;;  %v2423_v10 = vsub.f32 %v11603_v61, %v11470_v56  ;;  %v2402_v41 = vsub.f32 %v11659_v30, %v11454_v1  ;;  %v8652_v37 = vadd.f32 -0.5, %v2450_v34 }
 0x1bb   : > { %v2607_v63 = vsel %vm2479_vm8, %v2543_v17, %v8649_v46  ;;  %v2546_v27 = vmul.f32 %v2514_v42, %v2450_v34  ;;  %v2403_v26 = vsub.f32 %v11659_v30, %v11470_v56  ;;  %vm2482_vm9 = vcmp.lt.f32.partialorder %v2450_v34, 1.0  ;;  %v17057_v46 = vld [vmem:[#allocation54_spill] sm:$0xff]  ;;  %v17059_v42 = vld [vmem:[#allocation55_spill] sm:$0xff] }
 0x1bc   : > { %v2547_v33 = vmul.f32 %v2515_v28, %v2451_v11  ;;  %v8653_v12 = vadd.f32 -0.5, %v2451_v11  ;;  %v2494_v0 = vmul.f32 0.5, %v2430_v4  ;;  %v2196_v35 = vmul.f32 %v2164_v60, %v2100_v50 }
 0x1bd   : > { %vm2483_vm10 = vcmp.lt.f32.partialorder %v2451_v11, 1.0  ;;  %v2495_v61 = vmul.f32 0.5, %v2431_v52  ;;  %v2454_v55 = vand.u32 2147483647, %v2422_v14  ;;  %vm2132_vm11 = vcmp.lt.f32.partialorder %v2100_v50, 1.0  ;;  %v11720_v14 = vpop.permute.xlu1 %2355 }
 0x1be   : > { %v8630_v51 = vadd.f32 -0.5, %v2100_v50  ;;  %v2455_v54 = vand.u32 2147483647, %v2423_v10  ;;  %v2434_v47 = vand.u32 2147483647, %v2402_v41  ;;  %v11711_v17 = vadd.f32 %v2606_v8, %v17057_v46 }
 0x1bf   : > { %v11714_v18 = vadd.f32 %v2607_v63, %v17059_v42  ;;  %v2610_v30 = vsel %vm2482_vm9, %v2546_v27, %v8652_v37  ;;  %v2435_v34 = vand.u32 2147483647, %v2403_v26  ;;  %v2611_v28 = vsel %vm2483_vm10, %v2547_v33, %v8653_v12  ;;  %v11724_v37 = vpop.permute.xlu0 %2647  ;;  %v9731_v46 = vld [vmem:[%s10551_s30] sm:$0x7f] }
 0x1c0   : > { %17058 = vst [vmem:[#allocation54_spill] sm:$0xff] %v11711_v17  ;;  %v2526_v58 = vmul.f32 %v2494_v0, %v2430_v4  ;;  %v2426_v60 = vsub.f32 %v11644_v29, %v11454_v1  ;;  %v2427_v11 = vsub.f32 %v11644_v29, %v11470_v56  ;;  %v11722_v50 = vsel %vm2132_vm11, %v2196_v35, %v8630_v51 }
 0x1c1   : > { %17060 = vst [vmem:[#allocation55_spill] sm:$0xff] %v11714_v18  ;;  %17061 = vst [vmem:[#allocation94_spill] sm:$0xff] %v11722_v50  ;;  %vm2462_vm12 = vcmp.lt.f32.partialorder %v2430_v4, 1.0  ;;  %v2527_v8 = vmul.f32 %v2495_v61, %v2431_v52  ;;  %v2518_v10 = vmul.f32 0.5, %v2454_v55  ;;  %vm2463_vm13 = vcmp.lt.f32.partialorder %v2431_v52, 1.0 }
 0x1c2   : > { %v8632_v41 = vadd.f32 -0.5, %v2430_v4  ;;  %v2519_v63 = vmul.f32 0.5, %v2455_v54  ;;  %v2498_v27 = vmul.f32 0.5, %v2434_v47  ;;  %v11727_v26 = vadd.f32 %v2610_v30, %v10958_v19  ;;  %v11738_v30 = vpop.permute.xlu1 %2363 }
 0x1c3   : > { %v11730_v33 = vadd.f32 %v2611_v28, %v10968_v31  ;;  %v8633_v29 = vadd.f32 -0.5, %v2431_v52  ;;  %v2499_v12 = vmul.f32 0.5, %v2435_v34  ;;  %v2458_v35 = vand.u32 2147483647, %v2426_v60 }
 0x1c4   : > { %17062 = vst [vmem:[#allocation95_spill] sm:$0xff] %v11727_v26  ;;  %v2590_v0 = vsel %vm2462_vm12, %v2526_v58, %v8632_v41  ;;  %v2459_v51 = vand.u32 2147483647, %v2427_v11  ;;  %v11734_v61 = vrot.slane %v9731_v46, %v17031_v24  ;;  %vm2486_vm14 = vcmp.lt.f32.partialorder %v2454_v55, 1.0 }
 0x1c5   : > { %17063 = vst [vmem:[#allocation96_spill] sm:$0xff] %v11730_v33  ;;  %v2591_v4 = vsel %vm2463_vm13, %v2527_v8, %v8633_v29  ;;  %v2550_v42 = vmul.f32 %v2518_v10, %v2454_v55  ;;  %v8656_v18 = vadd.f32 -0.5, %v2454_v55  ;;  %v2551_v17 = vmul.f32 %v2519_v63, %v2455_v54  ;;  %v11749_v10 = vld [vmem:[%s16811_s5 + $0xa8] sm:$0xff] }
 0x1c6   : > { %v8657_v50 = vadd.f32 -0.5, %v2455_v54  ;;  %v2530_v19 = vmul.f32 %v2498_v27, %v2434_v47  ;;  %v2404_v31 = vsub.f32 %v11679_v32, %v11454_v1  ;;  %vm2487_vm15 = vcmp.lt.f32.partialorder %v2455_v54, 1.0  ;;  %v11752_v54 = vpop.permute.xlu0 %2655  ;;  %v11757_v44 = vpop.permute.xlu1 %2371  ;;  %v17066_v55 = vld [vmem:[#allocation33_spill] sm:$0xff] }
 0x1c7   : > { %v2531_v52 = vmul.f32 %v2499_v12, %v2435_v34  ;;  %v8636_v58 = vadd.f32 -0.5, %v2434_v47  ;;  %v2405_v28 = vsub.f32 %v11679_v32, %v11470_v56  ;;  %v2522_v24 = vmul.f32 0.5, %v2458_v35 }
 0x1c8   : > { %v2523_v60 = vmul.f32 0.5, %v2459_v51  ;;  %v2754_v11 = vsub.f32 %v11669_v22, %v11734_v61  ;;  %v2408_v8 = vsub.f32 %v11704_v16, %v11454_v1  ;;  %2707 = vperm.xlu1 %9583, %v11749_v10   ;;  %v2614_v41 = vsel %vm2486_vm14, %v2550_v42, %v8656_v18  ;;  %v17064_v18 = vld [vmem:[#allocation32_spill] sm:$0xff] }
 0x1c9   : > { %vm2466_vm0 = vcmp.lt.f32.partialorder %v2434_v47, 1.0  ;;  %v8637_v32 = vadd.f32 -0.5, %v2435_v34  ;;  %v2409_v63 = vsub.f32 %v11704_v16, %v11470_v56  ;;  %v2615_v22 = vsel %vm2487_vm15, %v2551_v17, %v8657_v50 }
 0x1ca   : > { %vm2467_vm2 = vcmp.lt.f32.partialorder %v2435_v34, 1.0  ;;  %v2594_v27 = vsel %vm2466_vm0, %v2530_v19, %v8636_v58  ;;  %v2436_v29 = vand.u32 2147483647, %v2404_v31  ;;  %v8660_v46 = vadd.f32 -0.5, %v2458_v35  ;;  %v17068_v34 = vld [vmem:[#allocation22_spill] sm:$0xff]  ;;  %v11770_v31 = vpop.permute.xlu0 %2663 }
 0x1cb   : > { %v2595_v12 = vsel %vm2467_vm2, %v2531_v52, %v8637_v32  ;;  %v8661_v33 = vadd.f32 -0.5, %v2459_v51  ;;  %v2437_v26 = vand.u32 2147483647, %v2405_v28  ;;  %v2554_v5 = vmul.f32 %v2522_v24, %v2458_v35  ;;  %v17070_v52 = vld [vmem:[#allocation15_spill] sm:$0xff] }
 0x1cc   : > { %v2555_v39 = vmul.f32 %v2523_v60, %v2459_v51  ;;  %v2786_v62 = vand.u32 2147483647, %v2754_v11  ;;  %v2440_v36 = vand.u32 2147483647, %v2408_v8  ;;  %v11760_v47 = vadd.f32 %v2590_v0, %v17064_v18  ;;  %v17072_v0 = vld [vmem:[#allocation30_spill] sm:$0xff] }
 0x1cd   : > { %vm2490_vm3 = vcmp.lt.f32.partialorder %v2458_v35, 1.0  ;;  %vm2491_vm4 = vcmp.lt.f32.partialorder %v2459_v51, 1.0  ;;  %v2441_v16 = vand.u32 2147483647, %v2409_v63  ;;  %v11763_v17 = vadd.f32 %v2591_v4, %v17066_v55  ;;  %v17074_v35 = vld [vmem:[#allocation31_spill] sm:$0xff] }
 0x1ce   : > { %17065 = vst [vmem:[#allocation32_spill] sm:$0xff] %v11760_v47  ;;  %v11766_v50 = vadd.f32 %v2614_v41, %v17068_v34  ;;  %v2500_v42 = vmul.f32 0.5, %v2436_v29  ;;  %v2756_v19 = vsub.f32 %v11687_v2, %v11734_v61  ;;  %v11773_v58 = vadd.f32 %v2615_v22, %v17070_v52 }
 0x1cf   : > { %17067 = vst [vmem:[#allocation33_spill] sm:$0xff] %v11763_v17  ;;  %v11776_v28 = vadd.f32 %v2594_v27, %v17072_v0  ;;  %v11779_v51 = vadd.f32 %v2595_v12, %v17074_v35  ;;  %v2501_v4 = vmul.f32 0.5, %v2437_v26  ;;  %v2618_v24 = vsel %vm2490_vm3, %v2554_v5, %v8660_v46  ;;  %v11785_v27 = vpop.permute.xlu1 %2379  ;;  %v17076_v12 = vld [vmem:[#allocation24_spill] sm:$0xff]  ;;  %v17078_v5 = vld [vmem:[#allocation58_spill] sm:$0xff] }
 0x1d0   : > { %17069 = vst [vmem:[#allocation22_spill] sm:$0xff] %v11766_v50  ;;  %17071 = vst [vmem:[#allocation15_spill] sm:$0xff] %v11773_v58  ;;  %v2619_v60 = vsel %vm2491_vm4, %v2555_v39, %v8661_v33  ;;  %v2850_v11 = vmul.f32 0.5, %v2786_v62  ;;  %v2504_v8 = vmul.f32 0.5, %v2440_v36  ;;  %vm2468_vm5 = vcmp.lt.f32.partialorder %v2436_v29, 1.0  ;;  %v9733_v35 = vld [vmem:[%s10243_s18] sm:$0xff] }
 0x1d1   : > { %17073 = vst [vmem:[#allocation30_spill] sm:$0xff] %v11776_v28  ;;  %17075 = vst [vmem:[#allocation31_spill] sm:$0xff] %v11779_v51  ;;  %v2505_v41 = vmul.f32 0.5, %v2441_v16  ;;  %v2412_v2 = vsub.f32 %v11720_v14, %v11454_v1  ;;  %v2413_v32 = vsub.f32 %v11720_v14, %v11470_v56  ;;  %vm2469_vm6 = vcmp.lt.f32.partialorder %v2437_v26, 1.0 }
 0x1d2   : > { %v2532_v63 = vmul.f32 %v2500_v42, %v2436_v29  ;;  %v2788_v22 = vand.u32 2147483647, %v2756_v19  ;;  %v11788_v18 = vadd.f32 %v2618_v24, %v17076_v12  ;;  %v11791_v39 = vadd.f32 %v2619_v60, %v17078_v5  ;;  %v11795_v42 = vpop.permute.xlu0 %2671 }
 0x1d3   : > { %v8638_v33 = vadd.f32 -0.5, %v2436_v29  ;;  %v8639_v46 = vadd.f32 -0.5, %v2437_v26  ;;  %v16854_v55 = vmov 2   ;;  %v2533_v34 = vmul.f32 %v2501_v4, %v2437_v26  ;;  %v11805_v29 = vpop.permute.xlu1 %2387 }
 0x1d4   : > { %17077 = vst [vmem:[#allocation24_spill] sm:$0xff] %v11788_v18  ;;  %17079 = vst [vmem:[#allocation58_spill] sm:$0xff] %v11791_v39  ;;  %9585 = vset.pattern.permute.xlu0 %v16854_v55  ;;  %v2882_v52 = vmul.f32 %v2850_v11, %v2786_v62  ;;  %v8664_v0 = vadd.f32 -0.5, %v2786_v62  ;;  %v2536_v14 = vmul.f32 %v2504_v8, %v2440_v36  ;;  %vm2818_vm7 = vcmp.lt.f32.partialorder %v2786_v62, 1.0 }
 0x1d5   : > { %3043 = vperm.xlu0 %9585, %v9733_v35   ;;  %v2537_v19 = vmul.f32 %v2505_v41, %v2441_v16  ;;  %v2444_v24 = vand.u32 2147483647, %v2412_v2  ;;  %v2445_v12 = vand.u32 2147483647, %v2413_v32  ;;  %v2596_v60 = vsel %vm2468_vm5, %v2532_v63, %v8638_v33  ;;  %v9734_v32 = vld [vmem:[%s10243_s18 + $0x18] sm:$0xff] }
 0x1d6   : > { %v8642_v5 = vadd.f32 -0.5, %v2440_v36  ;;  %v2852_v39 = vmul.f32 0.5, %v2788_v22  ;;  %v2758_v55 = vsub.f32 %v11708_v21, %v11734_v61  ;;  %vm2472_vm8 = vcmp.lt.f32.partialorder %v2440_v36, 1.0 }
 0x1d7   : > { %v8643_v4 = vadd.f32 -0.5, %v2441_v16  ;;  %v2416_v11 = vsub.f32 %v11738_v30, %v11454_v1  ;;  %v2417_v8 = vsub.f32 %v11738_v30, %v11470_v56  ;;  %v2597_v62 = vsel %vm2469_vm6, %v2533_v34, %v8639_v46  ;;  %v11812_v30 = vpop.permute.xlu0 %2679 }
 0x1d8   : > { %v2946_v41 = vsel %vm2818_vm7, %v2882_v52, %v8664_v0  ;;  %vm2473_vm9 = vcmp.lt.f32.partialorder %v2441_v16, 1.0  ;;  %v2600_v2 = vsel %vm2472_vm8, %v2536_v14, %v8642_v5  ;;  %v2508_v33 = vmul.f32 0.5, %v2444_v24  ;;  %v17080_v52 = vld [vmem:[#allocation34_spill] sm:$0xff]  ;;  %v17082_v14 = vld [vmem:[#allocation35_spill] sm:$0xff] }
 0x1d9   : > { %3055 = vperm.xlu0 %9585, %v9734_v32   ;;  %v2601_v63 = vsel %vm2473_vm9, %v2537_v19, %v8643_v4  ;;  %v2509_v36 = vmul.f32 0.5, %v2445_v12  ;;  %v2760_v21 = vsub.f32 %v11724_v37, %v11734_v61  ;;  %v2884_v35 = vmul.f32 %v2852_v39, %v2788_v22  ;;  %v17085_v39 = vld [vmem:[#allocation42_spill] sm:$0xff] }
 0x1da   : > { %v8666_v18 = vadd.f32 -0.5, %v2788_v22  ;;  %v2790_v58 = vand.u32 2147483647, %v2758_v55  ;;  %v2420_v26 = vsub.f32 %v11757_v44, %v11454_v1  ;;  %vm2820_vm10 = vcmp.lt.f32.partialorder %v2788_v22, 1.0  ;;  %v9735_v5 = vld [vmem:[%s10243_s18 + $0x28] sm:$0xff]  ;;  %v17087_v22 = vld [vmem:[#allocation43_spill] sm:$0xff] }
 0x1db   : > { %v2448_v16 = vand.u32 2147483647, %v2416_v11  ;;  %v2449_v46 = vand.u32 2147483647, %v2417_v8  ;;  %v2421_v34 = vsub.f32 %v11757_v44, %v11470_v56  ;;  %v11817_v0 = vadd.f32 %v2596_v60, %v17080_v52 }
 0x1dc   : > { %v11820_v19 = vadd.f32 %v2597_v62, %v17082_v14  ;;  %v11823_v37 = vadd.f32 %v2946_v41, %v11116_v9  ;;  %v11826_v55 = vadd.f32 %v2600_v2, %v17085_v39  ;;  %v11830_v4 = vadd.f32 %v2601_v63, %v17087_v22  ;;  %v11834_v9 = vpop.permute.xlu1 %2627 }
 0x1dd   : > { %17081 = vst [vmem:[#allocation34_spill] sm:$0xff] %v11817_v0  ;;  %3063 = vperm.xlu0 %9585, %v9735_v5   ;;  %v2540_v11 = vmul.f32 %v2508_v33, %v2444_v24  ;;  %v2541_v44 = vmul.f32 %v2509_v36, %v2445_v12  ;;  %v2792_v8 = vand.u32 2147483647, %v2760_v21  ;;  %v2948_v60 = vsel %vm2820_vm10, %v2884_v35, %v8666_v18  ;;  %v9736_v33 = vld [vmem:[%s10243_s18 + $0x38] sm:$0xff]  ;;  %v11837_v36 = vpop.permute.xlu0 %2687 }
 0x1de   : > { %17083 = vst [vmem:[#allocation35_spill] sm:$0xff] %v11820_v19  ;;  %17084 = vst [vmem:[#allocation97_spill] sm:$0xff] %v11823_v37  ;;  %v2854_v32 = vmul.f32 0.5, %v2790_v58  ;;  %v2452_v52 = vand.u32 2147483647, %v2420_v26  ;;  %v2762_v62 = vsub.f32 %v11752_v54, %v11734_v61  ;;  %v8646_v41 = vadd.f32 -0.5, %v2444_v24 }
 0x1df   : > { %17086 = vst [vmem:[#allocation42_spill] sm:$0xff] %v11826_v55  ;;  %17088 = vst [vmem:[#allocation43_spill] sm:$0xff] %v11830_v4  ;;  %v2512_v2 = vmul.f32 0.5, %v2448_v16  ;;  %v2513_v14 = vmul.f32 0.5, %v2449_v46  ;;  %v2453_v39 = vand.u32 2147483647, %v2421_v34  ;;  %v11840_v18 = vadd.f32 %v2948_v60, %v11217_v48 }
 0x1e0   : > { %vm2476_vm11 = vcmp.lt.f32.partialorder %v2444_v24, 1.0  ;;  %vm2477_vm12 = vcmp.lt.f32.partialorder %v2445_v12, 1.0  ;;  %v8647_v63 = vadd.f32 -0.5, %v2445_v12  ;;  %vm2822_vm13 = vcmp.lt.f32.partialorder %v2790_v58, 1.0  ;;  %v9737_v60 = vld [vmem:[%s10243_s18 + $0x48] sm:$0xff] }
 0x1e1   : > { %3071 = vperm.xlu0 %9585, %v9736_v33   ;;  %17089 = vst [vmem:[#allocation98_spill] sm:$0xff] %v11840_v18  ;;  %v2604_v21 = vsel %vm2476_vm11, %v2540_v11, %v8646_v41  ;;  %v8668_v54 = vadd.f32 -0.5, %v2790_v58  ;;  %v2856_v35 = vmul.f32 0.5, %v2792_v8  ;;  %v2886_v5 = vmul.f32 %v2854_v32, %v2790_v58  ;;  %v17090_v33 = vld [vmem:[#allocation50_spill] sm:$0xff]  ;;  %v11847_v11 = vpop.permute.xlu1 %2635 }
 0x1e2   : > { %v2605_v26 = vsel %vm2477_vm12, %v2541_v44, %v8647_v63  ;;  %v2516_v22 = vmul.f32 0.5, %v2452_v52  ;;  %v2794_v37 = vand.u32 2147483647, %v2762_v62  ;;  %v2544_v34 = vmul.f32 %v2512_v2, %v2448_v16  ;;  %v9750_v55 = vld [vmem:[%s16811_s5 + $0x88] sm:$0xff] }
 0x1e3   : > { %v2545_v24 = vmul.f32 %v2513_v14, %v2449_v46  ;;  %v2517_v50 = vmul.f32 0.5, %v2453_v39  ;;  %v2424_v12 = vsub.f32 %v11785_v27, %v11454_v1  ;;  %v11845_v51 = vadd.f32 %v2604_v21, %v17090_v33  ;;  %v11853_v21 = vpop.permute.xlu0 %2695 }
 0x1e4   : > { %vm2480_vm14 = vcmp.lt.f32.partialorder %v2448_v16, 1.0  ;;  %vm2481_vm15 = vcmp.lt.f32.partialorder %v2449_v46, 1.0  ;;  %v8650_v48 = vadd.f32 -0.5, %v2448_v16  ;;  %v8651_v44 = vadd.f32 -0.5, %v2449_v46 }
 0x1e5   : > { %17091 = vst [vmem:[#allocation50_spill] sm:$0xff] %v11845_v51  ;;  %3079 = vperm.xlu0 %9585, %v9737_v60   ;;  %v2888_v32 = vmul.f32 %v2856_v35, %v2792_v8  ;;  %v8670_v62 = vadd.f32 -0.5, %v2792_v8  ;;  %v2425_v41 = vsub.f32 %v11785_v27, %v11470_v56  ;;  %v2950_v2 = vsel %vm2822_vm13, %v2886_v5, %v8668_v54  ;;  %v9738_v60 = vld [vmem:[%s10243_s18 + $0x58] sm:$0xff] }
 0x1e6   : > { %vm2824_vm0 = vcmp.lt.f32.partialorder %v2792_v8, 1.0  ;;  %v2548_v14 = vmul.f32 %v2516_v22, %v2452_v52  ;;  %v2858_v63 = vmul.f32 0.5, %v2794_v37  ;;  %v2608_v33 = vsel %vm2480_vm14, %v2544_v34, %v8650_v48 }
 0x1e7   : > { %v2609_v16 = vsel %vm2481_vm15, %v2545_v24, %v8651_v44  ;;  %v2549_v18 = vmul.f32 %v2517_v50, %v2453_v39  ;;  %v2456_v28 = vand.u32 2147483647, %v2424_v12  ;;  %vm2484_vm2 = vcmp.lt.f32.partialorder %v2452_v52, 1.0  ;;  %v11866_v24 = vpop.xlane.xlu0 %1140 }
 0x1e8   : > { %vm2485_vm3 = vcmp.lt.f32.partialorder %v2453_v39, 1.0  ;;  %v8654_v46 = vadd.f32 -0.5, %v2452_v52  ;;  %v2764_v35 = vsub.f32 %v11770_v31, %v11734_v61  ;;  %v2952_v27 = vsel %vm2824_vm0, %v2888_v32, %v8670_v62  ;;  %v11864_v52 = vpop.permute.xlu1 %2643  ;;  %v17092_v31 = vld [vmem:[#allocation51_spill] sm:$0xff] }
 0x1e9   : > { %3087 = vperm.xlu0 %9585, %v9738_v60   ;;  %v8655_v58 = vadd.f32 -0.5, %v2453_v39  ;;  %v11858_v54 = vand.u32 2147483647, %v2425_v41  ;;  %v2428_v8 = vsub.f32 %v11805_v29, %v11454_v1  ;;  %v2890_v22 = vmul.f32 %v2858_v63, %v2794_v37  ;;  %v17095_v1 = vld [vmem:[#allocation36_spill] sm:$0xff]  ;;  %v17097_v41 = vld [vmem:[#allocation37_spill] sm:$0xff] }
 0x1ea   : > { %v2612_v5 = vsel %vm2484_vm2, %v2548_v14, %v8654_v46  ;;  %v8672_v50 = vadd.f32 -0.5, %v2794_v37  ;;  %v2429_v34 = vsub.f32 %v11805_v29, %v11470_v56  ;;  %v11869_v12 = vadd.f32 %v2605_v26, %v17092_v31  ;;  %v9739_v29 = vld [vmem:[%s10243_s18 + $0x68] sm:$0xff]  ;;  %v17100_v39 = vld [vmem:[#allocation40_spill] sm:$0xff] }
 0x1eb   : > { %v2613_v48 = vsel %vm2485_vm3, %v2549_v18, %v8655_v58  ;;  %vm2826_vm4 = vcmp.lt.f32.partialorder %v2794_v37, 1.0  ;;  %v2520_v44 = vmul.f32 0.5, %v2456_v28  ;;  %v11873_v32 = vadd.f32 %v2950_v2, %v11276_v15  ;;  %v17102_v2 = vld [vmem:[#allocation41_spill] sm:$0xff] }
 0x1ec   : > { %17093 = vst [vmem:[#allocation51_spill] sm:$0xff] %v11869_v12  ;;  %v11876_v62 = vadd.f32 %v2608_v33, %v17095_v1  ;;  %v11879_v14 = vadd.f32 %v2609_v16, %v17097_v41  ;;  %v11881_v56 = vand.u32 2147483647, %v2764_v35  ;;  %v11885_v26 = vadd.f32 %v2952_v27, %v11321_v6  ;;  %v11906_v58 = vpop.permute.xlu1 %2651 }
 0x1ed   : > { %17094 = vst [vmem:[#allocation99_spill] sm:$0xff] %v11873_v32  ;;  %3095 = vperm.xlu0 %9585, %v9739_v29   ;;  %v11888_v37 = vadd.f32 %v2612_v5, %v17100_v39  ;;  %v2521_v15 = vmul.f32 0.5, %v11858_v54  ;;  %v11891_v18 = vand.u32 2147483647, %v2428_v8  ;;  %v11894_v63 = vadd.f32 %v2613_v48, %v17102_v2  ;;  %v9740_v8 = vld [vmem:[%s10243_s18 + $0x78] sm:$0xff]  ;;  %v11910_v5 = vpop.xlane.xlu0 %1164  ;;  %v9741_v2 = vld [vmem:[%s16811_s5 + $0x8] sm:$0xff] }
 0x1ee   : > { %17096 = vst [vmem:[#allocation36_spill] sm:$0xff] %v11876_v62  ;;  %17098 = vst [vmem:[#allocation37_spill] sm:$0xff] %v11879_v14  ;;  %v11896_v33 = vsel %vm2826_vm4, %v2890_v22, %v8672_v50  ;;  %vm2488_vm5 = vcmp.lt.f32.partialorder %v2456_v28, 1.0  ;;  %v11898_v16 = vand.u32 2147483647, %v2429_v34  ;;  %vm2489_vm6 = vcmp.lt.f32.partialorder %v11858_v54, 1.0 }
 0x1ef   : > { %17099 = vst [vmem:[#allocation100_spill] sm:$0xff] %v11885_v26  ;;  %17101 = vst [vmem:[#allocation40_spill] sm:$0xff] %v11888_v37  ;;  %v2552_v6 = vmul.f32 %v2520_v44, %v2456_v28  ;;  %v8658_v46 = vadd.f32 -0.5, %v2456_v28  ;;  %v950_v35 = vmul.f32 %v11269_v7, %v11178_v43  ;;  %v8659_v60 = vadd.f32 -0.5, %v11858_v54  ;;  %v17105_v28 = vld [vmem:[#allocation67_spill] sm:$0xff]  ;;  %v17127_v26 = vld [vmem:[#allocation26_spill] sm:$0xff] }
 0x1f0   : > { %17103 = vst [vmem:[#allocation41_spill] sm:$0xff] %v11894_v63  ;;  %vm2828_vm7 = vcmp.lt.f32.partialorder %v11881_v56, 1.0  ;;  %v2860_v27 = vmul.f32 0.5, %v11881_v56  ;;  %vm951_vm8 = vcmp.eq.f32.partialorder %v11178_v43, inf  ;;  %v2553_v22 = vmul.f32 %v2521_v15, %v11858_v54  ;;  %v17139_v14 = vld [vmem:[#allocation18_spill] sm:$0xff] }
 0x1f1   : > { %3103 = vperm.xlu0 %9585, %v9740_v8   ;;  %v8674_v50 = vadd.f32 -0.5, %v11881_v56  ;;  %v2524_v7 = vmul.f32 0.5, %v11891_v18  ;;  %v952_v34 = vsel %vm951_vm8, %v11178_v43, %v950_v35  ;;  %v2525_v31 = vmul.f32 0.5, %v11898_v16 }
 0x1f2   : > { %v8662_v48 = vadd.f32 -0.5, %v11891_v18  ;;  %v954_v44 = vand.u32 2147483648, %v11178_v43  ;;  %v957_v1 = vmul.f32 %v11296_v53, %v11206_v59  ;;  %v2616_v41 = vsel %vm2488_vm5, %v2552_v6, %v8658_v46  ;;  %v17104_v53 = vld [vmem:[#allocation17_spill] sm:$0xff] }
 0x1f3   : > { %vm2492_vm9 = vcmp.lt.f32.partialorder %v11891_v18, 1.0  ;;  %vm953_vm10 = vcmp.eq.f32.partialorder %v11178_v43, 0.0  ;;  %vm958_vm11 = vcmp.eq.f32.partialorder %v11206_v59, inf  ;;  %v961_v29 = vand.u32 2147483648, %v11206_v59 }
 0x1f4   : > { %v955_v39 = vsel %vm953_vm10, %v954_v44, %v952_v34  ;;  %v959_v15 = vsel %vm958_vm11, %v11206_v59, %v957_v1  ;;  %vm960_vm12 = vcmp.eq.f32.partialorder %v11206_v59, 0.0  ;;  %v1062_v6 = vmul.f32 %v17105_v28, %v17104_v53  ;;  %v11939_v44 = vpop.permute.xlu1 %2659 }
 0x1f5   : > { %3343 = vperm.xlu0 %9585, %v9741_v2   ;;  %v2892_v46 = vmul.f32 %v2860_v27, %v11881_v56  ;;  %vm2493_vm13 = vcmp.lt.f32.partialorder %v11898_v16, 1.0  ;;  %v962_v43 = vsel %vm960_vm12, %v961_v29, %v959_v15  ;;  %v1089_v35 = vsub.f32 0.0, %v955_v39  ;;  %v11941_v2 = vpop.xlane.xlu0 %1146  ;;  %v9742_v29 = vld [vmem:[%s16811_s5 + $0x18] sm:$0xff] }
 0x1f6   : > { %v2617_v8 = vsel %vm2489_vm6, %v2553_v22, %v8659_v60  ;;  %v2556_v34 = vmul.f32 %v2524_v7, %v11891_v18  ;;  %v2557_v59 = vmul.f32 %v2525_v31, %v11898_v16  ;;  %v1090_v1 = vsub.f32 0.0, %v962_v43  ;;  %v17108_v7 = vld [vmem:[#allocation65_spill] sm:$0xff] }
 0x1f7   : > { %v2766_v28 = vsub.f32 %v11795_v42, %v11734_v61  ;;  %vm1063_vm14 = vcmp.eq.f32.partialorder %v17104_v53, inf  ;;  %vm1065_vm15 = vcmp.eq.f32.partialorder %v17104_v53, 0.0  ;;  %v1066_v27 = vand.u32 2147483648, %v17104_v53 }
 0x1f8   : > { %v11948_v54 = vmul.f32 0.5, %v1089_v35  ;;  %v11950_v60 = vmul.f32 0.5, %v1090_v1  ;;  %v1064_v22 = vsel %vm1063_vm14, %v17104_v53, %v1062_v6  ;;  %v1069_v31 = vmul.f32 %v11331_v23, %v17108_v7 }
 0x1f9   : > { %3351 = vperm.xlu0 %9585, %v9742_v29   ;;  %v2755_v42 = vsub.f32 %v11834_v9, %v11734_v61  ;;  %v1067_v39 = vsel %vm1065_vm15, %v1066_v27, %v1064_v22  ;;  %vm1070_vm0 = vcmp.eq.f32.partialorder %v17108_v7, inf  ;;  %v1073_v15 = vand.u32 2147483648, %v17108_v7 }
 0x1fa   : > { %17106 = vst [vmem:[#allocation17_spill] sm:$0xff] %v11948_v54  ;;  %17107 = vst [vmem:[#allocation67_spill] sm:$0xff] %v11950_v60  ;;  %v1160_v43 = vmax.f32 %v11948_v54, %v11950_v60  ;;  %v1071_v53 = vsel %vm1070_vm0, %v17108_v7, %v1069_v31  ;;  %vm1072_vm2 = vcmp.eq.f32.partialorder %v17108_v7, 0.0  ;;  %v1105_v23 = vsub.f32 0.0, %v1067_v39  ;;  %v11977_v7 = vpop.permute.xlu1 %2667 }
 0x1fb   : > { %v2956_v6 = vsel %vm2828_vm7, %v2892_v46, %v8674_v50  ;;  %v8663_v35 = vadd.f32 -0.5, %v11898_v16  ;;  %v11969_v1 = vand.u32 2147483647, %v2766_v28  ;;  %v1074_v9 = vsel %vm1072_vm2, %v1073_v15, %v1071_v53  ;;  %v9743_v50 = vld [vmem:[%s16811_s5 + $0x28] sm:$0xff]  ;;  %v11982_v46 = vpop.xlane.xlu0 %1170  ;;  %v17112_v28 = vld [vmem:[#allocation44_spill] sm:$0xff] }
 0x1fc   : > { %v2620_v27 = vsel %vm2492_vm9, %v2556_v34, %v8662_v48  ;;  %v2768_v22 = vsub.f32 %v11812_v30, %v11734_v61  ;;  %v2757_v31 = vsub.f32 %v11847_v11, %v11734_v61  ;;  %1161 = vmax.xlane.f32.xlu1 %v1160_v43  ;;  %v1106_v56 = vsub.f32 0.0, %v1074_v9  ;;  %v17116_v53 = vld [vmem:[#allocation45_spill] sm:$0xff]  ;;  %v17119_v16 = vld [vmem:[#allocation48_spill] sm:$0xff] }
 0x1fd   : > { %3359 = vperm.xlu0 %9585, %v9743_v50   ;;  %v11986_v18 = vadd.f32 %v11896_v33, %v11336_v40  ;;  %v2621_v30 = vsel %vm2493_vm13, %v2557_v59, %v8663_v35  ;;  %v11990_v48 = vand.u32 2147483647, %v2755_v42  ;;  %v17110_v11 = vlaneseq  ;;  %v17121_v35 = vld [vmem:[#allocation49_spill] sm:$0xff] }
 0x1fe   : > { %v11996_v29 = vadd.f32 %v2616_v41, %v17112_v28  ;;  %v11998_v39 = vmul.f32 0.5, %v1105_v23  ;;  %v12000_v15 = vmul.f32 0.5, %v1106_v56  ;;  %v12003_v43 = vstv %s11542_s16  ;;  %v17125_v28 = vld [vmem:[#allocation60_spill] sm:$0xff] }
 0x1ff   : > { %17109 = vst [vmem:[#allocation65_spill] sm:$0xff] %v11986_v18  ;;  %v11993_v34 = vand.u32 127, %v17110_v11  ;;  %v12006_v40 = vadd.f32 %v2617_v8, %v17116_v53  ;;  %v12009_v33 = vadd.f32 %v2956_v6, %v11364_v49  ;;  %v12012_v59 = vadd.f32 %v2620_v27, %v17119_v16  ;;  %v9744_v49 = vld [vmem:[%s16811_s5 + $0x38] sm:$0xff]  ;;  %v12038_v11 = vpop.permute.xlu1 %2675 }
 0x200   : > { %17113 = vst [vmem:[#allocation44_spill] sm:$0xff] %v11996_v29  ;;  %17114 = vst [vmem:[#allocation102_spill] sm:$0xff] %v11998_v39  ;;  %v2862_v42 = vmul.f32 0.5, %v11969_v1  ;;  %v12016_v41 = vadd.f32 %v2621_v30, %v17121_v35  ;;  %v12018_v23 = vand.u32 2147483647, %v2768_v22  ;;  %v1184_v56 = vmax.f32 %v11998_v39, %v12000_v15  ;;  %v17123_v6 = vld [vmem:[#allocation12_spill] sm:$0xff]  ;;  %v12047_v35 = vpop.xlane.xlu0 %1152 }
 0x201   : > { %17111 = vst [vmem:[#allocation101_spill] sm:$0xff] %v11993_v34  ;;  %17115 = vst [vmem:[#allocation103_spill] sm:$0xff] %v12000_v15  ;;  %v12020_v9 = vand.u32 2147483647, %v2757_v31  ;;  %3367 = vperm.xlu0 %9585, %v9744_v49   ;;  %v2851_v8 = vmul.f32 0.5, %v11990_v48  ;;  %v1304_v27 = vadd.s32 %v12003_v43, %v17123_v6  ;;  %vm1336_vm3 = vcmp.lt.s32.totalorder %v11993_v34, 64 }
 0x202   : > { %17117 = vst [vmem:[#allocation45_spill] sm:$0xff] %v12006_v40  ;;  %17118 = vst [vmem:[#allocation104_spill] sm:$0xff] %v12009_v33  ;;  %v17124_v22 = vld [vmem:[#allocation59_spill] sm:$0xff]  ;;  %v12034_v31 = vadd.f32 -0.5, %v11969_v1  ;;  %v2770_v30 = vsub.f32 %v11837_v36, %v11734_v61  ;;  %1185 = vmax.xlane.f32.xlu1 %v1184_v56  ;;  %v12042_v53 = vsub.f32 %v17125_v28, %v11866_v24  ;;  %v12045_v16 = vadd.s32 64, %v17123_v6  ;;  %v9745_v56 = vld [vmem:[%s16811_s5 + $0x48] sm:$0xff] }
 0x203   : > { %17120 = vst [vmem:[#allocation48_spill] sm:$0xff] %v12012_v59  ;;  %17122 = vst [vmem:[#allocation49_spill] sm:$0xff] %v12016_v41  ;;  %v1187_v50 = vsub.f32 %v17124_v22, %v11866_v24  ;;  %v12050_v49 = vmul.f32 %v2862_v42, %v11969_v1  ;;  %v12053_v22 = vadd.f32 -0.5, %v11990_v48  ;;  %vm1320_vm4 = vcmp.lt.s32.totalorder %v1304_v27, 64  ;;  %v17129_v39 = vld [vmem:[#allocation19_spill] sm:$0xff]  ;;  %v17132_v59 = vld [vmem:[#allocation29_spill] sm:$0xff] }
 0x204   : > { %17126 = vst [vmem:[#allocation59_spill] sm:$0xff] %v12045_v16  ;;  %vm1370_vm5 = vcmp.ne.s32.totalorder %v11993_v34, %v1304_v27  ;;  %vm2830_vm6 = vcmp.lt.f32.partialorder %v11969_v1, 1.0  ;;  %v12058_v36 = vmul.f32 0.5, %v12018_v23  ;;  %v12061_v24 = vadd.f32 -0.5, %v12018_v23  ;;  %vm1338_vm7 = vmand %vm1320_vm4, %vm1336_vm3  ;;  %v17134_v29 = vld [vmem:[#allocation62_spill] sm:$0xff] }
 0x205   : > { %3375 = vperm.xlu0 %9585, %v9745_v56   ;;  %v1219_v42 = vmul.f32 1.442695, %v1187_v50  ;;  %v1221_v28 = vmul.f32 1.442695, %v12042_v53  ;;  %v12070_v27 = vmul.f32 %v2851_v8, %v11990_v48  ;;  %v12073_v33 = vmul.f32 0.5, %v12020_v9  ;;  %vm1402_vm8 = vmand %vm1370_vm5, %vm1338_vm7 }
 0x206   : > { %v1312_v18 = vadd.s32 %v12003_v43, %v12045_v16  ;;  %v1203_v32 = vsub.f32 %v17127_v26, %v11910_v5  ;;  %v17128_v56 = vmov 0.0   ;;  %v12084_v41 = vsub.f32 %v17129_v39, %v11910_v5  ;;  %v12096_v16 = vpop.permute.xlu1 %2683  ;;  %v9746_v5 = vld [vmem:[%s16811_s5 + $0x58] sm:$0xff] }
 0x207   : > { %v12080_v15 = vsel %vm1402_vm8, 1.0, %v17128_v56  ;;  %9659 = vpow2.f32 %v1219_v42  ;;  %v12087_v8 = vadd.s32 16, %v17123_v6  ;;  %v12094_v26 = vadd.f32 -0.5, %v12020_v9 }
 0x208   : > { %9661 = vpow2.f32 %v1221_v28  ;;  %v12090_v60 = vmul.f32 %v12080_v15, %v1187_v50  ;;  %vm1328_vm9 = vcmp.lt.s32.totalorder %v1312_v18, 64  ;;  %vm1386_vm10 = vcmp.ne.s32.totalorder %v11993_v34, %v1312_v18  ;;  %v1177_v18 = vpop.xlane.xlu0 %1176  ;;  %v17131_v28 = vld [vmem:[#allocation20_spill] sm:$0xff] }
 0x209   : > { %17130 = vst [vmem:[#allocation60_spill] sm:$0xff] %v12087_v8  ;;  %3383 = vperm.xlu0 %9585, %v9746_v5   ;;  %vm1354_vm11 = vmand %vm1328_vm9, %vm1336_vm3  ;;  %v1251_v39 = vmul.f32 1.442695, %v1203_v32  ;;  %v1253_v50 = vmul.f32 1.442695, %v12084_v41  ;;  %v1306_v42 = vadd.s32 %v12003_v43, %v12087_v8  ;;  %v1191_v54 = vsub.f32 %v17131_v28, %v11941_v2 }
 0x20a   : > { %vm1418_vm12 = vmand %vm1386_vm10, %vm1354_vm11  ;;  %v12110_v40 = vsub.f32 %v17132_v59, %v11941_v2  ;;  %v12113_v5 = vadd.s32 80, %v17123_v6  ;;  %v1207_v63 = vsub.f32 %v17134_v29, %v11982_v46  ;;  %v12127_v8 = vand.u32 2147483647, %v2770_v30  ;;  %v9747_v29 = vld [vmem:[%s16811_s5 + $0x68] sm:$0xff] }
 0x20b   : > { %v12118_v37 = vsel %vm1418_vm12, 1.0, %v17128_v56  ;;  %9663 = vpow2.f32 %v1251_v39  ;;  %vm1322_vm13 = vcmp.lt.s32.totalorder %v1306_v42, 64  ;;  %vm1374_vm14 = vcmp.ne.s32.totalorder %v11993_v34, %v1306_v42 }
 0x20c   : > { %17133 = vst [vmem:[#allocation26_spill] sm:$0xff] %v12113_v5  ;;  %9665 = vpow2.f32 %v1253_v50  ;;  %v12122_v28 = vmul.f32 %v12118_v37, %v1203_v32  ;;  %vm1342_vm15 = vmand %vm1322_vm13, %vm1336_vm3  ;;  %v1227_v2 = vmul.f32 1.442695, %v1191_v54  ;;  %v1229_v59 = vmul.f32 1.442695, %v12110_v40  ;;  %v17136_v32 = vld [vmem:[#allocation63_spill] sm:$0xff] }
 0x20d   : > { %3391 = vperm.xlu0 %9585, %v9747_v29   ;;  %vm1406_vm0 = vmand %vm1374_vm14, %vm1342_vm15  ;;  %v1314_v39 = vadd.s32 %v12003_v43, %v12113_v5  ;;  %v12136_v50 = vsub.f32 %v17136_v32, %v11982_v46  ;;  %v1259_v42 = vmul.f32 1.442695, %v1207_v63  ;;  %v12142_v30 = vadd.s32 32, %v17123_v6  ;;  %v12146_v29 = vpop.permute.xlu1 %2691  ;;  %v1159_v46 = vpop.xlane.xlu0 %1158  ;;  %v17142_v32 = vld [vmem:[#allocation66_spill] sm:$0xff] }
 0x20e   : > { %17135 = vst [vmem:[#allocation19_spill] sm:$0xff] %v12122_v28  ;;  %v12139_v28 = vsel %vm1406_vm0, 1.0, %v17128_v56  ;;  %9667 = vpow2.f32 %v1227_v2  ;;  %v1195_v62 = vsub.f32 %v17139_v14, %v12047_v35  ;;  %v12156_v2 = vsel %vm2830_vm6, %v12050_v49, %v12034_v31 }
 0x20f   : > { %17137 = vst [vmem:[#allocation20_spill] sm:$0xff] %v12136_v50  ;;  %17138 = vst [vmem:[#allocation29_spill] sm:$0xff] %v12142_v30  ;;  %9669 = vpow2.f32 %v1229_v59  ;;  %v12149_v5 = vmul.f32 %v12139_v28, %v1191_v54  ;;  %vm1330_vm2 = vcmp.lt.s32.totalorder %v1314_v39, 64  ;;  %vm1390_vm4 = vcmp.ne.s32.totalorder %v11993_v34, %v1314_v39  ;;  %v9748_v59 = vld [vmem:[%s16811_s5 + $0x78] sm:$0xff]  ;;  %v17140_v39 = vld [vmem:[#allocation25_spill] sm:$0xff] }
 0x210   : > { %vm1358_vm5 = vmand %vm1330_vm2, %vm1336_vm3  ;;  %9671 = vpow2.f32 %v1259_v42  ;;  %v1261_v14 = vmul.f32 1.442695, %v12136_v50  ;;  %v1308_v54 = vadd.s32 %v12003_v43, %v12142_v30  ;;  %v12168_v1 = vsub.f32 %v17140_v39, %v12047_v35 }
 0x211   : > { %3399 = vperm.xlu0 %9585, %v9748_v59   ;;  %vm1422_vm7 = vmand %vm1390_vm4, %vm1358_vm5  ;;  %v1235_v31 = vmul.f32 1.442695, %v1195_v62  ;;  %v12171_v49 = vadd.s32 96, %v17123_v6  ;;  %v1211_v42 = vsub.f32 %v17142_v32, %v1177_v18  ;;  %v12180_v59 = vmul.f32 %v12058_v36, %v12018_v23  ;;  %v12202_v51 = vpop.permute.xlu1 %2699 }
 0x212   : > { %v12175_v12 = vsel %vm1422_vm7, 1.0, %v17128_v56  ;;  %9673 = vpow2.f32 %v1261_v14  ;;  %vm1324_vm6 = vcmp.lt.s32.totalorder %v1308_v54, 64  ;;  %vm1378_vm8 = vcmp.ne.s32.totalorder %v11993_v34, %v1308_v54  ;;  %v12191_v14 = vld [vmem:[%s16811_s5 + $0xb8] sm:$0xff] }
 0x213   : > { %17141 = vst [vmem:[#allocation62_spill] sm:$0xff] %v12171_v49  ;;  %v12183_v35 = vmul.f32 %v12175_v12, %v1207_v63  ;;  %vm1346_vm9 = vmand %vm1324_vm6, %vm1336_vm3  ;;  %9675 = vpow2.f32 %v1235_v31  ;;  %v1237_v39 = vmul.f32 1.442695, %v12168_v1  ;;  %2715 = vperm.xlu1 %9583, %v12191_v14   ;;  %v1316_v36 = vadd.s32 %v12003_v43, %v12171_v49  ;;  %v17144_v63 = vld [vmem:[#allocation68_spill] sm:$0xff]  ;;  %v1183_v49 = vpop.xlane.xlu0 %1182 }
 0x214   : > { %v9660_v32 = vpop.eup %9659  ;;  %vm1410_vm10 = vmand %vm1378_vm8, %vm1346_vm9  ;;  %v12197_v54 = vsub.f32 %v17144_v63, %v1177_v18  ;;  %v1267_v30 = vmul.f32 1.442695, %v1211_v42  ;;  %v12200_v31 = vadd.s32 48, %v17123_v6  ;;  %v17147_v18 = vld [vmem:[#allocation69_spill] sm:$0xff]  ;;  %vm2819_vm0 = vcmp.lt.f32.partialorder %v11990_v48, 1.0 }
 0x215   : > { %17143 = vst [vmem:[#allocation63_spill] sm:$0xff] %v12183_v35  ;;  %v9662_v35 = vpop.eup %9661  ;;  %v1498_v4 = vmul.f32 %v9660_v32, %v12080_v15  ;;  %3407 = vperm.xlu0 %9585, %v9750_v55   ;;  %v12209_v19 = vsel %vm1410_vm10, 1.0, %v17128_v56  ;;  %9677 = vpow2.f32 %v1237_v39  ;;  %v1199_v63 = vsub.f32 %v17147_v18, %v1159_v46  ;;  %v17150_v18 = vld [vmem:[#allocation73_spill] sm:$0xff] }
 0x216   : > { %17145 = vst [vmem:[#allocation18_spill] sm:$0xff] %v12197_v54  ;;  %17146 = vst [vmem:[#allocation25_spill] sm:$0xff] %v12200_v31  ;;  %v1499_v0 = vmul.f32 0.0, %v9662_v35  ;;  %v12213_v17 = vmul.f32 %v12209_v19, %v1195_v62  ;;  %vm1332_vm11 = vcmp.lt.s32.totalorder %v1316_v36, 64  ;;  %vm1394_vm12 = vcmp.ne.s32.totalorder %v11993_v34, %v1316_v36  ;;  %v12226_v62 = vld [vmem:[%s16811_s5 + $0xc8] sm:$0xff] }
 0x217   : > { %1530 = vst [vmem:[#allocation3] sm:$0xff] %v1498_v4  ;;  %vm1362_vm13 = vmand %vm1332_vm11, %vm1336_vm3  ;;  %9679 = vpow2.f32 %v1267_v30  ;;  %v1269_v55 = vmul.f32 1.442695, %v12197_v54  ;;  %v1310_v39 = vadd.s32 %v12003_v43, %v12200_v31  ;;  %2723 = vperm.xlu1 %9583, %v12226_v62   ;;  %v17148_v4 = vld [vmem:[#allocation70_spill] sm:$0xff]  ;;  %v1243_v36 = vmul.f32 1.442695, %v1199_v63 }
 0x218   : > { %v9664_v35 = vpop.eup %9663  ;;  %1531 = vst [vmem:[#allocation3 + $0x8] sm:$0xff] %v1499_v0  ;;  %vm1426_vm14 = vmand %vm1394_vm12, %vm1362_vm13  ;;  %v12230_v32 = vsub.f32 %v17148_v4, %v1159_v46  ;;  %v12233_v30 = vadd.s32 112, %v17123_v6  ;;  %v1215_v15 = vsub.f32 %v17150_v18, %v1183_v49  ;;  %v9752_v54 = vld [vmem:[%s16811_s5 + $0x98] sm:$0xff]  ;;  %v1144_v46 = vpop.xlane.xlu1 %1143  ;;  %vm2832_vm6 = vcmp.lt.f32.partialorder %v12018_v23, 1.0 }
 0x219   : > { %v9666_v31 = vpop.eup %9665  ;;  %v1514_v47 = vmul.f32 %v9664_v35, %v12118_v37  ;;  %3415 = vperm.xlu0 %9585, %v9752_v54   ;;  %v12241_v0 = vsel %vm1426_vm14, 1.0, %v17128_v56  ;;  %9681 = vpow2.f32 %v1269_v55  ;;  %vm1326_vm15 = vcmp.lt.s32.totalorder %v1310_v39, 64  ;;  %v17152_v35 = vld [vmem:[#allocation74_spill] sm:$0xff] }
 0x21a   : > { %17149 = vst [vmem:[#allocation66_spill] sm:$0xff] %v12233_v30  ;;  %v1515_v4 = vmul.f32 0.0, %v9666_v31  ;;  %v12245_v50 = vmul.f32 %v12241_v0, %v1211_v42  ;;  %vm1350_vm2 = vmand %vm1326_vm15, %vm1336_vm3  ;;  %vm1382_vm4 = vcmp.ne.s32.totalorder %v11993_v34, %v1310_v39  ;;  %9683 = vpow2.f32 %v1243_v36  ;;  %v12261_v39 = vld [vmem:[%s16811_s5 + $0xd8] sm:$0xff] }
 0x21b   : > { %v9668_v37 = vpop.eup %9667  ;;  %1546 = vst [vmem:[#allocation3 + $0x80] sm:$0xff] %v1514_v47  ;;  %vm1414_vm5 = vmand %vm1382_vm4, %vm1350_vm2  ;;  %v1245_v55 = vmul.f32 1.442695, %v12230_v32  ;;  %v1318_v31 = vadd.s32 %v12003_v43, %v12233_v30  ;;  %v12256_v42 = vsub.f32 %v17152_v35, %v1183_v49  ;;  %2731 = vperm.xlu1 %9583, %v12261_v39   ;;  %v1275_v54 = vmul.f32 1.442695, %v1215_v15 }
 0x21c   : > { %17151 = vst [vmem:[#allocation68_spill] sm:$0xff] %v12245_v50  ;;  %v9670_v18 = vpop.eup %9669  ;;  %1547 = vst [vmem:[#allocation3 + $0x88] sm:$0xff] %v1515_v4  ;;  %v1502_v47 = vmul.f32 %v9668_v37, %v12139_v28  ;;  %v12266_v36 = vsel %vm1414_vm5, 1.0, %v17128_v56  ;;  %v12269_v30 = vadd.s32 8, %v17123_v6  ;;  %vm2821_vm15 = vcmp.lt.f32.partialorder %v12020_v9, 1.0 }
 0x21d   : > { %v9672_v49 = vpop.eup %9671  ;;  %v1503_v35 = vmul.f32 0.0, %v9670_v18  ;;  %3423 = vperm.xlu0 %9585, %v11749_v10   ;;  %9685 = vpow2.f32 %v1245_v55  ;;  %v12273_v50 = vmul.f32 %v12266_v36, %v1199_v63  ;;  %vm1334_vm7 = vcmp.lt.s32.totalorder %v1318_v31, 64  ;;  %v1168_v18 = vpop.xlane.xlu1 %1167 }
 0x21e   : > { %17153 = vst [vmem:[#allocation69_spill] sm:$0xff] %v12269_v30  ;;  %1534 = vst [vmem:[#allocation3 + $0x20] sm:$0xff] %v1502_v47  ;;  %v1518_v28 = vmul.f32 %v9672_v49, %v12175_v12  ;;  %vm1398_vm9 = vcmp.ne.s32.totalorder %v11993_v34, %v1318_v31  ;;  %9687 = vpow2.f32 %v1275_v54  ;;  %v1277_v4 = vmul.f32 1.442695, %v12256_v42  ;;  %v12293_v31 = vld [vmem:[%s16811_s5 + $0xe8] sm:$0xff] }
 0x21f   : > { %vm1366_vm8 = vmand %vm1334_vm7, %vm1336_vm3  ;;  %v9674_v37 = vpop.eup %9673  ;;  %v12283_v10 = vadd.f32 %v12156_v2, %v11373_v38  ;;  %1535 = vst [vmem:[#allocation3 + $0x28] sm:$0xff] %v1503_v35  ;;  %v1305_v63 = vadd.s32 %v12003_v43, %v12269_v30  ;;  %v1189_v12 = vsub.f32 %v11361_v20, %v1144_v46  ;;  %v1190_v55 = vsub.f32 %v11367_v57, %v1144_v46 }
 0x220   : > { %vm1430_vm10 = vmand %vm1398_vm9, %vm1366_vm8  ;;  %v9676_v47 = vpop.eup %9675  ;;  %v6879_v54 = vmul.f32 0.0, %v12042_v53  ;;  %2739 = vperm.xlu1 %9583, %v12293_v31   ;;  %v1519_v38 = vmul.f32 0.0, %v9674_v37  ;;  %1550 = vst [vmem:[#allocation3 + $0xa0] sm:$0xff] %v1518_v28  ;;  %9689 = vpow2.f32 %v1277_v4  ;;  %v12308_v28 = vadd.s32 72, %v17123_v6 }
 0x221   : > { %17154 = vst [vmem:[#allocation70_spill] sm:$0xff] %v12283_v10  ;;  %v12297_v2 = vsel %vm1430_vm10, 1.0, %v17128_v56  ;;  %3431 = vperm.xlu0 %9585, %v12191_v14   ;;  %v1506_v20 = vmul.f32 %v9676_v47, %v12209_v19  ;;  %vm1321_vm11 = vcmp.lt.s32.totalorder %v1305_v63, 64  ;;  %vm1372_vm12 = vcmp.ne.s32.totalorder %v11993_v34, %v1305_v63  ;;  %v12322_v63 = vld [vmem:[%s16811_s5 + $0xf8] sm:$0xff] }
 0x222   : > { %v12302_v57 = vmul.f32 %v12297_v2, %v1215_v15  ;;  %v9678_v53 = vpop.eup %9677  ;;  %1551 = vst [vmem:[#allocation3 + $0xa8] sm:$0xff] %v1519_v38  ;;  %vm1340_vm13 = vmand %vm1321_vm11, %vm1336_vm3  ;;  %v1223_v46 = vmul.f32 1.442695, %v1189_v12  ;;  %v1225_v49 = vmul.f32 1.442695, %v1190_v55  ;;  %v6881_v35 = vmul.f32 0.0, %v1190_v55 }
 0x223   : > { %17155 = vst [vmem:[#allocation73_spill] sm:$0xff] %v12308_v28  ;;  %v2947_v19 = vsel %vm2819_vm0, %v12070_v27, %v12053_v22  ;;  %v1507_v14 = vmul.f32 0.0, %v9678_v53  ;;  %1538 = vst [vmem:[#allocation3 + $0x40] sm:$0xff] %v1506_v20  ;;  %v1205_v15 = vsub.f32 %v11409_v13, %v1168_v18  ;;  %v12316_v4 = vsub.f32 %v11411_v25, %v1168_v18  ;;  %v1150_v18 = vpop.xlane.xlu1 %1149  ;;  %v17156_v53 = vld [vmem:[#allocation53_spill] sm:$0xff] }
 0x224   : > { %vm1404_vm14 = vmand %vm1372_vm12, %vm1340_vm13  ;;  %v9680_v37 = vpop.eup %9679  ;;  %2747 = vperm.xlu1 %9583, %v12322_v63   ;;  %9691 = vpow2.f32 %v1223_v46  ;;  %v6931_v22 = vadd.f32 %v6881_v35, %v6879_v54  ;;  %v1313_v13 = vadd.s32 %v12003_v43, %v12308_v28  ;;  %v2885_v38 = vmul.f32 %v12073_v33, %v12020_v9 }
 0x225   : > { %v12326_v48 = vsel %vm1404_vm14, 1.0, %v17128_v56  ;;  %1539 = vst [vmem:[#allocation3 + $0x48] sm:$0xff] %v1507_v14  ;;  %3439 = vperm.xlu0 %9585, %v12226_v62   ;;  %v1522_v25 = vmul.f32 %v9680_v37, %v12241_v0  ;;  %9693 = vpow2.f32 %v1225_v49  ;;  %v1255_v55 = vmul.f32 1.442695, %v1205_v15  ;;  %v12356_v37 = vld [vmem:[%s10243_s18 + $0x8] sm:$0xff] }
 0x226   : > { %v6880_v27 = vmul.f32 %v12326_v48, %v1189_v12  ;;  %v9682_v47 = vpop.eup %9681  ;;  %vm1329_vm0 = vcmp.lt.s32.totalorder %v1313_v13, 64  ;;  %vm1388_vm2 = vcmp.ne.s32.totalorder %v11993_v34, %v1313_v13  ;;  %v1257_v54 = vmul.f32 1.442695, %v12316_v4 }
 0x227   : > { %v9684_v20 = vpop.eup %9683  ;;  %v12338_v62 = vadd.f32 %v2947_v19, %v17156_v53  ;;  %v1523_v0 = vmul.f32 0.0, %v9682_v47  ;;  %1554 = vst [vmem:[#allocation3 + $0xc0] sm:$0xff] %v1522_v25  ;;  %vm1356_vm4 = vmand %vm1329_vm0, %vm1336_vm3  ;;  %9695 = vpow2.f32 %v1255_v55  ;;  %v17157_v46 = vmov 2   ;;  %v1174_v47 = vpop.xlane.xlu1 %1173 }
 0x228   : > { %v6910_v12 = vadd.f32 %v6880_v27, %v12090_v60  ;;  %9586 = vset.pattern.permute.xlu1 %v17157_v46  ;;  %v1510_v33 = vmul.f32 %v9684_v20, %v12266_v36  ;;  %vm1420_vm5 = vmand %vm1388_vm2, %vm1356_vm4  ;;  %9697 = vpow2.f32 %v1257_v54  ;;  %v12346_v49 = vadd.s32 24, %v17123_v6  ;;  %v12373_v20 = vpop.permute.xlu0 %2703 }
 0x229   : > { %v1193_v35 = vsub.f32 %v11459_v45, %v1150_v18  ;;  %v2960_v60 = vsel %vm2832_vm6, %v12180_v59, %v12061_v24  ;;  %v2866_v19 = vmul.f32 0.5, %v12127_v8  ;;  %v6883_v14 = vmul.f32 0.0, %v12110_v40  ;;  %3047 = vperm.xlu1 %9586, %v12356_v37   ;;  %1555 = vst [vmem:[#allocation3 + $0xc8] sm:$0xff] %v1523_v0  ;;  %3447 = vperm.xlu0 %9585, %v12261_v39   ;;  %v12383_v0 = vld [vmem:[%s10243_s18 + $0x10] sm:$0xff] }
 0x22a   : > { %17158 = vst [vmem:[#allocation74_spill] sm:$0xff] %v12346_v49  ;;  %v12361_v36 = vsel %vm1420_vm5, 1.0, %v17128_v56  ;;  %v9686_v45 = vpop.eup %9685  ;;  %vm2834_vm7 = vcmp.lt.f32.partialorder %v12127_v8, 1.0  ;;  %1542 = vst [vmem:[#allocation3 + $0x60] sm:$0xff] %v1510_v33  ;;  %v1307_v40 = vadd.s32 %v12003_v43, %v12346_v49  ;;  %v1194_v24 = vsub.f32 %v11461_v3, %v1150_v18  ;;  %v17159_v3 = vld [vmem:[#allocation57_spill] sm:$0xff] }
 0x22b   : > { %v12365_v23 = vmul.f32 %v12361_v36, %v1205_v15  ;;  %v1231_v59 = vmul.f32 1.442695, %v1193_v35  ;;  %v9688_v13 = vpop.eup %9687  ;;  %v8680_v39 = vadd.f32 -0.5, %v12127_v8  ;;  %v1511_v25 = vmul.f32 0.0, %v9686_v45 }
 0x22c   : > { %v6911_v27 = vadd.f32 %v6910_v12, %v12149_v5  ;;  %v6932_v55 = vadd.f32 %v6931_v22, %v6883_v14  ;;  %v1526_v54 = vmul.f32 %v9688_v13, %v12297_v2  ;;  %vm1323_vm6 = vcmp.lt.s32.totalorder %v1307_v40, 64 }
 0x22d   : > { %vm1376_vm8 = vcmp.ne.s32.totalorder %v11993_v34, %v1307_v40  ;;  %9699 = vpow2.f32 %v1231_v59  ;;  %v9690_v15 = vpop.eup %9689  ;;  %v12377_v18 = vadd.f32 %v2960_v60, %v17159_v3  ;;  %v2949_v53 = vsel %vm2821_vm15, %v2885_v38, %v12094_v26  ;;  %3051 = vperm.xlu1 %9586, %v12383_v0   ;;  %1543 = vst [vmem:[#allocation3 + $0x68] sm:$0xff] %v1511_v25  ;;  %vm1344_vm9 = vmand %vm1323_vm6, %vm1336_vm3  ;;  %v17163_v26 = vld [vmem:[#allocation83_spill] sm:$0xff]  ;;  %v17165_v40 = vld [vmem:[#allocation84_spill] sm:$0xff] }
 0x22e   : > { %3455 = vperm.xlu0 %9585, %v12293_v31   ;;  %v1233_v5 = vmul.f32 1.442695, %v1194_v24  ;;  %v6885_v2 = vmul.f32 0.0, %v1194_v24  ;;  %v17161_v22 = vsub.f32 %v11864_v52, %v11734_v61  ;;  %v1527_v46 = vmul.f32 0.0, %v9690_v15  ;;  %1558 = vst [vmem:[#allocation3 + $0xe0] sm:$0xff] %v1526_v54  ;;  %vm1408_vm10 = vmand %vm1376_vm8, %vm1344_vm9  ;;  %v17166_v25 = vld [vmem:[#allocation56_spill] sm:$0xff] }
 0x22f   : > { %17160 = vst [vmem:[#allocation53_spill] sm:$0xff] %v12377_v18  ;;  %v12397_v9 = vadd.s32 88, %v17123_v6  ;;  %v1209_v31 = vsub.f32 %v17163_v26, %v1174_v47  ;;  %v17164_v38 = vsub.f32 %v11853_v21, %v11734_v61  ;;  %v12406_v52 = vsel %vm1408_vm10, 1.0, %v17128_v56  ;;  %v9759_v26 = vld [vmem:[%s10243_s18 + $0x30] sm:$0xff] }
 0x230   : > { %v12392_v12 = vand.u32 2147483647, %v17161_v22  ;;  %9701 = vpow2.f32 %v1233_v5  ;;  %v6933_v60 = vadd.f32 %v6932_v55, %v6885_v2  ;;  %1559 = vst [vmem:[#allocation3 + $0xe8] sm:$0xff] %v1527_v46  ;;  %v6884_v14 = vmul.f32 %v12406_v52, %v1193_v35  ;;  %v9758_v55 = vld [vmem:[%s10243_s18 + $0x20] sm:$0xff] }
 0x231   : > { %17162 = vst [vmem:[#allocation57_spill] sm:$0xff] %v12397_v9  ;;  %v12403_v33 = vand.u32 2147483647, %v17164_v38  ;;  %v1315_v45 = vadd.s32 %v12003_v43, %v12397_v9  ;;  %v12412_v24 = vsub.f32 %v17165_v40, %v1174_v47  ;;  %v1263_v59 = vmul.f32 1.442695, %v1209_v31  ;;  %v9692_v13 = vpop.eup %9691  ;;  %3059 = vperm.xlu1 %9586, %v9758_v55   ;;  %v12423_v47 = vpop.permute.xlu0 %2711 }
 0x232   : > { %v12415_v21 = vadd.f32 %v2949_v53, %v17166_v25  ;;  %v2898_v54 = vmul.f32 %v2866_v19, %v12127_v8  ;;  %v2761_v15 = vsub.f32 %v11906_v58, %v11734_v61  ;;  %3463 = vperm.xlu0 %9585, %v12322_v63   ;;  %v9694_v35 = vpop.eup %9693  ;;  %v1500_v3 = vmul.f32 %v9692_v13, %v12326_v48 }
 0x233   : > { %v6912_v5 = vadd.f32 %v6911_v27, %v6884_v14  ;;  %vm1331_vm11 = vcmp.lt.s32.totalorder %v1315_v45, 64  ;;  %vm1392_vm12 = vcmp.ne.s32.totalorder %v11993_v34, %v1315_v45  ;;  %v2763_v19 = vsub.f32 %v11939_v44, %v11734_v61 }
 0x234   : > { %v1501_v53 = vmul.f32 0.0, %v9694_v35  ;;  %vm1360_vm13 = vmand %vm1331_vm11, %vm1336_vm3  ;;  %9703 = vpow2.f32 %v1263_v59  ;;  %v1265_v58 = vmul.f32 1.442695, %v12412_v24  ;;  %v9696_v63 = vpop.eup %9695  ;;  %v2855_v48 = vmul.f32 0.5, %v12392_v12  ;;  %1532 = vst [vmem:[#allocation3 + $0x10] sm:$0xff] %v1500_v3  ;;  %v1156_v40 = vpop.xlane.xlu1 %1155  ;;  %v17169_v35 = vld [vmem:[#allocation78_spill] sm:$0xff] }
 0x235   : > { %v12433_v27 = vadd.f32 -0.5, %v12392_v12  ;;  %vm1424_vm14 = vmand %vm1392_vm12, %vm1360_vm13  ;;  %v12436_v2 = vadd.s32 40, %v17123_v6  ;;  %v12439_v44 = vadd.f32 %v6912_v5, %v12213_v17  ;;  %v9698_v22 = vpop.eup %9697  ;;  %v2962_v46 = vsel %vm2834_vm7, %v2898_v54, %v8680_v39  ;;  %3067 = vperm.xlu1 %9586, %v9759_v26   ;;  %v17168_v54 = vld [vmem:[#allocation88_spill] sm:$0xff]  ;;  %v12467_v3 = vpop.permute.xlu0 %2719 }
 0x236   : > { %1533 = vst [vmem:[#allocation3 + $0x18] sm:$0xff] %v1501_v53  ;;  %v16868_v38 = vmov 3   ;;  %v1516_v14 = vmul.f32 %v9696_v63, %v12361_v36  ;;  %v12447_v45 = vsel %vm1424_vm14, 1.0, %v17128_v56  ;;  %9705 = vpow2.f32 %v1265_v58 }
 0x237   : > { %17167 = vst [vmem:[#allocation83_spill] sm:$0xff] %v12436_v2  ;;  %9588 = vset.pattern.permute.xlu0 %v16868_v38  ;;  %v2868_v17 = vmul.f32 0.5, %v12403_v33  ;;  %v6887_v59 = vmul.f32 0.0, %v12168_v1  ;;  %v1517_v8 = vmul.f32 0.0, %v9698_v22  ;;  %v12453_v39 = vmul.f32 %v12447_v45, %v1209_v31  ;;  %v17171_v31 = vld [vmem:[#allocation89_spill] sm:$0xff] }
 0x238   : > { %3763 = vperm.xlu0 %9588, %v12356_v37   ;;  %vm2823_vm15 = vcmp.lt.f32.partialorder %v12392_v12, 1.0  ;;  %v12457_v36 = vadd.f32 -0.5, %v12403_v33  ;;  %v12459_v13 = vand.u32 2147483647, %v2761_v15  ;;  %1548 = vst [vmem:[#allocation3 + $0x90] sm:$0xff] %v1516_v14  ;;  %v1309_v25 = vadd.s32 %v12003_v43, %v12436_v2  ;;  %v9760_v22 = vld [vmem:[%s10243_s18 + $0x40] sm:$0xff] }
 0x239   : > { %v1197_v1 = vsub.f32 %v17168_v54, %v1156_v40  ;;  %v12465_v37 = vadd.f32 %v2962_v46, %v17169_v35  ;;  %1549 = vst [vmem:[#allocation3 + $0x98] sm:$0xff] %v1517_v8  ;;  %v1198_v5 = vsub.f32 %v17171_v31, %v1156_v40  ;;  %v6934_v53 = vadd.f32 %v6933_v60, %v6887_v59  ;;  %v9761_v35 = vld [vmem:[%s10243_s18 + $0x50] sm:$0xff] }
 0x23a   : > { %v12471_v58 = vadd.s32 104, %v17123_v6  ;;  %v9700_v15 = vpop.eup %9699  ;;  %v2887_v63 = vmul.f32 %v2855_v48, %v12392_v12  ;;  %3075 = vperm.xlu1 %9586, %v9760_v22   ;;  %vm1325_vm0 = vcmp.lt.s32.totalorder %v1309_v25, 64  ;;  %vm1380_vm2 = vcmp.ne.s32.totalorder %v11993_v34, %v1309_v25 }
 0x23b   : > { %17170 = vst [vmem:[#allocation84_spill] sm:$0xff] %v12465_v37  ;;  %v1239_v14 = vmul.f32 1.442695, %v1197_v1  ;;  %vm2836_vm4 = vcmp.lt.f32.partialorder %v12403_v33, 1.0  ;;  %v12477_v46 = vand.u32 2147483647, %v2763_v19  ;;  %v1504_v40 = vmul.f32 %v9700_v15, %v12406_v52  ;;  %vm1348_vm5 = vmand %vm1325_vm0, %vm1336_vm3  ;;  %v12502_v15 = vpop.permute.xlu0 %2727 }
 0x23c   : > { %17172 = vst [vmem:[#allocation56_spill] sm:$0xff] %v12471_v58  ;;  %3775 = vperm.xlu0 %9588, %v9758_v55   ;;  %v1241_v60 = vmul.f32 1.442695, %v1198_v5  ;;  %v6889_v59 = vmul.f32 0.0, %v1198_v5  ;;  %v2900_v48 = vmul.f32 %v2868_v17, %v12403_v33  ;;  %v2765_v8 = vsub.f32 %v11977_v7, %v11734_v61  ;;  %vm1412_vm7 = vmand %vm1380_vm2, %vm1348_vm5 }
 0x23d   : > { %9707 = vpow2.f32 %v1239_v14  ;;  %v1317_v19 = vadd.s32 %v12003_v43, %v12471_v58  ;;  %v9702_v25 = vpop.eup %9701  ;;  %v2767_v52 = vsub.f32 %v12038_v11, %v11734_v61  ;;  %1536 = vst [vmem:[#allocation3 + $0x30] sm:$0xff] %v1504_v40  ;;  %v12490_v55 = vsel %vm1412_vm7, 1.0, %v17128_v56 }
 0x23e   : > { %9709 = vpow2.f32 %v1241_v60  ;;  %v12492_v54 = vadd.f32 %v6934_v53, %v6889_v59  ;;  %v2857_v17 = vmul.f32 0.5, %v12459_v13  ;;  %v2769_v7 = vsub.f32 %v12096_v16, %v11734_v61  ;;  %3083 = vperm.xlu1 %9586, %v9761_v35  }
 0x23f   : > { %v1505_v31 = vmul.f32 0.0, %v9702_v25  ;;  %v6888_v5 = vmul.f32 %v12490_v55, %v1197_v1  ;;  %vm2825_vm6 = vcmp.lt.f32.partialorder %v12459_v13, 1.0  ;;  %v2771_v11 = vsub.f32 %v12146_v29, %v11734_v61  ;;  %v12546_v2 = vpop.permute.xlu0 %2735 }
 0x240   : > { %3783 = vperm.xlu0 %9588, %v9759_v26   ;;  %vm1333_vm8 = vcmp.lt.s32.totalorder %v1317_v19, 64  ;;  %vm1396_vm9 = vcmp.ne.s32.totalorder %v11993_v34, %v1317_v19  ;;  %v8671_v53 = vadd.f32 -0.5, %v12459_v13  ;;  %v12506_v16 = vand.u32 2147483647, %v2765_v8  ;;  %v1180_v12 = vpop.xlane.xlu1 %1179 }
 0x241   : > { %v2773_v14 = vsub.f32 %v12202_v51, %v11734_v61  ;;  %1537 = vst [vmem:[#allocation3 + $0x38] sm:$0xff] %v1505_v31  ;;  %v6914_v1 = vadd.f32 %v12439_v44, %v6888_v5  ;;  %vm1364_vm10 = vmand %vm1333_vm8, %vm1336_vm3  ;;  %v9704_v29 = vpop.eup %9703  ;;  %v2951_v26 = vsel %vm2823_vm15, %v2887_v63, %v12433_v27  ;;  %vm2827_vm11 = vcmp.lt.f32.partialorder %v12477_v46, 1.0  ;;  %v9762_v44 = vld [vmem:[%s10243_s18 + $0x60] sm:$0xff] }
 0x242   : > { %v2859_v40 = vmul.f32 0.5, %v12477_v46  ;;  %v12518_v60 = vand.u32 2147483647, %v2767_v52  ;;  %vm1428_vm12 = vmand %vm1396_vm9, %vm1364_vm10  ;;  %v2889_v51 = vmul.f32 %v2857_v17, %v12459_v13  ;;  %v12521_v59 = vand.u32 2147483647, %v2769_v7  ;;  %3091 = vperm.xlu1 %9586, %v9762_v44   ;;  %v17173_v52 = vld [vmem:[#allocation91_spill] sm:$0xff] }
 0x243   : > { %v1520_v8 = vmul.f32 %v9704_v29, %v12447_v45  ;;  %v12526_v19 = vsel %vm1428_vm12, 1.0, %v17128_v56  ;;  %v9706_v27 = vpop.eup %9705  ;;  %v8673_v63 = vadd.f32 -0.5, %v12477_v46  ;;  %v12529_v25 = vand.u32 2147483647, %v2771_v11  ;;  %v17174_v5 = vld [vmem:[#allocation92_spill] sm:$0xff]  ;;  %v17175_v7 = vld [vmem:[#allocation21_spill] sm:$0xff] }
 0x244   : > { %3791 = vperm.xlu0 %9588, %v9760_v22   ;;  %v1213_v31 = vsub.f32 %v17173_v52, %v1180_v12  ;;  %v12533_v17 = vsub.f32 %v17174_v5, %v1180_v12  ;;  %v12536_v38 = vadd.f32 %v2951_v26, %v17175_v7  ;;  %v2861_v45 = vmul.f32 0.5, %v12506_v16 }
 0x245   : > { %v12539_v29 = vand.u32 2147483647, %v2773_v14  ;;  %v1521_v30 = vmul.f32 0.0, %v9706_v27  ;;  %1552 = vst [vmem:[#allocation3 + $0xb0] sm:$0xff] %v1520_v8  ;;  %v2863_v49 = vmul.f32 0.5, %v12518_v60  ;;  %v2964_v26 = vsel %vm2836_vm4, %v2900_v48, %v12457_v36  ;;  %v9763_v27 = vld [vmem:[%s10243_s18 + $0x70] sm:$0xff] }
 0x246   : > { %v1271_v11 = vmul.f32 1.442695, %v1213_v31  ;;  %v1273_v22 = vmul.f32 1.442695, %v12533_v17  ;;  %v12544_v52 = vmul.f32 %v12526_v19, %v1213_v31  ;;  %v2953_v14 = vsel %vm2825_vm6, %v2889_v51, %v8671_v53  ;;  %3099 = vperm.xlu1 %9586, %v9763_v27  }
 0x247   : > { %v2891_v12 = vmul.f32 %v2859_v40, %v12477_v46  ;;  %v2865_v8 = vmul.f32 0.5, %v12521_v59  ;;  %1553 = vst [vmem:[#allocation3 + $0xb8] sm:$0xff] %v1521_v30  ;;  %v2867_v5 = vmul.f32 0.5, %v12529_v25  ;;  %v6891_v31 = vmul.f32 0.0, %v12230_v32 }
 0x248   : > { %v2774_v7 = vsub.f32 %v12373_v20, %v11734_v61  ;;  %3799 = vperm.xlu0 %9588, %v9761_v35   ;;  %9711 = vpow2.f32 %v1271_v11  ;;  %v2893_v33 = vmul.f32 %v2861_v45, %v12506_v16  ;;  %v2869_v36 = vmul.f32 0.5, %v12539_v29 }
 0x249   : > { %9713 = vpow2.f32 %v1273_v22  ;;  %v12563_v13 = vadd.f32 %v6914_v1, %v12273_v50  ;;  %vm2829_vm13 = vcmp.lt.f32.partialorder %v12506_v16, 1.0  ;;  %v8675_v30 = vadd.f32 -0.5, %v12506_v16  ;;  %v9764_v1 = vld [vmem:[%s16811_s5] sm:$0xff] }
 0x24a   : > { %v9708_v48 = vpop.eup %9707  ;;  %v2895_v32 = vmul.f32 %v2863_v49, %v12518_v60  ;;  %v12569_v53 = vadd.f32 %v12492_v54, %v6891_v31  ;;  %v2955_v35 = vsel %vm2827_vm11, %v2891_v12, %v8673_v63  ;;  %v8677_v40 = vadd.f32 -0.5, %v12518_v60  ;;  %3339 = vperm.xlu1 %9586, %v9764_v1   ;;  %v2744_v63 = vpop.permute.xlu0 %2743 }
 0x24b   : > { %v9710_v20 = vpop.eup %9709  ;;  %v2776_v50 = vsub.f32 %v12423_v47, %v11734_v61  ;;  %v1508_v51 = vmul.f32 %v9708_v48, %v12490_v55  ;;  %v2897_v49 = vmul.f32 %v2865_v8, %v12521_v59  ;;  %v2899_v54 = vmul.f32 %v2867_v5, %v12529_v25  ;;  %v17178_v48 = vld [vmem:[#allocation16_spill] sm:$0xff] }
 0x24c   : > { %v12582_v45 = vand.u32 2147483647, %v2774_v7  ;;  %v1509_v46 = vmul.f32 0.0, %v9710_v20  ;;  %3807 = vperm.xlu0 %9588, %v9762_v44   ;;  %v2957_v11 = vsel %vm2829_vm13, %v2893_v33, %v8675_v30  ;;  %vm2831_vm14 = vcmp.lt.f32.partialorder %v12518_v60, 1.0 }
 0x24d   : > { %v2901_v47 = vmul.f32 %v2869_v36, %v12539_v29  ;;  %v2778_v22 = vsub.f32 %v12467_v3, %v11734_v61  ;;  %1540 = vst [vmem:[#allocation3 + $0x50] sm:$0xff] %v1508_v51  ;;  %v2959_v55 = vsel %vm2831_vm14, %v2895_v32, %v8677_v40  ;;  %vm2833_vm15 = vcmp.lt.f32.partialorder %v12521_v59, 1.0  ;;  %v9765_v3 = vld [vmem:[%s16811_s5 + $0x10] sm:$0xff]  ;;  %v17179_v32 = vld [vmem:[#allocation61_spill] sm:$0xff] }
 0x24e   : > { %v8679_v12 = vadd.f32 -0.5, %v12521_v59  ;;  %v8681_v8 = vadd.f32 -0.5, %v12529_v25  ;;  %1541 = vst [vmem:[#allocation3 + $0x58] sm:$0xff] %v1509_v46  ;;  %vm2835_vm0 = vcmp.lt.f32.partialorder %v12529_v25, 1.0  ;;  %vm2837_vm2 = vcmp.lt.f32.partialorder %v12539_v29, 1.0  ;;  %3347 = vperm.xlu1 %9586, %v9765_v3   ;;  %v17176_v25 = vld [vmem:[#allocation80_spill] sm:$0xff] }
 0x24f   : > { %v8683_v16 = vadd.f32 -0.5, %v12539_v29  ;;  %v12596_v60 = vand.u32 2147483647, %v2776_v50  ;;  %v2870_v59 = vmul.f32 0.5, %v12582_v45  ;;  %v2780_v31 = vsub.f32 %v12502_v15, %v11734_v61  ;;  %v17181_v40 = vld [vmem:[#allocation23_spill] sm:$0xff] }
 0x250   : > { %v2961_v44 = vsel %vm2833_vm15, %v2897_v49, %v8679_v12  ;;  %v2963_v5 = vsel %vm2835_vm0, %v2899_v54, %v8681_v8  ;;  %3815 = vperm.xlu0 %9588, %v9763_v27   ;;  %v12605_v7 = vadd.f32 %v2964_v26, %v17176_v25  ;;  %v12607_v29 = vand.u32 2147483647, %v2778_v22  ;;  %v12621_v27 = vpop.permute.xlu0 %3043  ;;  %v17183_v26 = vld [vmem:[#allocation64_spill] sm:$0xff]  ;;  %v17185_v49 = vld [vmem:[#allocation71_spill] sm:$0xff] }
 0x251   : > { %v2965_v33 = vsel %vm2837_vm2, %v2901_v47, %v8683_v16  ;;  %v2782_v36 = vsub.f32 %v12546_v2, %v11734_v61  ;;  %v12612_v30 = vadd.f32 %v2953_v14, %v17178_v48  ;;  %v12615_v20 = vadd.f32 %v2955_v35, %v17179_v32  ;;  %v17187_v2 = vld [vmem:[#allocation72_spill] sm:$0xff] }
 0x252   : > { %17177 = vst [vmem:[#allocation88_spill] sm:$0xff] %v12605_v7  ;;  %v12618_v50 = vadd.f32 %v2957_v11, %v17181_v40  ;;  %v2784_v15 = vsub.f32 %v2744_v63, %v11734_v61  ;;  %v12624_v51 = vadd.f32 %v2959_v55, %v17183_v26  ;;  %v12627_v54 = vadd.f32 %v2961_v44, %v17185_v49  ;;  %v9766_v35 = vld [vmem:[%s16811_s5 + $0x20] sm:$0xff]  ;;  %v17189_v11 = vld [vmem:[#allocation75_spill] sm:$0xff]  ;;  %v17192_v44 = vld [vmem:[#allocation18_spill] sm:$0xff] }
 0x253   : > { %17180 = vst [vmem:[#allocation78_spill] sm:$0xff] %v12615_v20  ;;  %v12630_v46 = vadd.f32 %v2963_v5, %v17187_v2  ;;  %v2872_v14 = vmul.f32 0.5, %v12596_v60  ;;  %3355 = vperm.xlu1 %9586, %v9766_v35   ;;  %v12637_v63 = vadd.f32 %v2965_v33, %v17189_v11  ;;  %v12640_v47 = vmul.f32 0.0, %v12084_v41  ;;  %v17191_v8 = vld [vmem:[#allocation20_spill] sm:$0xff]  ;;  %v2708_v33 = vpop.permute.xlu1 %2707  ;;  %v17200_v7 = vld [vmem:[#allocation86_spill] sm:$0xff] }
 0x254   : > { %17182 = vst [vmem:[#allocation89_spill] sm:$0xff] %v12618_v50  ;;  %17184 = vst [vmem:[#allocation91_spill] sm:$0xff] %v12624_v51  ;;  %v2902_v22 = vmul.f32 %v2870_v59, %v12582_v45  ;;  %v12643_v55 = vand.u32 2147483647, %v2780_v31  ;;  %4055 = vperm.xlu0 %9588, %v9764_v1   ;;  %v12646_v16 = vmul.f32 0.0, %v17191_v8  ;;  %v12649_v5 = vmul.f32 0.0, %v17192_v44  ;;  %v12661_v40 = vpop.permute.xlu0 %3055 }
 0x255   : > { %17186 = vst [vmem:[#allocation92_spill] sm:$0xff] %v12627_v54  ;;  %17188 = vst [vmem:[#allocation21_spill] sm:$0xff] %v12630_v46  ;;  %v9712_v12 = vpop.eup %9711  ;;  %v2874_v25 = vmul.f32 0.5, %v12607_v29  ;;  %v12652_v48 = vand.u32 2147483647, %v2782_v36  ;;  %v8684_v41 = vadd.f32 -0.5, %v12582_v45  ;;  %v2904_v26 = vmul.f32 %v2872_v14, %v12596_v60 }
 0x256   : > { %17190 = vst [vmem:[#allocation80_spill] sm:$0xff] %v12637_v63  ;;  %v9714_v32 = vpop.eup %9713  ;;  %v1524_v59 = vmul.f32 %v9712_v12, %v12526_v19  ;;  %v12656_v31 = vand.u32 2147483647, %v2784_v15  ;;  %v12659_v1 = vsub.s32 2, %v17123_v6  ;;  %vm2838_vm4 = vcmp.lt.f32.partialorder %v12582_v45, 1.0  ;;  %v9767_v36 = vld [vmem:[%s16811_s5 + $0x30] sm:$0xff] }
 0x257   : > { %v1525_v49 = vmul.f32 0.0, %v9714_v32  ;;  %3363 = vperm.xlu1 %9586, %v9767_v36   ;;  %v12669_v2 = vadd.s32 56, %v17123_v6  ;;  %v12672_v19 = vmul.f32 0.0, %v12256_v42  ;;  %v2966_v15 = vsel %vm2838_vm4, %v2902_v22, %v8684_v41  ;;  %v12687_v22 = vld [vmem:[%s16812_s6] sm:$0x7f]  ;;  %v9780_v50 = vld [vmem:[%s16811_s5 + $0xd0] sm:$0xff] }
 0x258   : > { %v2876_v11 = vmul.f32 0.5, %v12643_v55  ;;  %1556 = vst [vmem:[#allocation3 + $0xd0] sm:$0xff] %v1524_v59  ;;  %v2775_v45 = vsub.f32 %v2708_v33, %v11734_v61  ;;  %4063 = vperm.xlu0 %9588, %v9765_v3   ;;  %v12677_v14 = vmul.f32 0.0, %v12316_v4  ;;  %v8686_v12 = vadd.f32 -0.5, %v12596_v60  ;;  %v12696_v3 = vld [vmem:[%s16812_s6 + $0x8] sm:$0x7f] }
 0x259   : > { %17193 = vst [vmem:[#allocation16_spill] sm:$0xff] %v12669_v2  ;;  %17194 = vst [vmem:[#allocation61_spill] sm:$0xff] %v12672_v19  ;;  %v2906_v8 = vmul.f32 %v2874_v25, %v12607_v29  ;;  %v2878_v44 = vmul.f32 0.5, %v12652_v48  ;;  %vm2840_vm5 = vcmp.lt.f32.partialorder %v12596_v60, 1.0  ;;  %v2880_v42 = vmul.f32 0.5, %v12656_v31  ;;  %v12702_v60 = vpop.permute.xlu0 %3063  ;;  %v17197_v33 = vld [vmem:[#allocation82_spill] sm:$0xff] }
 0x25a   : > { %1557 = vst [vmem:[#allocation3 + $0xd8] sm:$0xff] %v1525_v49  ;;  %v12691_v4 = vrot.slane %v12687_v22, %v12659_v1  ;;  %v12700_v25 = vrot.slane %v12696_v3, %v12659_v1  ;;  %v12705_v32 = vadd.f32 %v2966_v15, %v17197_v33  ;;  %v2968_v41 = vsel %vm2840_vm5, %v2904_v26, %v8686_v12  ;;  %v9770_v49 = vld [vmem:[%s16811_s5 + $0x40] sm:$0xff] }
 0x25b   : > { %v8688_v59 = vadd.f32 -0.5, %v12607_v29  ;;  %3371 = vperm.xlu1 %9586, %v9770_v49   ;;  %v1311_v28 = vadd.s32 %v12003_v43, %v12669_v2  ;;  %vm2842_vm7 = vcmp.lt.f32.partialorder %v12607_v29, 1.0  ;;  %v2908_v9 = vmul.f32 %v2876_v11, %v12643_v55 }
 0x25c   : > { %17195 = vst [vmem:[#allocation23_spill] sm:$0xff] %v12691_v4  ;;  %17196 = vst [vmem:[#allocation64_spill] sm:$0xff] %v12700_v25  ;;  %v12715_v58 = vand.u32 2147483647, %v2775_v45  ;;  %4071 = vperm.xlu0 %9588, %v9766_v35   ;;  %v12718_v15 = vadd.s32 120, %v17123_v6  ;;  %vm2844_vm6 = vcmp.lt.f32.partialorder %v12643_v55, 1.0  ;;  %v2910_v33 = vmul.f32 %v2878_v44, %v12652_v48 }
 0x25d   : > { %17198 = vst [vmem:[#allocation71_spill] sm:$0xff] %v12705_v32  ;;  %v2970_v26 = vsel %vm2842_vm7, %v2906_v8, %v8688_v59  ;;  %v8690_v12 = vadd.f32 -0.5, %v12643_v55  ;;  %vm2846_vm8 = vcmp.lt.f32.partialorder %v12652_v48, 1.0  ;;  %v2912_v2 = vmul.f32 %v2880_v42, %v12656_v31  ;;  %v12729_v11 = vpop.permute.xlu0 %3071  ;;  %v9771_v55 = vld [vmem:[%s16811_s5 + $0x50] sm:$0xff] }
 0x25e   : > { %17199 = vst [vmem:[#allocation72_spill] sm:$0xff] %v12718_v15  ;;  %v3114_v29 = vsub.f32 %v12621_v27, %v12691_v4  ;;  %v3115_v35 = vsub.f32 %v12621_v27, %v12700_v25  ;;  %v8692_v45 = vadd.f32 -0.5, %v12652_v48  ;;  %v3120_v8 = vsub.f32 %v12661_v40, %v12691_v4  ;;  %v17206_v48 = vld [vmem:[#allocation90_spill] sm:$0xff] }
 0x25f   : > { %3379 = vperm.xlu1 %9586, %v9771_v55   ;;  %v3121_v44 = vsub.f32 %v12661_v40, %v12700_v25  ;;  %vm1327_vm9 = vcmp.lt.s32.totalorder %v1311_v28, 64  ;;  %v2972_v42 = vsel %vm2844_vm6, %v2908_v9, %v8690_v12  ;;  %v2871_v59 = vmul.f32 0.5, %v12715_v58 }
 0x260   : > { %v8694_v27 = vadd.f32 -0.5, %v12656_v31  ;;  %4079 = vperm.xlu0 %9588, %v9767_v36   ;;  %v1319_v32 = vadd.s32 %v12003_v43, %v12718_v15  ;;  %v12744_v37 = vadd.f32 %v2968_v41, %v17200_v7  ;;  %v12747_v18 = vmul.f32 0.0, %v12412_v24  ;;  %vm12760_vm11 = vmand %vm1327_vm9, %vm1336_vm3  ;;  %v17204_v24 = vld [vmem:[#allocation87_spill] sm:$0xff] }
 0x261   : > { %v2974_v10 = vsel %vm2846_vm8, %v2910_v33, %v8692_v45  ;;  %vm2848_vm10 = vcmp.lt.f32.partialorder %v12656_v31, 1.0  ;;  %v12752_v40 = vand.u32 2147483647, %v3114_v29  ;;  %v12754_v12 = vand.u32 2147483647, %v3115_v35  ;;  %v12756_v36 = vpop.permute.xlu0 %3079  ;;  %v9772_v33 = vld [vmem:[%s16811_s5 + $0x60] sm:$0xff] }
 0x262   : > { %17201 = vst [vmem:[#allocation75_spill] sm:$0xff] %v12744_v37  ;;  %v2976_v9 = vsel %vm2848_vm10, %v2912_v2, %v8694_v27  ;;  %vm1384_vm12 = vcmp.ne.s32.totalorder %v11993_v34, %v1311_v28  ;;  %v12766_v7 = vadd.f32 %v2970_v26, %v17204_v24  ;;  %v12769_v31 = vadd.f32 %v2972_v42, %v17206_v48  ;;  %v17208_v45 = vld [vmem:[#allocation93_spill] sm:$0xff]  ;;  %v9774_v43 = vld [vmem:[%s16811_s5 + $0x70] sm:$0xff] }
 0x263   : > { %v12771_v2 = vand.u32 2147483647, %v3120_v8  ;;  %v12773_v41 = vand.u32 2147483647, %v3121_v44  ;;  %3387 = vperm.xlu1 %9586, %v9772_v33   ;;  %v12779_v29 = vmul.f32 0.0, %v12533_v17  ;;  %v2903_v35 = vmul.f32 %v2871_v59, %v12715_v58  ;;  %v17210_v44 = vld [vmem:[#allocation94_spill] sm:$0xff]  ;;  %vm1416_vm14 = vmand %vm1384_vm12, %vm12760_vm11 }
 0x264   : > { %17205 = vst [vmem:[#allocation20_spill] sm:$0xff] %v12766_v7  ;;  %17207 = vst [vmem:[#allocation18_spill] sm:$0xff] %v12769_v31  ;;  %v3124_v26 = vsub.f32 %v12702_v60, %v12691_v4  ;;  %4087 = vperm.xlu0 %9588, %v9770_v49   ;;  %vm1335_vm13 = vcmp.lt.s32.totalorder %v1319_v32, 64  ;;  %v12785_v8 = vadd.f32 %v2974_v10, %v17208_v45  ;;  %v12793_v24 = vld [vmem:[%s10551_s30] sm:$0x7f]  ;;  %v8685_v10 = vadd.f32 -0.5, %v12715_v58 }
 0x265   : > { %v12788_v42 = vadd.f32 %v2976_v9, %v17210_v44  ;;  %v3125_v27 = vsub.f32 %v12702_v60, %v12700_v25  ;;  %v12797_v17 = vrot.slane %v12793_v24, %v12659_v1  ;;  %v3210_v49 = vmul.f32 0.5, %v12752_v40  ;;  %v12806_v9 = vpop.permute.xlu0 %3087  ;;  %vm12817_vm0 = vmand %vm1335_vm13, %vm1336_vm3  ;;  %v17214_v7 = vld [vmem:[#allocation76_spill] sm:$0xff] }
 0x266   : > { %17209 = vst [vmem:[#allocation82_spill] sm:$0xff] %v12785_v8  ;;  %v3211_v59 = vmul.f32 0.5, %v12754_v12  ;;  %vm2839_vm15 = vcmp.lt.f32.partialorder %v12715_v58, 1.0  ;;  %v3216_v60 = vmul.f32 0.5, %v12771_v2  ;;  %v3217_v1 = vmul.f32 0.5, %v12773_v41 }
 0x267   : > { %17211 = vst [vmem:[#allocation86_spill] sm:$0xff] %v12788_v42  ;;  %3395 = vperm.xlu1 %9586, %v9774_v43   ;;  %vm1400_vm2 = vcmp.ne.s32.totalorder %v11993_v34, %v1319_v32  ;;  %v2967_v48 = vsel %vm2839_vm15, %v2903_v35, %v8685_v10  ;;  %v12822_v58 = vand.u32 2147483647, %v3124_v26  ;;  %v12825_v45 = vsel %vm1416_vm14, 1.0, %v17128_v56 }
 0x268   : > { %4095 = vperm.xlu0 %9588, %v9771_v55   ;;  %v12828_v44 = vsub.s32 3, %v17123_v6  ;;  %vm3178_vm4 = vcmp.lt.f32.partialorder %v12752_v40, 1.0  ;;  %vm3179_vm5 = vcmp.lt.f32.partialorder %v12754_v12, 1.0  ;;  %v3157_v15 = vand.u32 2147483647, %v3125_v27  ;;  %vm1432_vm7 = vmand %vm1400_vm2, %vm12817_vm0 }
 0x269   : > { %v3128_v42 = vsub.f32 %v12729_v11, %v12691_v4  ;;  %v3242_v8 = vmul.f32 %v3210_v49, %v12752_v40  ;;  %v3243_v35 = vmul.f32 %v3211_v59, %v12754_v12  ;;  %v8696_v55 = vadd.f32 -0.5, %v12752_v40  ;;  %v12838_v10 = vpop.permute.xlu0 %3095  ;;  %v9775_v59 = vld [vmem:[%s16811_s5 + $0x80] sm:$0xff]  ;;  %v9776_v40 = vld [vmem:[%s16811_s5 + $0x90] sm:$0xff] }
 0x26a   : > { %v8697_v26 = vadd.f32 -0.5, %v12754_v12  ;;  %v3248_v27 = vmul.f32 %v3216_v60, %v12771_v2  ;;  %v3249_v6 = vmul.f32 %v3217_v1, %v12773_v41  ;;  %v8702_v31 = vadd.f32 -0.5, %v12771_v2 }
 0x26b   : > { %v8703_v49 = vadd.f32 -0.5, %v12773_v41  ;;  %3403 = vperm.xlu1 %9586, %v9775_v59   ;;  %v12852_v37 = vadd.f32 %v2967_v48, %v17214_v7  ;;  %vm3184_vm6 = vcmp.lt.f32.partialorder %v12771_v2, 1.0  ;;  %vm3185_vm8 = vcmp.lt.f32.partialorder %v12773_v41, 1.0 }
 0x26c   : > { %v3220_v32 = vmul.f32 0.5, %v12822_v58  ;;  %4103 = vperm.xlu0 %9588, %v9772_v33   ;;  %v3221_v60 = vmul.f32 0.5, %v3157_v15  ;;  %v3129_v1 = vsub.f32 %v12729_v11, %v12700_v25  ;;  %v3160_v28 = vand.u32 2147483647, %v3128_v42 }
 0x26d   : > { %17215 = vst [vmem:[#allocation87_spill] sm:$0xff] %v12852_v37  ;;  %v12860_v34 = vsel %vm1432_vm7, 1.0, %v17128_v56  ;;  %v3306_v63 = vsel %vm3178_vm4, %v3242_v8, %v8696_v55  ;;  %v3307_v7 = vsel %vm3179_vm5, %v3243_v35, %v8697_v26  ;;  %v12866_v2 = vpop.permute.xlu0 %3103  ;;  %v12870_v41 = vrot.slane %v12687_v22, %v12828_v44  ;;  %v17218_v55 = vld [vmem:[#allocation32_spill] sm:$0xff] }
 0x26e   : > { %v12874_v33 = vrot.slane %v12696_v3, %v12828_v44  ;;  %v3312_v11 = vsel %vm3184_vm6, %v3248_v27, %v8702_v31  ;;  %v3313_v42 = vsel %vm3185_vm8, %v3249_v6, %v8703_v49  ;;  %vm3188_vm9 = vcmp.lt.f32.partialorder %v12822_v58, 1.0 }
 0x26f   : > { %17216 = vst [vmem:[#allocation90_spill] sm:$0xff] %v12870_v41  ;;  %v3132_v56 = vsub.f32 %v12756_v36, %v12691_v4  ;;  %3411 = vperm.xlu1 %9586, %v9776_v40   ;;  %v3252_v12 = vmul.f32 %v3220_v32, %v12822_v58  ;;  %v8706_v22 = vadd.f32 -0.5, %v12822_v58  ;;  %v8707_v8 = vadd.f32 -0.5, %v3157_v15 }
 0x270   : > { %17217 = vst [vmem:[#allocation93_spill] sm:$0xff] %v12874_v33  ;;  %v3133_v3 = vsub.f32 %v12756_v36, %v12700_v25  ;;  %4111 = vperm.xlu0 %9588, %v9774_v43   ;;  %v3253_v6 = vmul.f32 %v3221_v60, %v3157_v15  ;;  %v12886_v31 = vand.u32 2147483647, %v3129_v1  ;;  %v3224_v48 = vmul.f32 0.5, %v3160_v28  ;;  %v17220_v36 = vld [vmem:[#allocation33_spill] sm:$0xff]  ;;  %v17222_v60 = vld [vmem:[#allocation34_spill] sm:$0xff] }
 0x271   : > { %v3136_v35 = vsub.f32 %v12806_v9, %v12691_v4  ;;  %v12891_v26 = vadd.f32 %v3306_v63, %v17218_v55  ;;  %vm3189_vm10 = vcmp.lt.f32.partialorder %v3157_v15, 1.0  ;;  %v3137_v27 = vsub.f32 %v12806_v9, %v12700_v25  ;;  %v12897_v32 = vpop.permute.xlu0 %3343  ;;  %v9777_v63 = vld [vmem:[%s16811_s5 + $0xa0] sm:$0xff]  ;;  %v17224_v9 = vld [vmem:[#allocation35_spill] sm:$0xff] }
 0x272   : > { %v3140_v49 = vsub.f32 %v12838_v10, %v12691_v4  ;;  %v12900_v43 = vadd.f32 %v3307_v7, %v17220_v36  ;;  %v12903_v1 = vadd.f32 %v3312_v11, %v17222_v60  ;;  %v12905_v37 = vand.u32 2147483647, %v3132_v56 }
 0x273   : > { %17219 = vst [vmem:[#allocation94_spill] sm:$0xff] %v12891_v26  ;;  %3419 = vperm.xlu1 %9586, %v9777_v63   ;;  %v3141_v15 = vsub.f32 %v12838_v10, %v12700_v25  ;;  %v12913_v55 = vadd.f32 %v3313_v42, %v17224_v9  ;;  %v3316_v7 = vsel %vm3188_vm9, %v3252_v12, %v8706_v22  ;;  %v8710_v36 = vadd.f32 -0.5, %v3160_v28  ;;  %v17226_v9 = vld [vmem:[#allocation42_spill] sm:$0xff] }
 0x274   : > { %17221 = vst [vmem:[#allocation76_spill] sm:$0xff] %v12900_v43  ;;  %17223 = vst [vmem:[#allocation32_spill] sm:$0xff] %v12903_v1  ;;  %v12917_v43 = vand.u32 2147483647, %v3133_v3  ;;  %4119 = vperm.xlu0 %9588, %v9775_v59   ;;  %v3317_v11 = vsel %vm3189_vm10, %v3253_v6, %v8707_v8  ;;  %v3225_v56 = vmul.f32 0.5, %v12886_v31  ;;  %v3256_v60 = vmul.f32 %v3224_v48, %v3160_v28  ;;  %v9778_v59 = vld [vmem:[%s16811_s5 + $0xb0] sm:$0xff] }
 0x275   : > { %17225 = vst [vmem:[#allocation33_spill] sm:$0xff] %v12913_v55  ;;  %v3168_v1 = vand.u32 2147483647, %v3136_v35  ;;  %vm3192_vm11 = vcmp.lt.f32.partialorder %v3160_v28, 1.0  ;;  %v3169_v26 = vand.u32 2147483647, %v3137_v27  ;;  %v3144_v10 = vsub.f32 %v12866_v2, %v12691_v4  ;;  %v12922_v42 = vpop.permute.xlu0 %3351 }
 0x276   : > { %v3172_v33 = vand.u32 2147483647, %v3140_v49  ;;  %v12925_v58 = vadd.f32 %v3316_v7, %v17226_v9  ;;  %v3228_v12 = vmul.f32 0.5, %v12905_v37  ;;  %v3173_v22 = vand.u32 2147483647, %v3141_v15  ;;  %v17228_v3 = vld [vmem:[#allocation43_spill] sm:$0xff] }
 0x277   : > { %3427 = vperm.xlu1 %9586, %v9778_v59   ;;  %v3145_v8 = vsub.f32 %v12866_v2, %v12700_v25  ;;  %v12934_v6 = vadd.f32 %v3317_v11, %v17228_v3  ;;  %vm3193_vm12 = vcmp.lt.f32.partialorder %v12886_v31, 1.0  ;;  %v8711_v48 = vadd.f32 -0.5, %v12886_v31  ;;  %v9779_v28 = vld [vmem:[%s16811_s5 + $0xc0] sm:$0xff] }
 0x278   : > { %17227 = vst [vmem:[#allocation34_spill] sm:$0xff] %v12925_v58  ;;  %v3229_v35 = vmul.f32 0.5, %v12917_v43  ;;  %4127 = vperm.xlu0 %9588, %v9776_v40   ;;  %v3257_v27 = vmul.f32 %v3225_v56, %v12886_v31  ;;  %v3320_v49 = vsel %vm3192_vm11, %v3256_v60, %v8710_v36  ;;  %vm3196_vm13 = vcmp.lt.f32.partialorder %v12905_v37, 1.0 }
 0x279   : > { %17229 = vst [vmem:[#allocation35_spill] sm:$0xff] %v12934_v6  ;;  %v3232_v15 = vmul.f32 0.5, %v3168_v1  ;;  %v8714_v7 = vadd.f32 -0.5, %v12905_v37  ;;  %v3233_v2 = vmul.f32 0.5, %v3169_v26  ;;  %v3236_v9 = vmul.f32 0.5, %v3172_v33  ;;  %v12943_v3 = vpop.permute.xlu0 %3359 }
 0x27a   : > { %v3176_v11 = vand.u32 2147483647, %v3144_v10  ;;  %vm3197_vm14 = vcmp.lt.f32.partialorder %v12917_v43, 1.0  ;;  %v3260_v6 = vmul.f32 %v3228_v12, %v12905_v37  ;;  %v3237_v58 = vmul.f32 0.5, %v3173_v22 }
 0x27b   : > { %v3177_v40 = vand.u32 2147483647, %v3145_v8  ;;  %3435 = vperm.xlu1 %9586, %v9779_v28   ;;  %v3261_v36 = vmul.f32 %v3229_v35, %v12917_v43  ;;  %v8715_v56 = vadd.f32 -0.5, %v12917_v43  ;;  %vm3200_vm15 = vcmp.lt.f32.partialorder %v3168_v1, 1.0  ;;  %v9781_v43 = vld [vmem:[%s16811_s5 + $0xe0] sm:$0xff] }
 0x27c   : > { %v3471_v60 = vsub.f32 %v12897_v32, %v12797_v17  ;;  %4135 = vperm.xlu0 %9588, %v9777_v63   ;;  %vm3201_vm0 = vcmp.lt.f32.partialorder %v3169_v26, 1.0  ;;  %v3264_v10 = vmul.f32 %v3232_v15, %v3168_v1  ;;  %v8718_v55 = vadd.f32 -0.5, %v3168_v1  ;;  %v17230_v63 = vld [vmem:[#allocation50_spill] sm:$0xff] }
 0x27d   : > { %v8719_v12 = vadd.f32 -0.5, %v3169_v26  ;;  %v3265_v41 = vmul.f32 %v3233_v2, %v3169_v26  ;;  %v3268_v8 = vmul.f32 %v3236_v9, %v3172_v33  ;;  %v8722_v46 = vadd.f32 -0.5, %v3172_v33  ;;  %v3368_v25 = vpop.permute.xlu0 %3367 }
 0x27e   : > { %v3240_v54 = vmul.f32 0.5, %v3176_v11  ;;  %vm3204_vm2 = vcmp.lt.f32.partialorder %v3172_v33, 1.0  ;;  %v3269_v4 = vmul.f32 %v3237_v58, %v3173_v22  ;;  %v8723_v51 = vadd.f32 -0.5, %v3173_v22  ;;  %v17235_v33 = vld [vmem:[#allocation37_spill] sm:$0xff] }
 0x27f   : > { %v3241_v35 = vmul.f32 0.5, %v3177_v40  ;;  %3443 = vperm.xlu1 %9586, %v9780_v50   ;;  %v3321_v32 = vsel %vm3193_vm12, %v3257_v27, %v8711_v48  ;;  %v12960_v15 = vadd.f32 %v3320_v49, %v17230_v63  ;;  %vm3205_vm4 = vcmp.lt.f32.partialorder %v3173_v22, 1.0 }
 0x280   : > { %v3503_v2 = vand.u32 2147483647, %v3471_v60  ;;  %4143 = vperm.xlu0 %9588, %v9778_v59   ;;  %v3324_v9 = vsel %vm3196_vm13, %v3260_v6, %v8714_v7  ;;  %v3325_v58 = vsel %vm3197_vm14, %v3261_v36, %v8715_v56  ;;  %v3328_v20 = vsel %vm3200_vm15, %v3264_v10, %v8718_v55  ;;  %v17237_v6 = vld [vmem:[#allocation40_spill] sm:$0xff]  ;;  %v17243_v10 = vld [vmem:[#allocation45_spill] sm:$0xff] }
 0x281   : > { %v3473_v19 = vsub.f32 %v12922_v42, %v12797_v17  ;;  %v3329_v31 = vsel %vm3201_vm0, %v3265_v41, %v8719_v12  ;;  %v3332_v48 = vsel %vm3204_vm2, %v3268_v8, %v8722_v46  ;;  %v3272_v27 = vmul.f32 %v3240_v54, %v3176_v11  ;;  %v3376_v22 = vpop.permute.xlu0 %3375  ;;  %v17231_v54 = vld [vmem:[#allocation51_spill] sm:$0xff] }
 0x282   : > { %v8726_v49 = vadd.f32 -0.5, %v3176_v11  ;;  %v3333_v60 = vsel %vm3205_vm4, %v3269_v4, %v8723_v51  ;;  %vm3208_vm5 = vcmp.lt.f32.partialorder %v3176_v11, 1.0  ;;  %v3273_v59 = vmul.f32 %v3241_v35, %v3177_v40  ;;  %v17233_v51 = vld [vmem:[#allocation36_spill] sm:$0xff] }
 0x283   : > { %v8727_v37 = vadd.f32 -0.5, %v3177_v40  ;;  %3451 = vperm.xlu1 %9586, %v9781_v43   ;;  %vm3209_vm7 = vcmp.lt.f32.partialorder %v3177_v40, 1.0  ;;  %v3567_v1 = vmul.f32 0.5, %v3503_v2  ;;  %v3475_v26 = vsub.f32 %v12943_v3, %v12797_v17  ;;  %v17239_v40 = vld [vmem:[#allocation41_spill] sm:$0xff]  ;;  %v17241_v3 = vld [vmem:[#allocation44_spill] sm:$0xff] }
 0x284   : > { %v3477_v41 = vsub.f32 %v3368_v25, %v12797_v17  ;;  %4151 = vperm.xlu0 %9588, %v9779_v28   ;;  %v12978_v46 = vadd.f32 %v3321_v32, %v17231_v54  ;;  %v12981_v4 = vadd.f32 %v3324_v9, %v17233_v51  ;;  %v12984_v55 = vadd.f32 %v3325_v58, %v17235_v33  ;;  %v17245_v58 = vld [vmem:[#allocation48_spill] sm:$0xff] }
 0x285   : > { %v12986_v42 = vand.u32 2147483647, %v3473_v19  ;;  %v12989_v7 = vadd.f32 %v3328_v20, %v17237_v6  ;;  %v12992_v36 = vadd.f32 %v3329_v31, %v17239_v40  ;;  %v12995_v25 = vadd.f32 %v3332_v48, %v17241_v3  ;;  %v3384_v56 = vpop.permute.xlu0 %3383  ;;  %v9782_v20 = vld [vmem:[%s16811_s5 + $0xf0] sm:$0xff]  ;;  %v1162_v63 = vpop.xlane.xlu1 %1161 }
 0x286   : > { %17232 = vst [vmem:[#allocation42_spill] sm:$0xff] %v12978_v46  ;;  %17234 = vst [vmem:[#allocation43_spill] sm:$0xff] %v12981_v4  ;;  %v3336_v28 = vsel %vm3208_vm5, %v3272_v27, %v8726_v49  ;;  %v12999_v12 = vadd.f32 %v3333_v60, %v17243_v10  ;;  %v3337_v8 = vsel %vm3209_vm7, %v3273_v59, %v8727_v37  ;;  %vm3535_vm6 = vcmp.lt.f32.partialorder %v3503_v2, 1.0  ;;  %v17247_v27 = vld [vmem:[#allocation17_spill] sm:$0xff]  ;;  %v17248_v60 = vld [vmem:[#allocation67_spill] sm:$0xff] }
 0x287   : > { %17236 = vst [vmem:[#allocation50_spill] sm:$0xff] %v12984_v55  ;;  %17238 = vst [vmem:[#allocation51_spill] sm:$0xff] %v12989_v7  ;;  %v8729_v35 = vadd.f32 -0.5, %v3503_v2  ;;  %3459 = vperm.xlu1 %9586, %v9782_v20   ;;  %v3599_v19 = vmul.f32 %v3567_v1, %v3503_v2  ;;  %v3507_v32 = vand.u32 2147483647, %v3475_v26  ;;  %v3479_v11 = vsub.f32 %v3376_v22, %v12797_v17  ;;  %v17249_v37 = vld [vmem:[#allocation49_spill] sm:$0xff] }
 0x288   : > { %17240 = vst [vmem:[#allocation36_spill] sm:$0xff] %v12992_v36  ;;  %17242 = vst [vmem:[#allocation37_spill] sm:$0xff] %v12995_v25  ;;  %v13004_v9 = vand.u32 2147483647, %v3477_v41  ;;  %4159 = vperm.xlu0 %9588, %v9780_v50   ;;  %v13008_v31 = vadd.f32 %v3336_v28, %v17245_v58  ;;  %v3569_v48 = vmul.f32 0.5, %v12986_v42  ;;  %v1201_v49 = vsub.f32 %v17247_v27, %v1162_v63  ;;  %v9783_v10 = vld [vmem:[%s10243_s18] sm:$0xff] }
 0x289   : > { %17244 = vst [vmem:[#allocation40_spill] sm:$0xff] %v12999_v12  ;;  %v1202_v59 = vsub.f32 %v17248_v60, %v1162_v63  ;;  %v13014_v54 = vadd.f32 %v3337_v8, %v17249_v37  ;;  %vm3537_vm8 = vcmp.lt.f32.partialorder %v12986_v42, 1.0  ;;  %v8731_v1 = vadd.f32 -0.5, %v12986_v42  ;;  %v13019_v50 = vpop.permute.xlu0 %3391  ;;  %v17305_v12 = vld [vmem:[#allocation54_spill] sm:$0xff] }
 0x28a   : > { %17246 = vst [vmem:[#allocation41_spill] sm:$0xff] %v13008_v31  ;;  %v3481_v22 = vsub.f32 %v3384_v56, %v12797_v17  ;;  %v1247_v26 = vmul.f32 1.442695, %v1201_v49  ;;  %v6892_v51 = vmul.f32 %v12825_v45, %v1201_v49  ;;  %v17251_v6 = vmov 3   ;;  %v17252_v49 = vld [vmem:[#allocation19_spill] sm:$0xff] }
 0x28b   : > { %17250 = vst [vmem:[#allocation44_spill] sm:$0xff] %v13014_v54  ;;  %v1249_v41 = vmul.f32 1.442695, %v1202_v59  ;;  %v6893_v33 = vmul.f32 0.0, %v1202_v59  ;;  %9587 = vset.pattern.permute.xlu1 %v17251_v6  ;;  %v3663_v40 = vsel %vm3535_vm6, %v3599_v19, %v8729_v35  ;;  %v3571_v3 = vmul.f32 0.5, %v3507_v32  ;;  %v1186_v2 = vpop.xlane.xlu1 %1185 }
 0x28c   : > { %v3573_v28 = vmul.f32 0.5, %v13004_v9  ;;  %3759 = vperm.xlu1 %9587, %v9783_v10   ;;  %v13026_v8 = vand.u32 2147483647, %v3479_v11  ;;  %4167 = vperm.xlu0 %9588, %v9781_v43   ;;  %v3601_v56 = vmul.f32 %v3569_v48, %v12986_v42  ;;  %9715 = vpow2.f32 %v1247_v26  ;;  %v17253_v43 = vld [vmem:[#allocation102_spill] sm:$0xff]  ;;  %v17254_v48 = vld [vmem:[#allocation103_spill] sm:$0xff] }
 0x28d   : > { %v6916_v63 = vadd.f32 %v12563_v13, %v6892_v51  ;;  %v6937_v58 = vadd.f32 %v12569_v53, %v6893_v33  ;;  %vm3539_vm9 = vcmp.lt.f32.partialorder %v3507_v32, 1.0  ;;  %v8733_v27 = vadd.f32 -0.5, %v3507_v32  ;;  %v13033_v19 = vpop.permute.xlu0 %3399 }
 0x28e   : > { %9717 = vpow2.f32 %v1249_v41  ;;  %v13031_v35 = vand.u32 2147483647, %v3481_v22  ;;  %v1217_v59 = vsub.f32 %v17253_v43, %v1186_v2  ;;  %v13039_v37 = vsub.f32 %v17254_v48, %v1186_v2 }
 0x28f   : > { %v6917_v60 = vadd.f32 %v6916_v63, %v17252_v49  ;;  %v6938_v11 = vadd.f32 %v6937_v58, %v12640_v47  ;;  %v3603_v13 = vmul.f32 %v3571_v3, %v3507_v32  ;;  %v3605_v53 = vmul.f32 %v3573_v28, %v13004_v9  ;;  %v2716_v3 = vpop.permute.xlu1 %2715 }
 0x290   : > { %v8735_v26 = vadd.f32 -0.5, %v13004_v9  ;;  %v3575_v41 = vmul.f32 0.5, %v13026_v8  ;;  %3767 = vperm.xlu1 %9587, %v12383_v0   ;;  %4175 = vperm.xlu0 %9588, %v9782_v20   ;;  %v1279_v47 = vmul.f32 1.442695, %v1217_v59  ;;  %v1281_v33 = vmul.f32 1.442695, %v13039_v37 }
 0x291   : > { %v6918_v22 = vadd.f32 %v6917_v60, %v12365_v23  ;;  %v6939_v51 = vadd.f32 %v6938_v11, %v12677_v14  ;;  %vm3541_vm10 = vcmp.lt.f32.partialorder %v13004_v9, 1.0  ;;  %v6908_v6 = vmul.f32 %v12860_v34, %v1217_v59  ;;  %v13053_v0 = vpop.permute.xlu0 %3407  ;;  %v17255_v14 = vld [vmem:[#allocation63_spill] sm:$0xff] }
 0x292   : > { %v3577_v28 = vmul.f32 0.5, %v13031_v35  ;;  %v3483_v63 = vsub.f32 %v13019_v50, %v12797_v17  ;;  %v3665_v23 = vsel %vm3537_vm8, %v3601_v56, %v8731_v1  ;;  %9719 = vpow2.f32 %v1279_v47  ;;  %v9784_v60 = vld [vmem:[%s10243_s18 + $0x18] sm:$0xff] }
 0x293   : > { %v6919_v20 = vadd.f32 %v6918_v22, %v17255_v14  ;;  %v6940_v58 = vadd.f32 %v6939_v51, %v12646_v16  ;;  %v3667_v2 = vsel %vm3539_vm9, %v3603_v13, %v8733_v27  ;;  %9721 = vpow2.f32 %v1281_v33  ;;  %v2724_v11 = vpop.permute.xlu1 %2723  ;;  %v17261_v33 = vld [vmem:[#allocation61_spill] sm:$0xff] }
 0x294   : > { %vm3543_vm11 = vcmp.lt.f32.partialorder %v13026_v8, 1.0  ;;  %v8737_v49 = vadd.f32 -0.5, %v13026_v8  ;;  %3771 = vperm.xlu1 %9587, %v9784_v60   ;;  %v16886_v50 = vmov 4   ;;  %v3669_v42 = vsel %vm3541_vm10, %v3605_v53, %v8735_v26 }
 0x295   : > { %9589 = vset.pattern.permute.xlu0 %v16886_v50  ;;  %v6920_v1 = vadd.f32 %v6919_v20, %v12453_v39  ;;  %v6941_v16 = vadd.f32 %v6940_v58, %v12747_v18  ;;  %v3607_v32 = vmul.f32 %v3575_v41, %v13026_v8  ;;  %v3609_v56 = vmul.f32 %v3577_v28, %v13031_v35  ;;  %v13075_v9 = vpop.permute.xlu0 %3415  ;;  %v17257_v18 = vld [vmem:[#allocation68_spill] sm:$0xff] }
 0x296   : > { %4475 = vperm.xlu0 %9589, %v9783_v10   ;;  %v8739_v27 = vadd.f32 -0.5, %v13031_v35  ;;  %v13071_v43 = vand.u32 2147483647, %v3483_v63  ;;  %v3485_v59 = vsub.f32 %v13033_v19, %v12797_v17  ;;  %v13078_v39 = vadd.f32 %v3663_v40, %v12338_v62  ;;  %v9785_v19 = vld [vmem:[%s10243_s18 + $0x28] sm:$0xff]  ;;  %v9786_v20 = vld [vmem:[%s10243_s18 + $0x38] sm:$0xff] }
 0x297   : > { %v6921_v48 = vadd.f32 %v6920_v1, %v17257_v18  ;;  %v6942_v13 = vadd.f32 %v6941_v16, %v12649_v5  ;;  %vm3545_vm12 = vcmp.lt.f32.partialorder %v13031_v35, 1.0  ;;  %v13084_v10 = vadd.f32 %v3665_v23, %v12415_v21  ;;  %v17262_v63 = vld [vmem:[#allocation78_spill] sm:$0xff] }
 0x298   : > { %17256 = vst [vmem:[#allocation45_spill] sm:$0xff] %v13078_v39  ;;  %v13087_v53 = vadd.f32 %v3667_v2, %v12536_v38  ;;  %v2777_v26 = vsub.f32 %v2716_v3, %v11734_v61  ;;  %3779 = vperm.xlu1 %9587, %v9785_v19   ;;  %v13093_v62 = vrot.slane %v12793_v24, %v12828_v44  ;;  %v3579_v51 = vmul.f32 0.5, %v13071_v43  ;;  %v2732_v24 = vpop.permute.xlu1 %2731 }
 0x299   : > { %17258 = vst [vmem:[#allocation48_spill] sm:$0xff] %v13084_v10  ;;  %v13096_v40 = vadd.f32 %v3669_v42, %v12612_v30  ;;  %v6922_v5 = vadd.f32 %v6921_v48, %v12544_v52  ;;  %v6943_v35 = vadd.f32 %v6942_v13, %v12779_v29  ;;  %v3671_v21 = vsel %vm3543_vm11, %v3607_v32, %v8737_v49  ;;  %v9716_v38 = vpop.eup %9715  ;;  %v13106_v30 = vpop.permute.xlu0 %3423  ;;  %v17264_v49 = vld [vmem:[#allocation89_spill] sm:$0xff] }
 0x29a   : > { %17259 = vst [vmem:[#allocation17_spill] sm:$0xff] %v13087_v53  ;;  %4487 = vperm.xlu0 %9589, %v9784_v60   ;;  %v3673_v41 = vsel %vm3545_vm12, %v3609_v56, %v8739_v27  ;;  %v2779_v22 = vsub.f32 %v2724_v11, %v11734_v61  ;;  %v13104_v44 = vand.u32 2147483647, %v3485_v59  ;;  %v1512_v52 = vmul.f32 %v9716_v38, %v12825_v45  ;;  %v9787_v13 = vld [vmem:[%s10243_s18 + $0x48] sm:$0xff] }
 0x29b   : > { %17260 = vst [vmem:[#allocation67_spill] sm:$0xff] %v13096_v40  ;;  %v9718_v47 = vpop.eup %9717  ;;  %v6909_v29 = vmul.f32 0.0, %v13039_v37  ;;  %v6923_v8 = vadd.f32 %v6922_v5, %v12302_v57  ;;  %v6944_v3 = vadd.f32 %v6943_v35, %v17261_v33  ;;  %v13113_v23 = vadd.f32 %v3671_v21, %v17262_v63 }
 0x29c   : > { %v1513_v28 = vmul.f32 0.0, %v9718_v47  ;;  %v13115_v14 = vand.u32 2147483647, %v2777_v26  ;;  %3787 = vperm.xlu1 %9587, %v9786_v20   ;;  %v3487_v58 = vsub.f32 %v13053_v0, %v12797_v17  ;;  %1544 = vst [vmem:[#allocation3 + $0x70] sm:$0xff] %v1512_v52  ;;  %v13121_v37 = vadd.f32 %v3673_v41, %v17264_v49  ;;  %v2740_v0 = vpop.permute.xlu1 %2739 }
 0x29d   : > { %17263 = vst [vmem:[#allocation49_spill] sm:$0xff] %v13113_v23  ;;  %v6924_v2 = vadd.f32 %v6923_v8, %v6908_v6  ;;  %v6945_v45 = vadd.f32 %v6944_v3, %v6909_v29  ;;  %vm3547_vm13 = vcmp.lt.f32.partialorder %v13071_v43, 1.0  ;;  %v13124_v57 = vand.u32 2147483647, %v2779_v22  ;;  %v13129_v16 = vpop.permute.xlu0 %3431 }
 0x29e   : > { %17265 = vst [vmem:[#allocation19_spill] sm:$0xff] %v13121_v37  ;;  %4495 = vperm.xlu0 %9589, %v9785_v19   ;;  %1545 = vst [vmem:[#allocation3 + $0x78] sm:$0xff] %v1513_v28  ;;  %v3611_v60 = vmul.f32 %v3579_v51, %v13071_v43  ;;  %v8741_v42 = vadd.f32 -0.5, %v13071_v43  ;;  %v3581_v1 = vmul.f32 0.5, %v13104_v44  ;;  %v2781_v56 = vsub.f32 %v2732_v24, %v11734_v61  ;;  %v9788_v28 = vld [vmem:[%s10243_s18 + $0x58] sm:$0xff] }
 0x29f   : > { %v6925_v6 = vrot.slane %v6924_v2, 4  ;;  %v6946_v32 = vrot.slane %v6945_v45, 4  ;;  %vm3549_vm14 = vcmp.lt.f32.partialorder %v13104_v44, 1.0  ;;  %v9720_v27 = vpop.eup %9719  ;;  %v2873_v11 = vmul.f32 0.5, %v13115_v14 }
 0x2a0   : > { %v8743_v59 = vadd.f32 -0.5, %v13104_v44  ;;  %v2783_v18 = vsub.f32 %v2740_v0, %v11734_v61  ;;  %v13136_v48 = vand.u32 2147483647, %v3487_v58  ;;  %3795 = vperm.xlu1 %9587, %v9787_v13   ;;  %v9722_v26 = vpop.eup %9721  ;;  %v1528_v19 = vmul.f32 %v9720_v27, %v12860_v34  ;;  %v2748_v51 = vpop.permute.xlu1 %2747 }
 0x2a1   : > { %v6926_v5 = vadd.f32 %v6925_v6, %v6924_v2  ;;  %v6947_v35 = vadd.f32 %v6946_v32, %v6945_v45  ;;  %v3489_v21 = vsub.f32 %v13075_v9, %v12797_v17  ;;  %v1529_v38 = vmul.f32 0.0, %v9722_v26  ;;  %v13145_v24 = vpop.permute.xlu0 %3439  ;;  %v17266_v45 = vld [vmem:[#allocation91_spill] sm:$0xff] }
 0x2a2   : > { %4503 = vperm.xlu0 %9589, %v9786_v20   ;;  %vm2841_vm15 = vcmp.lt.f32.partialorder %v13115_v14, 1.0  ;;  %v2875_v41 = vmul.f32 0.5, %v13124_v57  ;;  %v3613_v22 = vmul.f32 %v3581_v1, %v13104_v44  ;;  %1560 = vst [vmem:[#allocation3 + $0xf0] sm:$0xff] %v1528_v19  ;;  %v3675_v52 = vsel %vm3547_vm13, %v3611_v60, %v8741_v42 }
 0x2a3   : > { %v6927_v47 = vrot.slane %v6926_v5, 2  ;;  %v6948_v34 = vrot.slane %v6947_v35, 2  ;;  %v13149_v29 = vand.u32 2147483647, %v2781_v56  ;;  %1561 = vst [vmem:[#allocation3 + $0xf8] sm:$0xff] %v1529_v38  ;;  %v8687_v9 = vadd.f32 -0.5, %v13115_v14 }
 0x2a4   : > { %v13152_v8 = vand.u32 2147483647, %v2783_v18  ;;  %v3583_v33 = vmul.f32 0.5, %v13136_v48  ;;  %v2785_v3 = vsub.f32 %v2748_v51, %v11734_v61  ;;  %3803 = vperm.xlu1 %9587, %v9788_v28   ;;  %v2905_v58 = vmul.f32 %v2873_v11, %v13115_v14  ;;  %v3048_v60 = vpop.permute.xlu1 %3047  ;;  %v17271_v38 = vld [vmem:[#allocation64_spill] sm:$0xff] }
 0x2a5   : > { %v6928_v63 = vadd.f32 %v6927_v47, %v6926_v5  ;;  %v6949_v20 = vadd.f32 %v6948_v34, %v6947_v35  ;;  %v13158_v2 = vand.u32 2147483647, %v3489_v21  ;;  %vm2843_vm0 = vcmp.lt.f32.partialorder %v13124_v57, 1.0  ;;  %v13167_v42 = vpop.permute.xlu0 %3447  ;;  %v17270_v35 = vld [vmem:[#allocation23_spill] sm:$0xff] }
 0x2a6   : > { %4511 = vperm.xlu0 %9589, %v9787_v13   ;;  %v2907_v43 = vmul.f32 %v2875_v41, %v13124_v57  ;;  %v13163_v49 = vadd.f32 %v3675_v52, %v17266_v45  ;;  %v3677_v61 = vsel %vm3549_vm14, %v3613_v22, %v8743_v59  ;;  %v2877_v6 = vmul.f32 0.5, %v13149_v29  ;;  %v9789_v13 = vld [vmem:[%s10243_s18 + $0x68] sm:$0xff] }
 0x2a7   : > { %v6929_v1 = vrot.slane %v6928_v63, 1  ;;  %v6950_v0 = vrot.slane %v6949_v20, 1  ;;  %v2817_v32 = vand.u32 2147483647, %v2785_v3  ;;  %v8689_v56 = vadd.f32 -0.5, %v13124_v57  ;;  %v9790_v3 = vld [vmem:[%s10243_s18 + $0x78] sm:$0xff] }
 0x2a8   : > { %17267 = vst [vmem:[#allocation102_spill] sm:$0xff] %v13163_v49  ;;  %v2879_v27 = vmul.f32 0.5, %v13152_v8  ;;  %v3615_v11 = vmul.f32 %v3583_v33, %v13136_v48  ;;  %v8745_v18 = vadd.f32 -0.5, %v13136_v48  ;;  %3811 = vperm.xlu1 %9587, %v9789_v13   ;;  %vm3551_vm2 = vcmp.lt.f32.partialorder %v13136_v48, 1.0  ;;  %v3052_v22 = vpop.permute.xlu1 %3051 }
 0x2a9   : > { %v13175_v44 = vadd.f32 %v6929_v1, %v6928_v63  ;;  %v13177_v59 = vadd.f32 %v6950_v0, %v6949_v20  ;;  %v3585_v26 = vmul.f32 0.5, %v13158_v2  ;;  %v2969_v19 = vsel %vm2841_vm15, %v2905_v58, %v8687_v9  ;;  %v13187_v51 = vpop.permute.xlu0 %3455 }
 0x2aa   : > { %4519 = vperm.xlu0 %9589, %v9788_v28   ;;  %v2971_v5 = vsel %vm2843_vm0, %v2907_v43, %v8689_v56  ;;  %v3116_v21 = vsub.f32 %v3048_v60, %v17270_v35  ;;  %v3117_v41 = vsub.f32 %v3048_v60, %v17271_v38  ;;  %v2909_v47 = vmul.f32 %v2877_v6, %v13149_v29 }
 0x2ab   : > { %17268 = vst [vmem:[#allocation103_spill] sm:$0xff] %v13175_v44  ;;  %17269 = vst [vmem:[#allocation63_spill] sm:$0xff] %v13177_v59  ;;  %v2881_v34 = vmul.f32 0.5, %v2817_v32  ;;  %v3118_v52 = vsub.f32 %v3052_v22, %v17270_v35  ;;  %v3119_v33 = vsub.f32 %v3052_v22, %v17271_v38  ;;  %vm2845_vm4 = vcmp.lt.f32.partialorder %v13149_v29, 1.0 }
 0x2ac   : > { %v8691_v14 = vadd.f32 -0.5, %v13149_v29  ;;  %v2911_v57 = vmul.f32 %v2879_v27, %v13152_v8  ;;  %v3679_v9 = vsel %vm3551_vm2, %v3615_v11, %v8745_v18  ;;  %3819 = vperm.xlu1 %9587, %v9790_v3   ;;  %vm3553_vm5 = vcmp.lt.f32.partialorder %v13158_v2, 1.0  ;;  %v3060_v45 = vpop.permute.xlu1 %3059  ;;  %v17273_v27 = vld [vmem:[#allocation52_spill] sm:$0xff]  ;;  %v17275_v11 = vld [vmem:[#allocation77_spill] sm:$0xff] }
 0x2ad   : > { %v3617_v28 = vmul.f32 %v3585_v26, %v13158_v2  ;;  %v8747_v63 = vadd.f32 -0.5, %v13158_v2  ;;  %v3491_v20 = vsub.f32 %v13106_v30, %v12797_v17  ;;  %vm2847_vm7 = vcmp.lt.f32.partialorder %v13152_v8, 1.0  ;;  %v13209_v60 = vpop.permute.xlu0 %3463  ;;  %v17279_v29 = vld [vmem:[#allocation21_spill] sm:$0xff] }
 0x2ae   : > { %4527 = vperm.xlu0 %9589, %v9789_v13   ;;  %v8693_v58 = vadd.f32 -0.5, %v13152_v8  ;;  %v13205_v43 = vand.u32 2147483647, %v3116_v21  ;;  %v13207_v48 = vand.u32 2147483647, %v3117_v41  ;;  %17272 = vst [vmem:[#allocation68_spill] sm:$0xff] %v13209_v60  ;;  %v2973_v1 = vsel %vm2845_vm4, %v2909_v47, %v8691_v14 }
 0x2af   : > { %v2913_v0 = vmul.f32 %v2881_v34, %v2817_v32  ;;  %v3150_v6 = vand.u32 2147483647, %v3118_v52  ;;  %v3151_v56 = vand.u32 2147483647, %v3119_v33  ;;  %v13214_v30 = vadd.f32 %v2969_v19, %v17273_v27  ;;  %v17277_v8 = vld [vmem:[#allocation92_spill] sm:$0xff]  ;;  %v9791_v21 = vld [vmem:[%s16811_s5 + $0x8] sm:$0xff] }
 0x2b0   : > { %v13217_v18 = vadd.f32 %v2971_v5, %v17275_v11  ;;  %v13220_v13 = vadd.f32 %v3677_v61, %v17277_v8  ;;  %v2975_v26 = vsel %vm2847_vm7, %v2911_v57, %v8693_v58  ;;  %4059 = vperm.xlu1 %9587, %v9791_v21   ;;  %v13226_v41 = vadd.f32 %v3679_v9, %v17279_v29  ;;  %v17281_v5 = vld [vmem:[#allocation79_spill] sm:$0xff]  ;;  %v3068_v33 = vpop.permute.xlu1 %3067  ;;  %v17283_v14 = vld [vmem:[#allocation81_spill] sm:$0xff] }
 0x2b1   : > { %17274 = vst [vmem:[#allocation61_spill] sm:$0xff] %v13214_v30  ;;  %v8695_v22 = vadd.f32 -0.5, %v2817_v32  ;;  %v3681_v19 = vsel %vm3553_vm5, %v3617_v28, %v8747_v63  ;;  %v13230_v47 = vand.u32 2147483647, %v3491_v20  ;;  %v13233_v34 = vadd.f32 %v2973_v1, %v17281_v5  ;;  %v17285_v28 = vld [vmem:[#allocation80_spill] sm:$0xff] }
 0x2b2   : > { %17276 = vst [vmem:[#allocation78_spill] sm:$0xff] %v13217_v18  ;;  %17278 = vst [vmem:[#allocation89_spill] sm:$0xff] %v13220_v13  ;;  %4535 = vperm.xlu0 %9589, %v9790_v3   ;;  %vm2849_vm6 = vcmp.lt.f32.partialorder %v2817_v32, 1.0  ;;  %v3212_v61 = vmul.f32 0.5, %v13205_v43  ;;  %v3213_v52 = vmul.f32 0.5, %v13207_v48  ;;  %v13238_v57 = vadd.f32 %v2975_v26, %v17283_v14  ;;  %v9792_v3 = vld [vmem:[%s16811_s5 + $0x18] sm:$0xff] }
 0x2b3   : > { %17280 = vst [vmem:[#allocation91_spill] sm:$0xff] %v13226_v41  ;;  %17282 = vst [vmem:[#allocation23_spill] sm:$0xff] %v13233_v34  ;;  %v2977_v9 = vsel %vm2849_vm6, %v2913_v0, %v8695_v22  ;;  %v3214_v58 = vmul.f32 0.5, %v3150_v6  ;;  %v3215_v27 = vmul.f32 0.5, %v3151_v56  ;;  %v13240_v2 = vpop.permute.xlu0 %3763  ;;  %v13243_v63 = vadd.f32 %v3681_v19, %v17285_v28  ;;  %v17307_v34 = vld [vmem:[#allocation93_spill] sm:$0xff] }
 0x2b4   : > { %17284 = vst [vmem:[#allocation64_spill] sm:$0xff] %v13238_v57  ;;  %vm3180_vm8 = vcmp.lt.f32.partialorder %v13205_v43, 1.0  ;;  %vm3181_vm9 = vcmp.lt.f32.partialorder %v13207_v48, 1.0  ;;  %v3122_v32 = vsub.f32 %v3060_v45, %v17270_v35  ;;  %4067 = vperm.xlu1 %9587, %v9792_v3   ;;  %v8698_v20 = vadd.f32 -0.5, %v13205_v43 }
 0x2b5   : > { %17286 = vst [vmem:[#allocation52_spill] sm:$0xff] %v13243_v63  ;;  %v3587_v1 = vmul.f32 0.5, %v13230_v47  ;;  %v3493_v0 = vsub.f32 %v13129_v16, %v12797_v17  ;;  %v3123_v11 = vsub.f32 %v3060_v45, %v17271_v38  ;;  %v3244_v8 = vmul.f32 %v3212_v61, %v13205_v43  ;;  %v13260_v22 = vpop.permute.xlu1 %3075 }
 0x2b6   : > { %4775 = vperm.xlu0 %9589, %v9791_v21   ;;  %v3245_v26 = vmul.f32 %v3213_v52, %v13207_v48  ;;  %v8699_v29 = vadd.f32 -0.5, %v13207_v48  ;;  %vm3555_vm10 = vcmp.lt.f32.partialorder %v13230_v47, 1.0  ;;  %v3246_v19 = vmul.f32 %v3214_v58, %v3150_v6  ;;  %v9793_v58 = vld [vmem:[%s16811_s5 + $0x28] sm:$0xff] }
 0x2b7   : > { %v3247_v5 = vmul.f32 %v3215_v27, %v3151_v56  ;;  %v3495_v14 = vsub.f32 %v13145_v24, %v12797_v17  ;;  %v3126_v16 = vsub.f32 %v3068_v33, %v17270_v35  ;;  %v13265_v28 = vpop.permute.xlu0 %3775  ;;  %v8749_v45 = vadd.f32 -0.5, %v13230_v47 }
 0x2b8   : > { %v13268_v21 = vand.u32 2147483647, %v3122_v32  ;;  %v13270_v61 = vand.u32 2147483647, %v3123_v11  ;;  %v3127_v52 = vsub.f32 %v3068_v33, %v17271_v38  ;;  %4075 = vperm.xlu1 %9587, %v9793_v58   ;;  %v3619_v27 = vmul.f32 %v3587_v1, %v13230_v47 }
 0x2b9   : > { %v8700_v24 = vadd.f32 -0.5, %v3150_v6  ;;  %v8701_v50 = vadd.f32 -0.5, %v3151_v56  ;;  %v13277_v59 = vand.u32 2147483647, %v3493_v0  ;;  %v3308_v32 = vsel %vm3180_vm8, %v3244_v8, %v8698_v20  ;;  %v13283_v33 = vpop.permute.xlu1 %3083  ;;  %v17287_v0 = vld [vmem:[#allocation85_spill] sm:$0xff]  ;;  %v17290_v8 = vld [vmem:[#allocation28_spill] sm:$0xff] }
 0x2ba   : > { %4783 = vperm.xlu0 %9589, %v9792_v3   ;;  %v3309_v11 = vsel %vm3181_vm9, %v3245_v26, %v8699_v29  ;;  %vm3182_vm11 = vcmp.lt.f32.partialorder %v3150_v6, 1.0  ;;  %vm3183_vm12 = vcmp.lt.f32.partialorder %v3151_v56, 1.0  ;;  %v13285_v41 = vand.u32 2147483647, %v3495_v14  ;;  %v9794_v6 = vld [vmem:[%s16811_s5 + $0x38] sm:$0xff] }
 0x2bb   : > { %v3310_v44 = vsel %vm3182_vm11, %v3246_v19, %v8700_v24  ;;  %v3311_v63 = vsel %vm3183_vm12, %v3247_v5, %v8701_v50  ;;  %v13287_v1 = vand.u32 2147483647, %v3126_v16  ;;  %v13289_v13 = vpop.permute.xlu0 %3783  ;;  %v13292_v3 = vadd.f32 %v2977_v9, %v17287_v0  ;;  %v17289_v50 = vld [vmem:[#allocation27_spill] sm:$0xff]  ;;  %v17292_v19 = vld [vmem:[#allocation30_spill] sm:$0xff] }
 0x2bc   : > { %v3218_v43 = vmul.f32 0.5, %v13268_v21  ;;  %v3219_v48 = vmul.f32 0.5, %v13270_v61  ;;  %v3159_v20 = vand.u32 2147483647, %v3127_v52  ;;  %4083 = vperm.xlu1 %9587, %v9794_v6   ;;  %v13300_v56 = vadd.f32 %v3308_v32, %v17289_v50  ;;  %v17293_v14 = vld [vmem:[#allocation31_spill] sm:$0xff]  ;;  %v9795_v0 = vld [vmem:[%s16811_s5 + $0x48] sm:$0xff] }
 0x2bd   : > { %17288 = vst [vmem:[#allocation77_spill] sm:$0xff] %v13292_v3  ;;  %v13303_v26 = vadd.f32 %v3309_v11, %v17290_v8  ;;  %v13307_v9 = vsel %vm3555_vm10, %v3619_v27, %v8749_v45  ;;  %v3589_v29 = vmul.f32 0.5, %v13277_v59  ;;  %v13311_v5 = vadd.f32 %v3310_v44, %v17292_v19  ;;  %v13318_v24 = vpop.permute.xlu1 %3091 }
 0x2be   : > { %17291 = vst [vmem:[#allocation92_spill] sm:$0xff] %v13307_v9  ;;  %4791 = vperm.xlu0 %9589, %v9793_v58   ;;  %v13314_v16 = vadd.f32 %v3311_v63, %v17293_v14  ;;  %vm3557_vm13 = vcmp.lt.f32.partialorder %v13277_v59, 1.0  ;;  %v8751_v52 = vadd.f32 -0.5, %v13277_v59  ;;  %vm3186_vm14 = vcmp.lt.f32.partialorder %v13268_v21, 1.0 }
 0x2bf   : > { %v3591_v47 = vmul.f32 0.5, %v13285_v41  ;;  %v3222_v45 = vmul.f32 0.5, %v13287_v1  ;;  %v3223_v27 = vmul.f32 0.5, %v3159_v20  ;;  %v13323_v58 = vpop.permute.xlu0 %3791  ;;  %v3250_v44 = vmul.f32 %v3218_v43, %v13268_v21 }
 0x2c0   : > { %v3251_v63 = vmul.f32 %v3219_v48, %v13270_v61  ;;  %v3130_v32 = vsub.f32 %v13260_v22, %v17270_v35  ;;  %v3131_v11 = vsub.f32 %v13260_v22, %v17271_v38  ;;  %4091 = vperm.xlu1 %9587, %v9795_v0   ;;  %v3621_v50 = vmul.f32 %v3589_v29, %v13277_v59 }
 0x2c1   : > { %vm3187_vm15 = vcmp.lt.f32.partialorder %v13270_v61, 1.0  ;;  %v8704_v8 = vadd.f32 -0.5, %v13268_v21  ;;  %v8705_v43 = vadd.f32 -0.5, %v13270_v61  ;;  %vm3559_vm0 = vcmp.lt.f32.partialorder %v13285_v41, 1.0  ;;  %v13342_v14 = vpop.permute.xlu1 %3099 }
 0x2c2   : > { %4799 = vperm.xlu0 %9589, %v9794_v6   ;;  %v8753_v48 = vadd.f32 -0.5, %v13285_v41  ;;  %v3497_v22 = vsub.f32 %v13167_v42, %v12797_v17  ;;  %v3162_v19 = vand.u32 2147483647, %v3130_v32  ;;  %v3623_v49 = vmul.f32 %v3591_v47, %v13285_v41  ;;  %v9796_v47 = vld [vmem:[%s16811_s5 + $0x58] sm:$0xff] }
 0x2c3   : > { %v3254_v29 = vmul.f32 %v3222_v45, %v13287_v1  ;;  %v3255_v37 = vmul.f32 %v3223_v27, %v3159_v20  ;;  %v3163_v23 = vand.u32 2147483647, %v3131_v11  ;;  %v13346_v40 = vpop.permute.xlu0 %3799  ;;  %v3314_v61 = vsel %vm3186_vm14, %v3250_v44, %v8704_v8 }
 0x2c4   : > { %v3315_v6 = vsel %vm3187_vm15, %v3251_v63, %v8705_v43  ;;  %v3499_v53 = vsub.f32 %v13187_v51, %v12797_v17  ;;  %v3134_v42 = vsub.f32 %v13283_v33, %v17270_v35  ;;  %4099 = vperm.xlu1 %9587, %v9796_v47   ;;  %v8708_v45 = vadd.f32 -0.5, %v13287_v1  ;;  %v17296_v63 = vld [vmem:[#allocation38_spill] sm:$0xff]  ;;  %v17297_v43 = vld [vmem:[#allocation39_spill] sm:$0xff] }
 0x2c5   : > { %v8709_v27 = vadd.f32 -0.5, %v3159_v20  ;;  %v3226_v32 = vmul.f32 0.5, %v3162_v19  ;;  %v3227_v11 = vmul.f32 0.5, %v3163_v23  ;;  %v13360_v21 = vsel %vm3557_vm13, %v3621_v50, %v8751_v52  ;;  %v13365_v44 = vpop.permute.xlu1 %3339  ;;  %v9797_v50 = vld [vmem:[%s16811_s5 + $0x68] sm:$0xff] }
 0x2c6   : > { %4807 = vperm.xlu0 %9589, %v9795_v0   ;;  %17294 = vst [vmem:[#allocation21_spill] sm:$0xff] %v13360_v21  ;;  %vm3190_vm2 = vcmp.lt.f32.partialorder %v13287_v1, 1.0  ;;  %vm3191_vm4 = vcmp.lt.f32.partialorder %v3159_v20, 1.0  ;;  %v13363_v51 = vand.u32 2147483647, %v3497_v22  ;;  %v13368_v8 = vadd.f32 %v3314_v61, %v17296_v63  ;;  %v17300_v61 = vld [vmem:[#allocation46_spill] sm:$0xff] }
 0x2c7   : > { %v13371_v10 = vadd.f32 %v3315_v6, %v17297_v43  ;;  %v3318_v39 = vsel %vm3190_vm2, %v3254_v29, %v8708_v45  ;;  %v3319_v54 = vsel %vm3191_vm4, %v3255_v37, %v8709_v27  ;;  %v13373_v0 = vpop.permute.xlu0 %3807  ;;  %v3258_v59 = vmul.f32 %v3226_v32, %v3162_v19  ;;  %v9798_v63 = vld [vmem:[%s16811_s5 + $0x78] sm:$0xff] }
 0x2c8   : > { %17295 = vst [vmem:[#allocation79_spill] sm:$0xff] %v13363_v51  ;;  %v13375_v52 = vand.u32 2147483647, %v3499_v53  ;;  %v3135_v1 = vsub.f32 %v13283_v33, %v17271_v38  ;;  %v3166_v20 = vand.u32 2147483647, %v3134_v42  ;;  %4107 = vperm.xlu1 %9587, %v9797_v50   ;;  %v13384_v22 = vsel %vm3559_vm0, %v3623_v49, %v8753_v48  ;;  %v17302_v49 = vld [vmem:[#allocation47_spill] sm:$0xff] }
 0x2c9   : > { %17299 = vst [vmem:[#allocation80_spill] sm:$0xff] %v13384_v22  ;;  %v3259_v29 = vmul.f32 %v3227_v11, %v3163_v23  ;;  %v3138_v37 = vsub.f32 %v13318_v24, %v17270_v35  ;;  %v3139_v53 = vsub.f32 %v13318_v24, %v17271_v38  ;;  %v13391_v33 = vadd.f32 %v3318_v39, %v17300_v61  ;;  %v13396_v27 = vpop.permute.xlu1 %3347 }
 0x2ca   : > { %17298 = vst [vmem:[#allocation81_spill] sm:$0xff] %v13375_v52  ;;  %4815 = vperm.xlu0 %9589, %v9796_v47   ;;  %v13394_v6 = vmul.f32 0.5, %v13363_v51  ;;  %v8712_v42 = vadd.f32 -0.5, %v3162_v19  ;;  %v3167_v45 = vand.u32 2147483647, %v3135_v1  ;;  %v13399_v41 = vadd.f32 %v3319_v54, %v17302_v49 }
 0x2cb   : > { %vm3194_vm5 = vcmp.lt.f32.partialorder %v3162_v19, 1.0  ;;  %v8713_v48 = vadd.f32 -0.5, %v3163_v23  ;;  %v3230_v32 = vmul.f32 0.5, %v3166_v20  ;;  %v13401_v11 = vpop.permute.xlu0 %3815  ;;  %vm3195_vm7 = vcmp.lt.f32.partialorder %v3163_v23, 1.0 }
 0x2cc   : > { %17301 = vst [vmem:[#allocation85_spill] sm:$0xff] %v13394_v6  ;;  %v3322_v24 = vsel %vm3194_vm5, %v3258_v59, %v8712_v42  ;;  %v13404_v39 = vmul.f32 0.5, %v13375_v52  ;;  %v3231_v47 = vmul.f32 0.5, %v3167_v45  ;;  %4115 = vperm.xlu1 %9587, %v9798_v63   ;;  %v3170_v54 = vand.u32 2147483647, %v3138_v37  ;;  %v17304_v59 = vld [vmem:[#allocation90_spill] sm:$0xff] }
 0x2cd   : > { %v3323_v43 = vsel %vm3195_vm7, %v3259_v29, %v8713_v48  ;;  %v3262_v1 = vmul.f32 %v3230_v32, %v3166_v20  ;;  %v3171_v61 = vand.u32 2147483647, %v3139_v53  ;;  %v8716_v49 = vadd.f32 -0.5, %v3166_v20  ;;  %v17306_v37 = vld [vmem:[#allocation55_spill] sm:$0xff] }
 0x2ce   : > { %17303 = vst [vmem:[#allocation27_spill] sm:$0xff] %v13404_v39  ;;  %4823 = vperm.xlu0 %9589, %v9797_v50   ;;  %v3263_v19 = vmul.f32 %v3231_v47, %v3167_v45  ;;  %v3832_v42 = vsub.f32 %v13240_v2, %v17304_v59  ;;  %v13413_v31 = vpop.permute.xlu1 %3355  ;;  %v13416_v3 = vadd.f32 %v3322_v24, %v17305_v12  ;;  %vm3198_vm6 = vcmp.lt.f32.partialorder %v3166_v20, 1.0  ;;  %v9799_v47 = vld [vmem:[%s16811_s5 + $0x88] sm:$0xff] }
 0x2cf   : > { %v8717_v57 = vadd.f32 -0.5, %v3167_v45  ;;  %v3234_v29 = vmul.f32 0.5, %v3170_v54  ;;  %v13418_v48 = vpop.permute.xlu0 %4055  ;;  %v13421_v50 = vadd.f32 %v3323_v43, %v17306_v37  ;;  %vm3199_vm8 = vcmp.lt.f32.partialorder %v3167_v45, 1.0 }
 0x2d0   : > { %v3326_v53 = vsel %vm3198_vm6, %v3262_v1, %v8716_v49  ;;  %v3235_v32 = vmul.f32 0.5, %v3171_v61  ;;  %4123 = vperm.xlu1 %9587, %v9799_v47   ;;  %vm3202_vm9 = vcmp.lt.f32.partialorder %v3170_v54, 1.0  ;;  %v8720_v24 = vadd.f32 -0.5, %v3170_v54  ;;  %v17309_v49 = vld [vmem:[#allocation96_spill] sm:$0xff] }
 0x2d1   : > { %v3327_v23 = vsel %vm3199_vm8, %v3263_v19, %v8717_v57  ;;  %v3266_v12 = vmul.f32 %v3234_v29, %v3170_v54  ;;  %v8721_v25 = vadd.f32 -0.5, %v3171_v61  ;;  %v3833_v36 = vsub.f32 %v13240_v2, %v17307_v34  ;;  %v17308_v54 = vld [vmem:[#allocation95_spill] sm:$0xff] }
 0x2d2   : > { %4831 = vperm.xlu0 %9589, %v9798_v63   ;;  %v3267_v20 = vmul.f32 %v3235_v32, %v3171_v61  ;;  %v3864_v43 = vand.u32 2147483647, %v3832_v42  ;;  %v13428_v37 = vpop.permute.xlu1 %3363  ;;  %vm3203_vm10 = vcmp.lt.f32.partialorder %v3171_v61, 1.0  ;;  %v3142_v1 = vsub.f32 %v13342_v14, %v17270_v35  ;;  %v9800_v61 = vld [vmem:[%s16811_s5 + $0x98] sm:$0xff]  ;;  %v17310_v32 = vld [vmem:[#allocation22_spill] sm:$0xff] }
 0x2d3   : > { %v3330_v45 = vsel %vm3202_vm9, %v3266_v12, %v8720_v24  ;;  %v3143_v57 = vsub.f32 %v13342_v14, %v17271_v38  ;;  %v13434_v19 = vpop.permute.xlu0 %4063  ;;  %v13437_v63 = vadd.f32 %v3326_v53, %v17308_v54  ;;  %v13440_v29 = vadd.f32 %v3327_v23, %v17309_v49 }
 0x2d4   : > { %v3331_v2 = vsel %vm3203_vm10, %v3267_v20, %v8721_v25  ;;  %v3865_v42 = vand.u32 2147483647, %v3833_v36  ;;  %4131 = vperm.xlu1 %9587, %v9800_v61   ;;  %v13446_v35 = vadd.f32 %v3330_v45, %v17310_v32  ;;  %v3928_v12 = vmul.f32 0.5, %v3864_v43 }
 0x2d5   : > { %v8762_v38 = vadd.f32 -0.5, %v3864_v43  ;;  %v3174_v14 = vand.u32 2147483647, %v3142_v1  ;;  %vm3896_vm11 = vcmp.lt.f32.partialorder %v3864_v43, 1.0  ;;  %v3175_v54 = vand.u32 2147483647, %v3143_v57 }
 0x2d6   : > { %4839 = vperm.xlu0 %9589, %v9799_v47   ;;  %v3929_v53 = vmul.f32 0.5, %v3865_v42  ;;  %v8763_v24 = vadd.f32 -0.5, %v3865_v42  ;;  %v13448_v23 = vpop.permute.xlu1 %3371  ;;  %vm3897_vm12 = vcmp.lt.f32.partialorder %v3865_v42, 1.0  ;;  %v3960_v36 = vmul.f32 %v3928_v12, %v3864_v43  ;;  %v9801_v47 = vld [vmem:[%s16811_s5 + $0xa8] sm:$0xff] }
 0x2d7   : > { %vm3206_vm13 = vcmp.lt.f32.partialorder %v3174_v14, 1.0  ;;  %v3238_v25 = vmul.f32 0.5, %v3174_v14  ;;  %v13450_v20 = vpop.permute.xlu0 %4071  ;;  %v3239_v7 = vmul.f32 0.5, %v3175_v54  ;;  %v8724_v45 = vadd.f32 -0.5, %v3174_v14 }
 0x2d8   : > { %v3961_v49 = vmul.f32 %v3929_v53, %v3865_v42  ;;  %v8725_v32 = vadd.f32 -0.5, %v3175_v54  ;;  %4139 = vperm.xlu1 %9587, %v9801_v47   ;;  %v4024_v1 = vsel %vm3896_vm11, %v3960_v36, %v8762_v38  ;;  %v3838_v39 = vsub.f32 %v13265_v28, %v17304_v59 }
 0x2d9   : > { %v3270_v57 = vmul.f32 %v3238_v25, %v3174_v14  ;;  %v3839_v12 = vsub.f32 %v13265_v28, %v17307_v34  ;;  %v4412_v52 = vadd.f32 %v4024_v1, %v13300_v56  ;;  %v3271_v6 = vmul.f32 %v3239_v7, %v3175_v54  ;;  %v17311_v28 = vld [vmem:[#allocation15_spill] sm:$0xff] }
 0x2da   : > { %4847 = vperm.xlu0 %9589, %v9800_v61   ;;  %v4025_v53 = vsel %vm3897_vm12, %v3961_v49, %v8763_v24  ;;  %v3470_v51 = vsub.f32 %v13365_v44, %v12797_v17  ;;  %v13464_v22 = vpop.permute.xlu1 %3379  ;;  %v3870_v36 = vand.u32 2147483647, %v3838_v39  ;;  %v13471_v61 = vadd.f32 %v3331_v2, %v17311_v28  ;;  %v9802_v7 = vld [vmem:[%s16811_s5 + $0xb8] sm:$0xff] }
 0x2db   : > { %v4413_v43 = vadd.f32 %v4025_v53, %v13303_v26  ;;  %v3334_v38 = vsel %vm3206_vm13, %v3270_v57, %v8724_v45  ;;  %v3871_v25 = vand.u32 2147483647, %v3839_v12  ;;  %v13468_v18 = vpop.permute.xlu0 %4079  ;;  %v6624_v42 = vmul.f32 0.25, %v4412_v52  ;;  %v17312_v26 = vld [vmem:[#allocation24_spill] sm:$0xff]  ;;  %v9803_v12 = vld [vmem:[%s16811_s5 + $0xc8] sm:$0xff] }
 0x2dc   : > { %vm3207_vm14 = vcmp.lt.f32.partialorder %v3175_v54, 1.0  ;;  %v3502_v56 = vand.u32 2147483647, %v3470_v51  ;;  %4147 = vperm.xlu1 %9587, %v9802_v7   ;;  %v13477_v14 = vadd.f32 %v3334_v38, %v17312_v26  ;;  %vm3902_vm15 = vcmp.lt.f32.partialorder %v3870_v36, 1.0 }
 0x2dd   : > { %v6625_v44 = vmul.f32 0.25, %v4413_v43  ;;  %v3335_v24 = vsel %vm3207_vm14, %v3271_v6, %v8725_v32  ;;  %6656 = vst [vmem:[#allocation4 + $0x10] sm:$0xff] %v6624_v42  ;;  %v3934_v39 = vmul.f32 0.5, %v3870_v36  ;;  %v3935_v49 = vmul.f32 0.5, %v3871_v25 }
 0x2de   : > { %4855 = vperm.xlu0 %9589, %v9801_v47   ;;  %v8768_v2 = vadd.f32 -0.5, %v3870_v36  ;;  %v8769_v45 = vadd.f32 -0.5, %v3871_v25  ;;  %v13479_v52 = vpop.permute.xlu1 %3387  ;;  %vm3903_vm0 = vcmp.lt.f32.partialorder %v3871_v25, 1.0  ;;  %vm3534_vm2 = vcmp.lt.f32.partialorder %v3502_v56, 1.0 }
 0x2df   : > { %6657 = vst [vmem:[#allocation4 + $0x18] sm:$0xff] %v6625_v44  ;;  %v3566_v51 = vmul.f32 0.5, %v3502_v56  ;;  %v3842_v54 = vsub.f32 %v13289_v13, %v17304_v59  ;;  %v13483_v6 = vpop.permute.xlu0 %4087  ;;  %v3966_v32 = vmul.f32 %v3934_v39, %v3870_v36  ;;  %v3967_v1 = vmul.f32 %v3935_v49, %v3871_v25 }
 0x2e0   : > { %v3843_v47 = vsub.f32 %v13289_v13, %v17307_v34  ;;  %v3472_v57 = vsub.f32 %v13396_v27, %v12797_v17  ;;  %4155 = vperm.xlu1 %9587, %v9803_v12   ;;  %v8728_v43 = vadd.f32 -0.5, %v3502_v56  ;;  %v3846_v28 = vsub.f32 %v13323_v58, %v17304_v59 }
 0x2e1   : > { %v3598_v53 = vmul.f32 %v3566_v51, %v3502_v56  ;;  %v3874_v38 = vand.u32 2147483647, %v3842_v54  ;;  %v4030_v42 = vsel %vm3902_vm15, %v3966_v32, %v8768_v2  ;;  %v4031_v44 = vsel %vm3903_vm0, %v3967_v1, %v8769_v45  ;;  %v17313_v56 = vld [vmem:[#allocation58_spill] sm:$0xff] }
 0x2e2   : > { %4863 = vperm.xlu0 %9589, %v9802_v7   ;;  %v3875_v13 = vand.u32 2147483647, %v3843_v47  ;;  %v3504_v26 = vand.u32 2147483647, %v3472_v57  ;;  %v13496_v39 = vpop.permute.xlu1 %3395  ;;  %v4418_v27 = vadd.f32 %v4030_v42, %v13368_v8  ;;  %v4419_v49 = vadd.f32 %v4031_v44, %v13371_v10  ;;  %v9804_v7 = vld [vmem:[%s16811_s5 + $0xd8] sm:$0xff] }
 0x2e3   : > { %v3662_v51 = vsel %vm3534_vm2, %v3598_v53, %v8728_v43  ;;  %v3847_v54 = vsub.f32 %v13323_v58, %v17307_v34  ;;  %v13503_v21 = vpop.permute.xlu0 %4095  ;;  %vm3906_vm4 = vcmp.lt.f32.partialorder %v3874_v38, 1.0  ;;  %v3938_v36 = vmul.f32 0.5, %v3874_v38  ;;  %v17314_v53 = vld [vmem:[#allocation97_spill] sm:$0xff] }
 0x2e4   : > { %vm3907_vm5 = vcmp.lt.f32.partialorder %v3875_v13, 1.0  ;;  %v3939_v25 = vmul.f32 0.5, %v3875_v13  ;;  %4163 = vperm.xlu1 %9587, %v9804_v7   ;;  %v6630_v2 = vmul.f32 0.25, %v4418_v27  ;;  %v6631_v8 = vmul.f32 0.25, %v4419_v49 }
 0x2e5   : > { %v8772_v45 = vadd.f32 -0.5, %v3874_v38  ;;  %v8773_v10 = vadd.f32 -0.5, %v3875_v13  ;;  %v13509_v32 = vadd.f32 %v3335_v24, %v17313_v56  ;;  %v3970_v58 = vmul.f32 %v3938_v36, %v3874_v38 }
 0x2e6   : > { %4871 = vperm.xlu0 %9589, %v9803_v12   ;;  %v3971_v1 = vmul.f32 %v3939_v25, %v3875_v13  ;;  %v3568_v47 = vmul.f32 0.5, %v3504_v26  ;;  %v13511_v57 = vpop.permute.xlu1 %3403  ;;  %6662 = vst [vmem:[#allocation4 + $0x40] sm:$0xff] %v6630_v2  ;;  %6663 = vst [vmem:[#allocation4 + $0x48] sm:$0xff] %v6631_v8  ;;  %v13514_v43 = vadd.f32 %v3662_v51, %v17314_v53  ;;  %vm3536_vm7 = vcmp.lt.f32.partialorder %v3504_v26, 1.0  ;;  %v9805_v25 = vld [vmem:[%s16811_s5 + $0xe8] sm:$0xff] }
 0x2e7   : > { %v3878_v42 = vand.u32 2147483647, %v3846_v28  ;;  %v3879_v44 = vand.u32 2147483647, %v3847_v54  ;;  %v13516_v27 = vpop.permute.xlu0 %4103  ;;  %v4034_v12 = vsel %vm3906_vm4, %v3970_v58, %v8772_v45  ;;  %v8730_v49 = vadd.f32 -0.5, %v3504_v26 }
 0x2e8   : > { %v4035_v24 = vsel %vm3907_vm5, %v3971_v1, %v8773_v10  ;;  %v3474_v36 = vsub.f32 %v13413_v31, %v12797_v17  ;;  %4171 = vperm.xlu1 %9587, %v9805_v25   ;;  %v4422_v51 = vadd.f32 %v4034_v12, %v13391_v33  ;;  %v3600_v54 = vmul.f32 %v3568_v47, %v3504_v26 }
 0x2e9   : > { %v4423_v28 = vadd.f32 %v4035_v24, %v13399_v41  ;;  %v3850_v38 = vsub.f32 %v13346_v40, %v17304_v59  ;;  %vm3910_vm6 = vcmp.lt.f32.partialorder %v3878_v42, 1.0  ;;  %v3942_v13 = vmul.f32 0.5, %v3878_v42 }
 0x2ea   : > { %4879 = vperm.xlu0 %9589, %v9804_v7   ;;  %v3943_v2 = vmul.f32 0.5, %v3879_v44  ;;  %v8776_v8 = vadd.f32 -0.5, %v3878_v42  ;;  %v13529_v45 = vpop.permute.xlu1 %3411  ;;  %v6634_v31 = vmul.f32 0.25, %v4422_v51  ;;  %vm3911_vm8 = vcmp.lt.f32.partialorder %v3879_v44, 1.0  ;;  %v9806_v7 = vld [vmem:[%s16811_s5 + $0xf8] sm:$0xff] }
 0x2eb   : > { %v6635_v10 = vmul.f32 0.25, %v4423_v28  ;;  %v8777_v56 = vadd.f32 -0.5, %v3879_v44  ;;  %v13531_v58 = vpop.permute.xlu0 %4111  ;;  %v3974_v33 = vmul.f32 %v3942_v13, %v3878_v42  ;;  %v3506_v41 = vand.u32 2147483647, %v3474_v36 }
 0x2ec   : > { %v3975_v1 = vmul.f32 %v3943_v2, %v3879_v44  ;;  %v3851_v47 = vsub.f32 %v13346_v40, %v17307_v34  ;;  %4179 = vperm.xlu1 %9587, %v9806_v7   ;;  %6666 = vst [vmem:[#allocation4 + $0x60] sm:$0xff] %v6634_v31  ;;  %v13539_v53 = vsel %vm3536_vm7, %v3600_v54, %v8730_v49  ;;  %v3882_v12 = vand.u32 2147483647, %v3850_v38 }
 0x2ed   : > { %6667 = vst [vmem:[#allocation4 + $0x68] sm:$0xff] %v6635_v10  ;;  %v3476_v24 = vsub.f32 %v13428_v37, %v12797_v17  ;;  %v3854_v36 = vsub.f32 %v13373_v0, %v17304_v59  ;;  %v4038_v40 = vsel %vm3910_vm6, %v3974_v33, %v8776_v8  ;;  %v3570_v28 = vmul.f32 0.5, %v3506_v41 }
 0x2ee   : > { %4887 = vperm.xlu0 %9589, %v9805_v25   ;;  %v4039_v51 = vsel %vm3911_vm8, %v3975_v1, %v8777_v56  ;;  %v3855_v13 = vsub.f32 %v13373_v0, %v17307_v34  ;;  %v13549_v26 = vpop.permute.xlu1 %3419  ;;  %v4426_v49 = vadd.f32 %v4038_v40, %v13416_v3  ;;  %vm3538_vm9 = vcmp.lt.f32.partialorder %v3506_v41, 1.0  ;;  %v13557_v56 = vld [vmem:[%s10243_s18 + $0x8] sm:$0xff] }
 0x2ef   : > { %v4427_v54 = vadd.f32 %v4039_v51, %v13421_v50  ;;  %v3883_v37 = vand.u32 2147483647, %v3851_v47  ;;  %v13553_v38 = vpop.permute.xlu0 %4119  ;;  %v3602_v25 = vmul.f32 %v3570_v28, %v3506_v41  ;;  %v8732_v42 = vadd.f32 -0.5, %v3506_v41 }
 0x2f0   : > { %v3946_v2 = vmul.f32 0.5, %v3882_v12  ;;  %v8780_v44 = vadd.f32 -0.5, %v3882_v12  ;;  %v17315_v8 = vmov 4   ;;  %v6638_v31 = vmul.f32 0.25, %v4426_v49 }
 0x2f1   : > { %9590 = vset.pattern.permute.xlu1 %v17315_v8  ;;  %v6639_v10 = vmul.f32 0.25, %v4427_v54  ;;  %vm3914_vm10 = vcmp.lt.f32.partialorder %v3882_v12, 1.0  ;;  %v3947_v0 = vmul.f32 0.5, %v3883_v37  ;;  %vm3915_vm11 = vcmp.lt.f32.partialorder %v3883_v37, 1.0 }
 0x2f2   : > { %4479 = vperm.xlu1 %9590, %v13557_v56   ;;  %4895 = vperm.xlu0 %9589, %v9806_v7   ;;  %v3978_v3 = vmul.f32 %v3946_v2, %v3882_v12  ;;  %v8781_v50 = vadd.f32 -0.5, %v3883_v37  ;;  %v3508_v33 = vand.u32 2147483647, %v3476_v24  ;;  %v13560_v1 = vpop.permute.xlu1 %3427  ;;  %6670 = vst [vmem:[#allocation4 + $0x80] sm:$0xff] %v6638_v31  ;;  %v3666_v47 = vsel %vm3538_vm9, %v3602_v25, %v8732_v42  ;;  %v13569_v31 = vld [vmem:[%s10243_s18 + $0x10] sm:$0xff] }
 0x2f3   : > { %6671 = vst [vmem:[#allocation4 + $0x88] sm:$0xff] %v6639_v10  ;;  %v3979_v40 = vmul.f32 %v3947_v0, %v3883_v37  ;;  %v3886_v51 = vand.u32 2147483647, %v3854_v36  ;;  %v3887_v28 = vand.u32 2147483647, %v3855_v13  ;;  %v13563_v49 = vpop.permute.xlu0 %4127  ;;  %17316 = vst [vmem:[#allocation28_spill] sm:$0xff] %v13569_v31  ;;  %v3488_v9 = vsub.f32 %v13529_v45, %v12797_v17 }
 0x2f4   : > { %v4042_v54 = vsel %vm3914_vm10, %v3978_v3, %v8780_v44  ;;  %vm3540_vm12 = vcmp.lt.f32.partialorder %v3508_v33, 1.0  ;;  %v3572_v7 = vmul.f32 0.5, %v3508_v33  ;;  %v8734_v8 = vadd.f32 -0.5, %v3508_v33 }
 0x2f5   : > { %v4043_v2 = vsel %vm3915_vm11, %v3979_v40, %v8781_v50  ;;  %v4430_v24 = vadd.f32 %v4042_v54, %v13437_v63  ;;  %vm3918_vm13 = vcmp.lt.f32.partialorder %v3886_v51, 1.0  ;;  %vm3919_vm14 = vcmp.lt.f32.partialorder %v3887_v28, 1.0 }
 0x2f6   : > { %4483 = vperm.xlu1 %9590, %v13569_v31   ;;  %v4431_v41 = vadd.f32 %v4043_v2, %v13440_v29  ;;  %v3604_v36 = vmul.f32 %v3572_v7, %v3508_v33  ;;  %v3950_v13 = vmul.f32 0.5, %v3886_v51  ;;  %v3951_v25 = vmul.f32 0.5, %v3887_v28  ;;  %v13573_v12 = vpop.permute.xlu1 %3435  ;;  %v17317_v29 = vld [vmem:[#allocation98_spill] sm:$0xff]  ;;  %v17318_v33 = vld [vmem:[#allocation99_spill] sm:$0xff] }
 0x2f7   : > { %v6642_v42 = vmul.f32 0.25, %v4430_v24  ;;  %v8784_v44 = vadd.f32 -0.5, %v3886_v51  ;;  %v8785_v37 = vadd.f32 -0.5, %v3887_v28  ;;  %v3478_v63 = vsub.f32 %v13448_v23, %v12797_v17  ;;  %v13577_v10 = vpop.permute.xlu0 %4135  ;;  %v13589_v23 = vld [vmem:[%s10243_s18 + $0x20] sm:$0xff] }
 0x2f8   : > { %v6643_v0 = vmul.f32 0.25, %v4431_v41  ;;  %v3668_v3 = vsel %vm3540_vm12, %v3604_v36, %v8734_v8  ;;  %v3982_v50 = vmul.f32 %v3950_v13, %v3886_v51  ;;  %v3983_v40 = vmul.f32 %v3951_v25, %v3887_v28  ;;  %v17319_v25 = vld [vmem:[#allocation100_spill] sm:$0xff] }
 0x2f9   : > { %v13582_v54 = vadd.f32 %v13539_v53, %v17317_v29  ;;  %6674 = vst [vmem:[#allocation4 + $0xa0] sm:$0xff] %v6642_v42  ;;  %v3510_v7 = vand.u32 2147483647, %v3478_v63  ;;  %v3858_v2 = vsub.f32 %v13401_v11, %v17304_v59  ;;  %v3859_v24 = vsub.f32 %v13401_v11, %v17307_v34 }
 0x2fa   : > { %4491 = vperm.xlu1 %9590, %v13589_v23   ;;  %v13593_v8 = vadd.f32 %v3666_v47, %v17318_v33  ;;  %6675 = vst [vmem:[#allocation4 + $0xa8] sm:$0xff] %v6643_v0  ;;  %v4046_v41 = vsel %vm3918_vm13, %v3982_v50, %v8784_v44  ;;  %v4047_v53 = vsel %vm3919_vm14, %v3983_v40, %v8785_v37  ;;  %v13599_v13 = vpop.permute.xlu1 %3443  ;;  %v13613_v40 = vld [vmem:[%s10243_s18 + $0x30] sm:$0xff] }
 0x2fb   : > { %v3480_v36 = vsub.f32 %v13464_v22, %v12797_v17  ;;  %v13602_v11 = vadd.f32 %v3668_v3, %v17319_v25  ;;  %v4434_v42 = vadd.f32 %v4046_v41, %v13446_v35  ;;  %v4435_v63 = vadd.f32 %v4047_v53, %v13471_v61  ;;  %v13606_v29 = vpop.permute.xlu0 %4143 }
 0x2fc   : > { %v3574_v47 = vmul.f32 0.5, %v3510_v7  ;;  %v3890_v51 = vand.u32 2147483647, %v3858_v2  ;;  %v3891_v44 = vand.u32 2147483647, %v3859_v24  ;;  %v4186_v28 = vsub.f32 %v13418_v48, %v13093_v62 }
 0x2fd   : > { %v3482_v22 = vsub.f32 %v13479_v52, %v12797_v17  ;;  %v6646_v37 = vmul.f32 0.25, %v4434_v42  ;;  %v6647_v0 = vmul.f32 0.25, %v4435_v63  ;;  %v3512_v3 = vand.u32 2147483647, %v3480_v36 }
 0x2fe   : > { %v3606_v50 = vmul.f32 %v3574_v47, %v3510_v7  ;;  %4499 = vperm.xlu1 %9590, %v13613_v40   ;;  %vm3542_vm15 = vcmp.lt.f32.partialorder %v3510_v7, 1.0  ;;  %v8736_v35 = vadd.f32 -0.5, %v3510_v7  ;;  %v3954_v61 = vmul.f32 0.5, %v3890_v51  ;;  %v13616_v2 = vpop.permute.xlu1 %3451  ;;  %v13621_v47 = vld [vmem:[%s10243_s18 + $0x40] sm:$0xff] }
 0x2ff   : > { %v3955_v33 = vmul.f32 0.5, %v3891_v44  ;;  %6678 = vst [vmem:[#allocation4 + $0xc0] sm:$0xff] %v6646_v37  ;;  %6679 = vst [vmem:[#allocation4 + $0xc8] sm:$0xff] %v6647_v0  ;;  %vm3922_vm0 = vcmp.lt.f32.partialorder %v3890_v51, 1.0  ;;  %vm3923_vm2 = vcmp.lt.f32.partialorder %v3891_v44, 1.0  ;;  %v8788_v48 = vadd.f32 -0.5, %v3890_v51  ;;  %v13624_v37 = vpop.permute.xlu0 %4151 }
 0x300   : > { %v8789_v52 = vadd.f32 -0.5, %v3891_v44  ;;  %v3670_v24 = vsel %vm3542_vm15, %v3606_v50, %v8736_v35  ;;  %v3986_v41 = vmul.f32 %v3954_v61, %v3890_v51  ;;  %v3576_v36 = vmul.f32 0.5, %v3512_v3 }
 0x301   : > { %v3987_v53 = vmul.f32 %v3955_v33, %v3891_v44  ;;  %v8738_v25 = vadd.f32 -0.5, %v3512_v3  ;;  %v4218_v42 = vand.u32 2147483647, %v4186_v28  ;;  %v3514_v63 = vand.u32 2147483647, %v3482_v22 }
 0x302   : > { %v4188_v7 = vsub.f32 %v13434_v19, %v13093_v62  ;;  %4507 = vperm.xlu1 %9590, %v13621_v47   ;;  %v4050_v0 = vsel %vm3922_vm0, %v3986_v41, %v8788_v48  ;;  %v3608_v55 = vmul.f32 %v3576_v36, %v3512_v3  ;;  %v3484_v51 = vsub.f32 %v13496_v39, %v12797_v17  ;;  %v13628_v44 = vpop.permute.xlu1 %3459  ;;  %v13633_v41 = vld [vmem:[%s10243_s18 + $0x50] sm:$0xff] }
 0x303   : > { %v4051_v30 = vsel %vm3923_vm2, %v3987_v53, %v8789_v52  ;;  %v4438_v28 = vadd.f32 %v4050_v0, %v13477_v14  ;;  %vm3544_vm4 = vcmp.lt.f32.partialorder %v3512_v3, 1.0  ;;  %v4282_v19 = vmul.f32 0.5, %v4218_v42  ;;  %v17320_v0 = vld [vmem:[#allocation65_spill] sm:$0xff] }
 0x304   : > { %v4439_v22 = vadd.f32 %v4051_v30, %v13509_v32  ;;  %v3672_v50 = vsel %vm3544_vm4, %v3608_v55, %v8738_v25  ;;  %vm4250_vm5 = vcmp.lt.f32.partialorder %v4218_v42, 1.0  ;;  %v8792_v35 = vadd.f32 -0.5, %v4218_v42 }
 0x305   : > { %v3578_v61 = vmul.f32 0.5, %v3514_v63  ;;  %v6650_v33 = vmul.f32 0.25, %v4438_v28  ;;  %v4314_v52 = vmul.f32 %v4282_v19, %v4218_v42  ;;  %vm3546_vm7 = vcmp.lt.f32.partialorder %v3514_v63, 1.0  ;;  %v13644_v42 = vpop.permute.xlu0 %4159  ;;  %v17321_v19 = vld [vmem:[#allocation104_spill] sm:$0xff] }
 0x306   : > { %v6651_v48 = vmul.f32 0.25, %v4439_v22  ;;  %4515 = vperm.xlu1 %9590, %v13633_v41   ;;  %v8740_v53 = vadd.f32 -0.5, %v3514_v63  ;;  %v4220_v36 = vand.u32 2147483647, %v4188_v7  ;;  %v3516_v14 = vand.u32 2147483647, %v3484_v51 }
 0x307   : > { %v3610_v39 = vmul.f32 %v3578_v61, %v3514_v63  ;;  %6682 = vst [vmem:[#allocation4 + $0xe0] sm:$0xff] %v6650_v33  ;;  %v4378_v30 = vsel %vm4250_vm5, %v4314_v52, %v8792_v35  ;;  %v4190_v55 = vsub.f32 %v13450_v20, %v13093_v62  ;;  %v3486_v32 = vsub.f32 %v13511_v57, %v12797_v17  ;;  %v13642_v25 = vpop.permute.xlu1 %3759  ;;  %v13655_v61 = vld [vmem:[%s10243_s18 + $0x60] sm:$0xff]  ;;  %v17322_v33 = vld [vmem:[#allocation70_spill] sm:$0xff] }
 0x308   : > { %6683 = vst [vmem:[#allocation4 + $0xe8] sm:$0xff] %v6651_v48  ;;  %v4192_v3 = vsub.f32 %v13468_v18, %v13093_v62  ;;  %v13647_v7 = vadd.f32 %v3670_v24, %v17320_v0  ;;  %v4442_v51 = vadd.f32 %v4378_v30, %v13514_v43  ;;  %v4284_v22 = vmul.f32 0.5, %v4220_v36 }
 0x309   : > { %v3674_v28 = vsel %vm3546_vm7, %v3610_v39, %v8740_v53  ;;  %v13652_v20 = vadd.f32 %v3672_v50, %v17321_v19  ;;  %vm4252_vm6 = vcmp.lt.f32.partialorder %v4220_v36, 1.0  ;;  %v8794_v57 = vadd.f32 -0.5, %v4220_v36 }
 0x30a   : > { %v3580_v35 = vmul.f32 0.5, %v3516_v14  ;;  %4523 = vperm.xlu1 %9590, %v13655_v61   ;;  %v6750_v18 = vmul.f32 0.25, %v4442_v51  ;;  %v13659_v48 = vadd.f32 %v3674_v28, %v17322_v33  ;;  %v4316_v24 = vmul.f32 %v4284_v22, %v4220_v36  ;;  %v13667_v28 = vld [vmem:[%s10243_s18 + $0x70] sm:$0xff] }
 0x30b   : > { %v4222_v43 = vand.u32 2147483647, %v4190_v55  ;;  %v8742_v52 = vadd.f32 -0.5, %v3516_v14  ;;  %v3518_v39 = vand.u32 2147483647, %v3486_v32  ;;  %v13661_v50 = vpop.permute.xlu1 %3767  ;;  %vm3548_vm8 = vcmp.lt.f32.partialorder %v3516_v14, 1.0  ;;  %v13670_v55 = vpop.permute.xlu0 %4167 }
 0x30c   : > { %v3612_v63 = vmul.f32 %v3580_v35, %v3516_v14  ;;  %v4224_v53 = vand.u32 2147483647, %v4192_v3  ;;  %6782 = vst [vmem:[#allocation6 + $0xb0] sm:$0xff] %v6750_v18  ;;  %v4380_v30 = vsel %vm4252_vm6, %v4316_v24, %v8794_v57  ;;  %v3520_v14 = vand.u32 2147483647, %v3488_v9  ;;  %v17323_v9 = vld [vmem:[#allocation53_spill] sm:$0xff] }
 0x30d   : > { %v4286_v0 = vmul.f32 0.5, %v4222_v43  ;;  %v8796_v19 = vadd.f32 -0.5, %v4222_v43  ;;  %v4444_v51 = vadd.f32 %v4380_v30, %v13582_v54  ;;  %vm4254_vm9 = vcmp.lt.f32.partialorder %v4222_v43, 1.0 }
 0x30e   : > { %v3582_v36 = vmul.f32 0.5, %v3518_v39  ;;  %4531 = vperm.xlu1 %9590, %v13667_v28   ;;  %v3676_v32 = vsel %vm3548_vm8, %v3612_v63, %v8742_v52  ;;  %v8744_v22 = vadd.f32 -0.5, %v3518_v39  ;;  %vm4256_vm10 = vcmp.lt.f32.partialorder %v4224_v53, 1.0 }
 0x30f   : > { %v4318_v3 = vmul.f32 %v4286_v0, %v4222_v43  ;;  %v6752_v57 = vmul.f32 0.25, %v4444_v51  ;;  %v4288_v18 = vmul.f32 0.5, %v4224_v53  ;;  %v8798_v33 = vadd.f32 -0.5, %v4224_v53  ;;  %v13672_v45 = vpop.permute.xlu1 %3771  ;;  %v13684_v0 = vld [vmem:[%s16811_s5] sm:$0xff] }
 0x310   : > { %v3614_v35 = vmul.f32 %v3582_v36, %v3518_v39  ;;  %v4194_v24 = vsub.f32 %v13483_v6, %v13093_v62  ;;  %v3490_v30 = vsub.f32 %v13549_v26, %v12797_v17  ;;  %vm3550_vm11 = vcmp.lt.f32.partialorder %v3518_v39, 1.0 }
 0x311   : > { %v4382_v54 = vsel %vm4254_vm9, %v4318_v3, %v8796_v19  ;;  %6784 = vst [vmem:[#allocation6 + $0xd8] sm:$0xff] %v6752_v57  ;;  %v4320_v43 = vmul.f32 %v4288_v18, %v4224_v53  ;;  %v4196_v52 = vsub.f32 %v13503_v21, %v13093_v62  ;;  %v13688_v6 = vadd.f32 %v3676_v32, %v17323_v9  ;;  %v13693_v21 = vpop.permute.xlu0 %4175 }
 0x312   : > { %v4446_v63 = vadd.f32 %v4382_v54, %v13593_v8  ;;  %4771 = vperm.xlu1 %9590, %v13684_v0   ;;  %v3678_v19 = vsel %vm3550_vm11, %v3614_v35, %v8744_v22  ;;  %v3584_v26 = vmul.f32 0.5, %v3520_v14  ;;  %v8746_v51 = vadd.f32 -0.5, %v3520_v14  ;;  %v17324_v22 = vld [vmem:[#allocation84_spill] sm:$0xff] }
 0x313   : > { %v4384_v8 = vsel %vm4256_vm10, %v4320_v43, %v8798_v33  ;;  %v4226_v39 = vand.u32 2147483647, %v4194_v24  ;;  %v3522_v3 = vand.u32 2147483647, %v3490_v30  ;;  %v13691_v57 = vpop.permute.xlu1 %3779  ;;  %v4228_v4 = vand.u32 2147483647, %v4196_v52 }
 0x314   : > { %v6754_v36 = vmul.f32 0.25, %v4446_v63  ;;  %v4448_v18 = vadd.f32 %v4384_v8, %v13602_v11  ;;  %v3616_v54 = vmul.f32 %v3584_v26, %v3520_v14  ;;  %v3492_v32 = vsub.f32 %v13560_v1, %v12797_v17  ;;  %v13704_v24 = vld [vmem:[%s16811_s5 + $0x10] sm:$0xff] }
 0x315   : > { %v13699_v35 = vadd.f32 %v3678_v19, %v17324_v22  ;;  %vm3552_vm12 = vcmp.lt.f32.partialorder %v3520_v14, 1.0  ;;  %v4290_v53 = vmul.f32 0.5, %v4226_v39  ;;  %v8800_v33 = vadd.f32 -0.5, %v4226_v39 }
 0x316   : > { %6786 = vst [vmem:[#allocation6 + $0x50] sm:$0xff] %v6754_v36  ;;  %4779 = vperm.xlu1 %9590, %v13704_v24   ;;  %v6756_v11 = vmul.f32 0.25, %v4448_v18  ;;  %v3680_v30 = vsel %vm3552_vm12, %v3616_v54, %v8746_v51  ;;  %vm4258_vm13 = vcmp.lt.f32.partialorder %v4226_v39, 1.0  ;;  %v3586_v63 = vmul.f32 0.5, %v3522_v3  ;;  %v13718_v18 = vld [vmem:[%s16811_s5 + $0x20] sm:$0xff]  ;;  %v13721_v54 = vpop.permute.xlu0 %4475 }
 0x317   : > { %v4322_v43 = vmul.f32 %v4290_v53, %v4226_v39  ;;  %v8748_v1 = vadd.f32 -0.5, %v3522_v3  ;;  %vm4260_vm14 = vcmp.lt.f32.partialorder %v4228_v4, 1.0  ;;  %v4292_v52 = vmul.f32 0.5, %v4228_v4  ;;  %v13707_v9 = vpop.permute.xlu1 %3787  ;;  %17325 = vst [vmem:[#allocation30_spill] sm:$0xff] %v13721_v54 }
 0x318   : > { %6788 = vst [vmem:[#allocation6 + $0x30] sm:$0xff] %v6756_v11  ;;  %v3618_v14 = vmul.f32 %v3586_v63, %v3522_v3  ;;  %v8802_v19 = vadd.f32 -0.5, %v4228_v4  ;;  %v3524_v26 = vand.u32 2147483647, %v3492_v32  ;;  %v4198_v36 = vsub.f32 %v13516_v27, %v13093_v62  ;;  %v17326_v32 = vld [vmem:[#allocation88_spill] sm:$0xff] }
 0x319   : > { %v4386_v8 = vsel %vm4258_vm13, %v4322_v43, %v8800_v33  ;;  %v4324_v22 = vmul.f32 %v4292_v52, %v4228_v4  ;;  %v3494_v51 = vsub.f32 %v13573_v12, %v12797_v17  ;;  %v4200_v39 = vsub.f32 %v13531_v58, %v13093_v62 }
 0x31a   : > { %4787 = vperm.xlu1 %9590, %v13718_v18   ;;  %v13724_v53 = vadd.f32 %v3680_v30, %v17326_v32  ;;  %v4450_v27 = vadd.f32 %v4386_v8, %v13647_v7  ;;  %vm3554_vm15 = vcmp.lt.f32.partialorder %v3522_v3, 1.0  ;;  %v3588_v33 = vmul.f32 0.5, %v3524_v26  ;;  %v13734_v7 = vld [vmem:[%s16811_s5 + $0x30] sm:$0xff] }
 0x31b   : > { %v3682_v12 = vsel %vm3554_vm15, %v3618_v14, %v8748_v1  ;;  %v4388_v11 = vsel %vm4260_vm14, %v4324_v22, %v8802_v19  ;;  %v8750_v58 = vadd.f32 -0.5, %v3524_v26  ;;  %v4230_v63 = vand.u32 2147483647, %v4198_v36  ;;  %v13728_v43 = vpop.permute.xlu1 %3795 }
 0x31c   : > { %v6758_v52 = vmul.f32 0.25, %v4450_v27  ;;  %v4452_v31 = vadd.f32 %v4388_v11, %v13652_v20  ;;  %v3620_v60 = vmul.f32 %v3588_v33, %v3524_v26  ;;  %v3526_v46 = vand.u32 2147483647, %v3494_v51  ;;  %v13752_v27 = vld [vmem:[%s16811_s5 + $0x40] sm:$0xff] }
 0x31d   : > { %vm3556_vm0 = vcmp.lt.f32.partialorder %v3524_v26, 1.0  ;;  %v4294_v54 = vmul.f32 0.5, %v4230_v63  ;;  %v8804_v30 = vadd.f32 -0.5, %v4230_v63  ;;  %v4232_v32 = vand.u32 2147483647, %v4200_v39  ;;  %v13739_v26 = vpop.permute.xlu0 %4487  ;;  %17328 = vst [vmem:[#allocation38_spill] sm:$0xff] %v13752_v27 }
 0x31e   : > { %4795 = vperm.xlu1 %9590, %v13734_v7   ;;  %6790 = vst [vmem:[#allocation6 + $0x80] sm:$0xff] %v6758_v52  ;;  %v6760_v4 = vmul.f32 0.25, %v4452_v31  ;;  %v3684_v3 = vsel %vm3556_vm0, %v3620_v60, %v8750_v58  ;;  %vm4262_vm2 = vcmp.lt.f32.partialorder %v4230_v63, 1.0  ;;  %v3590_v1 = vmul.f32 0.5, %v3526_v46  ;;  %17327 = vst [vmem:[#allocation31_spill] sm:$0xff] %v13739_v26 }
 0x31f   : > { %v4326_v14 = vmul.f32 %v4294_v54, %v4230_v63  ;;  %vm3558_vm4 = vcmp.lt.f32.partialorder %v3526_v46, 1.0  ;;  %v8752_v20 = vadd.f32 -0.5, %v3526_v46  ;;  %vm4264_vm5 = vcmp.lt.f32.partialorder %v4232_v32, 1.0  ;;  %v13737_v19 = vpop.permute.xlu1 %3803 }
 0x320   : > { %6792 = vst [vmem:[#allocation6 + $0xe8] sm:$0xff] %v6760_v4  ;;  %v3622_v36 = vmul.f32 %v3590_v1, %v3526_v46  ;;  %v4296_v8 = vmul.f32 0.5, %v4232_v32  ;;  %v8806_v22 = vadd.f32 -0.5, %v4232_v32  ;;  %v3496_v51 = vsub.f32 %v13599_v13, %v12797_v17 }
 0x321   : > { %v4390_v39 = vsel %vm4262_vm2, %v4326_v14, %v8804_v30  ;;  %v4202_v60 = vsub.f32 %v13553_v38, %v13093_v62  ;;  %v3498_v31 = vsub.f32 %v13616_v2, %v12797_v17  ;;  %v4204_v54 = vsub.f32 %v13563_v49, %v13093_v62  ;;  %v17329_v38 = vld [vmem:[#allocation71_spill] sm:$0xff] }
 0x322   : > { %4803 = vperm.xlu1 %9590, %v13752_v27   ;;  %v4454_v33 = vadd.f32 %v4390_v39, %v13659_v48  ;;  %v3686_v13 = vsel %vm3558_vm4, %v3622_v36, %v8752_v20  ;;  %v4328_v11 = vmul.f32 %v4296_v8, %v4232_v32  ;;  %v3528_v58 = vand.u32 2147483647, %v3496_v51  ;;  %v17330_v2 = vld [vmem:[#allocation75_spill] sm:$0xff]  ;;  %v17331_v48 = vld [vmem:[#allocation20_spill] sm:$0xff]  ;;  %v13770_v8 = vpop.permute.xlu0 %4495 }
 0x323   : > { %v13758_v63 = vadd.f32 %v3682_v12, %v17329_v38  ;;  %v13761_v52 = vadd.f32 %v3684_v3, %v17330_v2  ;;  %v4234_v49 = vand.u32 2147483647, %v4202_v60  ;;  %v3530_v30 = vand.u32 2147483647, %v3498_v31  ;;  %v13763_v4 = vpop.permute.xlu1 %3811  ;;  %v13775_v3 = vld [vmem:[%s16811_s5 + $0x50] sm:$0xff] }
 0x324   : > { %v6762_v1 = vmul.f32 0.25, %v4454_v33  ;;  %v4392_v14 = vsel %vm4264_vm5, %v4328_v11, %v8806_v22  ;;  %v3592_v26 = vmul.f32 0.5, %v3528_v58  ;;  %v4236_v27 = vand.u32 2147483647, %v4204_v54 }
 0x325   : > { %v13767_v46 = vadd.f32 %v3686_v13, %v17331_v48  ;;  %v4456_v20 = vadd.f32 %v4392_v14, %v13688_v6  ;;  %v8754_v36 = vadd.f32 -0.5, %v3528_v58  ;;  %v4298_v12 = vmul.f32 0.5, %v4234_v49  ;;  %v17332_v48 = vld [vmem:[#allocation18_spill] sm:$0xff] }
 0x326   : > { %4811 = vperm.xlu1 %9590, %v13775_v3   ;;  %6794 = vst [vmem:[#allocation6 + $0x60] sm:$0xff] %v6762_v1  ;;  %v3624_v32 = vmul.f32 %v3592_v26, %v3528_v58  ;;  %vm4266_vm7 = vcmp.lt.f32.partialorder %v4234_v49, 1.0  ;;  %v8808_v22 = vadd.f32 -0.5, %v4234_v49  ;;  %v3594_v51 = vmul.f32 0.5, %v3530_v30  ;;  %v13785_v26 = vld [vmem:[%s16811_s5 + $0x60] sm:$0xff] }
 0x327   : > { %v6764_v39 = vmul.f32 0.25, %v4456_v20  ;;  %vm3560_vm6 = vcmp.lt.f32.partialorder %v3528_v58, 1.0  ;;  %v4330_v60 = vmul.f32 %v4298_v12, %v4234_v49  ;;  %vm3562_vm8 = vcmp.lt.f32.partialorder %v3530_v30, 1.0  ;;  %v13778_v6 = vpop.permute.xlu1 %3819  ;;  %v13800_v12 = vpop.permute.xlu0 %4503 }
 0x328   : > { %v3688_v31 = vsel %vm3560_vm6, %v3624_v32, %v8754_v36  ;;  %vm4268_vm9 = vcmp.lt.f32.partialorder %v4236_v27, 1.0  ;;  %v4300_v54 = vmul.f32 0.5, %v4236_v27  ;;  %v8810_v33 = vadd.f32 -0.5, %v4236_v27 }
 0x329   : > { %6796 = vst [vmem:[#allocation6 + $0x8] sm:$0xff] %v6764_v39  ;;  %v4394_v13 = vsel %vm4266_vm7, %v4330_v60, %v8808_v22  ;;  %v3626_v11 = vmul.f32 %v3594_v51, %v3530_v30  ;;  %v3500_v38 = vsub.f32 %v13628_v44, %v12797_v17  ;;  %v8756_v2 = vadd.f32 -0.5, %v3530_v30 }
 0x32a   : > { %4819 = vperm.xlu1 %9590, %v13785_v26   ;;  %v4458_v58 = vadd.f32 %v4394_v13, %v13699_v35  ;;  %v4332_v49 = vmul.f32 %v4300_v54, %v4236_v27  ;;  %v16896_v1 = vmov 5   ;;  %v4206_v14 = vsub.f32 %v13577_v10, %v13093_v62 }
 0x32b   : > { %9592 = vset.pattern.permute.xlu0 %v16896_v1  ;;  %v13793_v20 = vadd.f32 %v3688_v31, %v17332_v48  ;;  %v3532_v44 = vand.u32 2147483647, %v3500_v38  ;;  %v3830_v36 = vsub.f32 %v13642_v25, %v17304_v59  ;;  %v3831_v35 = vsub.f32 %v13642_v25, %v17307_v34  ;;  %v13802_v32 = vpop.permute.xlu1 %4059  ;;  %v13814_v25 = vld [vmem:[%s16811_s5 + $0x70] sm:$0xff] }
 0x32c   : > { %5195 = vperm.xlu0 %9592, %v13557_v56   ;;  %v6766_v22 = vmul.f32 0.25, %v4458_v58  ;;  %v4396_v51 = vsel %vm4268_vm9, %v4332_v49, %v8810_v33  ;;  %v4238_v10 = vand.u32 2147483647, %v4206_v14  ;;  %v4208_v39 = vsub.f32 %v13606_v29, %v13093_v62 }
 0x32d   : > { %v13808_v60 = vsel %vm3562_vm8, %v3626_v11, %v8756_v2  ;;  %v4460_v56 = vadd.f32 %v4396_v51, %v13724_v53  ;;  %v3596_v31 = vmul.f32 0.5, %v3532_v44  ;;  %v8758_v54 = vadd.f32 -0.5, %v3532_v44 }
 0x32e   : > { %4827 = vperm.xlu1 %9590, %v13814_v25   ;;  %6798 = vst [vmem:[#allocation6 + $0x38] sm:$0xff] %v6766_v22  ;;  %vm4270_vm10 = vcmp.lt.f32.partialorder %v4238_v10, 1.0  ;;  %v4302_v27 = vmul.f32 0.5, %v4238_v10  ;;  %v8812_v33 = vadd.f32 -0.5, %v4238_v10  ;;  %v3862_v13 = vand.u32 2147483647, %v3830_v36  ;;  %v13822_v22 = vpop.permute.xlu0 %4511 }
 0x32f   : > { %v6768_v29 = vmul.f32 0.25, %v4460_v56  ;;  %v3628_v30 = vmul.f32 %v3596_v31, %v3532_v44  ;;  %v3863_v11 = vand.u32 2147483647, %v3831_v35  ;;  %v4240_v53 = vand.u32 2147483647, %v4208_v39  ;;  %v13818_v38 = vpop.permute.xlu1 %4067 }
 0x330   : > { %5207 = vperm.xlu0 %9592, %v13589_v23   ;;  %vm3564_vm11 = vcmp.lt.f32.partialorder %v3532_v44, 1.0  ;;  %v4334_v58 = vmul.f32 %v4302_v27, %v4238_v10  ;;  %vm3894_vm12 = vcmp.lt.f32.partialorder %v3862_v13, 1.0  ;;  %v3926_v2 = vmul.f32 0.5, %v3862_v13  ;;  %v13827_v23 = vld [vmem:[%s16811_s5 + $0x80] sm:$0xff] }
 0x331   : > { %6800 = vst [vmem:[#allocation6 + $0x40] sm:$0xff] %v6768_v29  ;;  %v13820_v49 = vsel %vm3564_vm11, %v3628_v30, %v8758_v54  ;;  %vm3895_vm13 = vcmp.lt.f32.partialorder %v3863_v11, 1.0  ;;  %v3927_v14 = vmul.f32 0.5, %v3863_v11  ;;  %v8760_v48 = vadd.f32 -0.5, %v3862_v13 }
 0x332   : > { %4835 = vperm.xlu1 %9590, %v13827_v23   ;;  %v4398_v44 = vsel %vm4270_vm10, %v4334_v58, %v8812_v33  ;;  %v3958_v36 = vmul.f32 %v3926_v2, %v3862_v13  ;;  %v8761_v35 = vadd.f32 -0.5, %v3863_v11  ;;  %vm4272_vm14 = vcmp.lt.f32.partialorder %v4240_v53, 1.0  ;;  %v17333_v58 = vld [vmem:[#allocation94_spill] sm:$0xff]  ;;  %v17334_v13 = vld [vmem:[#allocation76_spill] sm:$0xff] }
 0x333   : > { %v4462_v51 = vadd.f32 %v4398_v44, %v13758_v63  ;;  %v3959_v39 = vmul.f32 %v3927_v14, %v3863_v11  ;;  %v4304_v56 = vmul.f32 0.5, %v4240_v53  ;;  %v8814_v31 = vadd.f32 -0.5, %v4240_v53  ;;  %v13833_v54 = vpop.permute.xlu1 %4075 }
 0x334   : > { %5215 = vperm.xlu0 %9592, %v13613_v40   ;;  %v4022_v27 = vsel %vm3894_vm12, %v3958_v36, %v8760_v48  ;;  %v3834_v29 = vsub.f32 %v13661_v50, %v17304_v59  ;;  %v3835_v10 = vsub.f32 %v13661_v50, %v17307_v34  ;;  %v4210_v33 = vsub.f32 %v13624_v37, %v13093_v62  ;;  %v13847_v40 = vld [vmem:[%s16811_s5 + $0x90] sm:$0xff] }
 0x335   : > { %v6770_v30 = vmul.f32 0.25, %v4462_v51  ;;  %v4023_v63 = vsel %vm3895_vm13, %v3959_v39, %v8761_v35  ;;  %v4410_v2 = vadd.f32 %v4022_v27, %v17333_v58  ;;  %v4336_v14 = vmul.f32 %v4304_v56, %v4240_v53  ;;  %v13857_v39 = vpop.permute.xlu0 %4519 }
 0x336   : > { %4843 = vperm.xlu1 %9590, %v13847_v40   ;;  %v4411_v48 = vadd.f32 %v4023_v63, %v17334_v13  ;;  %v3866_v44 = vand.u32 2147483647, %v3834_v29  ;;  %v3867_v50 = vand.u32 2147483647, %v3835_v10  ;;  %v4242_v36 = vand.u32 2147483647, %v4210_v33 }
 0x337   : > { %6802 = vst [vmem:[#allocation6 + $0xe0] sm:$0xff] %v6770_v30  ;;  %v6622_v37 = vmul.f32 0.25, %v4410_v2  ;;  %v4400_v11 = vsel %vm4272_vm14, %v4336_v14, %v8814_v31  ;;  %v3836_v35 = vsub.f32 %v13672_v45, %v17304_v59  ;;  %v3837_v51 = vsub.f32 %v13672_v45, %v17307_v34  ;;  %v13859_v56 = vpop.permute.xlu1 %4083  ;;  %v13865_v33 = vld [vmem:[%s16811_s5 + $0xa0] sm:$0xff] }
 0x338   : > { %5223 = vperm.xlu0 %9592, %v13621_v47   ;;  %v6623_v27 = vmul.f32 0.25, %v4411_v48  ;;  %v4464_v29 = vadd.f32 %v4400_v11, %v13761_v52  ;;  %vm3898_vm15 = vcmp.lt.f32.partialorder %v3866_v44, 1.0  ;;  %vm3899_vm0 = vcmp.lt.f32.partialorder %v3867_v50, 1.0 }
 0x339   : > { %6654 = vst [vmem:[#allocation4] sm:$0xff] %v6622_v37  ;;  %v3930_v53 = vmul.f32 0.5, %v3866_v44  ;;  %v3931_v31 = vmul.f32 0.5, %v3867_v50  ;;  %v8764_v10 = vadd.f32 -0.5, %v3866_v44  ;;  %v8765_v47 = vadd.f32 -0.5, %v3867_v50 }
 0x33a   : > { %4851 = vperm.xlu1 %9590, %v13865_v33   ;;  %6655 = vst [vmem:[#allocation4 + $0x8] sm:$0xff] %v6623_v27  ;;  %v6772_v45 = vmul.f32 0.25, %v4464_v29  ;;  %vm4274_vm2 = vcmp.lt.f32.partialorder %v4242_v36, 1.0  ;;  %v4306_v30 = vmul.f32 0.5, %v4242_v36  ;;  %v8816_v63 = vadd.f32 -0.5, %v4242_v36 }
 0x33b   : > { %v3962_v52 = vmul.f32 %v3930_v53, %v3866_v44  ;;  %v3963_v58 = vmul.f32 %v3931_v31, %v3867_v50  ;;  %v3868_v2 = vand.u32 2147483647, %v3836_v35  ;;  %v3869_v14 = vand.u32 2147483647, %v3837_v51  ;;  %v13869_v13 = vpop.permute.xlu1 %4091  ;;  %v13884_v51 = vld [vmem:[%s16811_s5 + $0xb0] sm:$0xff] }
 0x33c   : > { %5231 = vperm.xlu0 %9592, %v13633_v41   ;;  %17335 = vst [vmem:[#allocation39_spill] sm:$0xff] %v13869_v13  ;;  %6804 = vst [vmem:[#allocation6 + $0x70] sm:$0xff] %v6772_v45  ;;  %v4338_v48 = vmul.f32 %v4306_v30, %v4242_v36  ;;  %v4212_v37 = vsub.f32 %v13644_v42, %v13093_v62  ;;  %v3840_v11 = vsub.f32 %v13691_v57, %v17304_v59  ;;  %v13879_v41 = vpop.permute.xlu0 %4527  ;;  %v13897_v36 = vld [vmem:[%s16811_s5 + $0xc0] sm:$0xff] }
 0x33d   : > { %v3841_v27 = vsub.f32 %v13691_v57, %v17307_v34  ;;  %v4026_v29 = vsel %vm3898_vm15, %v3962_v52, %v8764_v10  ;;  %v4027_v35 = vsel %vm3899_vm0, %v3963_v58, %v8765_v47  ;;  %vm3900_vm4 = vcmp.lt.f32.partialorder %v3868_v2, 1.0 }
 0x33e   : > { %vm3901_vm5 = vcmp.lt.f32.partialorder %v3869_v14, 1.0  ;;  %4859 = vperm.xlu1 %9590, %v13884_v51   ;;  %v4414_v42 = vadd.f32 %v4026_v29, %v13311_v5  ;;  %v4415_v53 = vadd.f32 %v4027_v35, %v13314_v16  ;;  %v4402_v57 = vsel %vm4274_vm2, %v4338_v48, %v8816_v63 }
 0x33f   : > { %v3932_v44 = vmul.f32 0.5, %v3868_v2  ;;  %v4466_v50 = vadd.f32 %v4402_v57, %v13767_v46  ;;  %v3933_v31 = vmul.f32 0.5, %v3869_v14  ;;  %v8766_v10 = vadd.f32 -0.5, %v3868_v2  ;;  %v13892_v45 = vpop.permute.xlu1 %4099 }
 0x340   : > { %v8767_v47 = vadd.f32 -0.5, %v3869_v14  ;;  %5239 = vperm.xlu0 %9592, %v13655_v61   ;;  %v6626_v30 = vmul.f32 0.25, %v4414_v42  ;;  %v6627_v52 = vmul.f32 0.25, %v4415_v53  ;;  %v4244_v1 = vand.u32 2147483647, %v4212_v37  ;;  %v17336_v37 = vld [vmem:[#allocation32_spill] sm:$0xff] }
 0x341   : > { %v3964_v58 = vmul.f32 %v3932_v44, %v3868_v2  ;;  %v6774_v13 = vmul.f32 0.25, %v4466_v50  ;;  %v3965_v5 = vmul.f32 %v3933_v31, %v3869_v14  ;;  %v3872_v29 = vand.u32 2147483647, %v3840_v11  ;;  %v17337_v42 = vld [vmem:[#allocation33_spill] sm:$0xff] }
 0x342   : > { %v3873_v16 = vand.u32 2147483647, %v3841_v27  ;;  %4867 = vperm.xlu1 %9590, %v13897_v36   ;;  %6658 = vst [vmem:[#allocation4 + $0x20] sm:$0xff] %v6626_v30  ;;  %6659 = vst [vmem:[#allocation4 + $0x28] sm:$0xff] %v6627_v52  ;;  %vm4276_vm7 = vcmp.lt.f32.partialorder %v4244_v1, 1.0  ;;  %v4308_v46 = vmul.f32 0.5, %v4244_v1  ;;  %v13904_v27 = vpop.permute.xlu0 %4535  ;;  %v4214_v14 = vsub.f32 %v13670_v55, %v13093_v62 }
 0x343   : > { %v4028_v61 = vsel %vm3900_vm4, %v3964_v58, %v8766_v10  ;;  %v8818_v63 = vadd.f32 -0.5, %v4244_v1  ;;  %6806 = vst [vmem:[#allocation6 + $0xa8] sm:$0xff] %v6774_v13  ;;  %v4029_v48 = vsel %vm3901_vm5, %v3965_v5, %v8767_v47  ;;  %vm3904_vm6 = vcmp.lt.f32.partialorder %v3872_v29, 1.0  ;;  %v13906_v35 = vpop.permute.xlu1 %4107  ;;  %v13914_v10 = vld [vmem:[%s16811_s5 + $0xd0] sm:$0xff] }
 0x344   : > { %v4416_v11 = vadd.f32 %v4028_v61, %v17336_v37  ;;  %vm3905_vm8 = vcmp.lt.f32.partialorder %v3873_v16, 1.0  ;;  %5247 = vperm.xlu0 %9592, %v13667_v28   ;;  %v4417_v53 = vadd.f32 %v4029_v48, %v17337_v42  ;;  %v4340_v2 = vmul.f32 %v4308_v46, %v4244_v1 }
 0x345   : > { %v3936_v57 = vmul.f32 0.5, %v3872_v29  ;;  %v3937_v44 = vmul.f32 0.5, %v3873_v16  ;;  %v8770_v31 = vadd.f32 -0.5, %v3872_v29  ;;  %v8771_v13 = vadd.f32 -0.5, %v3873_v16 }
 0x346   : > { %v6628_v50 = vmul.f32 0.25, %v4416_v11  ;;  %4875 = vperm.xlu1 %9590, %v13914_v10   ;;  %v6629_v28 = vmul.f32 0.25, %v4417_v53  ;;  %v4404_v47 = vsel %vm4276_vm7, %v4340_v2, %v8818_v63  ;;  %v4246_v5 = vand.u32 2147483647, %v4214_v14  ;;  %v17338_v11 = vld [vmem:[#allocation34_spill] sm:$0xff]  ;;  %v17339_v53 = vld [vmem:[#allocation35_spill] sm:$0xff] }
 0x347   : > { %v3968_v30 = vmul.f32 %v3936_v57, %v3872_v29  ;;  %v3969_v52 = vmul.f32 %v3937_v44, %v3873_v16  ;;  %v4468_v58 = vadd.f32 %v4404_v47, %v13793_v20  ;;  %v3844_v61 = vsub.f32 %v13707_v9, %v17304_v59  ;;  %v13924_v46 = vpop.permute.xlu1 %4115  ;;  %v13939_v29 = vld [vmem:[%s16811_s5 + $0xe0] sm:$0xff] }
 0x348   : > { %6660 = vst [vmem:[#allocation4 + $0x30] sm:$0xff] %v6628_v50  ;;  %v3845_v55 = vsub.f32 %v13707_v9, %v17307_v34  ;;  %5487 = vperm.xlu0 %9592, %v13684_v0   ;;  %6661 = vst [vmem:[#allocation4 + $0x38] sm:$0xff] %v6629_v28  ;;  %v4216_v48 = vsub.f32 %v13693_v21, %v13093_v62  ;;  %v3848_v20 = vsub.f32 %v13728_v43, %v17304_v59  ;;  %v13934_v0 = vpop.permute.xlu0 %4775  ;;  %v17340_v28 = vld [vmem:[#allocation82_spill] sm:$0xff] }
 0x349   : > { %v4032_v1 = vsel %vm3904_vm6, %v3968_v30, %v8770_v31  ;;  %v4033_v63 = vsel %vm3905_vm8, %v3969_v52, %v8771_v13  ;;  %v6776_v37 = vmul.f32 0.25, %v4468_v58  ;;  %vm4278_vm9 = vcmp.lt.f32.partialorder %v4246_v5, 1.0  ;;  %v17341_v30 = vld [vmem:[#allocation86_spill] sm:$0xff] }
 0x34a   : > { %v4420_v42 = vadd.f32 %v4032_v1, %v17338_v11  ;;  %v4421_v9 = vadd.f32 %v4033_v63, %v17339_v53  ;;  %4883 = vperm.xlu1 %9590, %v13939_v29   ;;  %v4310_v16 = vmul.f32 0.5, %v4246_v5  ;;  %v8820_v21 = vadd.f32 -0.5, %v4246_v5 }
 0x34b   : > { %v3876_v2 = vand.u32 2147483647, %v3844_v61  ;;  %v3877_v57 = vand.u32 2147483647, %v3845_v55  ;;  %6808 = vst [vmem:[#allocation6 + $0x10] sm:$0xff] %v6776_v37  ;;  %v3849_v13 = vsub.f32 %v13728_v43, %v17307_v34  ;;  %v13945_v14 = vpop.permute.xlu1 %4123  ;;  %v3754_v47 = vadd.f32 %v13808_v60, %v17340_v28 }
 0x34c   : > { %v6632_v44 = vmul.f32 0.25, %v4420_v42  ;;  %v6633_v50 = vmul.f32 0.25, %v4421_v9  ;;  %v4248_v31 = vand.u32 2147483647, %v4216_v48  ;;  %5495 = vperm.xlu0 %9592, %v13704_v24   ;;  %v3756_v52 = vadd.f32 %v13820_v49, %v17341_v30  ;;  %v13954_v24 = vld [vmem:[%s16811_s5 + $0xf0] sm:$0xff]  ;;  %v13959_v53 = vpop.permute.xlu0 %4783 }
 0x34d   : > { %v4342_v58 = vmul.f32 %v4310_v16, %v4246_v5  ;;  %v3940_v61 = vmul.f32 0.5, %v3876_v2  ;;  %vm3908_vm10 = vcmp.lt.f32.partialorder %v3876_v2, 1.0  ;;  %vm3909_vm11 = vcmp.lt.f32.partialorder %v3877_v57, 1.0 }
 0x34e   : > { %6664 = vst [vmem:[#allocation4 + $0x50] sm:$0xff] %v6632_v44  ;;  %6665 = vst [vmem:[#allocation4 + $0x58] sm:$0xff] %v6633_v50  ;;  %v3941_v55 = vmul.f32 0.5, %v3877_v57  ;;  %v8774_v1 = vadd.f32 -0.5, %v3876_v2  ;;  %4891 = vperm.xlu1 %9590, %v13954_v24   ;;  %v8775_v63 = vadd.f32 -0.5, %v3877_v57  ;;  %v4312_v49 = vmul.f32 0.5, %v4248_v31 }
 0x34f   : > { %v4406_v43 = vsel %vm4278_vm9, %v4342_v58, %v8820_v21  ;;  %v3972_v60 = vmul.f32 %v3940_v61, %v3876_v2  ;;  %v3880_v11 = vand.u32 2147483647, %v3848_v20  ;;  %v3881_v42 = vand.u32 2147483647, %v3849_v13  ;;  %v13961_v9 = vpop.permute.xlu1 %4131 }
 0x350   : > { %v4470_v48 = vadd.f32 %v4406_v43, %v3754_v47  ;;  %v3973_v37 = vmul.f32 %v3941_v55, %v3877_v57  ;;  %5503 = vperm.xlu0 %9592, %v13718_v18   ;;  %vm4280_vm12 = vcmp.lt.f32.partialorder %v4248_v31, 1.0  ;;  %v4344_v44 = vmul.f32 %v4312_v49, %v4248_v31  ;;  %v17342_v47 = vld [vmem:[#allocation12_spill] sm:$0xff]  ;;  %v17344_v18 = vld [vmem:[#allocation42_spill] sm:$0xff] }
 0x351   : > { %v4036_v16 = vsel %vm3908_vm10, %v3972_v60, %v8774_v1  ;;  %v8822_v5 = vadd.f32 -0.5, %v4248_v31  ;;  %v13967_v20 = vsub.s32 4, %v17342_v47  ;;  %v17343_v13 = vmov 5   ;;  %v13974_v55 = vld [vmem:[%s10243_s18] sm:$0xff] }
 0x352   : > { %v6778_v21 = vmul.f32 0.25, %v4470_v48  ;;  %v4037_v50 = vsel %vm3909_vm11, %v3973_v37, %v8775_v63  ;;  %v4424_v28 = vadd.f32 %v4036_v16, %v12960_v15  ;;  %9591 = vset.pattern.permute.xlu1 %v17343_v13  ;;  %v3944_v61 = vmul.f32 0.5, %v3880_v11  ;;  %17345 = vst [vmem:[#allocation46_spill] sm:$0xff] %v13974_v55  ;;  %v17346_v57 = vld [vmem:[#allocation68_spill] sm:$0xff] }
 0x353   : > { %v4425_v30 = vadd.f32 %v4037_v50, %v17344_v18  ;;  %v4408_v58 = vsel %vm4280_vm12, %v4344_v44, %v8822_v5  ;;  %v3852_v2 = vsub.f32 %v13737_v19, %v17304_v59  ;;  %5191 = vperm.xlu1 %9591, %v13974_v55   ;;  %v17347_v31 = vsub.f32 %v17346_v57, %v12797_v17  ;;  %v13983_v63 = vpop.permute.xlu1 %4139  ;;  %v13987_v50 = vpop.permute.xlu0 %4791  ;;  %v17349_v18 = vld [vmem:[#allocation43_spill] sm:$0xff] }
 0x354   : > { %6810 = vst [vmem:[#allocation6 + $0xa0] sm:$0xff] %v6778_v21  ;;  %v6636_v1 = vmul.f32 0.25, %v4424_v28  ;;  %v4472_v43 = vadd.f32 %v4408_v58, %v3756_v52  ;;  %v3945_v60 = vmul.f32 0.5, %v3881_v42  ;;  %5511 = vperm.xlu0 %9592, %v13734_v7   ;;  %vm3912_vm13 = vcmp.lt.f32.partialorder %v3880_v11, 1.0  ;;  %v9832_v7 = vld [vmem:[%s16812_s6] sm:$0x7f] }
 0x355   : > { %v13980_v15 = vand.u32 2147483647, %v17347_v31  ;;  %v6637_v49 = vmul.f32 0.25, %v4425_v30  ;;  %v3976_v48 = vmul.f32 %v3944_v61, %v3880_v11  ;;  %v8778_v37 = vadd.f32 -0.5, %v3880_v11  ;;  %v17348_v28 = vld [vmem:[#allocation28_spill] sm:$0xff]  ;;  %v17350_v61 = vld [vmem:[#allocation38_spill] sm:$0xff] }
 0x356   : > { %6668 = vst [vmem:[#allocation4 + $0x70] sm:$0xff] %v6636_v1  ;;  %v6780_v16 = vmul.f32 0.25, %v4472_v43  ;;  %v3977_v44 = vmul.f32 %v3945_v60, %v3881_v42  ;;  %v8779_v5 = vadd.f32 -0.5, %v3881_v42  ;;  %v3853_v17 = vsub.f32 %v13737_v19, %v17307_v34  ;;  %v9833_v19 = vld [vmem:[%s16812_s6 + $0x8] sm:$0x7f]  ;;  %v17352_v31 = vld [vmem:[#allocation92_spill] sm:$0xff] }
 0x357   : > { %6669 = vst [vmem:[#allocation4 + $0x78] sm:$0xff] %v6637_v49  ;;  %vm3913_vm14 = vcmp.lt.f32.partialorder %v3881_v42, 1.0  ;;  %v4040_v52 = vsel %vm3912_vm13, %v3976_v48, %v8778_v37  ;;  %v13993_v21 = vrot.slane %v9832_v7, %v13967_v20  ;;  %v3884_v11 = vand.u32 2147483647, %v3852_v2  ;;  %5199 = vperm.xlu1 %9591, %v17348_v28   ;;  %v14004_v57 = vpop.permute.xlu1 %4147  ;;  %v17351_v2 = vld [vmem:[#allocation87_spill] sm:$0xff]  ;;  %v17354_v43 = vld [vmem:[#allocation50_spill] sm:$0xff] }
 0x358   : > { %6812 = vst [vmem:[#allocation6 + $0x20] sm:$0xff] %v6780_v16  ;;  %v4041_v13 = vsel %vm3913_vm14, %v3977_v44, %v8779_v5  ;;  %v4428_v30 = vadd.f32 %v4040_v52, %v17349_v18  ;;  %v14001_v42 = vrot.slane %v9833_v19, %v13967_v20  ;;  %v3885_v58 = vand.u32 2147483647, %v3853_v17  ;;  %5519 = vperm.xlu0 %9592, %v17350_v61   ;;  %v17355_v49 = vld [vmem:[#allocation30_spill] sm:$0xff]  ;;  %v17356_v16 = vld [vmem:[#allocation61_spill] sm:$0xff]  ;;  %v17360_v18 = vld [vmem:[#allocation80_spill] sm:$0xff] }
 0x359   : > { %v14008_v1 = vadd.f32 %v17352_v31, %v17351_v2  ;;  %v4429_v60 = vadd.f32 %v4041_v13, %v17354_v43  ;;  %v4546_v48 = vsub.f32 %v17355_v49, %v13993_v21  ;;  %v3948_v37 = vmul.f32 0.5, %v3884_v11  ;;  %v17357_v44 = vld [vmem:[#allocation21_spill] sm:$0xff]  ;;  %v17359_v28 = vld [vmem:[#allocation78_spill] sm:$0xff]  ;;  %v17362_v61 = vld [vmem:[#allocation79_spill] sm:$0xff] }
 0x35a   : > { %v14015_v5 = vadd.f32 %v17357_v44, %v17356_v16  ;;  %v6640_v52 = vmul.f32 0.25, %v4428_v30  ;;  %v4547_v17 = vsub.f32 %v17355_v49, %v14001_v42  ;;  %v3949_v7 = vmul.f32 0.5, %v3885_v58  ;;  %v14026_v31 = vld [vmem:[%s10243_s18 + $0x18] sm:$0xff]  ;;  %v17364_v43 = vld [vmem:[#allocation85_spill] sm:$0xff] }
 0x35b   : > { %17353 = vst [vmem:[#allocation47_spill] sm:$0xff] %v14008_v1  ;;  %v14021_v19 = vadd.f32 %v17360_v18, %v17359_v28  ;;  %vm3561_vm15 = vcmp.lt.f32.partialorder %v17362_v61, 1.0  ;;  %v3597_v13 = vmul.f32 0.5, %v13980_v15  ;;  %v6641_v2 = vmul.f32 0.25, %v4429_v60  ;;  %17363 = vst [vmem:[#allocation55_spill] sm:$0xff] %v14026_v31  ;;  %5203 = vperm.xlu1 %9591, %v14026_v31   ;;  %v17365_v49 = vld [vmem:[#allocation81_spill] sm:$0xff]  ;;  %v14035_v18 = vpop.permute.xlu0 %4799  ;;  %v14037_v60 = vpop.permute.xlu1 %4155 }
 0x35c   : > { %17358 = vst [vmem:[#allocation90_spill] sm:$0xff] %v14015_v5  ;;  %v3625_v30 = vmul.f32 %v17364_v43, %v17362_v61  ;;  %v8755_v16 = vadd.f32 -0.5, %v17362_v61  ;;  %v17366_v44 = vld [vmem:[#allocation27_spill] sm:$0xff]  ;;  %6672 = vst [vmem:[#allocation4 + $0x90] sm:$0xff] %v6640_v52  ;;  %v3980_v28 = vmul.f32 %v3948_v37, %v3884_v11  ;;  %5527 = vperm.xlu0 %9592, %v13775_v3   ;;  %v8782_v55 = vadd.f32 -0.5, %v3884_v11 }
 0x35d   : > { %17361 = vst [vmem:[#allocation54_spill] sm:$0xff] %v14021_v19  ;;  %v3627_v47 = vmul.f32 %v17366_v44, %v17365_v49  ;;  %6673 = vst [vmem:[#allocation4 + $0x98] sm:$0xff] %v6641_v2  ;;  %v14039_v19 = vand.u32 2147483647, %v4546_v48  ;;  %v3981_v31 = vmul.f32 %v3949_v7, %v3885_v58  ;;  %v8783_v43 = vadd.f32 -0.5, %v3885_v58  ;;  %v14049_v2 = vld [vmem:[%s10243_s18 + $0x28] sm:$0xff] }
 0x35e   : > { %v14041_v5 = vand.u32 2147483647, %v4547_v17  ;;  %vm3916_vm0 = vcmp.lt.f32.partialorder %v3884_v11, 1.0  ;;  %vm3917_vm2 = vcmp.lt.f32.partialorder %v3885_v58, 1.0  ;;  %v3856_v37 = vsub.f32 %v13763_v4, %v17304_v59  ;;  %17367 = vst [vmem:[#allocation93_spill] sm:$0xff] %v14049_v2  ;;  %v17368_v11 = vld [vmem:[#allocation51_spill] sm:$0xff] }
 0x35f   : > { %v3629_v3 = vmul.f32 %v3597_v13, %v13980_v15  ;;  %v4044_v52 = vsel %vm3916_vm0, %v3980_v28, %v8782_v55  ;;  %v4045_v44 = vsel %vm3917_vm2, %v3981_v31, %v8783_v43  ;;  %v3857_v1 = vsub.f32 %v13763_v4, %v17307_v34  ;;  %5211 = vperm.xlu1 %9591, %v14049_v2   ;;  %v17369_v17 = vld [vmem:[#allocation36_spill] sm:$0xff]  ;;  %v14058_v55 = vpop.permute.xlu1 %4163  ;;  %v14065_v43 = vpop.permute.xlu0 %4807 }
 0x360   : > { %v3689_v48 = vsel %vm3561_vm15, %v3625_v30, %v8755_v16  ;;  %vm3563_vm4 = vcmp.lt.f32.partialorder %v17365_v49, 1.0  ;;  %v4432_v58 = vadd.f32 %v4044_v52, %v17368_v11  ;;  %v4433_v7 = vadd.f32 %v4045_v44, %v17369_v17  ;;  %5535 = vperm.xlu0 %9592, %v13785_v26   ;;  %17370 = vst [vmem:[#allocation95_spill] sm:$0xff] %v14058_v55  ;;  %v17371_v52 = vld [vmem:[#allocation23_spill] sm:$0xff] }
 0x361   : > { %v8757_v4 = vadd.f32 -0.5, %v17365_v49  ;;  %v8759_v13 = vadd.f32 -0.5, %v13980_v15  ;;  %v4642_v31 = vmul.f32 0.5, %v14039_v19  ;;  %v3888_v28 = vand.u32 2147483647, %v3856_v37  ;;  %v14071_v49 = vld [vmem:[%s10243_s18 + $0x38] sm:$0xff] }
 0x362   : > { %vm3565_vm5 = vcmp.lt.f32.partialorder %v13980_v15, 1.0  ;;  %v4643_v61 = vmul.f32 0.5, %v14041_v5  ;;  %v6644_v30 = vmul.f32 0.25, %v4432_v58  ;;  %v6645_v16 = vmul.f32 0.25, %v4433_v7  ;;  %17373 = vst [vmem:[#allocation22_spill] sm:$0xff] %v14071_v49  ;;  %v17374_v37 = vld [vmem:[#allocation31_spill] sm:$0xff] }
 0x363   : > { %v14068_v44 = vadd.f32 %v3689_v48, %v17371_v52  ;;  %v3691_v26 = vsel %vm3563_vm4, %v3627_v47, %v8757_v4  ;;  %v3693_v11 = vsel %vm3565_vm5, %v3629_v3, %v8759_v13  ;;  %v3889_v17 = vand.u32 2147483647, %v3857_v1  ;;  %5219 = vperm.xlu1 %9591, %v14071_v49   ;;  %v14079_v47 = vpop.permute.xlu1 %4171 }
 0x364   : > { %vm4610_vm7 = vcmp.lt.f32.partialorder %v14039_v19, 1.0  ;;  %v8824_v15 = vadd.f32 -0.5, %v14039_v19  ;;  %6676 = vst [vmem:[#allocation4 + $0xb0] sm:$0xff] %v6644_v30  ;;  %6677 = vst [vmem:[#allocation4 + $0xb8] sm:$0xff] %v6645_v16  ;;  %v4552_v58 = vsub.f32 %v17374_v37, %v13993_v21  ;;  %v3952_v7 = vmul.f32 0.5, %v3888_v28  ;;  %5543 = vperm.xlu0 %9592, %v13814_v25  }
 0x365   : > { %17372 = vst [vmem:[#allocation96_spill] sm:$0xff] %v14068_v44  ;;  %17375 = vst [vmem:[#allocation15_spill] sm:$0xff] %v14079_v47  ;;  %v4674_v1 = vmul.f32 %v4642_v31, %v14039_v19  ;;  %v8825_v3 = vadd.f32 -0.5, %v14041_v5  ;;  %v4553_v48 = vsub.f32 %v17374_v37, %v14001_v42  ;;  %v3953_v4 = vmul.f32 0.5, %v3889_v17  ;;  %v14091_v31 = vld [vmem:[%s10243_s18 + $0x48] sm:$0xff] }
 0x366   : > { %v4675_v13 = vmul.f32 %v4643_v61, %v14041_v5  ;;  %vm3920_vm6 = vcmp.lt.f32.partialorder %v3888_v28, 1.0  ;;  %v3984_v30 = vmul.f32 %v3952_v7, %v3888_v28  ;;  %v8786_v16 = vadd.f32 -0.5, %v3888_v28  ;;  %17376 = vst [vmem:[#allocation24_spill] sm:$0xff] %v14091_v31  ;;  %v14098_v28 = vpop.permute.xlu0 %4815 }
 0x367   : > { %v3985_v52 = vmul.f32 %v3953_v4, %v3889_v17  ;;  %v8787_v49 = vadd.f32 -0.5, %v3889_v17  ;;  %v3860_v25 = vsub.f32 %v13778_v6, %v17304_v59  ;;  %v3861_v44 = vsub.f32 %v13778_v6, %v17307_v34  ;;  %5227 = vperm.xlu1 %9591, %v14091_v31   ;;  %v14100_v7 = vpop.permute.xlu1 %4179  ;;  %v17377_v6 = vld [vmem:[#allocation37_spill] sm:$0xff]  ;;  %v17378_v31 = vld [vmem:[#allocation64_spill] sm:$0xff] }
 0x368   : > { %vm4611_vm8 = vcmp.lt.f32.partialorder %v14041_v5, 1.0  ;;  %v14095_v37 = vand.u32 2147483647, %v4552_v58  ;;  %vm3921_vm9 = vcmp.lt.f32.partialorder %v3889_v17, 1.0  ;;  %v4048_v61 = vsel %vm3920_vm6, %v3984_v30, %v8786_v16  ;;  %5551 = vperm.xlu0 %9592, %v13827_v23   ;;  %v17379_v58 = vld [vmem:[#allocation77_spill] sm:$0xff]  ;;  %v17381_v17 = vld [vmem:[#allocation40_spill] sm:$0xff] }
 0x369   : > { %v14102_v59 = vand.u32 2147483647, %v4553_v48  ;;  %v4049_v34 = vsel %vm3921_vm9, %v3985_v52, %v8787_v49  ;;  %v4436_v4 = vadd.f32 %v4048_v61, %v17377_v6  ;;  %v3892_v2 = vand.u32 2147483647, %v3860_v25 }
 0x36a   : > { %v14106_v47 = vadd.f32 %v3691_v26, %v17378_v31  ;;  %v14109_v55 = vadd.f32 %v3693_v11, %v17379_v58  ;;  %v4437_v30 = vadd.f32 %v4049_v34, %v17381_v17  ;;  %v4556_v23 = vsub.f32 %v13770_v8, %v13993_v21  ;;  %v14123_v26 = vld [vmem:[%s10243_s18 + $0x58] sm:$0xff]  ;;  %v14142_v34 = vpop.permute.xlu0 %4823  ;;  %v14147_v17 = vld [vmem:[%s10243_s18 + $0x68] sm:$0xff] }
 0x36b   : > { %v14116_v16 = vsel %vm4610_vm7, %v4674_v1, %v8824_v15  ;;  %v14120_v49 = vsel %vm4611_vm8, %v4675_v13, %v8825_v3  ;;  %v6648_v48 = vmul.f32 0.25, %v4436_v4  ;;  %v3893_v52 = vand.u32 2147483647, %v3861_v44  ;;  %17384 = vst [vmem:[#allocation99_spill] sm:$0xff] %v14123_v26  ;;  %5235 = vperm.xlu1 %9591, %v14123_v26   ;;  %17385 = vst [vmem:[#allocation100_spill] sm:$0xff] %v14147_v17 }
 0x36c   : > { %17380 = vst [vmem:[#allocation58_spill] sm:$0xff] %v14109_v55  ;;  %17382 = vst [vmem:[#allocation97_spill] sm:$0xff] %v14116_v16  ;;  %v6649_v11 = vmul.f32 0.25, %v4437_v30  ;;  %v4557_v25 = vsub.f32 %v13770_v8, %v14001_v42  ;;  %v3956_v31 = vmul.f32 0.5, %v3892_v2  ;;  %v4560_v19 = vsub.f32 %v13800_v12, %v13993_v21  ;;  %5559 = vperm.xlu0 %9592, %v13847_v40  }
 0x36d   : > { %17383 = vst [vmem:[#allocation98_spill] sm:$0xff] %v14120_v49  ;;  %v4648_v5 = vmul.f32 0.5, %v14095_v37  ;;  %v4649_v15 = vmul.f32 0.5, %v14102_v59  ;;  %v14134_v44 = vadd.f32 -0.5, %v14095_v37  ;;  %6680 = vst [vmem:[#allocation4 + $0xd0] sm:$0xff] %v6648_v48  ;;  %v3957_v1 = vmul.f32 0.5, %v3893_v52  ;;  %v14136_v3 = vpop.permute.xlu1 %4479 }
 0x36e   : > { %6681 = vst [vmem:[#allocation4 + $0xd8] sm:$0xff] %v6649_v11  ;;  %v14138_v8 = vand.u32 2147483647, %v4556_v23  ;;  %v3988_v13 = vmul.f32 %v3956_v31, %v3892_v2  ;;  %v8790_v61 = vadd.f32 -0.5, %v3892_v2  ;;  %v4561_v40 = vsub.f32 %v13800_v12, %v14001_v42 }
 0x36f   : > { %vm3924_vm10 = vcmp.lt.f32.partialorder %v3892_v2, 1.0  ;;  %v3989_v6 = vmul.f32 %v3957_v1, %v3893_v52  ;;  %v8791_v4 = vadd.f32 -0.5, %v3893_v52  ;;  %v4187_v58 = vsub.f32 %v13802_v32, %v13093_v62  ;;  %5243 = vperm.xlu1 %9591, %v14147_v17   ;;  %v17386_v2 = vld [vmem:[#allocation41_spill] sm:$0xff] }
 0x370   : > { %vm4616_vm11 = vcmp.lt.f32.partialorder %v14095_v37, 1.0  ;;  %v14151_v30 = vand.u32 2147483647, %v4557_v25  ;;  %vm3925_vm12 = vcmp.lt.f32.partialorder %v3893_v52, 1.0  ;;  %v4052_v23 = vsel %vm3924_vm10, %v3988_v13, %v8790_v61  ;;  %5567 = vperm.xlu0 %9592, %v13865_v33   ;;  %v17387_v13 = vld [vmem:[#allocation44_spill] sm:$0xff]  ;;  %v14195_v17 = vld [vmem:[%s16811_s5 + $0x8] sm:$0xff] }
 0x371   : > { %v14153_v48 = vand.u32 2147483647, %v4560_v19  ;;  %vm4617_vm13 = vcmp.lt.f32.partialorder %v14102_v59, 1.0  ;;  %v4053_v12 = vsel %vm3925_vm12, %v3989_v6, %v8791_v4  ;;  %v4440_v32 = vadd.f32 %v4052_v23, %v17386_v2  ;;  %v14160_v1 = vpop.permute.xlu1 %4483  ;;  %v14169_v23 = vld [vmem:[%s10243_s18 + $0x78] sm:$0xff]  ;;  %17390 = vst [vmem:[#allocation70_spill] sm:$0xff] %v14195_v17 }
 0x372   : > { %v14158_v11 = vand.u32 2147483647, %v4561_v40  ;;  %v4219_v31 = vand.u32 2147483647, %v4187_v58  ;;  %v4680_v25 = vmul.f32 %v4648_v5, %v14095_v37  ;;  %v4681_v52 = vmul.f32 %v4649_v15, %v14102_v59  ;;  %17388 = vst [vmem:[#allocation65_spill] sm:$0xff] %v14169_v23 }
 0x373   : > { %v8831_v19 = vadd.f32 -0.5, %v14102_v59  ;;  %v4441_v61 = vadd.f32 %v4053_v12, %v17387_v13  ;;  %vm4620_vm14 = vcmp.lt.f32.partialorder %v14138_v8, 1.0  ;;  %v4652_v33 = vmul.f32 0.5, %v14138_v8  ;;  %5251 = vperm.xlu1 %9591, %v14169_v23   ;;  %v14176_v12 = vpop.permute.xlu0 %4831 }
 0x374   : > { %v6652_v6 = vmul.f32 0.25, %v4440_v32  ;;  %v4283_v4 = vmul.f32 0.5, %v4219_v31  ;;  %v4653_v40 = vmul.f32 0.5, %v14151_v30  ;;  %v8834_v5 = vadd.f32 -0.5, %v14138_v8  ;;  %5575 = vperm.xlu0 %9592, %v13884_v51  }
 0x375   : > { %v6653_v58 = vmul.f32 0.25, %v4441_v61  ;;  %v4656_v15 = vmul.f32 0.5, %v14153_v48  ;;  %v4657_v2 = vmul.f32 0.5, %v14158_v11  ;;  %v8793_v13 = vadd.f32 -0.5, %v4219_v31  ;;  %v14181_v16 = vpop.permute.xlu1 %4491 }
 0x376   : > { %6684 = vst [vmem:[#allocation4 + $0xf0] sm:$0xff] %v6652_v6  ;;  %v4315_v32 = vmul.f32 %v4283_v4, %v4219_v31  ;;  %v4189_v49 = vsub.f32 %v13818_v38, %v13093_v62  ;;  %17389 = vst [vmem:[#allocation104_spill] sm:$0xff] %v14181_v16  ;;  %vm4621_vm15 = vcmp.lt.f32.partialorder %v14151_v30, 1.0  ;;  %vm4251_vm0 = vcmp.lt.f32.partialorder %v4219_v31, 1.0 }
 0x377   : > { %6685 = vst [vmem:[#allocation4 + $0xf8] sm:$0xff] %v6653_v58  ;;  %v4564_v61 = vsub.f32 %v13822_v22, %v13993_v21  ;;  %v4191_v51 = vsub.f32 %v13833_v54, %v13093_v62  ;;  %v4684_v6 = vmul.f32 %v4652_v33, %v14138_v8  ;;  %v8835_v4 = vadd.f32 -0.5, %v14151_v30  ;;  %5491 = vperm.xlu1 %9591, %v14195_v17   ;;  %v17391_v33 = vld [vmem:[#allocation45_spill] sm:$0xff]  ;;  %v14211_v55 = vpop.permute.xlu0 %4839 }
 0x378   : > { %v4379_v23 = vsel %vm4251_vm0, %v4315_v32, %v8793_v13  ;;  %v4565_v38 = vsub.f32 %v13822_v22, %v14001_v42  ;;  %v4685_v31 = vmul.f32 %v4653_v40, %v14151_v30  ;;  %v4688_v58 = vmul.f32 %v4656_v15, %v14153_v48  ;;  %5583 = vperm.xlu0 %9592, %v13897_v36  }
 0x379   : > { %v8838_v54 = vadd.f32 -0.5, %v14153_v48  ;;  %v4443_v16 = vadd.f32 %v4379_v23, %v17391_v33  ;;  %vm4624_vm2 = vcmp.lt.f32.partialorder %v14153_v48, 1.0  ;;  %v4689_v22 = vmul.f32 %v4657_v2, %v14158_v11  ;;  %v14206_v26 = vpop.permute.xlu1 %4499 }
 0x37a   : > { %v8839_v32 = vadd.f32 -0.5, %v14158_v11  ;;  %v4221_v13 = vand.u32 2147483647, %v4189_v49  ;;  %vm4625_vm4 = vcmp.lt.f32.partialorder %v14158_v11, 1.0  ;;  %v14209_v17 = vand.u32 2147483647, %v4564_v61 }
 0x37b   : > { %v6751_v40 = vmul.f32 0.25, %v4443_v16  ;;  %v4223_v15 = vand.u32 2147483647, %v4191_v51  ;;  %v14216_v36 = vsel %vm4616_vm11, %v4680_v25, %v14134_v44  ;;  %v14218_v23 = vand.u32 2147483647, %v4565_v38  ;;  %v14225_v16 = vld [vmem:[%s16811_s5 + $0x18] sm:$0xff]  ;;  %v14270_v33 = vpop.permute.xlu0 %4847 }
 0x37c   : > { %17392 = vst [vmem:[#allocation53_spill] sm:$0xff] %v14216_v36  ;;  %v4285_v2 = vmul.f32 0.5, %v4221_v13  ;;  %v4568_v49 = vsub.f32 %v13857_v39, %v13993_v21  ;;  %5499 = vperm.xlu1 %9591, %v14225_v16   ;;  %v14230_v61 = vsel %vm4617_vm13, %v4681_v52, %v8831_v19  ;;  %v14234_v37 = vsel %vm4620_vm14, %v4684_v6, %v8834_v5 }
 0x37d   : > { %17393 = vst [vmem:[#allocation84_spill] sm:$0xff] %v14230_v61  ;;  %17394 = vst [vmem:[#allocation88_spill] sm:$0xff] %v14234_v37  ;;  %v14238_v44 = vsel %vm4621_vm15, %v4685_v31, %v8835_v4  ;;  %v14242_v25 = vsel %vm4624_vm2, %v4688_v58, %v8838_v54  ;;  %5591 = vperm.xlu0 %9592, %v13914_v10   ;;  %v14247_v59 = vsel %vm4625_vm4, %v4689_v22, %v8839_v32  ;;  %v14251_v5 = vpop.permute.xlu1 %4507  ;;  %v17398_v4 = vld [vmem:[#allocation48_spill] sm:$0xff] }
 0x37e   : > { %17395 = vst [vmem:[#allocation71_spill] sm:$0xff] %v14238_v44  ;;  %17396 = vst [vmem:[#allocation75_spill] sm:$0xff] %v14242_v25  ;;  %v4317_v52 = vmul.f32 %v4285_v2, %v4221_v13  ;;  %v8795_v19 = vadd.f32 -0.5, %v4221_v13  ;;  %v4569_v8 = vsub.f32 %v13857_v39, %v14001_v42  ;;  %vm4628_vm5 = vcmp.lt.f32.partialorder %v14209_v17, 1.0  ;;  %v14263_v39 = vld [vmem:[%s16811_s5 + $0x28] sm:$0xff] }
 0x37f   : > { %6783 = vst [vmem:[#allocation6] sm:$0xff] %v6751_v40  ;;  %17397 = vst [vmem:[#allocation20_spill] sm:$0xff] %v14247_v59  ;;  %v4660_v30 = vmul.f32 0.5, %v14209_v17  ;;  %vm4253_vm7 = vcmp.lt.f32.partialorder %v4221_v13, 1.0  ;;  %v4287_v48 = vmul.f32 0.5, %v4223_v15  ;;  %v4661_v51 = vmul.f32 0.5, %v14218_v23 }
 0x380   : > { %v4381_v10 = vsel %vm4253_vm7, %v4317_v52, %v8795_v19  ;;  %v14256_v6 = vand.u32 2147483647, %v4568_v49  ;;  %v4572_v11 = vsub.f32 %v13879_v41, %v13993_v21  ;;  %5507 = vperm.xlu1 %9591, %v14263_v39   ;;  %v8797_v58 = vadd.f32 -0.5, %v4223_v15  ;;  %v17399_v19 = vld [vmem:[#allocation17_spill] sm:$0xff] }
 0x381   : > { %v4445_v38 = vadd.f32 %v4381_v10, %v17398_v4  ;;  %v4319_v31 = vmul.f32 %v4287_v48, %v4223_v15  ;;  %v4193_v54 = vsub.f32 %v13859_v56, %v13093_v62  ;;  %5599 = vperm.xlu0 %9592, %v13939_v29   ;;  %vm4629_vm6 = vcmp.lt.f32.partialorder %v14218_v23, 1.0  ;;  %v14277_v13 = vpop.permute.xlu1 %4515 }
 0x382   : > { %v14273_v22 = vand.u32 2147483647, %v4569_v8  ;;  %vm4255_vm8 = vcmp.lt.f32.partialorder %v4223_v15, 1.0  ;;  %v4573_v32 = vsub.f32 %v13879_v41, %v14001_v42  ;;  %v8842_v40 = vadd.f32 -0.5, %v14209_v17  ;;  %v14288_v15 = vld [vmem:[%s16811_s5 + $0x38] sm:$0xff] }
 0x383   : > { %v6753_v2 = vmul.f32 0.25, %v4445_v38  ;;  %v4383_v49 = vsel %vm4255_vm8, %v4319_v31, %v8797_v58  ;;  %v4225_v52 = vand.u32 2147483647, %v4193_v54  ;;  %v8843_v56 = vadd.f32 -0.5, %v14218_v23  ;;  %17400 = vst [vmem:[#allocation18_spill] sm:$0xff] %v14288_v15 }
 0x384   : > { %v4664_v29 = vmul.f32 0.5, %v14256_v6  ;;  %v4447_v48 = vadd.f32 %v4383_v49, %v17399_v19  ;;  %v14283_v10 = vand.u32 2147483647, %v4572_v11  ;;  %5515 = vperm.xlu1 %9591, %v14288_v15   ;;  %v4692_v41 = vmul.f32 %v4660_v30, %v14209_v17  ;;  %v9845_v19 = vld [vmem:[%s10551_s30] sm:$0x7f] }
 0x385   : > { %v4693_v8 = vmul.f32 %v4661_v51, %v14218_v23  ;;  %6785 = vst [vmem:[#allocation6 + $0x18] sm:$0xff] %v6753_v2  ;;  %vm4632_vm9 = vcmp.lt.f32.partialorder %v14256_v6, 1.0  ;;  %v4289_v4 = vmul.f32 0.5, %v4225_v52  ;;  %5607 = vperm.xlu0 %9592, %v13954_v24   ;;  %v4665_v11 = vmul.f32 0.5, %v14273_v22  ;;  %v14298_v54 = vpop.permute.xlu1 %4523  ;;  %v17402_v51 = vld [vmem:[#allocation39_spill] sm:$0xff]  ;;  %v14308_v24 = vpop.permute.xlu0 %4855 }
 0x386   : > { %v6755_v38 = vmul.f32 0.25, %v4447_v48  ;;  %v14296_v31 = vand.u32 2147483647, %v4573_v32  ;;  %v8799_v58 = vadd.f32 -0.5, %v4225_v52  ;;  %17401 = vst [vmem:[#allocation94_spill] sm:$0xff] %v14298_v54  ;;  %v4576_v30 = vsub.f32 %v13904_v27, %v13993_v21  ;;  %v14354_v23 = vld [vmem:[%s16811_s5 + $0x58] sm:$0xff] }
 0x387   : > { %v4321_v49 = vmul.f32 %v4289_v4, %v4225_v52  ;;  %v4195_v2 = vsub.f32 %v17402_v51, %v13093_v62  ;;  %v14306_v59 = vrot.slane %v9845_v19, %v13967_v20  ;;  %v4696_v48 = vmul.f32 %v4664_v29, %v14256_v6  ;;  %v14316_v4 = vld [vmem:[%s16811_s5 + $0x48] sm:$0xff]  ;;  %17409 = vst [vmem:[#allocation82_spill] sm:$0xff] %v14354_v23 }
 0x388   : > { %v8846_v32 = vadd.f32 -0.5, %v14256_v6  ;;  %6787 = vst [vmem:[#allocation6 + $0x68] sm:$0xff] %v6755_v38  ;;  %v4668_v25 = vmul.f32 0.5, %v14283_v10  ;;  %vm4257_vm10 = vcmp.lt.f32.partialorder %v4225_v52, 1.0  ;;  %17403 = vst [vmem:[#allocation76_spill] sm:$0xff] %v14316_v4  ;;  %5523 = vperm.xlu1 %9591, %v14316_v4   ;;  %v4577_v20 = vsub.f32 %v13904_v27, %v14001_v42  ;;  %v17405_v52 = vld [vmem:[#allocation67_spill] sm:$0xff] }
 0x389   : > { %v4385_v51 = vsel %vm4257_vm10, %v4321_v49, %v8799_v58  ;;  %v4227_v19 = vand.u32 2147483647, %v4195_v2  ;;  %v4197_v29 = vsub.f32 %v13892_v45, %v13093_v62  ;;  %v14325_v38 = vsel %vm4628_vm5, %v4692_v41, %v8842_v40  ;;  %v14332_v58 = vpop.permute.xlu1 %4531 }
 0x38a   : > { %17404 = vst [vmem:[#allocation32_spill] sm:$0xff] %v14325_v38  ;;  %v4449_v44 = vadd.f32 %v4385_v51, %v17405_v52  ;;  %v4903_v37 = vsub.f32 %v13934_v0, %v14306_v59  ;;  %v4199_v61 = vsub.f32 %v13906_v35, %v13093_v62  ;;  %17406 = vst [vmem:[#allocation33_spill] sm:$0xff] %v14332_v58  ;;  %v14339_v45 = vadd.f32 -0.5, %v14273_v22 }
 0x38b   : > { %v14336_v27 = vsel %vm4629_vm6, %v4693_v8, %v8843_v56  ;;  %v4669_v17 = vmul.f32 0.5, %v14296_v31  ;;  %v14342_v40 = vand.u32 2147483647, %v4576_v30  ;;  %v14345_v41 = vmul.f32 %v4665_v11, %v14273_v22 }
 0x38c   : > { %17407 = vst [vmem:[#allocation34_spill] sm:$0xff] %v14336_v27  ;;  %v14349_v0 = vsel %vm4632_vm9, %v4696_v48, %v8846_v32  ;;  %v6757_v35 = vmul.f32 0.25, %v4449_v44  ;;  %v4291_v49 = vmul.f32 0.5, %v4227_v19  ;;  %5531 = vperm.xlu1 %9591, %v14354_v23   ;;  %vm4633_vm11 = vcmp.lt.f32.partialorder %v14273_v22, 1.0  ;;  %v14366_v44 = vpop.permute.xlu0 %4863 }
 0x38d   : > { %17408 = vst [vmem:[#allocation35_spill] sm:$0xff] %v14349_v0  ;;  %v14359_v56 = vmul.f32 %v4668_v25, %v14283_v10  ;;  %v14362_v8 = vadd.f32 -0.5, %v14283_v10  ;;  %v14364_v6 = vand.u32 2147483647, %v4577_v20  ;;  %v4229_v11 = vand.u32 2147483647, %v4197_v29  ;;  %v14372_v25 = vpop.permute.xlu1 %4771 }
 0x38e   : > { %vm4636_vm12 = vcmp.lt.f32.partialorder %v14283_v10, 1.0  ;;  %vm4637_vm13 = vcmp.lt.f32.partialorder %v14296_v31, 1.0  ;;  %6789 = vst [vmem:[#allocation6 + $0x48] sm:$0xff] %v6757_v35  ;;  %v4323_v30 = vmul.f32 %v4291_v49, %v4227_v19  ;;  %v8801_v2 = vadd.f32 -0.5, %v4227_v19  ;;  %17410 = vst [vmem:[#allocation86_spill] sm:$0xff] %v14372_v25 }
 0x38f   : > { %v14370_v48 = vand.u32 2147483647, %v4903_v37  ;;  %v4231_v32 = vand.u32 2147483647, %v4199_v61  ;;  %v4701_v51 = vmul.f32 %v4669_v17, %v14296_v31  ;;  %v8851_v20 = vadd.f32 -0.5, %v14296_v31  ;;  %v14382_v37 = vld [vmem:[%s16811_s5 + $0x68] sm:$0xff] }
 0x390   : > { %v4672_v29 = vmul.f32 0.5, %v14342_v40  ;;  %vm4259_vm14 = vcmp.lt.f32.partialorder %v4227_v19, 1.0  ;;  %vm4640_vm15 = vcmp.lt.f32.partialorder %v14342_v40, 1.0  ;;  %v8854_v52 = vadd.f32 -0.5, %v14342_v40  ;;  %17411 = vst [vmem:[#allocation42_spill] sm:$0xff] %v14382_v37  ;;  %5539 = vperm.xlu1 %9591, %v14382_v37   ;;  %v17412_v19 = vld [vmem:[#allocation49_spill] sm:$0xff]  ;;  %v14395_v23 = vpop.permute.xlu0 %4871 }
 0x391   : > { %v4387_v0 = vsel %vm4259_vm14, %v4323_v30, %v8801_v2  ;;  %v4293_v35 = vmul.f32 0.5, %v4229_v11  ;;  %vm4641_vm0 = vcmp.lt.f32.partialorder %v14364_v6, 1.0  ;;  %v4673_v61 = vmul.f32 0.5, %v14364_v6  ;;  %v14390_v36 = vpop.permute.xlu1 %4779 }
 0x392   : > { %v8855_v17 = vadd.f32 -0.5, %v14364_v6  ;;  %v4451_v49 = vadd.f32 %v4387_v0, %v17412_v19  ;;  %v4999_v27 = vmul.f32 0.5, %v14370_v48  ;;  %v8803_v30 = vadd.f32 -0.5, %v4229_v11  ;;  %17413 = vst [vmem:[#allocation68_spill] sm:$0xff] %v14390_v36  ;;  %v17416_v36 = vld [vmem:[#allocation102_spill] sm:$0xff] }
 0x393   : > { %v4325_v38 = vmul.f32 %v4293_v35, %v4229_v11  ;;  %v4295_v2 = vmul.f32 0.5, %v4231_v32  ;;  %v4704_v25 = vmul.f32 %v4672_v29, %v14342_v40  ;;  %vm4261_vm2 = vcmp.lt.f32.partialorder %v4229_v11, 1.0  ;;  %v14402_v35 = vld [vmem:[%s16811_s5 + $0x78] sm:$0xff] }
 0x394   : > { %v6759_v58 = vmul.f32 0.25, %v4451_v49  ;;  %v4905_v37 = vsub.f32 %v13959_v53, %v14306_v59  ;;  %v8805_v15 = vadd.f32 -0.5, %v4231_v32  ;;  %v4907_v0 = vsub.f32 %v13987_v50, %v14306_v59  ;;  %17414 = vst [vmem:[#allocation28_spill] sm:$0xff] %v14402_v35  ;;  %5547 = vperm.xlu1 %9591, %v14402_v35   ;;  %v17415_v29 = vld [vmem:[#allocation19_spill] sm:$0xff] }
 0x395   : > { %v4389_v4 = vsel %vm4261_vm2, %v4325_v38, %v8803_v30  ;;  %v4327_v54 = vmul.f32 %v4295_v2, %v4231_v32  ;;  %v4705_v11 = vmul.f32 %v4673_v61, %v14364_v6  ;;  %v8857_v53 = vadd.f32 -0.5, %v14370_v48  ;;  %v14413_v2 = vpop.permute.xlu1 %4787 }
 0x396   : > { %6791 = vst [vmem:[#allocation6 + $0x88] sm:$0xff] %v6759_v58  ;;  %v4453_v19 = vadd.f32 %v4389_v4, %v17415_v29  ;;  %vm4263_vm4 = vcmp.lt.f32.partialorder %v4231_v32, 1.0  ;;  %v5031_v38 = vmul.f32 %v4999_v27, %v14370_v48  ;;  %v4201_v50 = vsub.f32 %v13924_v46, %v13093_v62 }
 0x397   : > { %v4391_v49 = vsel %vm4263_vm4, %v4327_v54, %v8805_v15  ;;  %v4203_v30 = vsub.f32 %v13945_v14, %v13093_v62  ;;  %vm4967_vm5 = vcmp.lt.f32.partialorder %v14370_v48, 1.0  ;;  %v14416_v58 = vand.u32 2147483647, %v4905_v37  ;;  %v14430_v14 = vld [vmem:[%s16811_s5 + $0x88] sm:$0xff]  ;;  %v14469_v48 = vld [vmem:[%s16811_s5 + $0x98] sm:$0xff] }
 0x398   : > { %v6761_v61 = vmul.f32 0.25, %v4453_v19  ;;  %v4455_v35 = vadd.f32 %v4391_v49, %v17416_v36  ;;  %v14423_v15 = vsel %vm4633_vm11, %v14345_v41, %v14339_v45  ;;  %v14425_v54 = vand.u32 2147483647, %v4907_v0  ;;  %5555 = vperm.xlu1 %9591, %v14430_v14   ;;  %v14445_v41 = vpop.permute.xlu0 %4879  ;;  %v17423_v19 = vld [vmem:[#allocation89_spill] sm:$0xff] }
 0x399   : > { %17417 = vst [vmem:[#allocation43_spill] sm:$0xff] %v14423_v15  ;;  %v4233_v46 = vand.u32 2147483647, %v4201_v50  ;;  %v4235_v4 = vand.u32 2147483647, %v4203_v30  ;;  %v14437_v36 = vsel %vm4636_vm12, %v14359_v56, %v14362_v8  ;;  %v14441_v22 = vsel %vm4637_vm13, %v4701_v51, %v8851_v20  ;;  %v14459_v8 = vpop.permute.xlu1 %4795 }
 0x39a   : > { %17418 = vst [vmem:[#allocation38_spill] sm:$0xff] %v14437_v36  ;;  %17419 = vst [vmem:[#allocation87_spill] sm:$0xff] %v14441_v22  ;;  %v6763_v27 = vmul.f32 0.25, %v4455_v35  ;;  %v4205_v45 = vsub.f32 %v13961_v9, %v13093_v62  ;;  %v14449_v32 = vsel %vm4640_vm15, %v4704_v25, %v8854_v52  ;;  %v14453_v10 = vsel %vm4641_vm0, %v4705_v11, %v8855_v17 }
 0x39b   : > { %6793 = vst [vmem:[#allocation6 + $0xb8] sm:$0xff] %v6761_v61  ;;  %17420 = vst [vmem:[#allocation92_spill] sm:$0xff] %v14449_v32  ;;  %v14457_v31 = vsel %vm4967_vm5, %v5031_v38, %v8857_v53  ;;  %v4297_v56 = vmul.f32 0.5, %v4233_v46  ;;  %vm4969_vm7 = vcmp.lt.f32.partialorder %v14416_v58, 1.0  ;;  %v5001_v9 = vmul.f32 0.5, %v14416_v58 }
 0x39c   : > { %17421 = vst [vmem:[#allocation50_spill] sm:$0xff] %v14453_v10  ;;  %17422 = vst [vmem:[#allocation30_spill] sm:$0xff] %v14457_v31  ;;  %v4909_v40 = vsub.f32 %v14035_v18, %v14306_v59  ;;  %v4299_v25 = vmul.f32 0.5, %v4235_v4  ;;  %v5003_v6 = vmul.f32 0.5, %v14425_v54  ;;  %v8807_v20 = vadd.f32 -0.5, %v4233_v46  ;;  %5563 = vperm.xlu1 %9591, %v14469_v48   ;;  %v14483_v30 = vpop.permute.xlu0 %4887  ;;  %v17431_v31 = vld [vmem:[#allocation95_spill] sm:$0xff] }
 0x39d   : > { %6795 = vst [vmem:[#allocation6 + $0xf0] sm:$0xff] %v6763_v27  ;;  %v4329_v51 = vmul.f32 %v4297_v56, %v4233_v46  ;;  %v4237_v52 = vand.u32 2147483647, %v4205_v45  ;;  %vm4265_vm6 = vcmp.lt.f32.partialorder %v4233_v46, 1.0  ;;  %v8809_v17 = vadd.f32 -0.5, %v4235_v4  ;;  %v14477_v53 = vpop.permute.xlu1 %4803  ;;  %v17424_v46 = vld [vmem:[#allocation91_spill] sm:$0xff] }
 0x39e   : > { %v4331_v37 = vmul.f32 %v4299_v25, %v4235_v4  ;;  %v4911_v0 = vsub.f32 %v14065_v43, %v14306_v59  ;;  %v8859_v18 = vadd.f32 -0.5, %v14416_v58  ;;  %vm4267_vm8 = vcmp.lt.f32.partialorder %v4235_v4, 1.0 }
 0x39f   : > { %v4393_v35 = vsel %vm4265_vm6, %v4329_v51, %v8807_v20  ;;  %v4207_v11 = vsub.f32 %v13983_v63, %v13093_v62  ;;  %v5033_v29 = vmul.f32 %v5001_v9, %v14416_v58  ;;  %v14481_v49 = vand.u32 2147483647, %v4909_v40  ;;  %v14491_v63 = vld [vmem:[%s16811_s5 + $0xa8] sm:$0xff] }
 0x3a0   : > { %v4457_v38 = vadd.f32 %v4393_v35, %v17423_v19  ;;  %v4395_v50 = vsel %vm4267_vm8, %v4331_v37, %v8809_v17  ;;  %v5035_v43 = vmul.f32 %v5003_v6, %v14425_v54  ;;  %v8861_v61 = vadd.f32 -0.5, %v14425_v54  ;;  %5571 = vperm.xlu1 %9591, %v14491_v63   ;;  %v14515_v19 = vld [vmem:[%s16811_s5 + $0xb8] sm:$0xff] }
 0x3a1   : > { %v4459_v4 = vadd.f32 %v4395_v50, %v17424_v46  ;;  %v4301_v27 = vmul.f32 0.5, %v4237_v52  ;;  %vm4971_vm9 = vcmp.lt.f32.partialorder %v14425_v54, 1.0  ;;  %v14495_v56 = vand.u32 2147483647, %v4911_v0  ;;  %v14499_v20 = vpop.permute.xlu1 %4811 }
 0x3a2   : > { %v6765_v45 = vmul.f32 0.25, %v4457_v38  ;;  %v4913_v9 = vsub.f32 %v14098_v28, %v14306_v59  ;;  %v8811_v6 = vadd.f32 -0.5, %v4237_v52  ;;  %v4239_v51 = vand.u32 2147483647, %v4207_v11 }
 0x3a3   : > { %v6767_v40 = vmul.f32 0.25, %v4459_v4  ;;  %v4333_v25 = vmul.f32 %v4301_v27, %v4237_v52  ;;  %v5005_v37 = vmul.f32 0.5, %v14481_v49  ;;  %vm4269_vm10 = vcmp.lt.f32.partialorder %v4237_v52, 1.0  ;;  %v17427_v52 = vld [vmem:[#allocation52_spill] sm:$0xff] }
 0x3a4   : > { %6797 = vst [vmem:[#allocation6 + $0x78] sm:$0xff] %v6765_v45  ;;  %v4915_v17 = vsub.f32 %v14142_v34, %v14306_v59  ;;  %v4209_v54 = vsub.f32 %v14004_v57, %v13093_v62  ;;  %v14508_v0 = vsel %vm4969_vm7, %v5033_v29, %v8859_v18  ;;  %v14510_v28 = vsel %vm4971_vm9, %v5035_v43, %v8861_v61  ;;  %v14522_v18 = vpop.permute.xlu0 %4895 }
 0x3a5   : > { %17425 = vst [vmem:[#allocation61_spill] sm:$0xff] %v14508_v0  ;;  %17426 = vst [vmem:[#allocation21_spill] sm:$0xff] %v14510_v28  ;;  %v4397_v35 = vsel %vm4269_vm10, %v4333_v25, %v8811_v6  ;;  %v4303_v11 = vmul.f32 0.5, %v4239_v51  ;;  %5579 = vperm.xlu1 %9591, %v14515_v19   ;;  %v5007_v34 = vmul.f32 0.5, %v14495_v56  ;;  %v14520_v38 = vand.u32 2147483647, %v4913_v9  ;;  %v14533_v45 = vpop.permute.xlu1 %4819 }
 0x3a6   : > { %6799 = vst [vmem:[#allocation6 + $0x58] sm:$0xff] %v6767_v40  ;;  %v4461_v57 = vadd.f32 %v4397_v35, %v17427_v52  ;;  %v4241_v58 = vand.u32 2147483647, %v4209_v54  ;;  %v14525_v29 = vadd.f32 -0.5, %v14481_v49  ;;  %v8813_v43 = vadd.f32 -0.5, %v4239_v51 }
 0x3a7   : > { %v4335_v50 = vmul.f32 %v4303_v11, %v4239_v51  ;;  %v4211_v61 = vsub.f32 %v14037_v60, %v13093_v62  ;;  %vm4973_vm11 = vcmp.lt.f32.partialorder %v14481_v49, 1.0  ;;  %v5037_v46 = vmul.f32 %v5005_v37, %v14481_v49  ;;  %v14541_v60 = vld [vmem:[%s16811_s5 + $0xc8] sm:$0xff] }
 0x3a8   : > { %v6769_v4 = vmul.f32 0.25, %v4461_v57  ;;  %vm4271_vm12 = vcmp.lt.f32.partialorder %v4239_v51, 1.0  ;;  %v14531_v27 = vand.u32 2147483647, %v4915_v17  ;;  %vm4975_vm13 = vcmp.lt.f32.partialorder %v14495_v56, 1.0  ;;  %v17428_v17 = vld [vmem:[#allocation47_spill] sm:$0xff] }
 0x3a9   : > { %v4399_v9 = vsel %vm4271_vm12, %v4335_v50, %v8813_v43  ;;  %v4305_v40 = vmul.f32 0.5, %v4241_v58  ;;  %v4917_v25 = vsub.f32 %v14176_v12, %v14306_v59  ;;  %5587 = vperm.xlu1 %9591, %v14541_v60   ;;  %v5039_v6 = vmul.f32 %v5007_v34, %v14495_v56  ;;  %v14550_v50 = vpop.permute.xlu0 %5195 }
 0x3aa   : > { %v8865_v51 = vadd.f32 -0.5, %v14495_v56  ;;  %6801 = vst [vmem:[#allocation6 + $0xc8] sm:$0xff] %v6769_v4  ;;  %v5009_v37 = vmul.f32 0.5, %v14520_v38  ;;  %v4463_v54 = vadd.f32 %v4399_v9, %v17428_v17  ;;  %vm4977_vm14 = vcmp.lt.f32.partialorder %v14520_v38, 1.0  ;;  %v14559_v9 = vld [vmem:[%s16811_s5 + $0xd8] sm:$0xff]  ;;  %v17430_v17 = vld [vmem:[#allocation46_spill] sm:$0xff] }
 0x3ab   : > { %v4337_v35 = vmul.f32 %v4305_v40, %v4241_v58  ;;  %v8815_v12 = vadd.f32 -0.5, %v4241_v58  ;;  %v4243_v11 = vand.u32 2147483647, %v4211_v61  ;;  %v5011_v57 = vmul.f32 0.5, %v14531_v27  ;;  %v17429_v61 = vld [vmem:[#allocation90_spill] sm:$0xff] }
 0x3ac   : > { %v6771_v52 = vmul.f32 0.25, %v4463_v54  ;;  %vm4273_vm15 = vcmp.lt.f32.partialorder %v4241_v58, 1.0  ;;  %v8867_v34 = vadd.f32 -0.5, %v14520_v38  ;;  %v14553_v28 = vand.u32 2147483647, %v4917_v25  ;;  %v14568_v54 = vpop.permute.xlu1 %4827 }
 0x3ad   : > { %v4401_v43 = vsel %vm4273_vm15, %v4337_v35, %v8815_v12  ;;  %v4307_v4 = vmul.f32 0.5, %v4243_v11  ;;  %v16914_v0 = vmov 6   ;;  %5595 = vperm.xlu1 %9591, %v14559_v9   ;;  %v5041_v58 = vmul.f32 %v5009_v37, %v14520_v38 }
 0x3ae   : > { %9593 = vset.pattern.permute.xlu0 %v16914_v0  ;;  %6803 = vst [vmem:[#allocation6 + $0x90] sm:$0xff] %v6771_v52  ;;  %vm4979_vm0 = vcmp.lt.f32.partialorder %v14531_v27, 1.0  ;;  %v4465_v40 = vadd.f32 %v4401_v43, %v17429_v61  ;;  %v4919_v25 = vsub.f32 %v14211_v55, %v14306_v59  ;;  %v8869_v35 = vadd.f32 -0.5, %v14531_v27  ;;  %v17432_v43 = vld [vmem:[#allocation15_spill] sm:$0xff] }
 0x3af   : > { %5907 = vperm.xlu0 %9593, %v17430_v17   ;;  %v4339_v12 = vmul.f32 %v4307_v4, %v4243_v11  ;;  %v8817_v0 = vadd.f32 -0.5, %v4243_v11  ;;  %v4213_v10 = vsub.f32 %v17431_v31, %v13093_v62  ;;  %v5043_v37 = vmul.f32 %v5011_v57, %v14531_v27  ;;  %v14582_v4 = vld [vmem:[%s16811_s5 + $0xe8] sm:$0xff] }
 0x3b0   : > { %v6773_v52 = vmul.f32 0.25, %v4465_v40  ;;  %vm4275_vm2 = vcmp.lt.f32.partialorder %v4243_v11, 1.0  ;;  %v4215_v61 = vsub.f32 %v17432_v43, %v13093_v62  ;;  %v5013_v55 = vmul.f32 0.5, %v14553_v28  ;;  %v17433_v31 = vld [vmem:[#allocation54_spill] sm:$0xff]  ;;  %v17434_v40 = vld [vmem:[#allocation55_spill] sm:$0xff] }
 0x3b1   : > { %v4403_v32 = vsel %vm4275_vm2, %v4339_v12, %v8817_v0  ;;  %v4245_v17 = vand.u32 2147483647, %v4213_v10  ;;  %v4921_v22 = vsub.f32 %v14270_v33, %v14306_v59  ;;  %5603 = vperm.xlu1 %9591, %v14582_v4   ;;  %v4923_v0 = vsub.f32 %v14308_v24, %v14306_v59  ;;  %v14591_v33 = vpop.permute.xlu0 %5207 }
 0x3b2   : > { %6805 = vst [vmem:[#allocation6 + $0xc0] sm:$0xff] %v6773_v52  ;;  %v4467_v11 = vadd.f32 %v4403_v32, %v17433_v31  ;;  %v4247_v57 = vand.u32 2147483647, %v4215_v61  ;;  %v4217_v10 = vsub.f32 %v14100_v7, %v13093_v62  ;;  %v14596_v12 = vsel %vm4973_vm11, %v5037_v46, %v14525_v29  ;;  %v14615_v29 = vpop.permute.xlu1 %4835  ;;  %v17440_v31 = vld [vmem:[#allocation96_spill] sm:$0xff] }
 0x3b3   : > { %5919 = vperm.xlu0 %9593, %v17434_v40   ;;  %17435 = vst [vmem:[#allocation78_spill] sm:$0xff] %v14596_v12  ;;  %v14600_v52 = vsel %vm4975_vm13, %v5039_v6, %v8865_v51  ;;  %v14604_v32 = vsel %vm4977_vm14, %v5041_v58, %v8867_v34  ;;  %v4309_v43 = vmul.f32 0.5, %v4245_v17  ;;  %v14608_v24 = vsel %vm4979_vm0, %v5043_v37, %v8869_v35  ;;  %v14622_v51 = vld [vmem:[%s16811_s5 + $0xf8] sm:$0xff] }
 0x3b4   : > { %17436 = vst [vmem:[#allocation80_spill] sm:$0xff] %v14600_v52  ;;  %17437 = vst [vmem:[#allocation79_spill] sm:$0xff] %v14604_v32  ;;  %v14611_v62 = vadd.f32 -0.5, %v14553_v28  ;;  %v6775_v7 = vmul.f32 0.25, %v4467_v11  ;;  %v14613_v49 = vand.u32 2147483647, %v4919_v25  ;;  %v5045_v27 = vmul.f32 %v5013_v55, %v14553_v28 }
 0x3b5   : > { %17438 = vst [vmem:[#allocation85_spill] sm:$0xff] %v14608_v24  ;;  %v4341_v56 = vmul.f32 %v4309_v43, %v4245_v17  ;;  %v8819_v46 = vadd.f32 -0.5, %v4245_v17  ;;  %v14617_v6 = vand.u32 2147483647, %v4921_v22  ;;  %v4311_v38 = vmul.f32 0.5, %v4247_v57  ;;  %5611 = vperm.xlu1 %9591, %v14622_v51   ;;  %v17439_v25 = vld [vmem:[#allocation93_spill] sm:$0xff] }
 0x3b6   : > { %vm4981_vm4 = vcmp.lt.f32.partialorder %v14553_v28, 1.0  ;;  %6807 = vst [vmem:[#allocation6 + $0xd0] sm:$0xff] %v6775_v7  ;;  %vm4277_vm5 = vcmp.lt.f32.partialorder %v4245_v17, 1.0  ;;  %v14627_v34 = vand.u32 2147483647, %v4923_v0  ;;  %v8821_v37 = vadd.f32 -0.5, %v4247_v57  ;;  %v14636_v17 = vpop.permute.xlu0 %5215 }
 0x3b7   : > { %v4249_v58 = vand.u32 2147483647, %v4217_v10  ;;  %5927 = vperm.xlu0 %9593, %v17439_v25   ;;  %v4405_v22 = vsel %vm4277_vm5, %v4341_v56, %v8819_v46  ;;  %v4343_v35 = vmul.f32 %v4311_v38, %v4247_v57  ;;  %v4925_v61 = vsub.f32 %v14366_v44, %v14306_v59  ;;  %v17442_v38 = vld [vmem:[#allocation22_spill] sm:$0xff]  ;;  %v14647_v25 = vpop.permute.xlu1 %4843  ;;  %v17449_v28 = vld [vmem:[#allocation99_spill] sm:$0xff] }
 0x3b8   : > { %vm4983_vm7 = vcmp.lt.f32.partialorder %v14613_v49, 1.0  ;;  %v4469_v11 = vadd.f32 %v4405_v22, %v17440_v31  ;;  %vm4279_vm6 = vcmp.lt.f32.partialorder %v4247_v57, 1.0  ;;  %v4548_v55 = vsub.f32 %v14136_v3, %v13993_v21  ;;  %17443 = vst [vmem:[#allocation81_spill] sm:$0xff] %v14647_v25  ;;  %v9858_v22 = vld [vmem:[%s10243_s18 + $0x8] sm:$0xff] }
 0x3b9   : > { %v5015_v40 = vmul.f32 0.5, %v14613_v49  ;;  %v8873_v0 = vadd.f32 -0.5, %v14613_v49  ;;  %v4407_v10 = vsel %vm4279_vm6, %v4343_v35, %v8821_v37  ;;  %v4313_v43 = vmul.f32 0.5, %v4249_v58 }
 0x3ba   : > { %v17441_v7 = vmov 6   ;;  %v6777_v44 = vmul.f32 0.25, %v4469_v11  ;;  %v4471_v56 = vadd.f32 %v4407_v10, %v14106_v47  ;;  %v14642_v46 = vand.u32 2147483647, %v4925_v61 }
 0x3bb   : > { %9594 = vset.pattern.permute.xlu1 %v17441_v7  ;;  %5935 = vperm.xlu0 %9593, %v17442_v38   ;;  %v4549_v57 = vsub.f32 %v14136_v3, %v14001_v42  ;;  %v5017_v31 = vmul.f32 0.5, %v14617_v6  ;;  %v5019_v35 = vmul.f32 0.5, %v14627_v34  ;;  %v4345_v37 = vmul.f32 %v4313_v43, %v4249_v58  ;;  %v17444_v43 = vld [vmem:[#allocation58_spill] sm:$0xff]  ;;  %v14672_v32 = vpop.permute.xlu1 %4851 }
 0x3bc   : > { %5911 = vperm.xlu1 %9594, %v9858_v22   ;;  %v8823_v7 = vadd.f32 -0.5, %v4249_v58  ;;  %6809 = vst [vmem:[#allocation6 + $0x28] sm:$0xff] %v6777_v44  ;;  %v6779_v47 = vmul.f32 0.25, %v4471_v56  ;;  %vm4281_vm8 = vcmp.lt.f32.partialorder %v4249_v58, 1.0  ;;  %v4580_v61 = vand.u32 2147483647, %v4548_v55  ;;  %v14665_v55 = vpop.permute.xlu0 %5223 }
 0x3bd   : > { %v4927_v11 = vsub.f32 %v14395_v23, %v14306_v59  ;;  %v5047_v3 = vmul.f32 %v5015_v40, %v14613_v49  ;;  %v14655_v38 = vand.u32 2147483647, %v4549_v57  ;;  %v4550_v22 = vsub.f32 %v14160_v1, %v13993_v21  ;;  %v17445_v58 = vld [vmem:[#allocation24_spill] sm:$0xff]  ;;  %v9859_v40 = vld [vmem:[%s10243_s18 + $0x10] sm:$0xff]  ;;  %17446 = vst [vmem:[#allocation27_spill] sm:$0xff] %v14672_v32 }
 0x3be   : > { %v4409_v10 = vsel %vm4281_vm8, %v4345_v37, %v8823_v7  ;;  %vm4985_vm9 = vcmp.lt.f32.partialorder %v14617_v6, 1.0  ;;  %6811 = vst [vmem:[#allocation6 + $0xf8] sm:$0xff] %v6779_v47  ;;  %v5021_v56 = vmul.f32 0.5, %v14642_v46  ;;  %v4551_v23 = vsub.f32 %v14160_v1, %v14001_v42  ;;  %v17451_v49 = vld [vmem:[#allocation104_spill] sm:$0xff] }
 0x3bf   : > { %v4473_v44 = vadd.f32 %v4409_v10, %v17444_v43  ;;  %5943 = vperm.xlu0 %9593, %v17445_v58   ;;  %v5049_v57 = vmul.f32 %v5017_v31, %v14617_v6  ;;  %v8875_v37 = vadd.f32 -0.5, %v14617_v6  ;;  %v8877_v7 = vadd.f32 -0.5, %v14627_v34 }
 0x3c0   : > { %5915 = vperm.xlu1 %9594, %v9859_v40   ;;  %v4644_v47 = vmul.f32 0.5, %v4580_v61  ;;  %v5051_v10 = vmul.f32 %v5019_v35, %v14627_v34  ;;  %v4959_v24 = vand.u32 2147483647, %v4927_v11  ;;  %v4582_v58 = vand.u32 2147483647, %v4550_v22 }
 0x3c1   : > { %v6781_v43 = vmul.f32 0.25, %v4473_v44  ;;  %v14677_v1 = vsel %vm4981_vm4, %v5045_v27, %v14611_v62  ;;  %vm4987_vm10 = vcmp.lt.f32.partialorder %v14627_v34, 1.0  ;;  %v4645_v31 = vmul.f32 0.5, %v14655_v38  ;;  %v9860_v62 = vld [vmem:[%s10243_s18 + $0x20] sm:$0xff] }
 0x3c2   : > { %17447 = vst [vmem:[#allocation51_spill] sm:$0xff] %v14677_v1  ;;  %v4929_v40 = vsub.f32 %v14445_v41, %v14306_v59  ;;  %v14685_v35 = vsel %vm4983_vm7, %v5047_v3, %v8873_v0  ;;  %v5053_v11 = vmul.f32 %v5021_v56, %v14642_v46  ;;  %v8879_v22 = vadd.f32 -0.5, %v14642_v46 }
 0x3c3   : > { %17448 = vst [vmem:[#allocation36_spill] sm:$0xff] %v14685_v35  ;;  %6813 = vst [vmem:[#allocation6 + $0x98] sm:$0xff] %v6781_v43  ;;  %v4583_v44 = vand.u32 2147483647, %v4551_v23  ;;  %5951 = vperm.xlu0 %9593, %v17449_v28   ;;  %v14693_v27 = vsel %vm4985_vm9, %v5049_v57, %v8875_v37  ;;  %vm4989_vm11 = vcmp.lt.f32.partialorder %v14642_v46, 1.0  ;;  %v4676_v41 = vmul.f32 %v4644_v47, %v4580_v61  ;;  %v14700_v23 = vpop.permute.xlu0 %5231  ;;  %v17454_v47 = vld [vmem:[#allocation100_spill] sm:$0xff] }
 0x3c4   : > { %5923 = vperm.xlu1 %9594, %v9860_v62   ;;  %17450 = vst [vmem:[#allocation23_spill] sm:$0xff] %v14693_v27  ;;  %v4554_v34 = vsub.f32 %v17451_v49, %v13993_v21  ;;  %v14698_v0 = vsel %vm4987_vm10, %v5051_v10, %v8877_v7  ;;  %vm4612_vm12 = vcmp.lt.f32.partialorder %v4580_v61, 1.0  ;;  %v5023_v3 = vmul.f32 0.5, %v4959_v24  ;;  %v14711_v10 = vpop.permute.xlu1 %4859  ;;  %v17456_v27 = vld [vmem:[#allocation65_spill] sm:$0xff] }
 0x3c5   : > { %17452 = vst [vmem:[#allocation31_spill] sm:$0xff] %v14698_v0  ;;  %v4646_v56 = vmul.f32 0.5, %v4582_v58  ;;  %v4677_v43 = vmul.f32 %v4645_v31, %v14655_v38  ;;  %v8826_v28 = vadd.f32 -0.5, %v4580_v61  ;;  %v4961_v6 = vand.u32 2147483647, %v4929_v40  ;;  %17455 = vst [vmem:[#allocation64_spill] sm:$0xff] %v14711_v10 }
 0x3c6   : > { %v4555_v57 = vsub.f32 %v17451_v49, %v14001_v42  ;;  %v14705_v46 = vsel %vm4989_vm11, %v5053_v11, %v8879_v22  ;;  %vm4613_vm13 = vcmp.lt.f32.partialorder %v14655_v38, 1.0  ;;  %v4647_v37 = vmul.f32 0.5, %v4583_v44  ;;  %v9861_v0 = vld [vmem:[%s10243_s18 + $0x30] sm:$0xff]  ;;  %v9862_v35 = vld [vmem:[%s10243_s18 + $0x40] sm:$0xff] }
 0x3c7   : > { %17453 = vst [vmem:[#allocation37_spill] sm:$0xff] %v14705_v46  ;;  %v4931_v7 = vsub.f32 %v14483_v30, %v14306_v59  ;;  %5959 = vperm.xlu0 %9593, %v17454_v47   ;;  %v8827_v62 = vadd.f32 -0.5, %v14655_v38  ;;  %v14714_v31 = vsel %vm4612_vm12, %v4676_v41, %v8826_v28  ;;  %v8881_v61 = vadd.f32 -0.5, %v4959_v24 }
 0x3c8   : > { %v4586_v40 = vand.u32 2147483647, %v4554_v34  ;;  %5931 = vperm.xlu1 %9594, %v9861_v0   ;;  %v5055_v11 = vmul.f32 %v5023_v3, %v4959_v24  ;;  %v4678_v22 = vmul.f32 %v4646_v56, %v4582_v58  ;;  %v4587_v49 = vand.u32 2147483647, %v4555_v57  ;;  %v14724_v0 = vpop.permute.xlu0 %5239 }
 0x3c9   : > { %v4558_v46 = vsub.f32 %v14206_v26, %v13993_v21  ;;  %v14719_v30 = vsel %vm4613_vm13, %v4677_v43, %v8827_v62  ;;  %vm4991_vm14 = vcmp.lt.f32.partialorder %v4959_v24, 1.0  ;;  %v5025_v47 = vmul.f32 0.5, %v4961_v6 }
 0x3ca   : > { %v4559_v38 = vsub.f32 %v14206_v26, %v14001_v42  ;;  %vm4614_vm15 = vcmp.lt.f32.partialorder %v4582_v58, 1.0  ;;  %v4679_v41 = vmul.f32 %v4647_v37, %v4583_v44  ;;  %v8828_v28 = vadd.f32 -0.5, %v4582_v58  ;;  %v14731_v37 = vpop.permute.xlu1 %4867 }
 0x3cb   : > { %v4963_v34 = vand.u32 2147483647, %v4931_v7  ;;  %5967 = vperm.xlu0 %9593, %v17456_v27   ;;  %vm4615_vm0 = vcmp.lt.f32.partialorder %v4583_v44, 1.0  ;;  %v8829_v3 = vadd.f32 -0.5, %v4583_v44  ;;  %v4650_v56 = vmul.f32 0.5, %v4586_v40  ;;  %17459 = vst [vmem:[#allocation41_spill] sm:$0xff] %v14731_v37 }
 0x3cc   : > { %v4651_v57 = vmul.f32 0.5, %v4587_v49  ;;  %5939 = vperm.xlu1 %9594, %v9862_v35   ;;  %v14727_v43 = vsel %vm4991_vm14, %v5055_v11, %v8881_v61  ;;  %v14729_v24 = vsel %vm4614_vm15, %v4678_v22, %v8828_v28  ;;  %vm4993_vm2 = vcmp.lt.f32.partialorder %v4961_v6, 1.0  ;;  %v17461_v11 = vld [vmem:[#allocation70_spill] sm:$0xff] }
 0x3cd   : > { %17457 = vst [vmem:[#allocation77_spill] sm:$0xff] %v14727_v43  ;;  %17458 = vst [vmem:[#allocation40_spill] sm:$0xff] %v14729_v24  ;;  %v4590_v26 = vand.u32 2147483647, %v4558_v46  ;;  %v5057_v58 = vmul.f32 %v5025_v47, %v4961_v6  ;;  %v8883_v7 = vadd.f32 -0.5, %v4961_v6  ;;  %v4933_v44 = vsub.f32 %v14522_v18, %v14306_v59  ;;  %v9863_v43 = vld [vmem:[%s10243_s18 + $0x50] sm:$0xff] }
 0x3ce   : > { %v14733_v27 = vand.u32 2147483647, %v4559_v38  ;;  %v14737_v62 = vsel %vm4615_vm0, %v4679_v41, %v8829_v3  ;;  %vm4618_vm4 = vcmp.lt.f32.partialorder %v4586_v40, 1.0  ;;  %v5027_v35 = vmul.f32 0.5, %v4963_v34  ;;  %v14747_v41 = vpop.permute.xlu0 %5247  ;;  %v17469_v37 = vld [vmem:[#allocation94_spill] sm:$0xff] }
 0x3cf   : > { %17460 = vst [vmem:[#allocation44_spill] sm:$0xff] %v14737_v62  ;;  %v4654_v61 = vmul.f32 0.5, %v4590_v26  ;;  %6207 = vperm.xlu0 %9593, %v17461_v11   ;;  %vm4619_vm5 = vcmp.lt.f32.partialorder %v4587_v49, 1.0  ;;  %v4682_v22 = vmul.f32 %v4650_v56, %v4586_v40  ;;  %v4683_v28 = vmul.f32 %v4651_v57, %v4587_v49  ;;  %v17463_v57 = vld [vmem:[#allocation12_spill] sm:$0xff] }
 0x3d0   : > { %v8832_v46 = vadd.f32 -0.5, %v4586_v40  ;;  %5947 = vperm.xlu1 %9594, %v9863_v43   ;;  %v8833_v47 = vadd.f32 -0.5, %v4587_v49  ;;  %v14741_v1 = vand.u32 2147483647, %v4933_v44  ;;  %v4562_v38 = vsub.f32 %v14251_v5, %v13993_v21  ;;  %v9865_v49 = vld [vmem:[%s16812_s6] sm:$0x7f] }
 0x3d1   : > { %v4563_v18 = vsub.f32 %v14251_v5, %v14001_v42  ;;  %v14750_v3 = vsel %vm4993_vm2, %v5057_v58, %v8883_v7  ;;  %v4655_v56 = vmul.f32 0.5, %v14733_v27  ;;  %v14754_v11 = vsub.s32 5, %v17463_v57  ;;  %v14759_v5 = vpop.permute.xlu1 %4875 }
 0x3d2   : > { %17462 = vst [vmem:[#allocation45_spill] sm:$0xff] %v14750_v3  ;;  %v4566_v43 = vsub.f32 %v14277_v13, %v13993_v21  ;;  %vm4995_vm7 = vcmp.lt.f32.partialorder %v4963_v34, 1.0  ;;  %v5059_v44 = vmul.f32 %v5027_v35, %v4963_v34  ;;  %v8885_v52 = vadd.f32 -0.5, %v4963_v34  ;;  %17464 = vst [vmem:[#allocation48_spill] sm:$0xff] %v14759_v5  ;;  %v9864_v3 = vld [vmem:[%s10243_s18 + $0x60] sm:$0xff] }
 0x3d3   : > { %v4686_v12 = vmul.f32 %v4654_v61, %v4590_v26  ;;  %6215 = vperm.xlu0 %9593, %v14225_v16   ;;  %v14762_v6 = vsel %vm4618_vm4, %v4682_v22, %v8832_v46  ;;  %v14765_v58 = vsel %vm4619_vm5, %v4683_v28, %v8833_v47  ;;  %vm4622_vm6 = vcmp.lt.f32.partialorder %v4590_v26, 1.0  ;;  %v9866_v22 = vld [vmem:[%s16812_s6 + $0x8] sm:$0x7f] }
 0x3d4   : > { %v8836_v7 = vadd.f32 -0.5, %v4590_v26  ;;  %5955 = vperm.xlu1 %9594, %v9864_v3   ;;  %v5029_v36 = vmul.f32 0.5, %v14741_v1  ;;  %v14769_v15 = vand.u32 2147483647, %v4562_v38  ;;  %v14771_v35 = vand.u32 2147483647, %v4563_v18  ;;  %v14799_v18 = vpop.permute.xlu0 %5487 }
 0x3d5   : > { %v4567_v16 = vsub.f32 %v14277_v13, %v14001_v42  ;;  %v4687_v40 = vmul.f32 %v4655_v56, %v14733_v27  ;;  %v14780_v61 = vrot.slane %v9865_v49, %v14754_v11  ;;  %v14786_v28 = vrot.slane %v9866_v22, %v14754_v11  ;;  %v9867_v56 = vld [vmem:[%s10243_s18 + $0x70] sm:$0xff]  ;;  %s15809_s18 = smov (!%p9021_p1), 0  }
 0x3d6   : > { %v14788_v46 = vand.u32 2147483647, %v4566_v43  ;;  %v14791_v13 = vsel %vm4995_vm7, %v5059_v44, %v8885_v52  ;;  %vm4623_vm8 = vcmp.lt.f32.partialorder %v14733_v27, 1.0  ;;  %v8837_v47 = vadd.f32 -0.5, %v14733_v27  ;;  %v14811_v44 = vpop.permute.xlu1 %4883 }
 0x3d7   : > { %17465 = vst [vmem:[#allocation17_spill] sm:$0xff] %v14791_v13  ;;  %v14796_v38 = vsel %vm4622_vm6, %v4686_v12, %v8836_v7  ;;  %6223 = vperm.xlu0 %9593, %v14263_v39   ;;  %vm4997_vm9 = vcmp.lt.f32.partialorder %v14741_v1, 1.0  ;;  %v8887_v3 = vadd.f32 -0.5, %v14741_v1  ;;  %v5264_v34 = vsub.f32 %v14550_v50, %v14780_v61  ;;  %17466 = vst [vmem:[#allocation39_spill] sm:$0xff] %v14811_v44 }
 0x3d8   : > { %v5265_v52 = vsub.f32 %v14550_v50, %v14786_v28  ;;  %5963 = vperm.xlu1 %9594, %v9867_v56   ;;  %v5061_v26 = vmul.f32 %v5029_v36, %v14741_v1  ;;  %v4658_v12 = vmul.f32 0.5, %v14769_v15  ;;  %v4659_v39 = vmul.f32 0.5, %v14771_v35  ;;  %v14836_v57 = vpop.permute.xlu0 %5495 }
 0x3d9   : > { %v4599_v43 = vand.u32 2147483647, %v4567_v16  ;;  %v14815_v7 = vsel %vm4623_vm8, %v4687_v40, %v8837_v47  ;;  %v5296_v49 = vand.u32 2147483647, %v5264_v34  ;;  %v4662_v13 = vmul.f32 0.5, %v14788_v46  ;;  %v17467_v16 = vld [vmem:[#allocation18_spill] sm:$0xff] }
 0x3da   : > { %v5297_v22 = vand.u32 2147483647, %v5265_v52  ;;  %vm4626_vm10 = vcmp.lt.f32.partialorder %v14769_v15, 1.0  ;;  %vm4627_vm11 = vcmp.lt.f32.partialorder %v14771_v35, 1.0  ;;  %v5270_v36 = vsub.f32 %v14591_v33, %v14780_v61  ;;  %v9868_v52 = vld [vmem:[%s16811_s5] sm:$0xff] }
 0x3db   : > { %v5271_v50 = vsub.f32 %v14591_v33, %v14786_v28  ;;  %6231 = vperm.xlu0 %9593, %v17467_v16   ;;  %v8840_v27 = vadd.f32 -0.5, %v14769_v15  ;;  %v8841_v40 = vadd.f32 -0.5, %v14771_v35  ;;  %v5360_v47 = vmul.f32 0.5, %v5296_v49 }
 0x3dc   : > { %v5361_v34 = vmul.f32 0.5, %v5297_v22  ;;  %6203 = vperm.xlu1 %9594, %v9868_v52   ;;  %v14832_v56 = vsel %vm4997_vm9, %v5061_v26, %v8887_v3  ;;  %v4690_v62 = vmul.f32 %v4658_v12, %v14769_v15  ;;  %v4691_v33 = vmul.f32 %v4659_v39, %v14771_v35  ;;  %v17470_v3 = vld [vmem:[#allocation76_spill] sm:$0xff]  ;;  %v14846_v26 = vpop.permute.xlu1 %4891  ;;  %v9869_v39 = vld [vmem:[%s16811_s5 + $0x10] sm:$0xff] }
 0x3dd   : > { %17468 = vst [vmem:[#allocation67_spill] sm:$0xff] %v14832_v56  ;;  %v4663_v16 = vmul.f32 0.5, %v4599_v43  ;;  %v8890_v24 = vadd.f32 -0.5, %v5296_v49  ;;  %v8891_v44 = vadd.f32 -0.5, %v5297_v22  ;;  %v4694_v5 = vmul.f32 %v4662_v13, %v14788_v46  ;;  %17471 = vst [vmem:[#allocation49_spill] sm:$0xff] %v14846_v26 }
 0x3de   : > { %v4570_v10 = vsub.f32 %v17469_v37, %v13993_v21  ;;  %v5392_v32 = vmul.f32 %v5360_v47, %v5296_v49  ;;  %v5393_v52 = vmul.f32 %v5361_v34, %v5297_v22  ;;  %v14841_v25 = vand.u32 2147483647, %v5270_v36 }
 0x3df   : > { %v14843_v1 = vand.u32 2147483647, %v5271_v50  ;;  %6239 = vperm.xlu0 %9593, %v17470_v3   ;;  %vm5328_vm12 = vcmp.lt.f32.partialorder %v5296_v49, 1.0  ;;  %vm5329_vm13 = vcmp.lt.f32.partialorder %v5297_v22, 1.0  ;;  %v4571_v12 = vsub.f32 %v17469_v37, %v14001_v42 }
 0x3e0   : > { %v5274_v13 = vsub.f32 %v14636_v17, %v14780_v61  ;;  %6211 = vperm.xlu1 %9594, %v9869_v39   ;;  %v14857_v36 = vsel %vm4626_vm10, %v4690_v62, %v8840_v27  ;;  %vm4630_vm14 = vcmp.lt.f32.partialorder %v14788_v46, 1.0  ;;  %v4695_v50 = vmul.f32 %v4663_v16, %v4599_v43  ;;  %v17472_v27 = vld [vmem:[#allocation82_spill] sm:$0xff]  ;;  %v14872_v16 = vpop.permute.xlu0 %5503 }
 0x3e1   : > { %v5275_v49 = vsub.f32 %v14636_v17, %v14786_v28  ;;  %v14864_v37 = vsel %vm4627_vm11, %v4691_v33, %v8841_v40  ;;  %v8844_v22 = vadd.f32 -0.5, %v14788_v46  ;;  %v8845_v47 = vadd.f32 -0.5, %v4599_v43  ;;  %v14885_v46 = vpop.permute.xlu1 %5191 }
 0x3e2   : > { %v14867_v34 = vand.u32 2147483647, %v4570_v10  ;;  %v5456_v3 = vsel %vm5328_vm12, %v5392_v32, %v8890_v24  ;;  %v5457_v39 = vsel %vm5329_vm13, %v5393_v52, %v8891_v44  ;;  %v5366_v15 = vmul.f32 0.5, %v14841_v25  ;;  %v9870_v10 = vld [vmem:[%s16811_s5 + $0x20] sm:$0xff]  ;;  %17473 = vst [vmem:[#allocation19_spill] sm:$0xff] %v14885_v46 }
 0x3e3   : > { %v5367_v62 = vmul.f32 0.5, %v14843_v1  ;;  %6247 = vperm.xlu0 %9593, %v17472_v27   ;;  %vm4631_vm15 = vcmp.lt.f32.partialorder %v4599_v43, 1.0  ;;  %v14874_v17 = vsel %vm4630_vm14, %v4694_v5, %v8844_v22  ;;  %v14876_v35 = vand.u32 2147483647, %v4571_v12  ;;  %v17478_v46 = vld [vmem:[#allocation28_spill] sm:$0xff] }
 0x3e4   : > { %v5306_v40 = vand.u32 2147483647, %v5274_v13  ;;  %6219 = vperm.xlu1 %9594, %v9870_v10   ;;  %v14881_v32 = vsel %vm4631_vm15, %v4695_v50, %v8845_v47  ;;  %vm5334_vm0 = vcmp.lt.f32.partialorder %v14841_v25, 1.0  ;;  %vm5335_vm2 = vcmp.lt.f32.partialorder %v14843_v1, 1.0  ;;  %v14910_v10 = vpop.permute.xlu0 %5511 }
 0x3e5   : > { %v5307_v24 = vand.u32 2147483647, %v5275_v49  ;;  %v14888_v5 = vadd.f32 %v5456_v3, %v14714_v31  ;;  %v14891_v43 = vadd.f32 %v5457_v39, %v14719_v30  ;;  %v8896_v44 = vadd.f32 -0.5, %v14841_v25  ;;  %v17476_v49 = vld [vmem:[#allocation42_spill] sm:$0xff]  ;;  %v17477_v30 = vld [vmem:[#allocation33_spill] sm:$0xff]  ;;  %v14916_v26 = vpop.permute.xlu1 %5199 }
 0x3e6   : > { %v8897_v33 = vadd.f32 -0.5, %v14843_v1  ;;  %v5398_v52 = vmul.f32 %v5366_v15, %v14841_v25  ;;  %v5399_v12 = vmul.f32 %v5367_v62, %v14843_v1  ;;  %vm4634_vm4 = vcmp.lt.f32.partialorder %v14867_v34, 1.0  ;;  %v9871_v3 = vld [vmem:[%s16811_s5 + $0x30] sm:$0xff]  ;;  %17479 = vst [vmem:[#allocation91_spill] sm:$0xff] %v14916_v26 }
 0x3e7   : > { %17474 = vst [vmem:[#allocation102_spill] sm:$0xff] %v14888_v5  ;;  %17475 = vst [vmem:[#allocation89_spill] sm:$0xff] %v14891_v43  ;;  %v5370_v13 = vmul.f32 0.5, %v5306_v40  ;;  %v5371_v50 = vmul.f32 0.5, %v5307_v24  ;;  %6255 = vperm.xlu0 %9593, %v17476_v49   ;;  %v4666_v31 = vmul.f32 0.5, %v14867_v34  ;;  %v4667_v22 = vmul.f32 0.5, %v14876_v35 }
 0x3e8   : > { %vm5338_vm5 = vcmp.lt.f32.partialorder %v5306_v40, 1.0  ;;  %v4574_v47 = vsub.f32 %v17477_v30, %v13993_v21  ;;  %6227 = vperm.xlu1 %9594, %v9871_v3   ;;  %v8900_v15 = vadd.f32 -0.5, %v5306_v40  ;;  %v4575_v62 = vsub.f32 %v17477_v30, %v14001_v42 }
 0x3e9   : > { %v5402_v39 = vmul.f32 %v5370_v13, %v5306_v40  ;;  %v5278_v27 = vsub.f32 %v14665_v55, %v14780_v61  ;;  %v5403_v49 = vmul.f32 %v5371_v50, %v5307_v24  ;;  %v8901_v43 = vadd.f32 -0.5, %v5307_v24  ;;  %v14940_v40 = vpop.permute.xlu0 %5519 }
 0x3ea   : > { %v4606_v5 = vand.u32 2147483647, %v4574_v47  ;;  %v5279_v21 = vsub.f32 %v14665_v55, %v14786_v28  ;;  %v8848_v56 = vadd.f32 -0.5, %v14867_v34  ;;  %vm5339_vm7 = vcmp.lt.f32.partialorder %v5307_v24, 1.0  ;;  %v9872_v55 = vld [vmem:[%s16811_s5 + $0x40] sm:$0xff] }
 0x3eb   : > { %v4607_v3 = vand.u32 2147483647, %v4575_v62  ;;  %v5310_v13 = vand.u32 2147483647, %v5278_v27  ;;  %6263 = vperm.xlu0 %9593, %v17478_v46   ;;  %v5462_v42 = vsel %vm5334_vm0, %v5398_v52, %v8896_v44  ;;  %v4698_v30 = vmul.f32 %v4666_v31, %v14867_v34  ;;  %v17480_v62 = vld [vmem:[#allocation86_spill] sm:$0xff] }
 0x3ec   : > { %v4699_v50 = vmul.f32 %v4667_v22, %v14876_v35  ;;  %v8849_v47 = vadd.f32 -0.5, %v14876_v35  ;;  %6235 = vperm.xlu1 %9594, %v9872_v55   ;;  %v5463_v24 = vsel %vm5335_vm2, %v5399_v12, %v8897_v33  ;;  %v5466_v46 = vsel %vm5338_vm5, %v5402_v39, %v8900_v15  ;;  %v14960_v15 = vpop.permute.xlu1 %5203 }
 0x3ed   : > { %v4902_v25 = vsub.f32 %v17480_v62, %v14306_v59  ;;  %v5282_v44 = vsub.f32 %v14700_v23, %v14780_v61  ;;  %v5467_v52 = vsel %vm5339_vm7, %v5403_v49, %v8901_v43  ;;  %v4670_v31 = vmul.f32 0.5, %v4606_v5  ;;  %v9874_v62 = vld [vmem:[%s16811_s5 + $0x60] sm:$0xff] }
 0x3ee   : > { %v4671_v22 = vmul.f32 0.5, %v4607_v3  ;;  %v5311_v27 = vand.u32 2147483647, %v5279_v21  ;;  %v14934_v26 = vadd.f32 %v5462_v42, %v14762_v6  ;;  %vm4635_vm6 = vcmp.lt.f32.partialorder %v14876_v35, 1.0  ;;  %v9873_v35 = vld [vmem:[%s16811_s5 + $0x50] sm:$0xff] }
 0x3ef   : > { %v5374_v55 = vmul.f32 0.5, %v5310_v13  ;;  %v5283_v1 = vsub.f32 %v14700_v23, %v14786_v28  ;;  %6271 = vperm.xlu0 %9593, %v14430_v14   ;;  %v14943_v33 = vadd.f32 %v5463_v24, %v14765_v58  ;;  %v14947_v43 = vsel %vm4634_vm4, %v4698_v30, %v8848_v56 }
 0x3f0   : > { %v14949_v12 = vsel %vm4635_vm6, %v4699_v50, %v8849_v47  ;;  %v5375_v6 = vmul.f32 0.5, %v5311_v27  ;;  %6243 = vperm.xlu1 %9594, %v9873_v35   ;;  %v14955_v23 = vadd.f32 %v5466_v46, %v14796_v38  ;;  %v14958_v14 = vadd.f32 %v5467_v52, %v14815_v7  ;;  %v17481_v47 = vld [vmem:[#allocation68_spill] sm:$0xff] }
 0x3f1   : > { %v8852_v58 = vadd.f32 -0.5, %v4606_v5  ;;  %v4934_v39 = vand.u32 2147483647, %v4902_v25  ;;  %v4702_v56 = vmul.f32 %v4670_v31, %v4606_v5  ;;  %v4703_v34 = vmul.f32 %v4671_v22, %v4607_v3 }
 0x3f2   : > { %v8853_v49 = vadd.f32 -0.5, %v4607_v3  ;;  %v5314_v21 = vand.u32 2147483647, %v5282_v44  ;;  %v5406_v42 = vmul.f32 %v5374_v55, %v5310_v13  ;;  %v8904_v30 = vadd.f32 -0.5, %v5310_v13  ;;  %v14968_v44 = vpop.permute.xlu0 %5527 }
 0x3f3   : > { %v5315_v50 = vand.u32 2147483647, %v5283_v1  ;;  %v4904_v24 = vsub.f32 %v17481_v47, %v14306_v59  ;;  %6279 = vperm.xlu0 %9593, %v14469_v48   ;;  %vm5342_vm8 = vcmp.lt.f32.partialorder %v5310_v13, 1.0  ;;  %v5407_v38 = vmul.f32 %v5375_v6, %v5311_v27 }
 0x3f4   : > { %v8905_v7 = vadd.f32 -0.5, %v5311_v27  ;;  %v5378_v46 = vmul.f32 0.5, %v5314_v21  ;;  %6251 = vperm.xlu1 %9594, %v9874_v62   ;;  %vm4638_vm9 = vcmp.lt.f32.partialorder %v4606_v5, 1.0  ;;  %vm4639_vm10 = vcmp.lt.f32.partialorder %v4607_v3, 1.0  ;;  %v14981_v3 = vpop.permute.xlu1 %5211 }
 0x3f5   : > { %vm5343_vm11 = vcmp.lt.f32.partialorder %v5311_v27, 1.0  ;;  %v4998_v25 = vmul.f32 0.5, %v4934_v39  ;;  %v14970_v52 = vsel %vm4638_vm9, %v4702_v56, %v8852_v58  ;;  %v14972_v31 = vsel %vm4639_vm10, %v4703_v34, %v8853_v49  ;;  %v9875_v58 = vld [vmem:[%s16811_s5 + $0x70] sm:$0xff] }
 0x3f6   : > { %vm4966_vm12 = vcmp.lt.f32.partialorder %v4934_v39, 1.0  ;;  %v5286_v48 = vsub.f32 %v14724_v0, %v14780_v61  ;;  %v5470_v13 = vsel %vm5342_vm8, %v5406_v42, %v8904_v30  ;;  %v5379_v22 = vmul.f32 0.5, %v5315_v50 }
 0x3f7   : > { %v14976_v55 = vand.u32 2147483647, %v4904_v24  ;;  %v5287_v5 = vsub.f32 %v14724_v0, %v14786_v28  ;;  %6287 = vperm.xlu0 %9593, %v14491_v63   ;;  %v5471_v27 = vsel %vm5343_vm11, %v5407_v38, %v8905_v7  ;;  %v5410_v1 = vmul.f32 %v5378_v46, %v5314_v21 }
 0x3f8   : > { %v8908_v6 = vadd.f32 -0.5, %v5314_v21  ;;  %v4906_v35 = vsub.f32 %v14413_v2, %v14306_v59  ;;  %6259 = vperm.xlu1 %9594, %v9875_v58   ;;  %v5030_v56 = vmul.f32 %v4998_v25, %v4934_v39  ;;  %vm5346_vm13 = vcmp.lt.f32.partialorder %v5314_v21, 1.0  ;;  %v15000_v21 = vpop.permute.xlu0 %5535  ;;  %v15010_v25 = vpop.permute.xlu1 %5219 }
 0x3f9   : > { %v5318_v34 = vand.u32 2147483647, %v5286_v48  ;;  %v5319_v49 = vand.u32 2147483647, %v5287_v5  ;;  %v14989_v0 = vadd.f32 %v5470_v13, %v14857_v36  ;;  %v8856_v63 = vadd.f32 -0.5, %v4934_v39 }
 0x3fa   : > { %v5290_v42 = vsub.f32 %v14747_v41, %v14780_v61  ;;  %v5291_v30 = vsub.f32 %v14747_v41, %v14786_v28  ;;  %v14996_v2 = vadd.f32 %v5471_v27, %v14864_v37  ;;  %v5411_v47 = vmul.f32 %v5379_v22, %v5315_v50  ;;  %v9876_v41 = vld [vmem:[%s16811_s5 + $0x80] sm:$0xff] }
 0x3fb   : > { %v8909_v24 = vadd.f32 -0.5, %v5315_v50  ;;  %v5000_v38 = vmul.f32 0.5, %v14976_v55  ;;  %6295 = vperm.xlu0 %9593, %v14515_v19   ;;  %vm5347_vm14 = vcmp.lt.f32.partialorder %v5315_v50, 1.0  ;;  %v5474_v36 = vsel %vm5346_vm13, %v5410_v1, %v8908_v6  ;;  %v9877_v5 = vld [vmem:[%s10551_s30] sm:$0x7f] }
 0x3fc   : > { %v5382_v7 = vmul.f32 0.5, %v5318_v34  ;;  %v4938_v46 = vand.u32 2147483647, %v4906_v35  ;;  %6267 = vperm.xlu1 %9594, %v9876_v41   ;;  %v15006_v37 = vsel %vm4966_vm12, %v5030_v56, %v8856_v63  ;;  %vm4968_vm15 = vcmp.lt.f32.partialorder %v14976_v55, 1.0 }
 0x3fd   : > { %v8858_v62 = vadd.f32 -0.5, %v14976_v55  ;;  %v5383_v19 = vmul.f32 0.5, %v5319_v49  ;;  %v5322_v48 = vand.u32 2147483647, %v5290_v42  ;;  %v15012_v13 = vand.u32 2147483647, %v5291_v30  ;;  %v15031_v42 = vpop.permute.xlu0 %5543 }
 0x3fe   : > { %v4908_v22 = vsub.f32 %v14459_v8, %v14306_v59  ;;  %v15018_v27 = vrot.slane %v9877_v5, %v14754_v11  ;;  %v5475_v39 = vsel %vm5347_vm14, %v5411_v47, %v8909_v24  ;;  %v15022_v1 = vadd.f32 %v5474_v36, %v14874_v17  ;;  %v9878_v11 = vld [vmem:[%s16811_s5 + $0x90] sm:$0xff] }
 0x3ff   : > { %v5032_v6 = vmul.f32 %v5000_v38, %v14976_v55  ;;  %v4910_v35 = vsub.f32 %v14477_v53, %v14306_v59  ;;  %6303 = vperm.xlu0 %9593, %v14541_v60   ;;  %vm5350_vm0 = vcmp.lt.f32.partialorder %v5318_v34, 1.0  ;;  %v5414_v58 = vmul.f32 %v5382_v7, %v5318_v34  ;;  %v15044_v7 = vpop.permute.xlu1 %5227 }
 0x400   : > { %v8912_v56 = vadd.f32 -0.5, %v5318_v34  ;;  %v5002_v8 = vmul.f32 0.5, %v4938_v46  ;;  %6275 = vperm.xlu1 %9594, %v9878_v11   ;;  %vm5351_vm2 = vcmp.lt.f32.partialorder %v5319_v49, 1.0  ;;  %v5415_v50 = vmul.f32 %v5383_v19, %v5319_v49 }
 0x401   : > { %v8913_v17 = vadd.f32 -0.5, %v5319_v49  ;;  %v5386_v63 = vmul.f32 0.5, %v5322_v48  ;;  %v5387_v30 = vmul.f32 0.5, %v15012_v13  ;;  %v4940_v53 = vand.u32 2147483647, %v4908_v22  ;;  %v15062_v49 = vpop.permute.xlu0 %5551 }
 0x402   : > { %v5618_v60 = vsub.f32 %v14799_v18, %v15018_v27  ;;  %v4942_v47 = vand.u32 2147483647, %v4910_v35  ;;  %v15037_v24 = vadd.f32 %v5475_v39, %v14881_v32  ;;  %v15041_v38 = vsel %vm4968_vm15, %v5032_v6, %v8858_v62  ;;  %v9879_v32 = vld [vmem:[%s16811_s5 + $0xa0] sm:$0xff] }
 0x403   : > { %vm4970_vm4 = vcmp.lt.f32.partialorder %v4938_v46, 1.0  ;;  %v8860_v36 = vadd.f32 -0.5, %v4938_v46  ;;  %6311 = vperm.xlu0 %9593, %v14559_v9   ;;  %v5478_v41 = vsel %vm5350_vm0, %v5414_v58, %v8912_v56  ;;  %v5034_v19 = vmul.f32 %v5002_v8, %v4938_v46 }
 0x404   : > { %17482 = vst [vmem:[#allocation52_spill] sm:$0xff] %v15037_v24  ;;  %v5650_v22 = vand.u32 2147483647, %v5618_v60  ;;  %v5620_v18 = vsub.f32 %v14836_v57, %v15018_v27  ;;  %6283 = vperm.xlu1 %9594, %v9879_v32   ;;  %v5479_v55 = vsel %vm5351_vm2, %v5415_v50, %v8913_v17  ;;  %vm5354_vm5 = vcmp.lt.f32.partialorder %v5322_v48, 1.0  ;;  %v9880_v50 = vld [vmem:[%s16811_s5 + $0xb0] sm:$0xff]  ;;  %v15078_v17 = vpop.permute.xlu1 %5235 }
 0x405   : > { %v5418_v62 = vmul.f32 %v5386_v63, %v5322_v48  ;;  %v8916_v5 = vadd.f32 -0.5, %v5322_v48  ;;  %v5419_v9 = vmul.f32 %v5387_v30, %v15012_v13  ;;  %v8917_v34 = vadd.f32 -0.5, %v15012_v13 }
 0x406   : > { %v5004_v39 = vmul.f32 0.5, %v4940_v53  ;;  %v5006_v6 = vmul.f32 0.5, %v4942_v47  ;;  %v15056_v35 = vadd.f32 %v5478_v41, %v14947_v43  ;;  %vm5355_vm7 = vcmp.lt.f32.partialorder %v15012_v13, 1.0  ;;  %v9881_v13 = vld [vmem:[%s16811_s5 + $0xc0] sm:$0xff] }
 0x407   : > { %v5714_v57 = vmul.f32 0.5, %v5650_v22  ;;  %v4912_v58 = vsub.f32 %v14499_v20, %v14306_v59  ;;  %6319 = vperm.xlu0 %9593, %v14582_v4   ;;  %v15065_v56 = vadd.f32 %v5479_v55, %v14949_v12  ;;  %v15068_v8 = vsel %vm4970_vm4, %v5034_v19, %v8860_v36 }
 0x408   : > { %17483 = vst [vmem:[#allocation47_spill] sm:$0xff] %v15056_v35  ;;  %v5652_v11 = vand.u32 2147483647, %v5620_v18  ;;  %v5622_v43 = vsub.f32 %v14872_v16, %v15018_v27  ;;  %6291 = vperm.xlu1 %9594, %v9880_v50   ;;  %v5482_v20 = vsel %vm5354_vm5, %v5418_v62, %v8916_v5  ;;  %vm4972_vm6 = vcmp.lt.f32.partialorder %v4940_v53, 1.0  ;;  %v15094_v62 = vpop.permute.xlu0 %5559  ;;  %v17530_v35 = vld [vmem:[#allocation20_spill] sm:$0xff] }
 0x409   : > { %17484 = vst [vmem:[#allocation90_spill] sm:$0xff] %v15065_v56  ;;  %v8862_v4 = vadd.f32 -0.5, %v4940_v53  ;;  %v5624_v12 = vsub.f32 %v14910_v10, %v15018_v27  ;;  %v5483_v46 = vsel %vm5355_vm7, %v5419_v9, %v8917_v34  ;;  %v5036_v63 = vmul.f32 %v5004_v39, %v4940_v53  ;;  %v9882_v53 = vld [vmem:[%s16811_s5 + $0xd0] sm:$0xff] }
 0x40a   : > { %v5038_v30 = vmul.f32 %v5006_v6, %v4942_v47  ;;  %v4914_v16 = vsub.f32 %v14533_v45, %v14306_v59  ;;  %v5746_v60 = vmul.f32 %v5714_v57, %v5650_v22  ;;  %v8920_v36 = vadd.f32 -0.5, %v5650_v22 }
 0x40b   : > { %v4944_v41 = vand.u32 2147483647, %v4912_v58  ;;  %v5654_v48 = vand.u32 2147483647, %v5622_v43  ;;  %6327 = vperm.xlu0 %9593, %v14622_v51   ;;  %vm5682_vm8 = vcmp.lt.f32.partialorder %v5650_v22, 1.0  ;;  %vm4974_vm9 = vcmp.lt.f32.partialorder %v4942_v47, 1.0 }
 0x40c   : > { %v8864_v19 = vadd.f32 -0.5, %v4942_v47  ;;  %v5716_v10 = vmul.f32 0.5, %v5652_v11  ;;  %6299 = vperm.xlu1 %9594, %v9881_v13   ;;  %v15089_v18 = vadd.f32 %v5482_v20, %v14970_v52  ;;  %v15092_v45 = vadd.f32 %v5483_v46, %v14972_v31  ;;  %v15101_v52 = vpop.permute.xlu1 %5243 }
 0x40d   : > { %v5718_v32 = vmul.f32 0.5, %v5654_v48  ;;  %v5656_v55 = vand.u32 2147483647, %v5624_v12  ;;  %v15097_v51 = vsel %vm4972_vm6, %v5036_v63, %v8862_v4  ;;  %vm5684_vm10 = vcmp.lt.f32.partialorder %v5652_v11, 1.0 }
 0x40e   : > { %17485 = vst [vmem:[#allocation46_spill] sm:$0xff] %v15089_v18  ;;  %17486 = vst [vmem:[#allocation95_spill] sm:$0xff] %v15092_v45  ;;  %v15099_v47 = vsel %vm4974_vm9, %v5038_v30, %v8864_v19  ;;  %v4946_v22 = vand.u32 2147483647, %v4914_v16  ;;  %v5810_v5 = vsel %vm5682_vm8, %v5746_v60, %v8920_v36  ;;  %v8922_v9 = vadd.f32 -0.5, %v5652_v11  ;;  %v15117_v60 = vpop.permute.xlu0 %5567  ;;  %v9883_v19 = vld [vmem:[%s16811_s5 + $0xe0] sm:$0xff] }
 0x40f   : > { %vm4976_vm11 = vcmp.lt.f32.partialorder %v4944_v41, 1.0  ;;  %v5008_v34 = vmul.f32 0.5, %v4944_v41  ;;  %v5748_v39 = vmul.f32 %v5716_v10, %v5652_v11  ;;  %v5750_v31 = vmul.f32 %v5718_v32, %v5654_v48 }
 0x410   : > { %v8924_v6 = vadd.f32 -0.5, %v5654_v48  ;;  %v4916_v57 = vsub.f32 %v14568_v54, %v14306_v59  ;;  %6307 = vperm.xlu1 %9594, %v9882_v53   ;;  %vm5686_vm12 = vcmp.lt.f32.partialorder %v5654_v48, 1.0  ;;  %v5720_v58 = vmul.f32 0.5, %v5656_v55  ;;  %v15125_v32 = vpop.permute.xlu1 %5251 }
 0x411   : > { %v5626_v43 = vsub.f32 %v14940_v40, %v15018_v27  ;;  %v5628_v50 = vsub.f32 %v14968_v44, %v15018_v27  ;;  %v8866_v20 = vadd.f32 -0.5, %v4944_v41  ;;  %v5010_v4 = vmul.f32 0.5, %v4946_v22  ;;  %v17488_v44 = vld [vmem:[#allocation81_spill] sm:$0xff] }
 0x412   : > { %v4948_v12 = vand.u32 2147483647, %v4916_v57  ;;  %v4918_v46 = vsub.f32 %v14615_v29, %v14306_v59  ;;  %v15115_v54 = vadd.f32 %v5810_v5, %v15006_v37  ;;  %v5040_v63 = vmul.f32 %v5008_v34, %v4944_v41 }
 0x413   : > { %v5658_v30 = vand.u32 2147483647, %v5626_v43  ;;  %v5660_v16 = vand.u32 2147483647, %v5628_v50  ;;  %v5812_v36 = vsel %vm5684_vm10, %v5748_v39, %v8922_v9  ;;  %v5814_v40 = vsel %vm5686_vm12, %v5750_v31, %v8924_v6 }
 0x414   : > { %17487 = vst [vmem:[#allocation15_spill] sm:$0xff] %v15115_v54  ;;  %vm4978_vm13 = vcmp.lt.f32.partialorder %v4946_v22, 1.0  ;;  %v4920_v48 = vsub.f32 %v17488_v44, %v14306_v59  ;;  %6315 = vperm.xlu1 %9594, %v9883_v19   ;;  %v8868_v29 = vadd.f32 -0.5, %v4946_v22  ;;  %v5752_v37 = vmul.f32 %v5720_v58, %v5656_v55 }
 0x415   : > { %v8926_v10 = vadd.f32 -0.5, %v5656_v55  ;;  %v5722_v13 = vmul.f32 0.5, %v5658_v30  ;;  %v5042_v5 = vmul.f32 %v5010_v4, %v4946_v22  ;;  %vm5688_vm14 = vcmp.lt.f32.partialorder %v5656_v55, 1.0  ;;  %v9884_v55 = vld [vmem:[%s16811_s5 + $0xf0] sm:$0xff] }
 0x416   : > { %v5012_v11 = vmul.f32 0.5, %v4948_v12  ;;  %v4950_v9 = vand.u32 2147483647, %v4918_v46  ;;  %v15128_v34 = vadd.f32 %v5812_v36, %v15041_v38  ;;  %v5104_v39 = vsel %vm4976_vm11, %v5040_v63, %v8866_v20  ;;  %v17491_v38 = vld [vmem:[#allocation27_spill] sm:$0xff]  ;;  %v15143_v20 = vpop.permute.xlu0 %5575 }
 0x417   : > { %v15132_v31 = vadd.f32 %v5814_v40, %v15068_v8  ;;  %v5724_v6 = vmul.f32 0.5, %v5660_v16  ;;  %v5754_v57 = vmul.f32 %v5722_v13, %v5658_v30  ;;  %v8928_v53 = vadd.f32 -0.5, %v5658_v30 }
 0x418   : > { %17489 = vst [vmem:[#allocation54_spill] sm:$0xff] %v15128_v34  ;;  %v4952_v58 = vand.u32 2147483647, %v4920_v48  ;;  %v5630_v43 = vsub.f32 %v15000_v21, %v15018_v27  ;;  %6323 = vperm.xlu1 %9594, %v9884_v55   ;;  %v5816_v50 = vsel %vm5688_vm14, %v5752_v37, %v8926_v10  ;;  %vm5690_vm15 = vcmp.lt.f32.partialorder %v5658_v30, 1.0  ;;  %v15148_v48 = vpop.permute.xlu1 %5491 }
 0x419   : > { %17490 = vst [vmem:[#allocation55_spill] sm:$0xff] %v15132_v31  ;;  %v4922_v41 = vsub.f32 %v17491_v38, %v14306_v59  ;;  %v5632_v8 = vsub.f32 %v15031_v42, %v15018_v27  ;;  %v15146_v4 = vsel %vm4978_vm13, %v5042_v5, %v8868_v29  ;;  %vm4980_vm0 = vcmp.lt.f32.partialorder %v4948_v12, 1.0  ;;  %v17493_v29 = vld [vmem:[#allocation64_spill] sm:$0xff]  ;;  %v17495_v38 = vld [vmem:[#allocation41_spill] sm:$0xff] }
 0x41a   : > { %v5044_v21 = vmul.f32 %v5012_v11, %v4948_v12  ;;  %v5014_v46 = vmul.f32 0.5, %v4950_v9  ;;  %v5756_v63 = vmul.f32 %v5724_v6, %v5660_v16  ;;  %v8930_v36 = vadd.f32 -0.5, %v5660_v16 }
 0x41b   : > { %v5016_v40 = vmul.f32 0.5, %v4952_v58  ;;  %v5662_v44 = vand.u32 2147483647, %v5630_v43  ;;  %v15151_v30 = vadd.f32 %v5816_v50, %v15097_v51  ;;  %v8870_v19 = vadd.f32 -0.5, %v4948_v12 }
 0x41c   : > { %v5818_v37 = vsel %vm5690_vm15, %v5754_v57, %v8928_v53  ;;  %vm5692_vm2 = vcmp.lt.f32.partialorder %v5660_v16, 1.0  ;;  %v15153_v10 = vand.u32 2147483647, %v4922_v41  ;;  %v5664_v22 = vand.u32 2147483647, %v5632_v8  ;;  %v15163_v16 = vpop.permute.xlu0 %5583 }
 0x41d   : > { %17492 = vst [vmem:[#allocation93_spill] sm:$0xff] %v15151_v30  ;;  %v5726_v42 = vmul.f32 0.5, %v5662_v44  ;;  %v4924_v13 = vsub.f32 %v17493_v29, %v14306_v59  ;;  %v15158_v5 = vsel %vm4980_vm0, %v5044_v21, %v8870_v19  ;;  %vm4982_vm4 = vcmp.lt.f32.partialorder %v4950_v9, 1.0 }
 0x41e   : > { %v5046_v11 = vmul.f32 %v5014_v46, %v4950_v9  ;;  %v8872_v6 = vadd.f32 -0.5, %v4950_v9  ;;  %v15161_v43 = vadd.f32 %v5818_v37, %v15099_v47  ;;  %v5820_v51 = vsel %vm5692_vm2, %v5756_v63, %v8930_v36  ;;  %v15172_v63 = vpop.permute.xlu1 %5499 }
 0x41f   : > { %v5048_v55 = vmul.f32 %v5016_v40, %v4952_v58  ;;  %v8874_v57 = vadd.f32 -0.5, %v4952_v58  ;;  %v8932_v53 = vadd.f32 -0.5, %v5662_v44  ;;  %v5634_v50 = vsub.f32 %v15062_v49, %v15018_v27 }
 0x420   : > { %17494 = vst [vmem:[#allocation96_spill] sm:$0xff] %v15161_v43  ;;  %v4926_v12 = vsub.f32 %v17495_v38, %v14306_v59  ;;  %v5636_v41 = vsub.f32 %v15094_v62, %v15018_v27  ;;  %v5758_v8 = vmul.f32 %v5726_v42, %v5662_v44  ;;  %v5018_v21 = vmul.f32 0.5, %v15153_v10 }
 0x421   : > { %v5728_v47 = vmul.f32 0.5, %v5664_v22  ;;  %v4956_v46 = vand.u32 2147483647, %v4924_v13  ;;  %v5110_v36 = vsel %vm4982_vm4, %v5046_v11, %v8872_v6  ;;  %vm4984_vm5 = vcmp.lt.f32.partialorder %v4952_v58, 1.0  ;;  %v15180_v58 = vpop.permute.xlu0 %5591 }
 0x422   : > { %vm5694_vm7 = vcmp.lt.f32.partialorder %v5662_v44, 1.0  ;;  %v5666_v40 = vand.u32 2147483647, %v5634_v50  ;;  %v15175_v19 = vadd.f32 %v5820_v51, %v5104_v39  ;;  %v5112_v49 = vsel %vm4984_vm5, %v5048_v55, %v8874_v57  ;;  %v17497_v55 = vld [vmem:[#allocation48_spill] sm:$0xff] }
 0x423   : > { %v4958_v37 = vand.u32 2147483647, %v4926_v12  ;;  %v5668_v29 = vand.u32 2147483647, %v5636_v41  ;;  %vm4986_vm6 = vcmp.lt.f32.partialorder %v15153_v10, 1.0  ;;  %v8876_v62 = vadd.f32 -0.5, %v15153_v10  ;;  %v15186_v12 = vpop.permute.xlu1 %5507 }
 0x424   : > { %17496 = vst [vmem:[#allocation22_spill] sm:$0xff] %v15175_v19  ;;  %vm5696_vm8 = vcmp.lt.f32.partialorder %v5664_v22, 1.0  ;;  %v8934_v42 = vadd.f32 -0.5, %v5664_v22  ;;  %v5730_v38 = vmul.f32 0.5, %v5666_v40  ;;  %v5822_v13 = vsel %vm5694_vm7, %v5758_v8, %v8932_v53  ;;  %v17498_v8 = vld [vmem:[#allocation39_spill] sm:$0xff] }
 0x425   : > { %v5050_v43 = vmul.f32 %v5018_v21, %v15153_v10  ;;  %v5760_v9 = vmul.f32 %v5728_v47, %v5664_v22  ;;  %v5020_v11 = vmul.f32 0.5, %v4956_v46  ;;  %vm4988_vm9 = vcmp.lt.f32.partialorder %v4956_v46, 1.0  ;;  %v15199_v56 = vpop.permute.xlu0 %5599 }
 0x426   : > { %vm5698_vm10 = vcmp.lt.f32.partialorder %v5666_v40, 1.0  ;;  %v5022_v39 = vmul.f32 0.5, %v4958_v37  ;;  %v5732_v44 = vmul.f32 0.5, %v5668_v29  ;;  %v5762_v6 = vmul.f32 %v5730_v38, %v5666_v40 }
 0x427   : > { %v8936_v51 = vadd.f32 -0.5, %v5666_v40  ;;  %v4928_v57 = vsub.f32 %v17497_v55, %v14306_v59  ;;  %v5638_v50 = vsub.f32 %v15117_v60, %v15018_v27  ;;  %v8938_v41 = vadd.f32 -0.5, %v5668_v29  ;;  %v17499_v60 = vld [vmem:[#allocation49_spill] sm:$0xff] }
 0x428   : > { %v5764_v53 = vmul.f32 %v5732_v44, %v5668_v29  ;;  %v4930_v21 = vsub.f32 %v17498_v8, %v14306_v59  ;;  %v5640_v47 = vsub.f32 %v15143_v20, %v15018_v27  ;;  %v5052_v19 = vmul.f32 %v5020_v11, %v4956_v46 }
 0x429   : > { %vm5700_vm11 = vcmp.lt.f32.partialorder %v5668_v29, 1.0  ;;  %v4960_v38 = vand.u32 2147483647, %v4928_v57  ;;  %v5670_v30 = vand.u32 2147483647, %v5638_v50  ;;  %v5824_v31 = vsel %vm5696_vm8, %v5760_v9, %v8934_v42 }
 0x42a   : > { %v5054_v55 = vmul.f32 %v5022_v39, %v4958_v37  ;;  %v5672_v34 = vand.u32 2147483647, %v5640_v47  ;;  %v4932_v54 = vsub.f32 %v17499_v60, %v14306_v59  ;;  %v15196_v44 = vadd.f32 %v5822_v13, %v15146_v4  ;;  %v15211_v4 = vpop.permute.xlu1 %5515 }
 0x42b   : > { %v8878_v45 = vadd.f32 -0.5, %v4956_v46  ;;  %v5826_v8 = vsel %vm5698_vm10, %v5762_v6, %v8936_v51  ;;  %v8880_v18 = vadd.f32 -0.5, %v4958_v37  ;;  %v5828_v20 = vsel %vm5700_vm11, %v5764_v53, %v8938_v41  ;;  %v17506_v46 = vld [vmem:[#allocation19_spill] sm:$0xff] }
 0x42c   : > { %17500 = vst [vmem:[#allocation58_spill] sm:$0xff] %v15196_v44  ;;  %v5024_v29 = vmul.f32 0.5, %v4960_v38  ;;  %v5734_v11 = vmul.f32 0.5, %v5670_v30  ;;  %v15201_v57 = vand.u32 2147483647, %v4930_v21  ;;  %v5114_v22 = vsel %vm4986_vm6, %v5050_v43, %v8876_v62  ;;  %v17507_v41 = vld [vmem:[#allocation91_spill] sm:$0xff] }
 0x42d   : > { %v15206_v42 = vadd.f32 %v5824_v31, %v15158_v5  ;;  %v15209_v59 = vsel %vm4988_vm9, %v5052_v19, %v8878_v45  ;;  %vm4990_vm12 = vcmp.lt.f32.partialorder %v4958_v37, 1.0  ;;  %v15213_v40 = vadd.f32 %v5826_v8, %v5110_v36 }
 0x42e   : > { %17501 = vst [vmem:[#allocation24_spill] sm:$0xff] %v15201_v57  ;;  %v15215_v13 = vsel %vm4990_vm12, %v5054_v55, %v8880_v18  ;;  %v5736_v9 = vmul.f32 0.5, %v5672_v34  ;;  %v15217_v39 = vand.u32 2147483647, %v4932_v54  ;;  %v15219_v6 = vadd.f32 %v5828_v20, %v5112_v49  ;;  %v15228_v49 = vpop.permute.xlu0 %5607  ;;  %v15235_v47 = vpop.permute.xlu1 %5523 }
 0x42f   : > { %17502 = vst [vmem:[#allocation99_spill] sm:$0xff] %v15206_v42  ;;  %17503 = vst [vmem:[#allocation104_spill] sm:$0xff] %v15213_v40  ;;  %vm5702_vm13 = vcmp.lt.f32.partialorder %v5670_v30, 1.0  ;;  %v5766_v10 = vmul.f32 %v5734_v11, %v5670_v30  ;;  %v8940_v43 = vadd.f32 -0.5, %v5670_v30  ;;  %v5056_v31 = vmul.f32 %v5024_v29, %v4960_v38 }
 0x430   : > { %17504 = vst [vmem:[#allocation100_spill] sm:$0xff] %v15217_v39  ;;  %17505 = vst [vmem:[#allocation65_spill] sm:$0xff] %v15219_v6  ;;  %v5026_v5 = vmul.f32 0.5, %v15201_v57  ;;  %v5642_v45 = vsub.f32 %v15163_v16, %v15018_v27  ;;  %v5262_v36 = vsub.f32 %v17506_v46, %v14780_v61  ;;  %vm4992_vm14 = vcmp.lt.f32.partialorder %v4960_v38, 1.0 }
 0x431   : > { %v8882_v18 = vadd.f32 -0.5, %v4960_v38  ;;  %v8942_v19 = vadd.f32 -0.5, %v5672_v34  ;;  %v5263_v54 = vsub.f32 %v17506_v46, %v14786_v28  ;;  %v5768_v37 = vmul.f32 %v5736_v9, %v5672_v34 }
 0x432   : > { %v5674_v62 = vand.u32 2147483647, %v5642_v45  ;;  %v5294_v51 = vand.u32 2147483647, %v5262_v36  ;;  %v5644_v50 = vsub.f32 %v15180_v58, %v15018_v27  ;;  %v5830_v53 = vsel %vm5702_vm13, %v5766_v10, %v8940_v43  ;;  %v15251_v46 = vpop.permute.xlu0 %5907 }
 0x433   : > { %vm5704_vm15 = vcmp.lt.f32.partialorder %v5672_v34, 1.0  ;;  %v5295_v16 = vand.u32 2147483647, %v5263_v54  ;;  %v5266_v21 = vsub.f32 %v17507_v41, %v14780_v61  ;;  %v5120_v38 = vsel %vm4992_vm14, %v5056_v31, %v8882_v18 }
 0x434   : > { %v15238_v55 = vmul.f32 %v5026_v5, %v15201_v57  ;;  %v15241_v60 = vadd.f32 -0.5, %v15201_v57  ;;  %v5738_v8 = vmul.f32 0.5, %v5674_v62  ;;  %v5028_v20 = vmul.f32 0.5, %v15217_v39 }
 0x435   : > { %v15245_v30 = vadd.f32 -0.5, %v15217_v39  ;;  %v5358_v34 = vmul.f32 0.5, %v5294_v51  ;;  %v5359_v58 = vmul.f32 0.5, %v5295_v16  ;;  %v15247_v29 = vadd.f32 %v5830_v53, %v5114_v22 }
 0x436   : > { %17508 = vst [vmem:[#allocation70_spill] sm:$0xff] %v15238_v55  ;;  %17509 = vst [vmem:[#allocation18_spill] sm:$0xff] %v15241_v60  ;;  %v5832_v11 = vsel %vm5704_vm15, %v5768_v37, %v8942_v19  ;;  %v5676_v9 = vand.u32 2147483647, %v5644_v50  ;;  %v5267_v10 = vsub.f32 %v17507_v41, %v14786_v28  ;;  %v5770_v43 = vmul.f32 %v5738_v8, %v5674_v62  ;;  %v15255_v37 = vpop.permute.xlu1 %5531  ;;  %v17524_v60 = vld [vmem:[#allocation53_spill] sm:$0xff] }
 0x437   : > { %17510 = vst [vmem:[#allocation94_spill] sm:$0xff] %v15245_v30  ;;  %17511 = vst [vmem:[#allocation76_spill] sm:$0xff] %v15247_v29  ;;  %v8944_v31 = vadd.f32 -0.5, %v5674_v62  ;;  %v5390_v5 = vmul.f32 %v5358_v34, %v5294_v51  ;;  %v5298_v45 = vand.u32 2147483647, %v5266_v21  ;;  %vm5706_vm0 = vcmp.lt.f32.partialorder %v5674_v62, 1.0 }
 0x438   : > { %v5391_v36 = vmul.f32 %v5359_v58, %v5295_v16  ;;  %v5740_v18 = vmul.f32 0.5, %v5676_v9  ;;  %v5646_v54 = vsub.f32 %v15199_v56, %v15018_v27  ;;  %vm5326_vm2 = vcmp.lt.f32.partialorder %v5294_v51, 1.0 }
 0x439   : > { %v8888_v22 = vadd.f32 -0.5, %v5294_v51  ;;  %v8946_v53 = vadd.f32 -0.5, %v5676_v9  ;;  %v5299_v19 = vand.u32 2147483647, %v5267_v10  ;;  %vm5327_vm4 = vcmp.lt.f32.partialorder %v5295_v16, 1.0 }
 0x43a   : > { %v8889_v50 = vadd.f32 -0.5, %v5295_v16  ;;  %vm5708_vm5 = vcmp.lt.f32.partialorder %v5676_v9, 1.0  ;;  %v5772_v41 = vmul.f32 %v5740_v18, %v5676_v9  ;;  %v5834_v8 = vsel %vm5706_vm0, %v5770_v43, %v8944_v31  ;;  %v15269_v43 = vpop.permute.xlu0 %5919 }
 0x43b   : > { %v5454_v21 = vsel %vm5326_vm2, %v5390_v5, %v8888_v22  ;;  %v5362_v34 = vmul.f32 0.5, %v5298_v45  ;;  %v5363_v30 = vmul.f32 0.5, %v5299_v19  ;;  %v15258_v62 = vmul.f32 %v5028_v20, %v15217_v39  ;;  %v17516_v20 = vld [vmem:[#allocation97_spill] sm:$0xff] }
 0x43c   : > { %v5455_v58 = vsel %vm5327_vm4, %v5391_v36, %v8889_v50  ;;  %v15260_v55 = vand.u32 2147483647, %v5646_v54  ;;  %v5268_v56 = vsub.f32 %v14960_v15, %v14780_v61  ;;  %v15265_v51 = vadd.f32 %v5832_v11, %v15209_v59  ;;  %v17517_v54 = vld [vmem:[#allocation98_spill] sm:$0xff] }
 0x43d   : > { %17512 = vst [vmem:[#allocation82_spill] sm:$0xff] %v15258_v62  ;;  %v5836_v10 = vsel %vm5708_vm5, %v5772_v41, %v8946_v53  ;;  %v5394_v16 = vmul.f32 %v5362_v34, %v5298_v45  ;;  %v5269_v9 = vsub.f32 %v14960_v15, %v14786_v28  ;;  %v15272_v31 = vadd.f32 %v5834_v8, %v15215_v13  ;;  %v15280_v53 = vpop.permute.xlu1 %5539  ;;  %v17521_v62 = vld [vmem:[#allocation12_spill] sm:$0xff] }
 0x43e   : > { %17513 = vst [vmem:[#allocation42_spill] sm:$0xff] %v15260_v55  ;;  %17514 = vst [vmem:[#allocation33_spill] sm:$0xff] %v15265_v51  ;;  %v15275_v5 = vadd.f32 %v5454_v21, %v17516_v20  ;;  %v5395_v36 = vmul.f32 %v5363_v30, %v5299_v19  ;;  %v5300_v18 = vand.u32 2147483647, %v5268_v56  ;;  %v15278_v22 = vadd.f32 %v5455_v58, %v17517_v54  ;;  %v17520_v20 = vld [vmem:[#allocation40_spill] sm:$0xff] }
 0x43f   : > { %17515 = vst [vmem:[#allocation28_spill] sm:$0xff] %v15272_v31  ;;  %vm5330_vm7 = vcmp.lt.f32.partialorder %v5298_v45, 1.0  ;;  %v8892_v59 = vadd.f32 -0.5, %v5298_v45  ;;  %v5301_v11 = vand.u32 2147483647, %v5269_v9  ;;  %v15282_v50 = vadd.f32 %v5836_v10, %v5120_v38 }
 0x440   : > { %vm5331_vm6 = vcmp.lt.f32.partialorder %v5299_v19, 1.0  ;;  %v8893_v15 = vadd.f32 -0.5, %v5299_v19  ;;  %v5742_v13 = vmul.f32 0.5, %v15260_v55  ;;  %v15286_v8 = vadd.f32 -0.5, %v15260_v55 }
 0x441   : > { %17518 = vst [vmem:[#allocation86_spill] sm:$0xff] %v15282_v50  ;;  %v5458_v41 = vsel %vm5330_vm7, %v5394_v16, %v8892_v59  ;;  %v5364_v30 = vmul.f32 0.5, %v5300_v18  ;;  %v5365_v21 = vmul.f32 0.5, %v5301_v11  ;;  %v8894_v58 = vadd.f32 -0.5, %v5300_v18  ;;  %v15294_v16 = vpop.permute.xlu0 %5927 }
 0x442   : > { %17519 = vst [vmem:[#allocation68_spill] sm:$0xff] %v15286_v8  ;;  %v5459_v34 = vsel %vm5331_vm6, %v5395_v36, %v8893_v15  ;;  %v5648_v45 = vsub.f32 %v15228_v49, %v15018_v27  ;;  %v5272_v56 = vsub.f32 %v14981_v3, %v14780_v61  ;;  %v8895_v9 = vadd.f32 -0.5, %v5301_v11  ;;  %v17527_v8 = vld [vmem:[#allocation88_spill] sm:$0xff] }
 0x443   : > { %v5396_v38 = vmul.f32 %v5364_v30, %v5300_v18  ;;  %v5397_v10 = vmul.f32 %v5365_v21, %v5301_v11  ;;  %v5273_v19 = vsub.f32 %v14981_v3, %v14786_v28  ;;  %v15297_v54 = vadd.f32 %v5458_v41, %v17520_v20  ;;  %v15302_v30 = vpop.permute.xlu1 %5547  ;;  %v17522_v21 = vld [vmem:[#allocation44_spill] sm:$0xff] }
 0x444   : > { %vm5332_vm8 = vcmp.lt.f32.partialorder %v5300_v18, 1.0  ;;  %vm5333_vm9 = vcmp.lt.f32.partialorder %v5301_v11, 1.0  ;;  %v5304_v36 = vand.u32 2147483647, %v5272_v56  ;;  %v15300_v39 = vsub.s32 6, %v17521_v62  ;;  %v17526_v11 = vld [vmem:[#allocation84_spill] sm:$0xff] }
 0x445   : > { %v5460_v59 = vsel %vm5332_vm8, %v5396_v38, %v8894_v58  ;;  %v5461_v15 = vsel %vm5333_vm9, %v5397_v10, %v8895_v9  ;;  %v5305_v49 = vand.u32 2147483647, %v5273_v19  ;;  %v15305_v50 = vadd.f32 %v5459_v34, %v17522_v21  ;;  %v9885_v34 = vld [vmem:[%s16812_s6] sm:$0x7f] }
 0x446   : > { %v15308_v3 = vmul.f32 %v5742_v13, %v15260_v55  ;;  %v15311_v41 = vadd.f32 %v5460_v59, %v17524_v60  ;;  %v15313_v18 = vand.u32 2147483647, %v5648_v45  ;;  %v15316_v58 = vadd.f32 %v5461_v15, %v17526_v11  ;;  %v9886_v60 = vld [vmem:[%s16812_s6 + $0x8] sm:$0x7f]  ;;  %v15332_v59 = vpop.permute.xlu0 %5935 }
 0x447   : > { %vm5336_vm10 = vcmp.lt.f32.partialorder %v5304_v36, 1.0  ;;  %v5368_v56 = vmul.f32 0.5, %v5304_v36  ;;  %v5369_v62 = vmul.f32 0.5, %v5305_v49  ;;  %vm5337_vm11 = vcmp.lt.f32.partialorder %v5305_v49, 1.0 }
 0x448   : > { %17523 = vst [vmem:[#allocation81_spill] sm:$0xff] %v15308_v3  ;;  %17525 = vst [vmem:[#allocation27_spill] sm:$0xff] %v15313_v18  ;;  %v8898_v38 = vadd.f32 -0.5, %v5304_v36  ;;  %v15322_v13 = vrot.slane %v9885_v34, %v15300_v39  ;;  %v15328_v45 = vrot.slane %v9886_v60, %v15300_v39  ;;  %v8899_v19 = vadd.f32 -0.5, %v5305_v49  ;;  %v15346_v3 = vpop.permute.xlu1 %5555 }
 0x449   : > { %v5400_v10 = vmul.f32 %v5368_v56, %v5304_v36  ;;  %v5401_v9 = vmul.f32 %v5369_v62, %v5305_v49  ;;  %v5276_v20 = vsub.f32 %v15010_v25, %v14780_v61  ;;  %v5277_v11 = vsub.f32 %v15010_v25, %v14786_v28 }
 0x44a   : > { %v5978_v15 = vsub.f32 %v15251_v46, %v15322_v13  ;;  %v5979_v21 = vsub.f32 %v15251_v46, %v15328_v45  ;;  %v5984_v34 = vsub.f32 %v15269_v43, %v15322_v13  ;;  %v5985_v31 = vsub.f32 %v15269_v43, %v15328_v45  ;;  %v17528_v46 = vld [vmem:[#allocation71_spill] sm:$0xff] }
 0x44b   : > { %v5464_v56 = vsel %vm5336_vm10, %v5400_v10, %v8898_v38  ;;  %v5465_v62 = vsel %vm5337_vm11, %v5401_v9, %v8899_v19  ;;  %v5308_v60 = vand.u32 2147483647, %v5276_v20  ;;  %v5309_v57 = vand.u32 2147483647, %v5277_v11  ;;  %v15354_v20 = vpop.permute.xlu0 %5943 }
 0x44c   : > { %v15349_v51 = vadd.f32 %v5464_v56, %v17527_v8  ;;  %v15352_v29 = vadd.f32 %v5465_v62, %v17528_v46  ;;  %v6010_v25 = vand.u32 2147483647, %v5978_v15  ;;  %v6011_v6 = vand.u32 2147483647, %v5979_v21  ;;  %v15358_v42 = vpop.permute.xlu1 %5563 }
 0x44d   : > { %vm5340_vm12 = vcmp.lt.f32.partialorder %v5308_v60, 1.0  ;;  %v5372_v36 = vmul.f32 0.5, %v5308_v60  ;;  %v8902_v38 = vadd.f32 -0.5, %v5308_v60  ;;  %vm5341_vm15 = vcmp.lt.f32.partialorder %v5309_v57, 1.0 }
 0x44e   : > { %vm6042_vm13 = vcmp.lt.f32.partialorder %v6010_v25, 1.0  ;;  %vm6043_vm14 = vcmp.lt.f32.partialorder %v6011_v6, 1.0  ;;  %v6074_v49 = vmul.f32 0.5, %v6010_v25  ;;  %v6075_v10 = vmul.f32 0.5, %v6011_v6 }
 0x44f   : > { %v8952_v9 = vadd.f32 -0.5, %v6010_v25  ;;  %v8953_v43 = vadd.f32 -0.5, %v6011_v6  ;;  %v5373_v19 = vmul.f32 0.5, %v5309_v57  ;;  %v5404_v62 = vmul.f32 %v5372_v36, %v5308_v60 }
 0x450   : > { %v6106_v8 = vmul.f32 %v6074_v49, %v6010_v25  ;;  %v6107_v56 = vmul.f32 %v6075_v10, %v6011_v6  ;;  %v8903_v46 = vadd.f32 -0.5, %v5309_v57  ;;  %v6016_v21 = vand.u32 2147483647, %v5984_v34  ;;  %v17529_v34 = vld [vmem:[#allocation75_spill] sm:$0xff] }
 0x451   : > { %v5405_v15 = vmul.f32 %v5373_v19, %v5309_v57  ;;  %v6017_v11 = vand.u32 2147483647, %v5985_v31  ;;  %v5280_v40 = vsub.f32 %v15044_v7, %v14780_v61  ;;  %v5468_v18 = vsel %vm5340_vm12, %v5404_v62, %v8902_v38 }
 0x452   : > { %v6170_v55 = vsel %vm6042_vm13, %v6106_v8, %v8952_v9  ;;  %v6171_v44 = vsel %vm6043_vm14, %v6107_v56, %v8953_v43  ;;  %v5281_v49 = vsub.f32 %v15044_v7, %v14786_v28  ;;  %v15369_v19 = vadd.f32 %v5468_v18, %v17529_v34  ;;  %v15374_v7 = vpop.permute.xlu0 %5951  ;;  %v15382_v8 = vpop.permute.xlu1 %5571 }
 0x453   : > { %v6558_v36 = vadd.f32 %v6170_v55, %v15275_v5  ;;  %v6559_v10 = vadd.f32 %v6171_v44, %v15278_v22  ;;  %v5469_v31 = vsel %vm5341_vm15, %v5405_v15, %v8903_v46  ;;  %vm6048_vm0 = vcmp.lt.f32.partialorder %v6016_v21, 1.0 }
 0x454   : > { %v15372_v24 = vadd.f32 %v5469_v31, %v17530_v35  ;;  %vm6049_vm2 = vcmp.lt.f32.partialorder %v6017_v11, 1.0  ;;  %v6080_v6 = vmul.f32 0.5, %v6016_v21  ;;  %v6081_v38 = vmul.f32 0.5, %v6017_v11 }
 0x455   : > { %v6686_v60 = vmul.f32 0.33333334, %v6558_v36  ;;  %v6687_v25 = vmul.f32 0.33333334, %v6559_v10  ;;  %v8958_v9 = vadd.f32 -0.5, %v6016_v21  ;;  %v8959_v5 = vadd.f32 -0.5, %v6017_v11 }
 0x456   : > { %v6112_v55 = vmul.f32 %v6080_v6, %v6016_v21  ;;  %v5312_v44 = vand.u32 2147483647, %v5280_v40  ;;  %v5313_v57 = vand.u32 2147483647, %v5281_v49  ;;  %v6113_v22 = vmul.f32 %v6081_v38, %v6017_v11 }
 0x457   : > { %6718 = vst [vmem:[#allocation5] sm:$0xff] %v6686_v60  ;;  %6719 = vst [vmem:[#allocation5 + $0x8] sm:$0xff] %v6687_v25  ;;  %v5988_v35 = vsub.f32 %v15294_v16, %v15322_v13  ;;  %v5989_v18 = vsub.f32 %v15294_v16, %v15328_v45  ;;  %v5284_v43 = vsub.f32 %v15078_v17, %v14780_v61  ;;  %v15390_v25 = vpop.permute.xlu0 %5959 }
 0x458   : > { %v6176_v56 = vsel %vm6048_vm0, %v6112_v55, %v8958_v9  ;;  %vm5344_vm4 = vcmp.lt.f32.partialorder %v5312_v44, 1.0  ;;  %vm5345_vm5 = vcmp.lt.f32.partialorder %v5313_v57, 1.0  ;;  %v5376_v40 = vmul.f32 0.5, %v5312_v44 }
 0x459   : > { %v6177_v62 = vsel %vm6049_vm2, %v6113_v22, %v8959_v5  ;;  %v6564_v46 = vadd.f32 %v6176_v56, %v15311_v41  ;;  %v5377_v15 = vmul.f32 0.5, %v5313_v57  ;;  %v8906_v49 = vadd.f32 -0.5, %v5312_v44  ;;  %v15397_v22 = vpop.permute.xlu1 %5579 }
 0x45a   : > { %v6565_v36 = vadd.f32 %v6177_v62, %v15316_v58  ;;  %v5408_v10 = vmul.f32 %v5376_v40, %v5312_v44  ;;  %v8907_v16 = vadd.f32 -0.5, %v5313_v57  ;;  %v6020_v31 = vand.u32 2147483647, %v5988_v35  ;;  %v17531_v58 = vld [vmem:[#allocation32_spill] sm:$0xff]  ;;  %v17532_v35 = vld [vmem:[#allocation34_spill] sm:$0xff] }
 0x45b   : > { %v6692_v34 = vmul.f32 0.33333334, %v6564_v46  ;;  %v5409_v6 = vmul.f32 %v5377_v15, %v5313_v57  ;;  %v6021_v60 = vand.u32 2147483647, %v5989_v18  ;;  %v5285_v21 = vsub.f32 %v15078_v17, %v14786_v28 }
 0x45c   : > { %v6693_v38 = vmul.f32 0.33333334, %v6565_v36  ;;  %v5472_v11 = vsel %vm5344_vm4, %v5408_v10, %v8906_v49  ;;  %vm6052_vm7 = vcmp.lt.f32.partialorder %v6020_v31, 1.0  ;;  %v6084_v41 = vmul.f32 0.5, %v6020_v31 }
 0x45d   : > { %6724 = vst [vmem:[#allocation5 + $0x30] sm:$0xff] %v6692_v34  ;;  %v5473_v9 = vsel %vm5345_vm5, %v5409_v6, %v8907_v16  ;;  %v15395_v55 = vadd.f32 %v5472_v11, %v17531_v58  ;;  %vm6053_vm6 = vcmp.lt.f32.partialorder %v6021_v60, 1.0  ;;  %v6085_v5 = vmul.f32 0.5, %v6021_v60 }
 0x45e   : > { %6725 = vst [vmem:[#allocation5 + $0x38] sm:$0xff] %v6693_v38  ;;  %v15400_v17 = vadd.f32 %v5473_v9, %v17532_v35  ;;  %v6116_v18 = vmul.f32 %v6084_v41, %v6020_v31  ;;  %v8962_v56 = vadd.f32 -0.5, %v6020_v31  ;;  %v8963_v44 = vadd.f32 -0.5, %v6021_v60 }
 0x45f   : > { %v6117_v40 = vmul.f32 %v6085_v5, %v6021_v60  ;;  %v5316_v62 = vand.u32 2147483647, %v5284_v43  ;;  %v5317_v46 = vand.u32 2147483647, %v5285_v21  ;;  %v5992_v57 = vsub.f32 %v15332_v59, %v15322_v13  ;;  %v15413_v43 = vpop.permute.xlu0 %5967 }
 0x460   : > { %v6180_v15 = vsel %vm6052_vm7, %v6116_v18, %v8962_v56  ;;  %v5993_v49 = vsub.f32 %v15332_v59, %v15328_v45  ;;  %v5288_v36 = vsub.f32 %v15101_v52, %v14780_v61  ;;  %v5289_v10 = vsub.f32 %v15101_v52, %v14786_v28  ;;  %v15418_v52 = vpop.permute.xlu1 %5587 }
 0x461   : > { %v6181_v16 = vsel %vm6053_vm6, %v6117_v40, %v8963_v44  ;;  %v6568_v34 = vadd.f32 %v6180_v15, %v15349_v51  ;;  %vm5348_vm8 = vcmp.lt.f32.partialorder %v5316_v62, 1.0  ;;  %vm5349_vm9 = vcmp.lt.f32.partialorder %v5317_v46, 1.0 }
 0x462   : > { %v6569_v31 = vadd.f32 %v6181_v16, %v15352_v29  ;;  %v5380_v6 = vmul.f32 0.5, %v5316_v62  ;;  %v5381_v21 = vmul.f32 0.5, %v5317_v46  ;;  %v8910_v38 = vadd.f32 -0.5, %v5316_v62  ;;  %v17534_v16 = vld [vmem:[#allocation43_spill] sm:$0xff] }
 0x463   : > { %v6696_v59 = vmul.f32 0.33333334, %v6568_v34  ;;  %v8911_v11 = vadd.f32 -0.5, %v5317_v46  ;;  %v6024_v41 = vand.u32 2147483647, %v5992_v57  ;;  %v5996_v9 = vsub.f32 %v15354_v20, %v15322_v13  ;;  %v17533_v57 = vld [vmem:[#allocation35_spill] sm:$0xff] }
 0x464   : > { %v6697_v60 = vmul.f32 0.33333334, %v6569_v31  ;;  %v5412_v58 = vmul.f32 %v5380_v6, %v5316_v62  ;;  %v5413_v51 = vmul.f32 %v5381_v21, %v5317_v46  ;;  %v6025_v5 = vand.u32 2147483647, %v5993_v49  ;;  %v15428_v6 = vpop.permute.xlu0 %6207 }
 0x465   : > { %6728 = vst [vmem:[#allocation5 + $0x50] sm:$0xff] %v6696_v59  ;;  %vm6056_vm10 = vcmp.lt.f32.partialorder %v6024_v41, 1.0  ;;  %v6088_v35 = vmul.f32 0.5, %v6024_v41  ;;  %v8966_v18 = vadd.f32 -0.5, %v6024_v41  ;;  %v5320_v29 = vand.u32 2147483647, %v5288_v36 }
 0x466   : > { %6729 = vst [vmem:[#allocation5 + $0x58] sm:$0xff] %v6697_v60  ;;  %v5476_v56 = vsel %vm5348_vm8, %v5412_v58, %v8910_v38  ;;  %v5477_v44 = vsel %vm5349_vm9, %v5413_v51, %v8911_v11  ;;  %vm6057_vm11 = vcmp.lt.f32.partialorder %v6025_v5, 1.0  ;;  %v6089_v40 = vmul.f32 0.5, %v6025_v5  ;;  %v15433_v60 = vpop.permute.xlu1 %5595 }
 0x467   : > { %v15423_v15 = vadd.f32 %v5476_v56, %v17533_v57  ;;  %v15426_v34 = vadd.f32 %v5477_v44, %v17534_v16  ;;  %v6120_v31 = vmul.f32 %v6088_v35, %v6024_v41  ;;  %v8967_v49 = vadd.f32 -0.5, %v6025_v5 }
 0x468   : > { %v6121_v21 = vmul.f32 %v6089_v40, %v6025_v5  ;;  %v5321_v59 = vand.u32 2147483647, %v5289_v10  ;;  %vm5352_vm12 = vcmp.lt.f32.partialorder %v5320_v29, 1.0  ;;  %v5384_v36 = vmul.f32 0.5, %v5320_v29  ;;  %v15439_v5 = vpop.permute.xlu0 %6215 }
 0x469   : > { %v6184_v62 = vsel %vm6056_vm10, %v6120_v31, %v8966_v18  ;;  %v8914_v46 = vadd.f32 -0.5, %v5320_v29  ;;  %v5997_v38 = vsub.f32 %v15354_v20, %v15328_v45  ;;  %v6028_v11 = vand.u32 2147483647, %v5996_v9  ;;  %v17535_v31 = vld [vmem:[#allocation38_spill] sm:$0xff] }
 0x46a   : > { %v6185_v58 = vsel %vm6057_vm11, %v6121_v21, %v8967_v49  ;;  %v6572_v51 = vadd.f32 %v6184_v62, %v15369_v19  ;;  %vm5353_vm13 = vcmp.lt.f32.partialorder %v5321_v59, 1.0  ;;  %v5385_v35 = vmul.f32 0.5, %v5321_v59 }
 0x46b   : > { %v6573_v56 = vadd.f32 %v6185_v58, %v15372_v24  ;;  %v5416_v10 = vmul.f32 %v5384_v36, %v5320_v29  ;;  %v8915_v44 = vadd.f32 -0.5, %v5321_v59  ;;  %v6029_v40 = vand.u32 2147483647, %v5997_v38  ;;  %v17536_v36 = vld [vmem:[#allocation87_spill] sm:$0xff] }
 0x46c   : > { %v6700_v41 = vmul.f32 0.33333334, %v6572_v51  ;;  %v5417_v18 = vmul.f32 %v5385_v35, %v5321_v59  ;;  %vm6060_vm14 = vcmp.lt.f32.partialorder %v6028_v11, 1.0  ;;  %v6092_v57 = vmul.f32 0.5, %v6028_v11 }
 0x46d   : > { %v6701_v16 = vmul.f32 0.33333334, %v6573_v56  ;;  %v5480_v20 = vsel %vm5352_vm12, %v5416_v10, %v8914_v46  ;;  %vm6061_vm15 = vcmp.lt.f32.partialorder %v6029_v40, 1.0  ;;  %v6093_v9 = vmul.f32 0.5, %v6029_v40  ;;  %v15450_v46 = vpop.permute.xlu1 %5603 }
 0x46e   : > { %6732 = vst [vmem:[#allocation5 + $0x70] sm:$0xff] %v6700_v41  ;;  %v5481_v19 = vsel %vm5353_vm13, %v5417_v18, %v8915_v44  ;;  %v15443_v49 = vadd.f32 %v5480_v20, %v17535_v31  ;;  %v6124_v24 = vmul.f32 %v6092_v57, %v6028_v11  ;;  %v8970_v21 = vadd.f32 -0.5, %v6028_v11 }
 0x46f   : > { %6733 = vst [vmem:[#allocation5 + $0x78] sm:$0xff] %v6701_v16  ;;  %v15446_v62 = vadd.f32 %v5481_v19, %v17536_v36  ;;  %v6125_v38 = vmul.f32 %v6093_v9, %v6029_v40  ;;  %v8971_v58 = vadd.f32 -0.5, %v6029_v40  ;;  %v5292_v29 = vsub.f32 %v15125_v32, %v14780_v61  ;;  %v15464_v9 = vpop.permute.xlu0 %6223 }
 0x470   : > { %v6188_v51 = vsel %vm6060_vm14, %v6124_v24, %v8970_v21  ;;  %v5293_v59 = vsub.f32 %v15125_v32, %v14786_v28  ;;  %v6000_v35 = vsub.f32 %v15374_v7, %v15322_v13  ;;  %v6001_v56 = vsub.f32 %v15374_v7, %v15328_v45 }
 0x471   : > { %v6189_v10 = vsel %vm6061_vm15, %v6125_v38, %v8971_v58  ;;  %v6576_v44 = vadd.f32 %v6188_v51, %v15395_v55  ;;  %v5324_v41 = vand.u32 2147483647, %v5292_v29  ;;  %v5619_v61 = vsub.f32 %v15148_v48, %v15018_v27  ;;  %v15466_v31 = vpop.permute.xlu1 %5611 }
 0x472   : > { %v6577_v11 = vadd.f32 %v6189_v10, %v15400_v17  ;;  %v5325_v18 = vand.u32 2147483647, %v5293_v59  ;;  %v6032_v57 = vand.u32 2147483647, %v6000_v35  ;;  %v6033_v16 = vand.u32 2147483647, %v6001_v56 }
 0x473   : > { %v6704_v28 = vmul.f32 0.33333334, %v6576_v44  ;;  %vm5356_vm0 = vcmp.lt.f32.partialorder %v5324_v41, 1.0  ;;  %v5388_v32 = vmul.f32 0.5, %v5324_v41  ;;  %v8918_v20 = vadd.f32 -0.5, %v5324_v41  ;;  %v17537_v35 = vld [vmem:[#allocation92_spill] sm:$0xff] }
 0x474   : > { %v6705_v7 = vmul.f32 0.33333334, %v6577_v11  ;;  %vm5357_vm2 = vcmp.lt.f32.partialorder %v5325_v18, 1.0  ;;  %v5389_v40 = vmul.f32 0.5, %v5325_v18  ;;  %v8919_v19 = vadd.f32 -0.5, %v5325_v18  ;;  %v17538_v11 = vld [vmem:[#allocation50_spill] sm:$0xff] }
 0x475   : > { %6736 = vst [vmem:[#allocation5 + $0x90] sm:$0xff] %v6704_v28  ;;  %v5420_v55 = vmul.f32 %v5388_v32, %v5324_v41  ;;  %vm6064_vm4 = vcmp.lt.f32.partialorder %v6032_v57, 1.0  ;;  %vm6065_vm5 = vcmp.lt.f32.partialorder %v6033_v16, 1.0  ;;  %v6096_v48 = vmul.f32 0.5, %v6032_v57 }
 0x476   : > { %6737 = vst [vmem:[#allocation5 + $0x98] sm:$0xff] %v6705_v7  ;;  %v5421_v17 = vmul.f32 %v5389_v40, %v5325_v18  ;;  %v6097_v24 = vmul.f32 0.5, %v6033_v16  ;;  %v8974_v21 = vadd.f32 -0.5, %v6032_v57  ;;  %v8975_v36 = vadd.f32 -0.5, %v6033_v16 }
 0x477   : > { %v5484_v38 = vsel %vm5356_vm0, %v5420_v55, %v8918_v20  ;;  %v6128_v58 = vmul.f32 %v6096_v48, %v6032_v57  ;;  %v5651_v29 = vand.u32 2147483647, %v5619_v61  ;;  %v6004_v51 = vsub.f32 %v15390_v25, %v15322_v13  ;;  %v15481_v61 = vpop.permute.xlu0 %6231 }
 0x478   : > { %v5485_v59 = vsel %vm5357_vm2, %v5421_v17, %v8919_v19  ;;  %v15473_v56 = vadd.f32 %v5484_v38, %v17537_v35  ;;  %v6129_v10 = vmul.f32 %v6097_v24, %v6033_v16  ;;  %v6005_v44 = vsub.f32 %v15390_v25, %v15328_v45  ;;  %v15488_v17 = vpop.permute.xlu1 %5911 }
 0x479   : > { %v15478_v28 = vadd.f32 %v5485_v59, %v17538_v11  ;;  %v6192_v41 = vsel %vm6064_vm4, %v6128_v58, %v8974_v21  ;;  %vm5683_vm7 = vcmp.lt.f32.partialorder %v5651_v29, 1.0  ;;  %v5715_v32 = vmul.f32 0.5, %v5651_v29 }
 0x47a   : > { %v6193_v20 = vsel %vm6065_vm5, %v6129_v10, %v8975_v36  ;;  %v6580_v18 = vadd.f32 %v6192_v41, %v15423_v15  ;;  %v8921_v7 = vadd.f32 -0.5, %v5651_v29  ;;  %v6036_v40 = vand.u32 2147483647, %v6004_v51  ;;  %v17539_v36 = vld [vmem:[#allocation30_spill] sm:$0xff] }
 0x47b   : > { %v6581_v19 = vadd.f32 %v6193_v20, %v15426_v34  ;;  %v5747_v55 = vmul.f32 %v5715_v32, %v5651_v29  ;;  %v6037_v48 = vand.u32 2147483647, %v6005_v44  ;;  %v5621_v25 = vsub.f32 %v15172_v63, %v15018_v27  ;;  %v15500_v44 = vpop.permute.xlu0 %6239 }
 0x47c   : > { %v6708_v57 = vmul.f32 0.33333334, %v6580_v18  ;;  %vm6068_vm6 = vcmp.lt.f32.partialorder %v6036_v40, 1.0  ;;  %v6100_v24 = vmul.f32 0.5, %v6036_v40  ;;  %v8978_v21 = vadd.f32 -0.5, %v6036_v40 }
 0x47d   : > { %v6709_v38 = vmul.f32 0.33333334, %v6581_v19  ;;  %v5811_v16 = vsel %vm5683_vm7, %v5747_v55, %v8921_v7  ;;  %vm6069_vm8 = vcmp.lt.f32.partialorder %v6037_v48, 1.0  ;;  %v6101_v15 = vmul.f32 0.5, %v6037_v48  ;;  %v15505_v55 = vpop.permute.xlu1 %5915 }
 0x47e   : > { %6740 = vst [vmem:[#allocation5 + $0xb0] sm:$0xff] %v6708_v57  ;;  %v15492_v58 = vadd.f32 %v5811_v16, %v17539_v36  ;;  %v6132_v34 = vmul.f32 %v6100_v24, %v6036_v40  ;;  %v8979_v51 = vadd.f32 -0.5, %v6037_v48  ;;  %v5653_v59 = vand.u32 2147483647, %v5621_v25 }
 0x47f   : > { %6741 = vst [vmem:[#allocation5 + $0xb8] sm:$0xff] %v6709_v38  ;;  %v6133_v63 = vmul.f32 %v6101_v15, %v6037_v48  ;;  %v6008_v35 = vsub.f32 %v15413_v43, %v15322_v13  ;;  %v6009_v10 = vsub.f32 %v15413_v43, %v15328_v45  ;;  %v5623_v29 = vsub.f32 %v15186_v12, %v15018_v27  ;;  %v9887_v12 = vld [vmem:[%s10551_s30] sm:$0x7f]  ;;  %s328_s30 = scalar_lea.vmem [#allocation8], %s10137_s23 }
 0x480   : > { %v6196_v11 = vsel %vm6068_vm6, %v6132_v34, %v8978_v21  ;;  %vm5685_vm9 = vcmp.lt.f32.partialorder %v5653_v59, 1.0  ;;  %v5717_v41 = vmul.f32 0.5, %v5653_v59  ;;  %v8923_v32 = vadd.f32 -0.5, %v5653_v59  ;;  %v17540_v15 = vld [vmem:[#allocation61_spill] sm:$0xff] }
 0x481   : > { %v6197_v20 = vsel %vm6069_vm8, %v6133_v63, %v8979_v51  ;;  %v6584_v18 = vadd.f32 %v6196_v11, %v15443_v49  ;;  %v6040_v7 = vand.u32 2147483647, %v6008_v35  ;;  %v6041_v19 = vand.u32 2147483647, %v6009_v10  ;;  %v15514_v51 = vpop.permute.xlu0 %6247 }
 0x482   : > { %v6585_v43 = vadd.f32 %v6197_v20, %v15446_v62  ;;  %v5749_v25 = vmul.f32 %v5717_v41, %v5653_v59  ;;  %v5655_v57 = vand.u32 2147483647, %v5623_v29  ;;  %v15510_v24 = vrot.slane %v9887_v12, %v15300_v39 }
 0x483   : > { %v6712_v40 = vmul.f32 0.33333334, %v6584_v18  ;;  %vm6072_vm10 = vcmp.lt.f32.partialorder %v6040_v7, 1.0  ;;  %vm6073_vm11 = vcmp.lt.f32.partialorder %v6041_v19, 1.0  ;;  %v6104_v21 = vmul.f32 0.5, %v6040_v7 }
 0x484   : > { %v6713_v48 = vmul.f32 0.33333334, %v6585_v43  ;;  %v5813_v38 = vsel %vm5685_vm9, %v5749_v25, %v8923_v32  ;;  %v6105_v49 = vmul.f32 0.5, %v6041_v19  ;;  %v8982_v16 = vadd.f32 -0.5, %v6040_v7  ;;  %v15525_v32 = vpop.permute.xlu1 %5923 }
 0x485   : > { %6744 = vst [vmem:[#allocation5 + $0xd0] sm:$0xff] %v6712_v40  ;;  %v5877_v36 = vadd.f32 %v5813_v38, %v17540_v15  ;;  %v6136_v34 = vmul.f32 %v6104_v21, %v6040_v7  ;;  %v8983_v62 = vadd.f32 -0.5, %v6041_v19  ;;  %vm5687_vm12 = vcmp.lt.f32.partialorder %v5655_v57, 1.0 }
 0x486   : > { %6745 = vst [vmem:[#allocation5 + $0xd8] sm:$0xff] %v6713_v48  ;;  %v6137_v39 = vmul.f32 %v6105_v49, %v6041_v19  ;;  %v5719_v63 = vmul.f32 0.5, %v5655_v57  ;;  %v8925_v35 = vadd.f32 -0.5, %v5655_v57  ;;  %v6335_v10 = vsub.f32 %v15428_v6, %v15510_v24  ;;  %v15532_v19 = vpop.permute.xlu0 %6255 }
 0x487   : > { %v6200_v59 = vsel %vm6072_vm10, %v6136_v34, %v8982_v16  ;;  %v5625_v29 = vsub.f32 %v15211_v4, %v15018_v27  ;;  %v6337_v11 = vsub.f32 %v15439_v5, %v15510_v24  ;;  %v5627_v41 = vsub.f32 %v15235_v47, %v15018_v27  ;;  %v17541_v47 = vld [vmem:[#allocation21_spill] sm:$0xff] }
 0x488   : > { %v6201_v20 = vsel %vm6073_vm11, %v6137_v39, %v8983_v62  ;;  %v6588_v18 = vadd.f32 %v6200_v59, %v15473_v56  ;;  %v5751_v43 = vmul.f32 %v5719_v63, %v5655_v57  ;;  %v6367_v25 = vand.u32 2147483647, %v6335_v10  ;;  %v15534_v62 = vpop.permute.xlu1 %5931 }
 0x489   : > { %v6589_v6 = vadd.f32 %v6201_v20, %v15478_v28  ;;  %v5657_v7 = vand.u32 2147483647, %v5625_v29  ;;  %v6369_v12 = vand.u32 2147483647, %v6337_v11  ;;  %v5659_v40 = vand.u32 2147483647, %v5627_v41 }
 0x48a   : > { %v6716_v4 = vmul.f32 0.33333334, %v6588_v18  ;;  %v5815_v21 = vsel %vm5687_vm12, %v5751_v43, %v8925_v35  ;;  %vm6399_vm13 = vcmp.lt.f32.partialorder %v6367_v25, 1.0  ;;  %v6431_v5 = vmul.f32 0.5, %v6367_v25 }
 0x48b   : > { %v6717_v48 = vmul.f32 0.33333334, %v6589_v6  ;;  %v5879_v38 = vadd.f32 %v5815_v21, %v17541_v47  ;;  %v8985_v49 = vadd.f32 -0.5, %v6367_v25  ;;  %vm5689_vm14 = vcmp.lt.f32.partialorder %v5657_v7, 1.0 }
 0x48c   : > { %6748 = vst [vmem:[#allocation5 + $0xf0] sm:$0xff] %v6716_v4  ;;  %v6463_v56 = vmul.f32 %v6431_v5, %v6367_v25  ;;  %v5721_v16 = vmul.f32 0.5, %v5657_v7  ;;  %v8927_v15 = vadd.f32 -0.5, %v5657_v7  ;;  %vm6401_vm15 = vcmp.lt.f32.partialorder %v6369_v12, 1.0  ;;  %v17542_v4 = vld [vmem:[#allocation78_spill] sm:$0xff]  ;;  %v15550_v5 = vpop.permute.xlu0 %6263 }
 0x48d   : > { %6749 = vst [vmem:[#allocation5 + $0xf8] sm:$0xff] %v6717_v48  ;;  %v6433_v28 = vmul.f32 0.5, %v6369_v12  ;;  %v8987_v34 = vadd.f32 -0.5, %v6369_v12  ;;  %vm5691_vm0 = vcmp.lt.f32.partialorder %v5659_v40, 1.0  ;;  %v5723_v57 = vmul.f32 0.5, %v5659_v40 }
 0x48e   : > { %v6527_v39 = vsel %vm6399_vm13, %v6463_v56, %v8985_v49  ;;  %v5753_v63 = vmul.f32 %v5721_v16, %v5657_v7  ;;  %v8929_v35 = vadd.f32 -0.5, %v5659_v40  ;;  %v6339_v10 = vsub.f32 %v15464_v9, %v15510_v24  ;;  %v15555_v16 = vpop.permute.xlu1 %5939 }
 0x48f   : > { %v6591_v59 = vadd.f32 %v6527_v39, %v15492_v58  ;;  %v6465_v29 = vmul.f32 %v6433_v28, %v6369_v12  ;;  %v5755_v11 = vmul.f32 %v5723_v57, %v5659_v40  ;;  %v5629_v41 = vsub.f32 %v15255_v37, %v15018_v27  ;;  %v17543_v37 = vld [vmem:[#allocation80_spill] sm:$0xff] }
 0x490   : > { %v5817_v20 = vsel %vm5689_vm14, %v5753_v63, %v8927_v15  ;;  %v6371_v18 = vand.u32 2147483647, %v6339_v10  ;;  %v6341_v43 = vsub.f32 %v15481_v61, %v15510_v24  ;;  %v5631_v25 = vsub.f32 %v15280_v53, %v15018_v27 }
 0x491   : > { %v6815_v6 = vmul.f32 0.33333334, %v6591_v59  ;;  %v5881_v21 = vadd.f32 %v5817_v20, %v17542_v4  ;;  %v6529_v9 = vsel %vm6401_vm15, %v6465_v29, %v8987_v34  ;;  %v5819_v58 = vsel %vm5691_vm0, %v5755_v11, %v8929_v35  ;;  %v15560_v29 = vpop.permute.xlu0 %6271 }
 0x492   : > { %v6593_v48 = vadd.f32 %v6529_v9, %v5877_v36  ;;  %v5883_v7 = vadd.f32 %v5819_v58, %v17543_v37  ;;  %vm6403_vm2 = vcmp.lt.f32.partialorder %v6371_v18, 1.0  ;;  %v6435_v47 = vmul.f32 0.5, %v6371_v18  ;;  %v15567_v4 = vpop.permute.xlu1 %5947 }
 0x493   : > { %6847 = vst [vmem:[#allocation7 + $0xc8] sm:$0xff] %v6815_v6  ;;  %v8989_v49 = vadd.f32 -0.5, %v6371_v18  ;;  %v5661_v61 = vand.u32 2147483647, %v5629_v41  ;;  %v6373_v56 = vand.u32 2147483647, %v6341_v43  ;;  %v6343_v53 = vsub.f32 %v15500_v44, %v15510_v24 }
 0x494   : > { %v6817_v12 = vmul.f32 0.33333334, %v6593_v48  ;;  %v6467_v15 = vmul.f32 %v6435_v47, %v6371_v18  ;;  %v5663_v40 = vand.u32 2147483647, %v5631_v25  ;;  %v5633_v28 = vsub.f32 %v15302_v30, %v15018_v27 }
 0x495   : > { %vm5693_vm4 = vcmp.lt.f32.partialorder %v5661_v61, 1.0  ;;  %v5725_v36 = vmul.f32 0.5, %v5661_v61  ;;  %v8931_v34 = vadd.f32 -0.5, %v5661_v61  ;;  %vm6405_vm5 = vcmp.lt.f32.partialorder %v6373_v56, 1.0 }
 0x496   : > { %6849 = vst [vmem:[#allocation7 + $0x78] sm:$0xff] %v6817_v12  ;;  %v6531_v57 = vsel %vm6403_vm2, %v6467_v15, %v8989_v49  ;;  %v6437_v39 = vmul.f32 0.5, %v6373_v56  ;;  %v8991_v63 = vadd.f32 -0.5, %v6373_v56  ;;  %vm5695_vm7 = vcmp.lt.f32.partialorder %v5663_v40, 1.0  ;;  %v17545_v49 = vld [vmem:[#allocation85_spill] sm:$0xff] }
 0x497   : > { %v6595_v35 = vadd.f32 %v6531_v57, %v5879_v38  ;;  %v5757_v44 = vmul.f32 %v5725_v36, %v5661_v61  ;;  %v5727_v10 = vmul.f32 0.5, %v5663_v40  ;;  %v8933_v59 = vadd.f32 -0.5, %v5663_v40  ;;  %v17544_v38 = vld [vmem:[#allocation79_spill] sm:$0xff] }
 0x498   : > { %v6469_v11 = vmul.f32 %v6437_v39, %v6373_v56  ;;  %v6375_v41 = vand.u32 2147483647, %v6343_v53  ;;  %v5665_v20 = vand.u32 2147483647, %v5633_v28  ;;  %v6345_v30 = vsub.f32 %v15514_v51, %v15510_v24 }
 0x499   : > { %v6819_v43 = vmul.f32 0.33333334, %v6595_v35  ;;  %v5821_v25 = vsel %vm5693_vm4, %v5757_v44, %v8931_v34  ;;  %v5759_v18 = vmul.f32 %v5727_v10, %v5663_v40  ;;  %v5635_v6 = vsub.f32 %v15346_v3, %v15018_v27  ;;  %v6280_v34 = vpop.permute.xlu0 %6279  ;;  %v15580_v10 = vpop.permute.xlu1 %5955 }
 0x49a   : > { %v5885_v9 = vadd.f32 %v5821_v25, %v17544_v38  ;;  %v6533_v58 = vsel %vm6405_vm5, %v6469_v11, %v8991_v63  ;;  %vm6407_vm6 = vcmp.lt.f32.partialorder %v6375_v41, 1.0  ;;  %v6439_v48 = vmul.f32 0.5, %v6375_v41 }
 0x49b   : > { %6851 = vst [vmem:[#allocation7 + $0x90] sm:$0xff] %v6819_v43  ;;  %v6597_v37 = vadd.f32 %v6533_v58, %v5881_v21  ;;  %v5823_v47 = vsel %vm5695_vm7, %v5759_v18, %v8933_v59  ;;  %v8993_v51 = vadd.f32 -0.5, %v6375_v41  ;;  %vm5697_vm8 = vcmp.lt.f32.partialorder %v5665_v20, 1.0 }
 0x49c   : > { %v5887_v61 = vadd.f32 %v5823_v47, %v17545_v49  ;;  %v6471_v53 = vmul.f32 %v6439_v48, %v6375_v41  ;;  %v5729_v12 = vmul.f32 0.5, %v5665_v20  ;;  %v8935_v15 = vadd.f32 -0.5, %v5665_v20  ;;  %v17547_v49 = vld [vmem:[#allocation36_spill] sm:$0xff] }
 0x49d   : > { %v6821_v3 = vmul.f32 0.33333334, %v6597_v37  ;;  %v6377_v28 = vand.u32 2147483647, %v6345_v30  ;;  %v5667_v36 = vand.u32 2147483647, %v5635_v6  ;;  %v6347_v56 = vsub.f32 %v15532_v19, %v15510_v24  ;;  %v15587_v48 = vpop.permute.xlu0 %6287 }
 0x49e   : > { %v6535_v57 = vsel %vm6407_vm6, %v6471_v53, %v8993_v51  ;;  %v5761_v39 = vmul.f32 %v5729_v12, %v5665_v20  ;;  %v5637_v21 = vsub.f32 %v15358_v42, %v15018_v27  ;;  %v6349_v40 = vsub.f32 %v15550_v5, %v15510_v24  ;;  %v17546_v30 = vld [vmem:[#allocation51_spill] sm:$0xff] }
 0x49f   : > { %6853 = vst [vmem:[#allocation7 + $0xa8] sm:$0xff] %v6821_v3  ;;  %v6599_v63 = vadd.f32 %v6535_v57, %v5883_v7  ;;  %vm6409_vm9 = vcmp.lt.f32.partialorder %v6377_v28, 1.0  ;;  %v6441_v35 = vmul.f32 0.5, %v6377_v28  ;;  %v8995_v44 = vadd.f32 -0.5, %v6377_v28  ;;  %v15591_v3 = vpop.permute.xlu1 %5963 }
 0x4a0   : > { %v5825_v59 = vsel %vm5697_vm8, %v5761_v39, %v8935_v15  ;;  %vm5699_vm10 = vcmp.lt.f32.partialorder %v5667_v36, 1.0  ;;  %v5731_v19 = vmul.f32 0.5, %v5667_v36  ;;  %v8937_v11 = vadd.f32 -0.5, %v5667_v36 }
 0x4a1   : > { %v6823_v41 = vmul.f32 0.33333334, %v6599_v63  ;;  %v5889_v43 = vadd.f32 %v5825_v59, %v17546_v30  ;;  %v6473_v25 = vmul.f32 %v6441_v35, %v6377_v28  ;;  %v6379_v42 = vand.u32 2147483647, %v6347_v56  ;;  %v17548_v59 = vld [vmem:[#allocation23_spill] sm:$0xff]  ;;  %v6296_v30 = vpop.permute.xlu0 %6295 }
 0x4a2   : > { %v5763_v18 = vmul.f32 %v5731_v19, %v5667_v36  ;;  %v5669_v6 = vand.u32 2147483647, %v5637_v21  ;;  %v6381_v5 = vand.u32 2147483647, %v6349_v40  ;;  %v5639_v7 = vsub.f32 %v15382_v8, %v15018_v27 }
 0x4a3   : > { %6855 = vst [vmem:[#allocation7 + $0xb0] sm:$0xff] %v6823_v41  ;;  %v6537_v38 = vsel %vm6409_vm9, %v6473_v25, %v8995_v44  ;;  %vm6411_vm11 = vcmp.lt.f32.partialorder %v6379_v42, 1.0  ;;  %v6443_v20 = vmul.f32 0.5, %v6379_v42  ;;  %v8997_v58 = vadd.f32 -0.5, %v6379_v42 }
 0x4a4   : > { %v6601_v37 = vadd.f32 %v6537_v38, %v5885_v9  ;;  %v5827_v47 = vsel %vm5699_vm10, %v5763_v18, %v8937_v11  ;;  %vm5701_vm12 = vcmp.lt.f32.partialorder %v5669_v6, 1.0  ;;  %v5733_v51 = vmul.f32 0.5, %v5669_v6 }
 0x4a5   : > { %v5891_v53 = vadd.f32 %v5827_v47, %v17547_v49  ;;  %v6475_v12 = vmul.f32 %v6443_v20, %v6379_v42  ;;  %v8939_v15 = vadd.f32 -0.5, %v5669_v6  ;;  %vm6413_vm13 = vcmp.lt.f32.partialorder %v6381_v5, 1.0 }
 0x4a6   : > { %v6825_v8 = vmul.f32 0.33333334, %v6601_v37  ;;  %v5765_v28 = vmul.f32 %v5733_v51, %v5669_v6  ;;  %v6445_v56 = vmul.f32 0.5, %v6381_v5  ;;  %v8999_v57 = vadd.f32 -0.5, %v6381_v5  ;;  %v15604_v6 = vpop.permute.xlu1 %6203  ;;  %v17549_v51 = vld [vmem:[#allocation31_spill] sm:$0xff] }
 0x4a7   : > { %v6539_v39 = vsel %vm6411_vm11, %v6475_v12, %v8997_v58  ;;  %v5671_v21 = vand.u32 2147483647, %v5639_v7  ;;  %v6351_v9 = vsub.f32 %v15560_v29, %v15510_v24  ;;  %v5641_v36 = vsub.f32 %v15397_v22, %v15018_v27 }
 0x4a8   : > { %6857 = vst [vmem:[#allocation7 + $0x40] sm:$0xff] %v6825_v8  ;;  %v6603_v40 = vadd.f32 %v6539_v39, %v5887_v61  ;;  %v5829_v63 = vsel %vm5701_vm12, %v5765_v28, %v8939_v15  ;;  %v6477_v35 = vmul.f32 %v6445_v56, %v6381_v5  ;;  %v6353_v44 = vsub.f32 %v6280_v34, %v15510_v24  ;;  %v6304_v56 = vpop.permute.xlu0 %6303 }
 0x4a9   : > { %v5893_v19 = vadd.f32 %v5829_v63, %v17548_v59  ;;  %vm5703_vm14 = vcmp.lt.f32.partialorder %v5671_v21, 1.0  ;;  %v5735_v11 = vmul.f32 0.5, %v5671_v21  ;;  %v8941_v41 = vadd.f32 -0.5, %v5671_v21 }
 0x4aa   : > { %v6827_v25 = vmul.f32 0.33333334, %v6603_v40  ;;  %v6541_v42 = vsel %vm6413_vm13, %v6477_v35, %v8999_v57  ;;  %v6383_v29 = vand.u32 2147483647, %v6351_v9  ;;  %v5673_v18 = vand.u32 2147483647, %v5641_v36  ;;  %v15615_v35 = vpop.permute.xlu1 %6211 }
 0x4ab   : > { %v6605_v7 = vadd.f32 %v6541_v42, %v5889_v43  ;;  %v5767_v22 = vmul.f32 %v5735_v11, %v5671_v21  ;;  %v6385_v38 = vand.u32 2147483647, %v6353_v44  ;;  %v5643_v61 = vsub.f32 %v15418_v52, %v15018_v27  ;;  %v17550_v44 = vld [vmem:[#allocation37_spill] sm:$0xff] }
 0x4ac   : > { %6859 = vst [vmem:[#allocation7 + $0x60] sm:$0xff] %v6827_v25  ;;  %vm6415_vm15 = vcmp.lt.f32.partialorder %v6383_v29, 1.0  ;;  %v6447_v34 = vmul.f32 0.5, %v6383_v29  ;;  %v9001_v20 = vadd.f32 -0.5, %v6383_v29  ;;  %vm5705_vm0 = vcmp.lt.f32.partialorder %v5673_v18, 1.0 }
 0x4ad   : > { %v6829_v58 = vmul.f32 0.33333334, %v6605_v7  ;;  %v5831_v37 = vsel %vm5703_vm14, %v5767_v22, %v8941_v41  ;;  %v5737_v5 = vmul.f32 0.5, %v5673_v18  ;;  %v8943_v47 = vadd.f32 -0.5, %v5673_v18 }
 0x4ae   : > { %v5895_v49 = vadd.f32 %v5831_v37, %v17549_v51  ;;  %v6479_v43 = vmul.f32 %v6447_v34, %v6383_v29  ;;  %vm6417_vm2 = vcmp.lt.f32.partialorder %v6385_v38, 1.0  ;;  %v6449_v12 = vmul.f32 0.5, %v6385_v38  ;;  %v6312_v34 = vpop.permute.xlu0 %6311 }
 0x4af   : > { %6861 = vst [vmem:[#allocation7 + $0x68] sm:$0xff] %v6829_v58  ;;  %v5769_v15 = vmul.f32 %v5737_v5, %v5673_v18  ;;  %v9003_v52 = vadd.f32 -0.5, %v6385_v38  ;;  %v5675_v8 = vand.u32 2147483647, %v5643_v61  ;;  %v6355_v28 = vsub.f32 %v15587_v48, %v15510_v24 }
 0x4b0   : > { %v6543_v57 = vsel %vm6415_vm15, %v6479_v43, %v9001_v20  ;;  %v6481_v39 = vmul.f32 %v6449_v12, %v6385_v38  ;;  %v5645_v21 = vsub.f32 %v15433_v60, %v15018_v27  ;;  %v6357_v9 = vsub.f32 %v6296_v30, %v15510_v24  ;;  %v17551_v20 = vld [vmem:[#allocation77_spill] sm:$0xff]  ;;  %v15623_v43 = vpop.permute.xlu1 %6219 }
 0x4b1   : > { %v6607_v36 = vadd.f32 %v6543_v57, %v5891_v53  ;;  %v5833_v40 = vsel %vm5705_vm0, %v5769_v15, %v8943_v47  ;;  %vm5707_vm4 = vcmp.lt.f32.partialorder %v5675_v8, 1.0  ;;  %v5739_v63 = vmul.f32 0.5, %v5675_v8 }
 0x4b2   : > { %v5897_v59 = vadd.f32 %v5833_v40, %v17550_v44  ;;  %v6545_v48 = vsel %vm6417_vm2, %v6481_v39, %v9003_v52  ;;  %v8945_v11 = vadd.f32 -0.5, %v5675_v8  ;;  %v6387_v41 = vand.u32 2147483647, %v6355_v28 }
 0x4b3   : > { %v6831_v25 = vmul.f32 0.33333334, %v6607_v36  ;;  %v6609_v42 = vadd.f32 %v6545_v48, %v5893_v19  ;;  %v5771_v29 = vmul.f32 %v5739_v63, %v5675_v8  ;;  %v5677_v7 = vand.u32 2147483647, %v5645_v21 }
 0x4b4   : > { %vm6419_vm5 = vcmp.lt.f32.partialorder %v6387_v41, 1.0  ;;  %v6451_v60 = vmul.f32 0.5, %v6387_v41  ;;  %v9005_v30 = vadd.f32 -0.5, %v6387_v41  ;;  %v6389_v53 = vand.u32 2147483647, %v6357_v9  ;;  %v17552_v9 = vld [vmem:[#allocation45_spill] sm:$0xff] }
 0x4b5   : > { %6863 = vst [vmem:[#allocation7 + $0x70] sm:$0xff] %v6831_v25  ;;  %v6833_v18 = vmul.f32 0.33333334, %v6609_v42  ;;  %v5835_v22 = vsel %vm5707_vm4, %v5771_v29, %v8945_v11  ;;  %vm5709_vm7 = vcmp.lt.f32.partialorder %v5677_v7, 1.0  ;;  %v5741_v61 = vmul.f32 0.5, %v5677_v7  ;;  %v15633_v42 = vpop.permute.xlu1 %6227 }
 0x4b6   : > { %v5899_v38 = vadd.f32 %v5835_v22, %v17551_v20  ;;  %v6483_v58 = vmul.f32 %v6451_v60, %v6387_v41  ;;  %v8947_v37 = vadd.f32 -0.5, %v5677_v7  ;;  %vm6421_vm6 = vcmp.lt.f32.partialorder %v6389_v53, 1.0 }
 0x4b7   : > { %6865 = vst [vmem:[#allocation7 + $0xa0] sm:$0xff] %v6833_v18  ;;  %v5773_v19 = vmul.f32 %v5741_v61, %v5677_v7  ;;  %v6453_v5 = vmul.f32 0.5, %v6389_v53  ;;  %v9007_v47 = vadd.f32 -0.5, %v6389_v53  ;;  %v5647_v51 = vsub.f32 %v15450_v46, %v15018_v27  ;;  %v17553_v61 = vld [vmem:[#allocation17_spill] sm:$0xff] }
 0x4b8   : > { %v6547_v12 = vsel %vm6419_vm5, %v6483_v58, %v9005_v30  ;;  %v6359_v15 = vsub.f32 %v6304_v56, %v15510_v24  ;;  %v5649_v52 = vsub.f32 %v15466_v31, %v15018_v27  ;;  %v6361_v8 = vsub.f32 %v6312_v34, %v15510_v24  ;;  %v6320_v30 = vpop.permute.xlu0 %6319 }
 0x4b9   : > { %v6611_v28 = vadd.f32 %v6547_v12, %v5895_v49  ;;  %v5837_v57 = vsel %vm5709_vm7, %v5773_v19, %v8947_v37  ;;  %v6485_v39 = vmul.f32 %v6453_v5, %v6389_v53  ;;  %v5679_v21 = vand.u32 2147483647, %v5647_v51  ;;  %v17554_v12 = vld [vmem:[#allocation67_spill] sm:$0xff] }
 0x4ba   : > { %v5901_v36 = vadd.f32 %v5837_v57, %v17552_v9  ;;  %v6391_v40 = vand.u32 2147483647, %v6359_v15  ;;  %v5681_v46 = vand.u32 2147483647, %v5649_v52  ;;  %v6393_v63 = vand.u32 2147483647, %v6361_v8 }
 0x4bb   : > { %v6835_v44 = vmul.f32 0.33333334, %v6611_v28  ;;  %v6549_v48 = vsel %vm6421_vm6, %v6485_v39, %v9007_v47  ;;  %vm5711_vm8 = vcmp.lt.f32.partialorder %v5679_v21, 1.0  ;;  %v5743_v56 = vmul.f32 0.5, %v5679_v21 }
 0x4bc   : > { %v6613_v11 = vadd.f32 %v6549_v48, %v5897_v59  ;;  %v8949_v41 = vadd.f32 -0.5, %v5679_v21  ;;  %vm6423_vm9 = vcmp.lt.f32.partialorder %v6391_v40, 1.0  ;;  %v6455_v27 = vmul.f32 0.5, %v6391_v40 }
 0x4bd   : > { %6867 = vst [vmem:[#allocation7 + $0x30] sm:$0xff] %v6835_v44  ;;  %v5775_v31 = vmul.f32 %v5743_v56, %v5679_v21  ;;  %v9009_v49 = vadd.f32 -0.5, %v6391_v40  ;;  %vm5713_vm10 = vcmp.lt.f32.partialorder %v5681_v46, 1.0  ;;  %v5745_v25 = vmul.f32 0.5, %v5681_v46 }
 0x4be   : > { %v6837_v29 = vmul.f32 0.33333334, %v6613_v11  ;;  %v6487_v7 = vmul.f32 %v6455_v27, %v6391_v40  ;;  %v8951_v60 = vadd.f32 -0.5, %v5681_v46  ;;  %vm6425_vm11 = vcmp.lt.f32.partialorder %v6393_v63, 1.0 }
 0x4bf   : > { %v5839_v53 = vsel %vm5711_vm8, %v5775_v31, %v8949_v41  ;;  %v5777_v18 = vmul.f32 %v5745_v25, %v5681_v46  ;;  %v6457_v22 = vmul.f32 0.5, %v6393_v63  ;;  %v9011_v59 = vadd.f32 -0.5, %v6393_v63  ;;  %v6328_v46 = vpop.permute.xlu0 %6327 }
 0x4c0   : > { %6869 = vst [vmem:[#allocation7 + $0xf0] sm:$0xff] %v6837_v29  ;;  %v5903_v34 = vadd.f32 %v5839_v53, %v17553_v61  ;;  %v6551_v20 = vsel %vm6423_vm9, %v6487_v7, %v9009_v49  ;;  %v5980_v58 = vsub.f32 %v15488_v17, %v15322_v13  ;;  %v5981_v37 = vsub.f32 %v15488_v17, %v15328_v45  ;;  %v17555_v53 = vld [vmem:[#allocation102_spill] sm:$0xff] }
 0x4c1   : > { %v6615_v19 = vadd.f32 %v6551_v20, %v5899_v38  ;;  %v5841_v5 = vsel %vm5713_vm10, %v5777_v18, %v8951_v60  ;;  %v6489_v47 = vmul.f32 %v6457_v22, %v6393_v63  ;;  %v6363_v51 = vsub.f32 %v6320_v30, %v15510_v24  ;;  %v15652_v38 = vpop.permute.xlu1 %6235 }
 0x4c2   : > { %v15645_v15 = vadd.f32 %v5841_v5, %v17554_v12  ;;  %v6012_v52 = vand.u32 2147483647, %v5980_v58  ;;  %v6013_v8 = vand.u32 2147483647, %v5981_v37  ;;  %v5982_v28 = vsub.f32 %v15505_v55, %v15322_v13 }
 0x4c3   : > { %v6839_v57 = vmul.f32 0.33333334, %v6615_v19  ;;  %v6553_v39 = vsel %vm6425_vm11, %v6489_v47, %v9011_v59  ;;  %v6395_v21 = vand.u32 2147483647, %v6363_v51  ;;  %v5983_v17 = vsub.f32 %v15505_v55, %v15328_v45  ;;  %v17556_v59 = vld [vmem:[#allocation89_spill] sm:$0xff] }
 0x4c4   : > { %v6617_v9 = vadd.f32 %v6553_v39, %v5901_v36  ;;  %vm6044_vm12 = vcmp.lt.f32.partialorder %v6012_v52, 1.0  ;;  %vm6045_vm13 = vcmp.lt.f32.partialorder %v6013_v8, 1.0  ;;  %v6076_v40 = vmul.f32 0.5, %v6012_v52 }
 0x4c5   : > { %6871 = vst [vmem:[#allocation7 + $0x48] sm:$0xff] %v6839_v57  ;;  %v6077_v44 = vmul.f32 0.5, %v6013_v8  ;;  %v8954_v48 = vadd.f32 -0.5, %v6012_v52  ;;  %v8955_v56 = vadd.f32 -0.5, %v6013_v8  ;;  %vm6427_vm14 = vcmp.lt.f32.partialorder %v6395_v21, 1.0  ;;  %v15662_v22 = vpop.permute.xlu1 %6243 }
 0x4c6   : > { %v6841_v11 = vmul.f32 0.33333334, %v6617_v9  ;;  %v6108_v41 = vmul.f32 %v6076_v40, %v6012_v52  ;;  %v6459_v63 = vmul.f32 0.5, %v6395_v21  ;;  %v9013_v27 = vadd.f32 -0.5, %v6395_v21 }
 0x4c7   : > { %v6109_v31 = vmul.f32 %v6077_v44, %v6013_v8  ;;  %v6014_v49 = vand.u32 2147483647, %v5982_v28  ;;  %v6015_v25 = vand.u32 2147483647, %v5983_v17  ;;  %v6365_v55 = vsub.f32 %v6328_v46, %v15510_v24 }
 0x4c8   : > { %6873 = vst [vmem:[#allocation7 + $0xc0] sm:$0xff] %v6841_v11  ;;  %v6172_v36 = vsel %vm6044_vm12, %v6108_v41, %v8954_v48  ;;  %v6491_v29 = vmul.f32 %v6459_v63, %v6395_v21  ;;  %v5986_v7 = vsub.f32 %v15525_v32, %v15322_v13  ;;  %v5987_v60 = vsub.f32 %v15525_v32, %v15328_v45 }
 0x4c9   : > { %v6173_v30 = vsel %vm6045_vm13, %v6109_v31, %v8955_v56  ;;  %v6560_v18 = vadd.f32 %v6172_v36, %v17555_v53  ;;  %vm6046_vm15 = vcmp.lt.f32.partialorder %v6014_v49, 1.0  ;;  %vm6047_vm0 = vcmp.lt.f32.partialorder %v6015_v25, 1.0  ;;  %v15672_v48 = vpop.permute.xlu1 %6251 }
 0x4ca   : > { %v6561_v61 = vadd.f32 %v6173_v30, %v17556_v59  ;;  %v6555_v20 = vsel %vm6427_vm14, %v6491_v29, %v9013_v27  ;;  %v6078_v58 = vmul.f32 0.5, %v6014_v49  ;;  %v6079_v37 = vmul.f32 0.5, %v6015_v25 }
 0x4cb   : > { %v6688_v19 = vmul.f32 0.33333334, %v6560_v18  ;;  %v6619_v5 = vadd.f32 %v6555_v20, %v5903_v34  ;;  %v8956_v47 = vadd.f32 -0.5, %v6014_v49  ;;  %v8957_v51 = vadd.f32 -0.5, %v6015_v25 }
 0x4cc   : > { %v6689_v12 = vmul.f32 0.33333334, %v6561_v61  ;;  %v6110_v32 = vmul.f32 %v6078_v58, %v6014_v49  ;;  %v6111_v52 = vmul.f32 %v6079_v37, %v6015_v25  ;;  %v6397_v8 = vand.u32 2147483647, %v6365_v55 }
 0x4cd   : > { %6720 = vst [vmem:[#allocation5 + $0x10] sm:$0xff] %v6688_v19  ;;  %v6843_v28 = vmul.f32 0.33333334, %v6619_v5  ;;  %v6018_v57 = vand.u32 2147483647, %v5986_v7  ;;  %v5990_v17 = vsub.f32 %v15534_v62, %v15322_v13  ;;  %v5994_v7 = vsub.f32 %v15555_v16, %v15322_v13  ;;  %v15688_v20 = vpop.permute.xlu1 %6259 }
 0x4ce   : > { %v6019_v39 = vand.u32 2147483647, %v5987_v60  ;;  %6721 = vst [vmem:[#allocation5 + $0x18] sm:$0xff] %v6689_v12  ;;  %v6174_v21 = vsel %vm6046_vm15, %v6110_v32, %v8956_v47  ;;  %v6175_v9 = vsel %vm6047_vm0, %v6111_v52, %v8957_v51  ;;  %vm6429_vm2 = vcmp.lt.f32.partialorder %v6397_v8, 1.0 }
 0x4cf   : > { %v6461_v34 = vmul.f32 0.5, %v6397_v8  ;;  %6875 = vst [vmem:[#allocation7] sm:$0xff] %v6843_v28  ;;  %v6562_v40 = vadd.f32 %v6174_v21, %v15297_v54  ;;  %v6563_v46 = vadd.f32 %v6175_v9, %v15305_v50  ;;  %v9015_v44 = vadd.f32 -0.5, %v6397_v8 }
 0x4d0   : > { %vm6050_vm4 = vcmp.lt.f32.partialorder %v6018_v57, 1.0  ;;  %vm6051_vm5 = vcmp.lt.f32.partialorder %v6019_v39, 1.0  ;;  %v6082_v11 = vmul.f32 0.5, %v6018_v57  ;;  %v6083_v41 = vmul.f32 0.5, %v6019_v39 }
 0x4d1   : > { %v6493_v56 = vmul.f32 %v6461_v34, %v6397_v8  ;;  %v6690_v63 = vmul.f32 0.33333334, %v6562_v40  ;;  %v6691_v27 = vmul.f32 0.33333334, %v6563_v46  ;;  %v8960_v31 = vadd.f32 -0.5, %v6018_v57  ;;  %v15700_v40 = vpop.permute.xlu1 %6267 }
 0x4d2   : > { %v8961_v49 = vadd.f32 -0.5, %v6019_v39  ;;  %v6114_v55 = vmul.f32 %v6082_v11, %v6018_v57  ;;  %v6115_v36 = vmul.f32 %v6083_v41, %v6019_v39  ;;  %v5991_v54 = vsub.f32 %v15534_v62, %v15328_v45 }
 0x4d3   : > { %v6557_v25 = vsel %vm6429_vm2, %v6493_v56, %v9015_v44  ;;  %6722 = vst [vmem:[#allocation5 + $0x20] sm:$0xff] %v6690_v63  ;;  %6723 = vst [vmem:[#allocation5 + $0x28] sm:$0xff] %v6691_v27  ;;  %v6022_v29 = vand.u32 2147483647, %v5990_v17  ;;  %v5995_v60 = vsub.f32 %v15555_v16, %v15328_v45  ;;  %v5998_v59 = vsub.f32 %v15567_v4, %v15322_v13 }
 0x4d4   : > { %v6621_v50 = vadd.f32 %v6557_v25, %v15645_v15  ;;  %v6178_v30 = vsel %vm6050_vm4, %v6114_v55, %v8960_v31  ;;  %v6179_v53 = vsel %vm6051_vm5, %v6115_v36, %v8961_v49  ;;  %v6023_v18 = vand.u32 2147483647, %v5991_v54 }
 0x4d5   : > { %v6566_v61 = vadd.f32 %v6178_v30, %v14934_v26  ;;  %v6567_v15 = vadd.f32 %v6179_v53, %v14943_v33  ;;  %vm6054_vm7 = vcmp.lt.f32.partialorder %v6022_v29, 1.0  ;;  %v6086_v58 = vmul.f32 0.5, %v6022_v29  ;;  %v15706_v30 = vpop.permute.xlu1 %6275 }
 0x4d6   : > { %v6845_v62 = vmul.f32 0.33333334, %v6621_v50  ;;  %vm6055_vm6 = vcmp.lt.f32.partialorder %v6023_v18, 1.0  ;;  %v6087_v37 = vmul.f32 0.5, %v6023_v18  ;;  %v8964_v16 = vadd.f32 -0.5, %v6022_v29 }
 0x4d7   : > { %v6694_v19 = vmul.f32 0.33333334, %v6566_v61  ;;  %v6695_v5 = vmul.f32 0.33333334, %v6567_v15  ;;  %v8965_v47 = vadd.f32 -0.5, %v6023_v18  ;;  %v5999_v51 = vsub.f32 %v15567_v4, %v15328_v45  ;;  %v17557_v15 = vld [vmem:[#allocation52_spill] sm:$0xff] }
 0x4d8   : > { %6877 = vst [vmem:[#allocation7 + $0x98] sm:$0xff] %v6845_v62  ;;  %v6118_v12 = vmul.f32 %v6086_v58, %v6022_v29  ;;  %v6119_v32 = vmul.f32 %v6087_v37, %v6023_v18  ;;  %v6026_v52 = vand.u32 2147483647, %v5994_v7  ;;  %v6027_v26 = vand.u32 2147483647, %v5995_v60 }
 0x4d9   : > { %6726 = vst [vmem:[#allocation5 + $0x40] sm:$0xff] %v6694_v19  ;;  %6727 = vst [vmem:[#allocation5 + $0x48] sm:$0xff] %v6695_v5  ;;  %v6030_v33 = vand.u32 2147483647, %v5998_v59  ;;  %v6031_v8 = vand.u32 2147483647, %v5999_v51  ;;  %v6002_v28 = vsub.f32 %v15580_v10, %v15322_v13  ;;  %v6003_v57 = vsub.f32 %v15580_v10, %v15328_v45 }
 0x4da   : > { %v6182_v39 = vsel %vm6054_vm7, %v6118_v12, %v8964_v16  ;;  %v6183_v17 = vsel %vm6055_vm6, %v6119_v32, %v8965_v47  ;;  %vm6058_vm8 = vcmp.lt.f32.partialorder %v6026_v52, 1.0  ;;  %vm6059_vm9 = vcmp.lt.f32.partialorder %v6027_v26, 1.0 }
 0x4db   : > { %v6570_v4 = vadd.f32 %v6182_v39, %v14955_v23  ;;  %v6571_v21 = vadd.f32 %v6183_v17, %v14958_v14  ;;  %v6090_v9 = vmul.f32 0.5, %v6026_v52  ;;  %v6091_v34 = vmul.f32 0.5, %v6027_v26  ;;  %v15724_v39 = vpop.permute.xlu1 %6283 }
 0x4dc   : > { %v8968_v46 = vadd.f32 -0.5, %v6026_v52  ;;  %v8969_v44 = vadd.f32 -0.5, %v6027_v26  ;;  %vm6062_vm10 = vcmp.lt.f32.partialorder %v6030_v33, 1.0  ;;  %vm6063_vm11 = vcmp.lt.f32.partialorder %v6031_v8, 1.0 }
 0x4dd   : > { %v6698_v56 = vmul.f32 0.33333334, %v6570_v4  ;;  %v6699_v10 = vmul.f32 0.33333334, %v6571_v21  ;;  %v6122_v11 = vmul.f32 %v6090_v9, %v6026_v52  ;;  %v6123_v41 = vmul.f32 %v6091_v34, %v6027_v26 }
 0x4de   : > { %v6094_v63 = vmul.f32 0.5, %v6030_v33  ;;  %v6095_v27 = vmul.f32 0.5, %v6031_v8  ;;  %v8972_v31 = vadd.f32 -0.5, %v6030_v33  ;;  %v8973_v49 = vadd.f32 -0.5, %v6031_v8 }
 0x4df   : > { %6730 = vst [vmem:[#allocation5 + $0x60] sm:$0xff] %v6698_v56  ;;  %6731 = vst [vmem:[#allocation5 + $0x68] sm:$0xff] %v6699_v10  ;;  %v6186_v23 = vsel %vm6058_vm8, %v6122_v11, %v8968_v46  ;;  %v6187_v14 = vsel %vm6059_vm9, %v6123_v41, %v8969_v44  ;;  %v6034_v25 = vand.u32 2147483647, %v6002_v28  ;;  %v6035_v55 = vand.u32 2147483647, %v6003_v57 }
 0x4e0   : > { %v6574_v36 = vadd.f32 %v6186_v23, %v14989_v0  ;;  %v6575_v54 = vadd.f32 %v6187_v14, %v14996_v2  ;;  %v6126_v50 = vmul.f32 %v6094_v63, %v6030_v33  ;;  %v6127_v29 = vmul.f32 %v6095_v27, %v6031_v8  ;;  %v17559_v28 = vld [vmem:[#allocation90_spill] sm:$0xff]  ;;  %v17561_v14 = vld [vmem:[#allocation95_spill] sm:$0xff] }
 0x4e1   : > { %vm6066_vm12 = vcmp.lt.f32.partialorder %v6034_v25, 1.0  ;;  %vm6067_vm13 = vcmp.lt.f32.partialorder %v6035_v55, 1.0  ;;  %v6098_v7 = vmul.f32 0.5, %v6034_v25  ;;  %v6099_v60 = vmul.f32 0.5, %v6035_v55 }
 0x4e2   : > { %v6702_v53 = vmul.f32 0.33333334, %v6574_v36  ;;  %v6703_v18 = vmul.f32 0.33333334, %v6575_v54  ;;  %v6190_v59 = vsel %vm6062_vm10, %v6126_v50, %v8972_v31  ;;  %v6191_v62 = vsel %vm6063_vm11, %v6127_v29, %v8973_v49  ;;  %v17560_v49 = vld [vmem:[#allocation46_spill] sm:$0xff]  ;;  %v15734_v54 = vpop.permute.xlu1 %6291 }
 0x4e3   : > { %v6578_v61 = vadd.f32 %v6190_v59, %v15022_v1  ;;  %v6579_v0 = vadd.f32 %v6191_v62, %v17557_v15  ;;  %v6130_v58 = vmul.f32 %v6098_v7, %v6034_v25  ;;  %v6131_v2 = vmul.f32 %v6099_v60, %v6035_v55 }
 0x4e4   : > { %6734 = vst [vmem:[#allocation5 + $0x80] sm:$0xff] %v6702_v53  ;;  %6735 = vst [vmem:[#allocation5 + $0x88] sm:$0xff] %v6703_v18  ;;  %v8976_v37 = vadd.f32 -0.5, %v6034_v25  ;;  %v8977_v16 = vadd.f32 -0.5, %v6035_v55  ;;  %v6006_v19 = vsub.f32 %v15591_v3, %v15322_v13  ;;  %v6007_v5 = vsub.f32 %v15591_v3, %v15328_v45  ;;  %v17558_v13 = vld [vmem:[#allocation47_spill] sm:$0xff] }
 0x4e5   : > { %v6706_v47 = vmul.f32 0.33333334, %v6578_v61  ;;  %v6707_v51 = vmul.f32 0.33333334, %v6579_v0  ;;  %v6334_v12 = vsub.f32 %v15604_v6, %v15510_v24  ;;  %v6336_v1 = vsub.f32 %v15615_v35, %v15510_v24  ;;  %v17562_v18 = vld [vmem:[#allocation15_spill] sm:$0xff] }
 0x4e6   : > { %v6194_v32 = vsel %vm6066_vm12, %v6130_v58, %v8976_v37  ;;  %v6195_v52 = vsel %vm6067_vm13, %v6131_v2, %v8977_v16  ;;  %v6038_v26 = vand.u32 2147483647, %v6006_v19  ;;  %v6039_v33 = vand.u32 2147483647, %v6007_v5  ;;  %v17563_v61 = vld [vmem:[#allocation27_spill] sm:$0xff] }
 0x4e7   : > { %6738 = vst [vmem:[#allocation5 + $0xa0] sm:$0xff] %v6706_v47  ;;  %6739 = vst [vmem:[#allocation5 + $0xa8] sm:$0xff] %v6707_v51  ;;  %v6582_v8 = vadd.f32 %v6194_v32, %v17558_v13  ;;  %v6583_v45 = vadd.f32 %v6195_v52, %v17559_v28  ;;  %v6366_v3 = vand.u32 2147483647, %v6334_v12  ;;  %v6368_v57 = vand.u32 2147483647, %v6336_v1  ;;  %v15751_v32 = vpop.permute.xlu1 %6299 }
 0x4e8   : > { %vm6070_vm14 = vcmp.lt.f32.partialorder %v6038_v26, 1.0  ;;  %vm6071_vm15 = vcmp.lt.f32.partialorder %v6039_v33, 1.0  ;;  %v6102_v6 = vmul.f32 0.5, %v6038_v26  ;;  %v6103_v35 = vmul.f32 0.5, %v6039_v33  ;;  %v17565_v13 = vld [vmem:[#allocation55_spill] sm:$0xff] }
 0x4e9   : > { %v6710_v17 = vmul.f32 0.33333334, %v6582_v8  ;;  %v6711_v4 = vmul.f32 0.33333334, %v6583_v45  ;;  %v8980_v21 = vadd.f32 -0.5, %v6038_v26  ;;  %v8981_v9 = vadd.f32 -0.5, %v6039_v33 }
 0x4ea   : > { %v6134_v34 = vmul.f32 %v6102_v6, %v6038_v26  ;;  %v6135_v46 = vmul.f32 %v6103_v35, %v6039_v33  ;;  %vm6398_vm0 = vcmp.lt.f32.partialorder %v6366_v3, 1.0  ;;  %v6430_v44 = vmul.f32 0.5, %v6366_v3 }
 0x4eb   : > { %6742 = vst [vmem:[#allocation5 + $0xc0] sm:$0xff] %v6710_v17  ;;  %6743 = vst [vmem:[#allocation5 + $0xc8] sm:$0xff] %v6711_v4  ;;  %v8984_v56 = vadd.f32 -0.5, %v6366_v3  ;;  %vm6400_vm2 = vcmp.lt.f32.partialorder %v6368_v57, 1.0  ;;  %v6432_v10 = vmul.f32 0.5, %v6368_v57  ;;  %v8986_v11 = vadd.f32 -0.5, %v6368_v57 }
 0x4ec   : > { %v6198_v41 = vsel %vm6070_vm14, %v6134_v34, %v8980_v21  ;;  %v6199_v63 = vsel %vm6071_vm15, %v6135_v46, %v8981_v9  ;;  %v6462_v27 = vmul.f32 %v6430_v44, %v6366_v3  ;;  %v6338_v31 = vsub.f32 %v15623_v43, %v15510_v24  ;;  %v17566_v21 = vld [vmem:[#allocation93_spill] sm:$0xff] }
 0x4ed   : > { %v6586_v23 = vadd.f32 %v6198_v41, %v17560_v49  ;;  %v6587_v25 = vadd.f32 %v6199_v63, %v17561_v14  ;;  %v6464_v55 = vmul.f32 %v6432_v10, %v6368_v57  ;;  %v6340_v36 = vsub.f32 %v15633_v42, %v15510_v24  ;;  %v17564_v42 = vld [vmem:[#allocation54_spill] sm:$0xff]  ;;  %v6308_v63 = vpop.permute.xlu1 %6307 }
 0x4ee   : > { %v6526_v50 = vsel %vm6398_vm0, %v6462_v27, %v8984_v56  ;;  %v6370_v29 = vand.u32 2147483647, %v6338_v31  ;;  %v6342_v7 = vsub.f32 %v15652_v38, %v15510_v24  ;;  %v6344_v60 = vsub.f32 %v15662_v22, %v15510_v24  ;;  %v17567_v56 = vld [vmem:[#allocation96_spill] sm:$0xff]  ;;  %v17568_v31 = vld [vmem:[#allocation22_spill] sm:$0xff] }
 0x4ef   : > { %v6714_v43 = vmul.f32 0.33333334, %v6586_v23  ;;  %v6715_v53 = vmul.f32 0.33333334, %v6587_v25  ;;  %v6590_v59 = vadd.f32 %v6526_v50, %v17562_v18  ;;  %v6528_v62 = vsel %vm6400_vm2, %v6464_v55, %v8986_v11 }
 0x4f0   : > { %v15744_v15 = vmul.f32 0.5, %v17563_v61  ;;  %v6592_v0 = vadd.f32 %v6528_v62, %v17564_v42  ;;  %v6434_v58 = vmul.f32 0.5, %v6370_v29  ;;  %v8988_v2 = vadd.f32 -0.5, %v6370_v29 }
 0x4f1   : > { %6746 = vst [vmem:[#allocation5 + $0xe0] sm:$0xff] %v6714_v43  ;;  %6747 = vst [vmem:[#allocation5 + $0xe8] sm:$0xff] %v6715_v53  ;;  %v6814_v37 = vmul.f32 0.33333334, %v6590_v59  ;;  %v6372_v38 = vand.u32 2147483647, %v6340_v36  ;;  %v6346_v22 = vsub.f32 %v15672_v48, %v15510_v24  ;;  %v6348_v51 = vsub.f32 %v15688_v20, %v15510_v24 }
 0x4f2   : > { %v6374_v16 = vand.u32 2147483647, %v6342_v7  ;;  %v6816_v19 = vmul.f32 0.33333334, %v6592_v0  ;;  %v6466_v5 = vmul.f32 %v6434_v58, %v6370_v29  ;;  %v6376_v47 = vand.u32 2147483647, %v6344_v60 }
 0x4f3   : > { %6846 = vst [vmem:[#allocation7 + $0x80] sm:$0xff] %v6814_v37  ;;  %vm6402_vm4 = vcmp.lt.f32.partialorder %v6370_v29, 1.0  ;;  %vm6404_vm5 = vcmp.lt.f32.partialorder %v6372_v38, 1.0  ;;  %v6436_v12 = vmul.f32 0.5, %v6372_v38  ;;  %v8990_v1 = vadd.f32 -0.5, %v6372_v38  ;;  %v17569_v60 = vld [vmem:[#allocation58_spill] sm:$0xff] }
 0x4f4   : > { %6848 = vst [vmem:[#allocation7 + $0xe8] sm:$0xff] %v6816_v19  ;;  %v6530_v52 = vsel %vm6402_vm4, %v6466_v5, %v8988_v2  ;;  %vm6406_vm7 = vcmp.lt.f32.partialorder %v6374_v16, 1.0  ;;  %v6438_v26 = vmul.f32 0.5, %v6374_v16  ;;  %v8992_v33 = vadd.f32 -0.5, %v6374_v16  ;;  %v17570_v0 = vld [vmem:[#allocation42_spill] sm:$0xff] }
 0x4f5   : > { %v6594_v48 = vadd.f32 %v6530_v52, %v17565_v13  ;;  %v6468_v8 = vmul.f32 %v6436_v12, %v6372_v38  ;;  %vm6408_vm6 = vcmp.lt.f32.partialorder %v6376_v47, 1.0  ;;  %v6440_v28 = vmul.f32 0.5, %v6376_v47  ;;  %v17572_v52 = vld [vmem:[#allocation104_spill] sm:$0xff] }
 0x4f6   : > { %v6470_v45 = vmul.f32 %v6438_v26, %v6374_v16  ;;  %v8994_v3 = vadd.f32 -0.5, %v6376_v47  ;;  %v6378_v20 = vand.u32 2147483647, %v6346_v22  ;;  %v6380_v57 = vand.u32 2147483647, %v6348_v51  ;;  %v6316_v16 = vpop.permute.xlu1 %6315 }
 0x4f7   : > { %v6818_v6 = vmul.f32 0.33333334, %v6594_v48  ;;  %v6532_v35 = vsel %vm6404_vm5, %v6468_v8, %v8990_v1  ;;  %v6472_v17 = vmul.f32 %v6440_v28, %v6376_v47  ;;  %v6350_v4 = vsub.f32 %v15700_v40, %v15510_v24  ;;  %v17573_v8 = vld [vmem:[#allocation24_spill] sm:$0xff] }
 0x4f8   : > { %v6596_v9 = vadd.f32 %v6532_v35, %v17566_v21  ;;  %v6534_v34 = vsel %vm6406_vm7, %v6470_v45, %v8992_v33  ;;  %v6442_v46 = vmul.f32 0.5, %v6378_v20  ;;  %v6352_v44 = vsub.f32 %v15706_v30, %v15510_v24 }
 0x4f9   : > { %6850 = vst [vmem:[#allocation7 + $0x8] sm:$0xff] %v6818_v6  ;;  %v6598_v10 = vadd.f32 %v6534_v34, %v17567_v56  ;;  %v6536_v11 = vsel %vm6408_vm6, %v6472_v17, %v8994_v3  ;;  %vm6410_vm8 = vcmp.lt.f32.partialorder %v6378_v20, 1.0  ;;  %v8996_v41 = vadd.f32 -0.5, %v6378_v20 }
 0x4fa   : > { %v6820_v27 = vmul.f32 0.33333334, %v6596_v9  ;;  %v6600_v49 = vadd.f32 %v6536_v11, %v17568_v31  ;;  %v6474_v40 = vmul.f32 %v6442_v46, %v6378_v20  ;;  %v6444_v23 = vmul.f32 0.5, %v6380_v57  ;;  %v6324_v21 = vpop.permute.xlu1 %6323  ;;  %v17575_v9 = vld [vmem:[#allocation76_spill] sm:$0xff] }
 0x4fb   : > { %v6822_v14 = vmul.f32 0.33333334, %v6598_v10  ;;  %v8998_v25 = vadd.f32 -0.5, %v6380_v57  ;;  %v6382_v55 = vand.u32 2147483647, %v6350_v4  ;;  %v6354_v36 = vsub.f32 %v15724_v39, %v15510_v24  ;;  %v17571_v39 = vld [vmem:[#allocation99_spill] sm:$0xff] }
 0x4fc   : > { %6852 = vst [vmem:[#allocation7 + $0x58] sm:$0xff] %v6820_v27  ;;  %v6824_v30 = vmul.f32 0.33333334, %v6600_v49  ;;  %v6538_v50 = vsel %vm6410_vm8, %v6474_v40, %v8996_v41  ;;  %v6476_v29 = vmul.f32 %v6444_v23, %v6380_v57  ;;  %v6384_v7 = vand.u32 2147483647, %v6352_v44  ;;  %v17576_v49 = vld [vmem:[#allocation33_spill] sm:$0xff] }
 0x4fd   : > { %6854 = vst [vmem:[#allocation7 + $0xd0] sm:$0xff] %v6822_v14  ;;  %v6602_v43 = vadd.f32 %v6538_v50, %v17569_v60  ;;  %vm6412_vm9 = vcmp.lt.f32.partialorder %v6380_v57, 1.0  ;;  %vm6414_vm10 = vcmp.lt.f32.partialorder %v6382_v55, 1.0  ;;  %v6446_v53 = vmul.f32 0.5, %v6382_v55  ;;  %v17579_v50 = vld [vmem:[#allocation28_spill] sm:$0xff] }
 0x4fe   : > { %6856 = vst [vmem:[#allocation7 + $0x38] sm:$0xff] %v6824_v30  ;;  %v6540_v18 = vsel %vm6412_vm9, %v6476_v29, %v8998_v25  ;;  %v9000_v59 = vadd.f32 -0.5, %v6382_v55  ;;  %v6448_v62 = vmul.f32 0.5, %v6384_v7  ;;  %v9002_v42 = vadd.f32 -0.5, %v6384_v7 }
 0x4ff   : > { %vm5710_vm11 = vcmp.lt.f32.partialorder %v17570_v0, 1.0  ;;  %v6826_v58 = vmul.f32 0.33333334, %v6602_v43  ;;  %v6604_v2 = vadd.f32 %v6540_v18, %v17571_v39  ;;  %v6478_v37 = vmul.f32 %v6446_v53, %v6382_v55  ;;  %v17577_v55 = vld [vmem:[#allocation68_spill] sm:$0xff]  ;;  %v17580_v18 = vld [vmem:[#allocation18_spill] sm:$0xff] }
 0x500   : > { %v6386_v38 = vand.u32 2147483647, %v6354_v36  ;;  %v6480_v22 = vmul.f32 %v6448_v62, %v6384_v7  ;;  %v6356_v19 = vsub.f32 %v15734_v54, %v15510_v24  ;;  %v6358_v5 = vsub.f32 %v15751_v32, %v15510_v24  ;;  %v17574_v54 = vld [vmem:[#allocation65_spill] sm:$0xff]  ;;  %v17582_v0 = vld [vmem:[#allocation86_spill] sm:$0xff] }
 0x501   : > { %v6360_v47 = vsub.f32 %v6308_v63, %v15510_v24  ;;  %6858 = vst [vmem:[#allocation7 + $0xe0] sm:$0xff] %v6826_v58  ;;  %v6828_v51 = vmul.f32 0.33333334, %v6604_v2  ;;  %v6542_v12 = vsel %vm6414_vm10, %v6478_v37, %v9000_v59  ;;  %vm6416_vm12 = vcmp.lt.f32.partialorder %v6384_v7, 1.0  ;;  %v17578_v36 = vld [vmem:[#allocation81_spill] sm:$0xff]  ;;  %v17581_v59 = vld [vmem:[#allocation70_spill] sm:$0xff] }
 0x502   : > { %v6450_v1 = vmul.f32 0.5, %v6386_v38  ;;  %v6606_v26 = vadd.f32 %v6542_v12, %v17572_v52  ;;  %v6544_v33 = vsel %vm6416_vm12, %v6480_v22, %v9002_v42  ;;  %v9004_v13 = vadd.f32 -0.5, %v6386_v38 }
 0x503   : > { %v6388_v48 = vand.u32 2147483647, %v6356_v19  ;;  %vm4994_vm13 = vcmp.lt.f32.partialorder %v17573_v8, 1.0  ;;  %6860 = vst [vmem:[#allocation7 + $0x18] sm:$0xff] %v6828_v51  ;;  %v6608_v28 = vadd.f32 %v6544_v33, %v17574_v54  ;;  %v6390_v32 = vand.u32 2147483647, %v6358_v5 }
 0x504   : > { %v6482_v45 = vmul.f32 %v6450_v1, %v6386_v38  ;;  %v6392_v3 = vand.u32 2147483647, %v6360_v47  ;;  %v5776_v20 = vmul.f32 %v15744_v15, %v17563_v61  ;;  %v6830_v57 = vmul.f32 0.33333334, %v6606_v26  ;;  %v17584_v5 = vld [vmem:[#allocation94_spill] sm:$0xff] }
 0x505   : > { %vm6418_vm14 = vcmp.lt.f32.partialorder %v6386_v38, 1.0  ;;  %v6452_v6 = vmul.f32 0.5, %v6388_v48  ;;  %v6832_v35 = vmul.f32 0.33333334, %v6608_v28  ;;  %vm6420_vm15 = vcmp.lt.f32.partialorder %v6388_v48, 1.0  ;;  %v17585_v47 = vld [vmem:[#allocation82_spill] sm:$0xff] }
 0x506   : > { %v6546_v17 = vsel %vm6418_vm14, %v6482_v45, %v9004_v13  ;;  %v6454_v4 = vmul.f32 0.5, %v6390_v32  ;;  %6862 = vst [vmem:[#allocation7 + $0x10] sm:$0xff] %v6830_v57  ;;  %v9006_v44 = vadd.f32 -0.5, %v6388_v48  ;;  %vm6422_vm0 = vcmp.lt.f32.partialorder %v6390_v32, 1.0 }
 0x507   : > { %v6610_v34 = vadd.f32 %v6546_v17, %v17575_v9  ;;  %v6484_v46 = vmul.f32 %v6452_v6, %v6388_v48  ;;  %6864 = vst [vmem:[#allocation7 + $0x50] sm:$0xff] %v6832_v35  ;;  %v9008_v10 = vadd.f32 -0.5, %v6390_v32  ;;  %v6456_v11 = vmul.f32 0.5, %v6392_v3 }
 0x508   : > { %v6486_v56 = vmul.f32 %v6454_v4, %v6390_v32  ;;  %v6362_v15 = vsub.f32 %v6316_v16, %v15510_v24  ;;  %v9010_v27 = vadd.f32 -0.5, %v6392_v3  ;;  %v6364_v31 = vsub.f32 %v6324_v21, %v15510_v24  ;;  %v17583_v16 = vld [vmem:[#allocation100_spill] sm:$0xff] }
 0x509   : > { %v6834_v41 = vmul.f32 0.33333334, %v6610_v34  ;;  %v6548_v63 = vsel %vm6420_vm15, %v6484_v46, %v9006_v44  ;;  %v6488_v14 = vmul.f32 %v6456_v11, %v6392_v3  ;;  %v5838_v30 = vsel %vm5710_vm11, %v17578_v36, %v17577_v55 }
 0x50a   : > { %v6612_v40 = vadd.f32 %v6548_v63, %v17576_v49  ;;  %v6550_v23 = vsel %vm6422_vm0, %v6486_v56, %v9008_v10  ;;  %v6394_v25 = vand.u32 2147483647, %v6362_v15  ;;  %vm6424_vm2 = vcmp.lt.f32.partialorder %v6392_v3, 1.0 }
 0x50b   : > { %6866 = vst [vmem:[#allocation7 + $0xd8] sm:$0xff] %v6834_v41  ;;  %v6614_v29 = vadd.f32 %v6550_v23, %v17579_v50  ;;  %v6396_v7 = vand.u32 2147483647, %v6364_v31  ;;  %v8950_v60 = vadd.f32 -0.5, %v17563_v61  ;;  %v6552_v53 = vsel %vm6424_vm2, %v6488_v14, %v9010_v27 }
 0x50c   : > { %v6836_v43 = vmul.f32 0.33333334, %v6612_v40  ;;  %v6458_v24 = vmul.f32 0.5, %v6394_v25  ;;  %v5122_v62 = vsel %vm4994_vm13, %v17581_v59, %v17580_v18  ;;  %vm5712_vm4 = vcmp.lt.f32.partialorder %v17563_v61, 1.0 }
 0x50d   : > { %v6838_v42 = vmul.f32 0.33333334, %v6614_v29  ;;  %v6616_v58 = vadd.f32 %v6552_v53, %v17582_v0  ;;  %v5840_v39 = vsel %vm5712_vm4, %v5776_v20, %v8950_v60  ;;  %v9012_v37 = vadd.f32 -0.5, %v6394_v25 }
 0x50e   : > { %6868 = vst [vmem:[#allocation7 + $0x20] sm:$0xff] %v6836_v43  ;;  %v6490_v2 = vmul.f32 %v6458_v24, %v6394_v25  ;;  %v6460_v38 = vmul.f32 0.5, %v6396_v7  ;;  %vm4996_vm5 = vcmp.lt.f32.partialorder %v17583_v16, 1.0  ;;  %v5902_v22 = vadd.f32 %v5838_v30, %v5122_v62 }
 0x50f   : > { %6870 = vst [vmem:[#allocation7 + $0x88] sm:$0xff] %v6838_v42  ;;  %v6840_v19 = vmul.f32 0.33333334, %v6616_v58  ;;  %vm6426_vm7 = vcmp.lt.f32.partialorder %v6394_v25, 1.0  ;;  %v5124_v51 = vsel %vm4996_vm5, %v17585_v47, %v17584_v5  ;;  %v9014_v1 = vadd.f32 -0.5, %v6396_v7 }
 0x510   : > { %v6554_v12 = vsel %vm6426_vm7, %v6490_v2, %v9012_v37  ;;  %v6492_v61 = vmul.f32 %v6460_v38, %v6396_v7  ;;  %v5904_v52 = vadd.f32 %v5840_v39, %v5124_v51  ;;  %vm6428_vm6 = vcmp.lt.f32.partialorder %v6396_v7, 1.0 }
 0x511   : > { %6872 = vst [vmem:[#allocation7 + $0xf8] sm:$0xff] %v6840_v19  ;;  %v6618_v26 = vadd.f32 %v6554_v12, %v5902_v22  ;;  %v15801_v54 = vmov 0.0   ;;  %v15803_v28 = vmov 0.0  }
 0x512   : > { %v6556_v33 = vsel %vm6428_vm6, %v6492_v61, %v9014_v1 }
 0x513   : > { %v6842_v13 = vmul.f32 0.33333334, %v6618_v26  ;;  %v6620_v48 = vadd.f32 %v6556_v33, %v5904_v52  ;;  %8476 = sbr.rel (%p9021_p1) target bundleno = 2006 (0x7d6), region = 101 }
 0x515   : > { %6874 = vst [vmem:[#allocation7 + $0xb8] sm:$0xff] %v6842_v13  ;;  %v6844_v8 = vmul.f32 0.33333334, %v6620_v48 }
 0x517   : > { %6876 = vst [vmem:[#allocation7 + $0x28] sm:$0xff] %v6844_v8 }
 0x518   : > { %v15805_v45 = vmov 0.0   ;;  %v15807_v32 = vmov 0.0  }
 0x519 LB: >> { %v7027_v3 = vld [vmem:[#allocation6 + $0xb0] sm:$0xff]  ;;  %v7284_v20 = vld [vmem:[#allocation7 + $0x80] sm:$0xff]  ;;  %v15821_v57 = vstv %s10006_s18  ;;  %v10024_v6 = vmov 0   ;;  %v17586_v35 = vld [vmem:[#allocation72_spill] sm:$0xff]  ;;  %v10025_v4 = vmov 1.0   ;;  %s7014_s27 = sshra.s32 %s10006_s18, 3  ;;  %s8139_s17 = sadd.s32 %s10006_s18, %s11542_s16  ;;  %s10006_s18 = sphi %s15809_s18, %s6960_s18   ;;  %v10002_v32 = vphi %v15807_v32, %v17606_v32   ;;  %v9998_v45 = vphi %v15805_v45, %v17605_v45  }
 0x51a   : >> { %9336 = vmatprep.mubr.f32.mxu0 %v7027_v3  ;;  %9416 = vmatprep.mubr.f32.mxu1 %v7284_v20  ;;  %vm6981_vm8 = vcmp.eq.s32.totalorder %v17586_v35, %v15821_v57  ;;  %v17587_v17 = vld [vmem:[#allocation66_spill] sm:$0xff]  ;;  %v17588_v21 = vld [vmem:[#allocation56_spill] sm:$0xff]  ;;  %v17590_v34 = vld [vmem:[#allocation57_spill] sm:$0xff]  ;;  %s7017_s22 = sand.u32 7, %s10006_s18  ;;  %s9207_s20 = sshll.u32 %s7014_s27, 4 }
 0x51b   : >> { %9889 = vset.pattern.permute.xlu0 %v10024_v6  ;;  %9888 = vset.pattern.permute.xlu1 %v10024_v6  ;;  %vm6980_vm9 = vcmp.eq.s32.totalorder %v17587_v17, %v15821_v57  ;;  %vm6979_vm10 = vcmp.eq.s32.totalorder %v17588_v21, %v15821_v57  ;;  %v17589_v9 = vld [vmem:[#allocation62_spill] sm:$0xff]  ;;  %vm6977_vm12 = vcmp.eq.s32.totalorder %v17590_v34, %v15821_v57  ;;  %v17592_v44 = vld [vmem:[#allocation73_spill] sm:$0xff]  ;;  %v17593_v56 = vld [vmem:[#allocation59_spill] sm:$0xff]  ;;  %s15933_s21 = sadd.s32 %s9207_s20, %s7017_s22  ;;  %s6960_s18 = sadd.s32 1, %s10006_s18  }
 0x51c   : >> { %9304 = vmatprep.subr.msk.mxu0 %vm6981_vm8, %v10025_v4  ;;  %9384 = vmatprep.subr.msk.mxu1 %vm6981_vm8, %v10025_v4  ;;  %vm6978_vm11 = vcmp.eq.s32.totalorder %v17589_v9, %v15821_v57  ;;  %v17591_v46 = vld [vmem:[#allocation26_spill] sm:$0xff]  ;;  %vm6975_vm14 = vcmp.eq.s32.totalorder %v17592_v44, %v15821_v57  ;;  %vm6974_vm15 = vcmp.eq.s32.totalorder %v17593_v56, %v15821_v57  ;;  %v17594_v10 = vld [vmem:[#allocation16_spill] sm:$0xff]  ;;  %v17595_v11 = vld [vmem:[#allocation25_spill] sm:$0xff]  ;;  %s7021_s8 = scalar_lea.vmem [#allocation3], %s15933_s21  ;;  %s7025_s10 = scalar_lea.vmem [#allocation5], %s15933_s21 }
 0x51d   : >> { %9305 = vmatpush3.msk.msra.mxu0 %vm6981_vm8, %v10025_v4  ;;  %9385 = vmatpush3.msk.msra.mxu1 %vm6981_vm8, %v10025_v4  ;;  %vm6976_vm13 = vcmp.eq.s32.totalorder %v17591_v46, %v15821_v57  ;;  %vm6973_vm0 = vcmp.eq.s32.totalorder %v17594_v10, %v15821_v57  ;;  %vm6972_vm2 = vcmp.eq.s32.totalorder %v17595_v11, %v15821_v57  ;;  %v17596_v15 = vld [vmem:[#allocation83_spill] sm:$0xff]  ;;  %v17597_v41 = vld [vmem:[#allocation29_spill] sm:$0xff]  ;;  %v17598_v63 = vld [vmem:[#allocation74_spill] sm:$0xff]  ;;  %s7023_s12 = scalar_lea.vmem [#allocation4], %s15933_s21  ;;  %p6959_p2 = scmp.ge.s32.totalorder %s6960_s18, %s17626_s19 }
 0x51e   : >> { %9306 = vmatprep.subr.msk.mxu0 %vm6980_vm9, %v10025_v4  ;;  %9386 = vmatprep.subr.msk.mxu1 %vm6980_vm9, %v10025_v4  ;;  %vm6971_vm4 = vcmp.eq.s32.totalorder %v17596_v15, %v15821_v57  ;;  %vm6970_vm5 = vcmp.eq.s32.totalorder %v17597_v41, %v15821_v57  ;;  %vm6969_vm7 = vcmp.eq.s32.totalorder %v17598_v63, %v15821_v57  ;;  %v17599_v27 = vld [vmem:[#allocation60_spill] sm:$0xff]  ;;  %v17600_v31 = vld [vmem:[#allocation69_spill] sm:$0xff]  ;;  %v7285_v23 = vld [vmem:[#allocation7 + $0xc8] sm:$0xff] }
 0x51f   : >> { %9307 = vmatpush3.msk.msra.mxu0 %vm6980_vm9, %v10025_v4  ;;  %9387 = vmatpush3.msk.msra.mxu1 %vm6980_vm9, %v10025_v4  ;;  %vm6968_vm6 = vcmp.eq.s32.totalorder %v17599_v27, %v15821_v57  ;;  %vm6967_vm8 = vcmp.eq.s32.totalorder %v17600_v31, %v15821_v57  ;;  %v17601_v49 = vld [vmem:[#allocation12_spill] sm:$0xff]  ;;  %v7028_v40 = vld [vmem:[#allocation6] sm:$0xff]  ;;  %v7286_v25 = vld [vmem:[#allocation7 + $0xe8] sm:$0xff] }
 0x520   : >> { %9308 = vmatprep.subr.msk.mxu0 %vm6979_vm10, %v10025_v4  ;;  %9388 = vmatprep.subr.msk.mxu1 %vm6979_vm10, %v10025_v4  ;;  %vm6966_vm9 = vcmp.eq.s32.totalorder %v17601_v49, %v15821_v57  ;;  %v7029_v14 = vld [vmem:[#allocation6 + $0xd8] sm:$0xff]  ;;  %v7031_v30 = vld [vmem:[#allocation6 + $0x50] sm:$0xff]  ;;  %v7288_v50 = vld [vmem:[#allocation7 + $0x8] sm:$0xff] }
 0x521   : >> { %9309 = vmatpush3.msk.msra.mxu0 %vm6979_vm10, %v10025_v4  ;;  %9389 = vmatpush3.msk.msra.mxu1 %vm6979_vm10, %v10025_v4  ;;  %v7030_v55 = vld [vmem:[#allocation6 + $0x18] sm:$0xff]  ;;  %v7032_v29 = vld [vmem:[#allocation6 + $0x68] sm:$0xff]  ;;  %v7289_v7 = vld [vmem:[#allocation7 + $0x90] sm:$0xff] }
 0x522   : >> { %9310 = vmatprep.subr.msk.mxu0 %vm6978_vm11, %v10025_v4  ;;  %9390 = vmatprep.subr.msk.mxu1 %vm6978_vm11, %v10025_v4  ;;  %v7287_v36 = vld [vmem:[#allocation7 + $0x78] sm:$0xff]  ;;  %v7033_v60 = vld [vmem:[#allocation6 + $0x30] sm:$0xff]  ;;  %v7034_v53 = vld [vmem:[#allocation6 + $0x48] sm:$0xff] }
 0x523   : >> { %9311 = vmatpush3.msk.msra.mxu0 %vm6978_vm11, %v10025_v4  ;;  %9391 = vmatpush3.msk.msra.mxu1 %vm6978_vm11, %v10025_v4  ;;  %v7290_v43 = vld [vmem:[#allocation7 + $0x58] sm:$0xff]  ;;  %v7291_v24 = vld [vmem:[#allocation7 + $0xa8] sm:$0xff]  ;;  %v7035_v18 = vld [vmem:[#allocation6 + $0x80] sm:$0xff] }
 0x524   : >> { %9312 = vmatprep.subr.msk.mxu0 %vm6977_vm12, %v10025_v4  ;;  %9392 = vmatprep.subr.msk.mxu1 %vm6977_vm12, %v10025_v4  ;;  %v7292_v59 = vld [vmem:[#allocation7 + $0xd0] sm:$0xff]  ;;  %v7036_v62 = vld [vmem:[#allocation6 + $0x88] sm:$0xff]  ;;  %v7294_v58 = vld [vmem:[#allocation7 + $0x38] sm:$0xff] }
 0x525   : >> { %9313 = vmatpush3.msk.msra.mxu0 %vm6977_vm12, %v10025_v4  ;;  %9393 = vmatpush3.msk.msra.mxu1 %vm6977_vm12, %v10025_v4  ;;  %v7293_v42 = vld [vmem:[#allocation7 + $0xb0] sm:$0xff]  ;;  %v7037_v0 = vld [vmem:[#allocation6 + $0xe8] sm:$0xff]  ;;  %v7038_v39 = vld [vmem:[#allocation6 + $0xb8] sm:$0xff] }
 0x526   : >> { %9314 = vmatprep.subr.msk.mxu0 %vm6976_vm13, %v10025_v4  ;;  %9394 = vmatprep.subr.msk.mxu1 %vm6976_vm13, %v10025_v4  ;;  %v7295_v2 = vld [vmem:[#allocation7 + $0x40] sm:$0xff]  ;;  %v7040_v16 = vld [vmem:[#allocation6 + $0xf0] sm:$0xff]  ;;  %v7041_v19 = vld [vmem:[#allocation6 + $0x8] sm:$0xff] }
 0x527   : >> { %9315 = vmatpush3.msk.msra.mxu0 %vm6976_vm13, %v10025_v4  ;;  %9395 = vmatpush3.msk.msra.mxu1 %vm6976_vm13, %v10025_v4  ;;  %v7039_v37 = vld [vmem:[#allocation6 + $0x60] sm:$0xff]  ;;  %v7298_v5 = vld [vmem:[#allocation7 + $0x18] sm:$0xff]  ;;  %v7299_v51 = vld [vmem:[#allocation7 + $0x68] sm:$0xff] }
 0x528   : >> { %9316 = vmatprep.subr.msk.mxu0 %vm6975_vm14, %v10025_v4  ;;  %9396 = vmatprep.subr.msk.mxu1 %vm6975_vm14, %v10025_v4  ;;  %v7296_v38 = vld [vmem:[#allocation7 + $0xe0] sm:$0xff]  ;;  %v7042_v47 = vld [vmem:[#allocation6 + $0x78] sm:$0xff]  ;;  %v7300_v61 = vld [vmem:[#allocation7 + $0x10] sm:$0xff] }
 0x529   : >> { %9317 = vmatpush3.msk.msra.mxu0 %vm6975_vm14, %v10025_v4  ;;  %9397 = vmatpush3.msk.msra.mxu1 %vm6975_vm14, %v10025_v4  ;;  %v7297_v22 = vld [vmem:[#allocation7 + $0x60] sm:$0xff]  ;;  %v7043_v12 = vld [vmem:[#allocation6 + $0x38] sm:$0xff]  ;;  %v7301_v52 = vld [vmem:[#allocation7 + $0x70] sm:$0xff] }
 0x52a   : >> { %9318 = vmatprep.subr.msk.mxu0 %vm6974_vm15, %v10025_v4  ;;  %9398 = vmatprep.subr.msk.mxu1 %vm6974_vm15, %v10025_v4  ;;  %v7044_v1 = vld [vmem:[#allocation6 + $0x58] sm:$0xff]  ;;  %v7045_v26 = vld [vmem:[#allocation6 + $0x40] sm:$0xff]  ;;  %v7302_v33 = vld [vmem:[#allocation7 + $0x50] sm:$0xff] }
 0x52b   : >> { %9319 = vmatpush3.msk.msra.mxu0 %vm6974_vm15, %v10025_v4  ;;  %9399 = vmatpush3.msk.msra.mxu1 %vm6974_vm15, %v10025_v4  ;;  %v7046_v13 = vld [vmem:[#allocation6 + $0xc8] sm:$0xff]  ;;  %v7303_v48 = vld [vmem:[#allocation7 + $0xa0] sm:$0xff]  ;;  %v7304_v54 = vld [vmem:[#allocation7 + $0xd8] sm:$0xff] }
 0x52c   : >> { %9320 = vmatprep.subr.msk.mxu0 %vm6973_vm0, %v10025_v4  ;;  %9400 = vmatprep.subr.msk.mxu1 %vm6973_vm0, %v10025_v4  ;;  %v7047_v8 = vld [vmem:[#allocation6 + $0xe0] sm:$0xff]  ;;  %v7048_v28 = vld [vmem:[#allocation6 + $0x90] sm:$0xff]  ;;  %v7051_v17 = vld [vmem:[#allocation6 + $0xa8] sm:$0xff] }
 0x52d   : >> { %9321 = vmatpush3.msk.msra.mxu0 %vm6973_vm0, %v10025_v4  ;;  %9401 = vmatpush3.msk.msra.mxu1 %vm6973_vm0, %v10025_v4  ;;  %v7305_v3 = vld [vmem:[#allocation7 + $0x30] sm:$0xff]  ;;  %v7306_v57 = vld [vmem:[#allocation7 + $0x20] sm:$0xff]  ;;  %v7308_v21 = vld [vmem:[#allocation7 + $0x88] sm:$0xff] }
 0x52e   : >> { %9322 = vmatprep.subr.msk.mxu0 %vm6972_vm2, %v10025_v4  ;;  %9402 = vmatprep.subr.msk.mxu1 %vm6972_vm2, %v10025_v4  ;;  %v7049_v20 = vld [vmem:[#allocation6 + $0x70] sm:$0xff]  ;;  %v7050_v6 = vld [vmem:[#allocation6 + $0xc0] sm:$0xff]  ;;  %v7309_v34 = vld [vmem:[#allocation7 + $0x48] sm:$0xff] }
 0x52f   : >> { %9323 = vmatpush3.msk.msra.mxu0 %vm6972_vm2, %v10025_v4  ;;  %9403 = vmatpush3.msk.msra.mxu1 %vm6972_vm2, %v10025_v4  ;;  %v7307_v35 = vld [vmem:[#allocation7 + $0xf0] sm:$0xff]  ;;  %v7310_v44 = vld [vmem:[#allocation7 + $0xf8] sm:$0xff]  ;;  %v7054_v56 = vld [vmem:[#allocation6 + $0x28] sm:$0xff] }
 0x530   : >> { %9324 = vmatprep.subr.msk.mxu0 %vm6971_vm4, %v10025_v4  ;;  %9404 = vmatprep.subr.msk.mxu1 %vm6971_vm4, %v10025_v4  ;;  %v7052_v9 = vld [vmem:[#allocation6 + $0xd0] sm:$0xff]  ;;  %v7311_v10 = vld [vmem:[#allocation7 + $0xc0] sm:$0xff]  ;;  %v7312_v15 = vld [vmem:[#allocation7 + $0xb8] sm:$0xff] }
 0x531   : >> { %9325 = vmatpush3.msk.msra.mxu0 %vm6971_vm4, %v10025_v4  ;;  %9405 = vmatpush3.msk.msra.mxu1 %vm6971_vm4, %v10025_v4  ;;  %v7053_v46 = vld [vmem:[#allocation6 + $0x10] sm:$0xff]  ;;  %v7055_v11 = vld [vmem:[#allocation6 + $0xa0] sm:$0xff]  ;;  %v7056_v41 = vld [vmem:[#allocation6 + $0xf8] sm:$0xff] }
 0x532   : >> { %9326 = vmatprep.subr.msk.mxu0 %vm6970_vm5, %v10025_v4  ;;  %9406 = vmatprep.subr.msk.mxu1 %vm6970_vm5, %v10025_v4  ;;  %v7313_v63 = vld [vmem:[#allocation7] sm:$0xff]  ;;  %v7314_v31 = vld [vmem:[#allocation7 + $0x28] sm:$0xff]  ;;  %v7058_v49 = vld [vmem:[#allocation6 + $0x98] sm:$0xff] }
 0x533   : >> { %9327 = vmatpush3.msk.msra.mxu0 %vm6970_vm5, %v10025_v4  ;;  %9407 = vmatpush3.msk.msra.mxu1 %vm6970_vm5, %v10025_v4  ;;  %v7057_v27 = vld [vmem:[#allocation6 + $0x20] sm:$0xff] }
 0x534   : >> { %9328 = vmatprep.subr.msk.mxu0 %vm6969_vm7, %v10025_v4  ;;  %9408 = vmatprep.subr.msk.mxu1 %vm6969_vm7, %v10025_v4 }
 0x535   : >> { %9329 = vmatpush3.msk.msra.mxu0 %vm6969_vm7, %v10025_v4  ;;  %9409 = vmatpush3.msk.msra.mxu1 %vm6969_vm7, %v10025_v4 }
 0x536   : >> { %9330 = vmatprep.subr.msk.mxu0 %vm6968_vm6, %v10025_v4  ;;  %9410 = vmatprep.subr.msk.mxu1 %vm6968_vm6, %v10025_v4 }
 0x537   : >> { %9331 = vmatpush3.msk.msra.mxu0 %vm6968_vm6, %v10025_v4  ;;  %9411 = vmatpush3.msk.msra.mxu1 %vm6968_vm6, %v10025_v4 }
 0x538   : >> { %9332 = vmatprep.subr.msk.mxu0 %vm6967_vm8, %v10025_v4  ;;  %9412 = vmatprep.subr.msk.mxu1 %vm6967_vm8, %v10025_v4 }
 0x539   : >> { %9333 = vmatpush3.msk.msra.mxu0 %vm6967_vm8, %v10025_v4  ;;  %9413 = vmatpush3.msk.msra.mxu1 %vm6967_vm8, %v10025_v4 }
 0x53a   : >> { %9334 = vmatprep.subr.msk.mxu0 %vm6966_vm9, %v10025_v4  ;;  %9414 = vmatprep.subr.msk.mxu1 %vm6966_vm9, %v10025_v4 }
 0x53b   : >> { %9335 = vmatpush3.msk.msra.mxu0 %vm6966_vm9, %v10025_v4  ;;  %9415 = vmatpush3.msk.msra.mxu1 %vm6966_vm9, %v10025_v4 }
 0x53c   : >> { %9337 = vmatmul.mubr.f32.vlgmr.msra.gmra.mxu0 %v7028_v40  ;;  %9417 = vmatmul.mubr.f32.vlgmr.msra.gmra.mxu1 %v7285_v23  ;;  %v7315_v40 = vld [vmem:[#allocation7 + $0x98] sm:$0xff] }
 0x53d   : >> { %9339 = vmatprep.mubr.f32.mxu0 %v7029_v14  ;;  %9419 = vmatprep.mubr.f32.mxu1 %v7286_v25 }
 0x540   : >> { %9340 = vmatmul.mubr.f32.gmra.mxu0 %v7030_v55  ;;  %9420 = vmatmul.mubr.f32.gmra.mxu1 %v7287_v36 }
 0x541   : >> { %9342 = vmatprep.mubr.f32.mxu0 %v7031_v30  ;;  %9422 = vmatprep.mubr.f32.mxu1 %v7288_v50 }
 0x544   : >> { %9343 = vmatmul.mubr.f32.gmra.mxu0 %v7032_v29  ;;  %9423 = vmatmul.mubr.f32.gmra.mxu1 %v7289_v7 }
 0x545   : >> { %9345 = vmatprep.mubr.f32.mxu0 %v7033_v60  ;;  %9425 = vmatprep.mubr.f32.mxu1 %v7290_v43 }
 0x548   : >> { %9346 = vmatmul.mubr.f32.gmra.mxu0 %v7034_v53  ;;  %9426 = vmatmul.mubr.f32.gmra.mxu1 %v7291_v24 }
 0x549   : >> { %9348 = vmatprep.mubr.f32.mxu0 %v7035_v18  ;;  %9428 = vmatprep.mubr.f32.mxu1 %v7292_v59 }
 0x54c   : >> { %9349 = vmatmul.mubr.f32.gmra.mxu0 %v7036_v62  ;;  %9429 = vmatmul.mubr.f32.gmra.mxu1 %v7293_v42 }
 0x54d   : >> { %9351 = vmatprep.mubr.f32.mxu0 %v7037_v0  ;;  %9431 = vmatprep.mubr.f32.mxu1 %v7294_v58 }
 0x550   : >> { %9352 = vmatmul.mubr.f32.gmra.mxu0 %v7038_v39  ;;  %9432 = vmatmul.mubr.f32.gmra.mxu1 %v7295_v2 }
 0x551   : >> { %9354 = vmatprep.mubr.f32.mxu0 %v7039_v37  ;;  %9434 = vmatprep.mubr.f32.mxu1 %v7296_v38 }
 0x554   : >> { %9355 = vmatmul.mubr.f32.gmra.mxu0 %v7040_v16  ;;  %9435 = vmatmul.mubr.f32.gmra.mxu1 %v7297_v22 }
 0x555   : >> { %9357 = vmatprep.mubr.f32.mxu0 %v7041_v19  ;;  %9437 = vmatprep.mubr.f32.mxu1 %v7298_v5 }
 0x558   : >> { %9358 = vmatmul.mubr.f32.gmra.mxu0 %v7042_v47  ;;  %9438 = vmatmul.mubr.f32.gmra.mxu1 %v7299_v51 }
 0x559   : >> { %9360 = vmatprep.mubr.f32.mxu0 %v7043_v12  ;;  %9440 = vmatprep.mubr.f32.mxu1 %v7300_v61 }
 0x55c   : >> { %9361 = vmatmul.mubr.f32.gmra.mxu0 %v7044_v1  ;;  %9441 = vmatmul.mubr.f32.gmra.mxu1 %v7301_v52 }
 0x55d   : >> { %9363 = vmatprep.mubr.f32.mxu0 %v7045_v26  ;;  %9443 = vmatprep.mubr.f32.mxu1 %v7302_v33 }
 0x560   : >> { %9364 = vmatmul.mubr.f32.gmra.mxu0 %v7046_v13  ;;  %9444 = vmatmul.mubr.f32.gmra.mxu1 %v7303_v48 }
 0x561   : >> { %9366 = vmatprep.mubr.f32.mxu0 %v7047_v8  ;;  %9446 = vmatprep.mubr.f32.mxu1 %v7304_v54 }
 0x564   : >> { %9367 = vmatmul.mubr.f32.gmra.mxu0 %v7048_v28  ;;  %9447 = vmatmul.mubr.f32.gmra.mxu1 %v7305_v3 }
 0x565   : >> { %9369 = vmatprep.mubr.f32.mxu0 %v7049_v20  ;;  %9449 = vmatprep.mubr.f32.mxu1 %v7306_v57 }
 0x568   : >> { %9370 = vmatmul.mubr.f32.gmra.mxu0 %v7050_v6  ;;  %9450 = vmatmul.mubr.f32.gmra.mxu1 %v7307_v35 }
 0x569   : >> { %9372 = vmatprep.mubr.f32.mxu0 %v7051_v17  ;;  %9452 = vmatprep.mubr.f32.mxu1 %v7308_v21 }
 0x56c   : >> { %9373 = vmatmul.mubr.f32.gmra.mxu0 %v7052_v9  ;;  %9453 = vmatmul.mubr.f32.gmra.mxu1 %v7309_v34 }
 0x56d   : >> { %9375 = vmatprep.mubr.f32.mxu0 %v7053_v46  ;;  %9455 = vmatprep.mubr.f32.mxu1 %v7310_v44 }
 0x570   : >> { %9376 = vmatmul.mubr.f32.gmra.mxu0 %v7054_v56  ;;  %9456 = vmatmul.mubr.f32.gmra.mxu1 %v7311_v10 }
 0x571   : >> { %9378 = vmatprep.mubr.f32.mxu0 %v7055_v11  ;;  %9458 = vmatprep.mubr.f32.mxu1 %v7312_v15 }
 0x574   : >> { %9379 = vmatmul.mubr.f32.gmra.mxu0 %v7056_v41  ;;  %9459 = vmatmul.mubr.f32.gmra.mxu1 %v7313_v63 }
 0x575   : >> { %9381 = vmatprep.mubr.f32.mxu0 %v7057_v27  ;;  %9461 = vmatprep.mubr.f32.mxu1 %v7314_v31 }
 0x578   : >> { %9382 = vmatmul.mubr.f32.gmra.mxu0 %v7058_v49  ;;  %9462 = vmatmul.mubr.f32.gmra.mxu1 %v7315_v40 }
 0x5fc   : >> { %v9338_v23 = vpop.f32.mrf.mxu0  ;;  %v9418_v14 = vpop.f32.mrf.mxu1 }
 0x5fd   : >> { %7559 = vperm.xlu1 %9888, %v9338_v23   ;;  %7858 = vperm.xlu0 %9889, %v9418_v14  }
 0x5fe   : >> { %v7125_v25 = vpop.f32.mrf.mxu0  ;;  %v7382_v55 = vpop.f32.mrf.mxu1 }
 0x600   : >> { %v9341_v36 = vpop.f32.mrf.mxu0  ;;  %v9421_v30 = vpop.f32.mrf.mxu1 }
 0x601   : >> { %7554 = vperm.xlu1 %9888, %v7125_v25   ;;  %7853 = vperm.xlu0 %9889, %v7382_v55   ;;  %v15938_v55 = vld [vmem:[%s7021_s8] ss:$8 sm:$0x3] }
 0x602   : >> { %v7135_v50 = vpop.f32.mrf.mxu0  ;;  %v7392_v29 = vpop.f32.mrf.mxu1 }
 0x604   : >> { %v9344_v7 = vpop.f32.mrf.mxu0  ;;  %v9424_v60 = vpop.f32.mrf.mxu1 }
 0x605   : >> { %7569 = vperm.xlu1 %9888, %v9341_v36   ;;  %7868 = vperm.xlu0 %9889, %v9421_v30   ;;  %v17602_v36 = vld [vmem:[#allocation14_spill] sm:$0xff] }
 0x606   : >> { %v7145_v43 = vpop.f32.mrf.mxu0  ;;  %v7402_v53 = vpop.f32.mrf.mxu1  ;;  %v8157_v30 = vrot.slane %v15938_v55, %v17602_v36 }
 0x608   : >> { %v9347_v24 = vpop.f32.mrf.mxu0  ;;  %v9427_v18 = vpop.f32.mrf.mxu1  ;;  %8299 = vmatprep.mubr.f32.mxu1 %v8157_v30  ;;  %8224 = vmatprep.mubr.f32.mxu0 %v8157_v30 }
 0x609   : >> { %7564 = vperm.xlu1 %9888, %v7135_v50   ;;  %7863 = vperm.xlu0 %9889, %v7392_v29  }
 0x60a   : >> { %v7155_v59 = vpop.f32.mrf.mxu0  ;;  %v7412_v62 = vpop.f32.mrf.mxu1 }
 0x60c   : >> { %v9350_v42 = vpop.f32.mrf.mxu0  ;;  %v9430_v0 = vpop.f32.mrf.mxu1 }
 0x60d   : >> { %7579 = vperm.xlu1 %9888, %v9344_v7   ;;  %7878 = vperm.xlu0 %9889, %v9424_v60  }
 0x60e   : >> { %v7165_v58 = vpop.f32.mrf.mxu0  ;;  %v7422_v39 = vpop.f32.mrf.mxu1 }
 0x610   : >> { %v9353_v2 = vpop.f32.mrf.mxu0  ;;  %v9433_v37 = vpop.f32.mrf.mxu1 }
 0x611   : >> { %7574 = vperm.xlu1 %9888, %v7145_v43   ;;  %7873 = vperm.xlu0 %9889, %v7402_v53  }
 0x612   : >> { %v7175_v38 = vpop.f32.mrf.mxu0  ;;  %v7432_v16 = vpop.f32.mrf.mxu1 }
 0x614   : >> { %v9356_v22 = vpop.f32.mrf.mxu0  ;;  %v9436_v19 = vpop.f32.mrf.mxu1 }
 0x615   : >> { %7589 = vperm.xlu1 %9888, %v9347_v24   ;;  %7888 = vperm.xlu0 %9889, %v9427_v18  }
 0x616   : >> { %v7185_v5 = vpop.f32.mrf.mxu0  ;;  %v7442_v47 = vpop.f32.mrf.mxu1 }
 0x618   : >> { %v9359_v51 = vpop.f32.mrf.mxu0  ;;  %v9439_v12 = vpop.f32.mrf.mxu1 }
 0x619   : >> { %7584 = vperm.xlu1 %9888, %v7155_v59   ;;  %7883 = vperm.xlu0 %9889, %v7412_v62  }
 0x61a   : >> { %v7195_v61 = vpop.f32.mrf.mxu0  ;;  %v7452_v52 = vpop.f32.mrf.mxu1 }
 0x61c   : >> { %v15919_v1 = vpop.f32.mrf.mxu0  ;;  %v15923_v33 = vpop.f32.mrf.mxu1 }
 0x61d   : >> { %7599 = vperm.xlu1 %9888, %v9350_v42   ;;  %7898 = vperm.xlu0 %9889, %v9430_v0  }
 0x61e   : >> { %v15921_v26 = vpop.f32.mrf.mxu0  ;;  %v15925_v48 = vpop.f32.mrf.mxu1 }
 0x620   : >> { %v9365_v13 = vpop.f32.mrf.mxu0  ;;  %v15927_v54 = vpop.f32.mrf.mxu1 }
 0x621   : >> { %7594 = vperm.xlu1 %9888, %v7165_v58   ;;  %7893 = vperm.xlu0 %9889, %v7422_v39  }
 0x622   : >> { %v7215_v8 = vpop.f32.mrf.mxu0  ;;  %v15929_v3 = vpop.f32.mrf.mxu1 }
 0x624   : >> { %v9368_v28 = vpop.f32.mrf.mxu0  ;;  %v9448_v57 = vpop.f32.mrf.mxu1 }
 0x625   : >> { %7609 = vperm.xlu1 %9888, %v9353_v2   ;;  %7908 = vperm.xlu0 %9889, %v9433_v37  }
 0x626   : >> { %v7225_v20 = vpop.f32.mrf.mxu0  ;;  %v7482_v35 = vpop.f32.mrf.mxu1 }
 0x628   : >> { %v9371_v6 = vpop.f32.mrf.mxu0  ;;  %v9451_v21 = vpop.f32.mrf.mxu1 }
 0x629   : >> { %7604 = vperm.xlu1 %9888, %v7175_v38   ;;  %7903 = vperm.xlu0 %9889, %v7432_v16  }
 0x62a   : >> { %v7235_v17 = vpop.f32.mrf.mxu0  ;;  %v7492_v34 = vpop.f32.mrf.mxu1 }
 0x62c   : >> { %v9374_v9 = vpop.f32.mrf.mxu0  ;;  %v9454_v44 = vpop.f32.mrf.mxu1 }
 0x62d   : >> { %7619 = vperm.xlu1 %9888, %v9356_v22   ;;  %7918 = vperm.xlu0 %9889, %v9436_v19  }
 0x62e   : >> { %v7245_v46 = vpop.f32.mrf.mxu0  ;;  %v7502_v10 = vpop.f32.mrf.mxu1 }
 0x630   : >> { %v9377_v56 = vpop.f32.mrf.mxu0  ;;  %v9457_v15 = vpop.f32.mrf.mxu1 }
 0x631   : >> { %7614 = vperm.xlu1 %9888, %v7185_v5   ;;  %7913 = vperm.xlu0 %9889, %v7442_v47  }
 0x632   : >> { %v7255_v11 = vpop.f32.mrf.mxu0  ;;  %v7512_v63 = vpop.f32.mrf.mxu1 }
 0x634   : >> { %v9380_v41 = vpop.f32.mrf.mxu0  ;;  %v9460_v31 = vpop.f32.mrf.mxu1 }
 0x635   : >> { %7928 = vperm.xlu1 %9888, %v9439_v12   ;;  %7629 = vperm.xlu0 %9889, %v9359_v51  }
 0x636   : >> { %v7265_v27 = vpop.f32.mrf.mxu0  ;;  %v7522_v40 = vpop.f32.mrf.mxu1 }
 0x638   : >> { %v9383_v49 = vpop.f32.mrf.mxu0  ;;  %v9463_v14 = vpop.f32.mrf.mxu1 }
 0x639   : >> { %7669 = vperm.xlu1 %9888, %v9371_v6   ;;  %7624 = vperm.xlu0 %9889, %v7195_v61   ;;  %v10026_v6 = vmov 0.0  }
 0x63a   : >> { %v7275_v23 = vpop.f32.mrf.mxu0  ;;  %v7532_v25 = vpop.f32.mrf.mxu1 }
 0x63d   : >> { %7679 = vperm.xlu1 %9888, %v9374_v9   ;;  %7923 = vperm.xlu0 %9889, %v7452_v52   ;;  %v7026_v52 = vld [vmem:[%s7025_s10] ss:$8 sm:$0x3] }
 0x641   : >> { %7674 = vperm.xlu1 %9888, %v7245_v46   ;;  %7978 = vperm.xlu0 %9889, %v9454_v44  }
 0x645   : >> { %7689 = vperm.xlu1 %9888, %v9377_v56   ;;  %7973 = vperm.xlu0 %9889, %v7502_v10  }
 0x649   : >> { %7684 = vperm.xlu1 %9888, %v7255_v11   ;;  %7988 = vperm.xlu0 %9889, %v9457_v15  }
 0x64d   : >> { %7699 = vperm.xlu1 %9888, %v9380_v41   ;;  %7983 = vperm.xlu0 %9889, %v7512_v63  }
 0x651   : >> { %7694 = vperm.xlu1 %9888, %v7265_v27   ;;  %7998 = vperm.xlu0 %9889, %v9460_v31  }
 0x655   : >> { %7709 = vperm.xlu1 %9888, %v9383_v49   ;;  %7993 = vperm.xlu0 %9889, %v7522_v40  }
 0x659   : >> { %7704 = vperm.xlu1 %9888, %v7275_v23   ;;  %8008 = vperm.xlu0 %9889, %v9463_v14  }
 0x65d   : >> { %7664 = vperm.xlu1 %9888, %v7235_v17   ;;  %8003 = vperm.xlu0 %9889, %v7532_v25  }
 0x661   : >> { %7659 = vperm.xlu1 %9888, %v9368_v28   ;;  %7968 = vperm.xlu0 %9889, %v9451_v21  }
 0x665   : >> { %7654 = vperm.xlu1 %9888, %v7225_v20   ;;  %7963 = vperm.xlu0 %9889, %v7492_v34  }
 0x669   : >> { %7649 = vperm.xlu1 %9888, %v9365_v13   ;;  %7958 = vperm.xlu0 %9889, %v9448_v57  }
 0x66d   : >> { %7644 = vperm.xlu1 %9888, %v7215_v8   ;;  %7953 = vperm.xlu0 %9889, %v7482_v35   ;;  %v17603_v8 = vld [vmem:[#allocation13_spill] sm:$0xff] }
 0x66e   : >> { %v16009_v57 = vrot.slane %v7026_v52, %v17603_v8 }
 0x671   : >> { %7639 = vperm.xlu1 %9888, %v15919_v1   ;;  %7948 = vperm.xlu0 %9889, %v15927_v54  }
 0x675   : >> { %7634 = vperm.xlu1 %9888, %v15921_v26   ;;  %7943 = vperm.xlu0 %9889, %v15929_v3  }
 0x678   : >> { %v15944_v50 = vpop.permute.xlu1 %7559  ;;  %v15946_v29 = vpop.permute.xlu0 %7858 }
 0x679   : >> { %7933 = vperm.xlu1 %9888, %v15925_v48   ;;  %7938 = vperm.xlu0 %9889, %v15923_v33   ;;  %v7024_v33 = vld [vmem:[%s7023_s12] ss:$8 sm:$0x3]  ;;  %v15999_v48 = vrot.slane %v7026_v52, %v17602_v36 }
 0x67a   : >> { %v16002_v54 = vrot.slane %v7024_v33, %v17603_v8  ;;  %v16005_v28 = vrot.slane %v7024_v33, %v17602_v36 }
 0x67c   : >> { %v15950_v7 = vpop.permute.xlu1 %7554  ;;  %v15952_v60 = vpop.permute.xlu0 %7853 }
 0x680   : >> { %v15954_v43 = vpop.permute.xlu1 %7569  ;;  %v15956_v53 = vpop.permute.xlu0 %7868 }
 0x684   : >> { %v15958_v24 = vpop.permute.xlu1 %7564  ;;  %v15960_v18 = vpop.permute.xlu0 %7863 }
 0x688   : >> { %v15962_v59 = vpop.permute.xlu1 %7579  ;;  %v15964_v62 = vpop.permute.xlu0 %7878 }
 0x68c   : >> { %v15966_v42 = vpop.permute.xlu1 %7574  ;;  %v15968_v0 = vpop.permute.xlu0 %7873 }
 0x690   : >> { %v15970_v58 = vpop.permute.xlu1 %7589  ;;  %v15972_v39 = vpop.permute.xlu0 %7888 }
 0x694   : >> { %v15974_v2 = vpop.permute.xlu1 %7584  ;;  %v15976_v37 = vpop.permute.xlu0 %7883 }
 0x698   : >> { %v15978_v38 = vpop.permute.xlu1 %7599  ;;  %v15980_v16 = vpop.permute.xlu0 %7898 }
 0x69c   : >> { %v15982_v22 = vpop.permute.xlu1 %7594  ;;  %v15984_v19 = vpop.permute.xlu0 %7893 }
 0x6a0   : >> { %v15986_v5 = vpop.permute.xlu1 %7609  ;;  %v15988_v47 = vpop.permute.xlu0 %7908 }
 0x6a1   : >> { %vm7735_vm8 = vcmp.le.f32.partialorder %v16005_v28, %v15986_v5 }
 0x6a2   : >> { %v7799_v31 = vsel %vm7735_vm8, 1.0, %v10026_v6 }
 0x6a4   : >> { %v15990_v51 = vpop.permute.xlu1 %7604  ;;  %v15992_v12 = vpop.permute.xlu0 %7903 }
 0x6a8   : >> { %v7620_v61 = vpop.permute.xlu1 %7619  ;;  %v7919_v1 = vpop.permute.xlu0 %7918 }
 0x6a9   : >> { %vm7739_vm0 = vcmp.le.f32.partialorder %v16005_v28, %v7620_v61  ;;  %vm7738_vm2 = vcmp.le.f32.partialorder %v16002_v54, %v7620_v61  ;;  %vm8038_vm9 = vcmp.le.f32.partialorder %v15999_v48, %v7919_v1 }
 0x6aa   : >> { %v7803_v10 = vsel %vm7739_vm0, 1.0, %v10026_v6  ;;  %v7802_v15 = vsel %vm7738_vm2, 1.0, %v10026_v6 }
 0x6ac   : >> { %v7615_v26 = vpop.permute.xlu1 %7614  ;;  %v15996_v13 = vpop.permute.xlu0 %7913 }
 0x6ad   : >> { %vm7737_vm4 = vcmp.le.f32.partialorder %v16005_v28, %v7615_v26  ;;  %vm7736_vm6 = vcmp.le.f32.partialorder %v16002_v54, %v7615_v26 }
 0x6ae   : >> { %v7801_v63 = vsel %vm7737_vm4, 1.0, %v10026_v6  ;;  %v7800_v27 = vsel %vm7736_vm6, 1.0, %v10026_v6 }
 0x6b0   : >> { %v7929_v3 = vpop.permute.xlu1 %7928  ;;  %v7630_v20 = vpop.permute.xlu0 %7629 }
 0x6b1   : >> { %vm8042_vm10 = vcmp.le.f32.partialorder %v15999_v48, %v7929_v3  ;;  %vm7742_vm11 = vcmp.le.f32.partialorder %v16002_v54, %v7630_v20  ;;  %vm7743_vm12 = vcmp.le.f32.partialorder %v16005_v28, %v7630_v20  ;;  %vm8041_vm13 = vcmp.le.f32.partialorder %v16009_v57, %v7929_v3 }
 0x6b2   : >> { %v7806_v35 = vsel %vm7742_vm11, 1.0, %v10026_v6  ;;  %v7807_v17 = vsel %vm7743_vm12, 1.0, %v10026_v6  ;;  %9137 = vmatprep.subr.msk.mxu1 %vm7743_vm12, %v10025_v4  ;;  %vm7733_vm12 = vcmp.le.f32.partialorder %v16005_v28, %v15990_v51 }
 0x6b3   : >> { %9073 = vmatprep.subr.msk.mxu0 %vm8042_vm10, %v7807_v17  ;;  %9138 = vmatpush1.msk.msra.mxu1 %vm7742_vm11, %v10025_v4  ;;  %vm7734_vm10 = vcmp.le.f32.partialorder %v16002_v54, %v15986_v5  ;;  %vm8037_vm11 = vcmp.le.f32.partialorder %v16009_v57, %v7919_v1  ;;  %v7797_v14 = vsel %vm7733_vm12, 1.0, %v10026_v6 }
 0x6b4   : >> { %v16018_v21 = vpop.permute.xlu1 %7669  ;;  %9074 = vmatpush1.msk.msra.mxu0 %vm8041_vm13, %v7806_v35  ;;  %v7625_v9 = vpop.permute.xlu0 %7624  ;;  %vm8036_vm13 = vcmp.le.f32.partialorder %v15999_v48, %v15996_v13  ;;  %v7798_v40 = vsel %vm7734_vm10, 1.0, %v10026_v6 }
 0x6b5   : >> { %vm7740_vm14 = vcmp.le.f32.partialorder %v16002_v54, %v7625_v9  ;;  %vm7741_vm15 = vcmp.le.f32.partialorder %v16005_v28, %v7625_v9 }
 0x6b6   : >> { %9139 = vmatprep.subr.msk.mxu1 %vm7741_vm15, %v10025_v4  ;;  %v7805_v44 = vsel %vm7741_vm15, 1.0, %v10026_v6  ;;  %v7804_v56 = vsel %vm7740_vm14, 1.0, %v10026_v6  ;;  %vm8035_vm15 = vcmp.le.f32.partialorder %v16009_v57, %v15996_v13 }
 0x6b7   : >> { %9140 = vmatpush1.msk.msra.mxu1 %vm7740_vm14, %v10025_v4  ;;  %vm7732_vm14 = vcmp.le.f32.partialorder %v16002_v54, %v15990_v51 }
 0x6b8   : >> { %v16025_v34 = vpop.permute.xlu1 %7679  ;;  %9141 = vmatprep.subr.msk.mxu1 %vm7739_vm0, %v10025_v4  ;;  %v7924_v46 = vpop.permute.xlu0 %7923  ;;  %vm7731_vm0 = vcmp.le.f32.partialorder %v16005_v28, %v15978_v38  ;;  %v7796_v25 = vsel %vm7732_vm14, 1.0, %v10026_v6 }
 0x6b9   : >> { %vm8039_vm5 = vcmp.le.f32.partialorder %v16009_v57, %v7924_v46  ;;  %vm8040_vm7 = vcmp.le.f32.partialorder %v15999_v48, %v7924_v46  ;;  %9142 = vmatpush1.msk.msra.mxu1 %vm7738_vm2, %v10025_v4  ;;  %vm8034_vm2 = vcmp.le.f32.partialorder %v15999_v48, %v15988_v47  ;;  %v7795_v36 = vsel %vm7731_vm0, 1.0, %v10026_v6 }
 0x6ba   : >> { %9075 = vmatprep.subr.msk.mxu0 %vm8040_vm7, %v7805_v44  ;;  %9143 = vmatprep.subr.msk.mxu1 %vm7737_vm4, %v10025_v4  ;;  %vm7730_vm4 = vcmp.le.f32.partialorder %v16002_v54, %v15978_v38  ;;  %vm7729_vm7 = vcmp.le.f32.partialorder %v16005_v28, %v15982_v22 }
 0x6bb   : >> { %9076 = vmatpush1.msk.msra.mxu0 %vm8039_vm5, %v7804_v56  ;;  %9144 = vmatpush1.msk.msra.mxu1 %vm7736_vm6, %v10025_v4  ;;  %vm8033_vm5 = vcmp.le.f32.partialorder %v16009_v57, %v15988_v47  ;;  %vm8032_vm6 = vcmp.le.f32.partialorder %v15999_v48, %v15992_v12  ;;  %v7794_v5 = vsel %vm7730_vm4, 1.0, %v10026_v6  ;;  %v7793_v38 = vsel %vm7729_vm7, 1.0, %v10026_v6 }
 0x6bc   : >> { %v16052_v11 = vpop.permute.xlu1 %7674  ;;  %9077 = vmatprep.subr.msk.mxu0 %vm8038_vm9, %v7803_v10  ;;  %9145 = vmatprep.subr.msk.mxu1 %vm7735_vm8, %v10025_v4  ;;  %v16064_v41 = vpop.permute.xlu0 %7978  ;;  %vm7728_vm8 = vcmp.le.f32.partialorder %v16002_v54, %v15982_v22  ;;  %vm8031_vm9 = vcmp.le.f32.partialorder %v16009_v57, %v15992_v12 }
 0x6bd   : >> { %9078 = vmatpush1.msk.msra.mxu0 %vm8037_vm11, %v7802_v15  ;;  %9146 = vmatpush1.msk.msra.mxu1 %vm7734_vm10, %v10025_v4  ;;  %vm7727_vm10 = vcmp.le.f32.partialorder %v16005_v28, %v15970_v58  ;;  %vm8030_vm11 = vcmp.le.f32.partialorder %v15999_v48, %v15980_v16 }
 0x6be   : >> { %9079 = vmatprep.subr.msk.mxu0 %vm8036_vm13, %v7801_v63  ;;  %9147 = vmatprep.subr.msk.mxu1 %vm7733_vm12, %v10025_v4  ;;  %vm7726_vm12 = vcmp.le.f32.partialorder %v16002_v54, %v15970_v58  ;;  %vm8029_vm13 = vcmp.le.f32.partialorder %v16009_v57, %v15980_v16  ;;  %v7792_v16 = vsel %vm7728_vm8, 1.0, %v10026_v6 }
 0x6bf   : >> { %9080 = vmatpush1.msk.msra.mxu0 %vm8035_vm15, %v7800_v27  ;;  %9148 = vmatpush1.msk.msra.mxu1 %vm7732_vm14, %v10025_v4  ;;  %vm7725_vm14 = vcmp.le.f32.partialorder %v16005_v28, %v15974_v2  ;;  %vm8028_vm15 = vcmp.le.f32.partialorder %v15999_v48, %v15984_v19  ;;  %v7790_v51 = vsel %vm7726_vm12, 1.0, %v10026_v6 }
 0x6c0   : >> { %v16100_v49 = vpop.permute.xlu1 %7689  ;;  %9081 = vmatprep.subr.msk.mxu0 %vm8034_vm2, %v7799_v31  ;;  %9149 = vmatprep.subr.msk.mxu1 %vm7731_vm0, %v10025_v4  ;;  %v16114_v23 = vpop.permute.xlu0 %7973  ;;  %vm7724_vm0 = vcmp.le.f32.partialorder %v16002_v54, %v15974_v2  ;;  %vm8027_vm2 = vcmp.le.f32.partialorder %v16009_v57, %v15984_v19  ;;  %v7791_v19 = vsel %vm7727_vm10, 1.0, %v10026_v6  ;;  %v7789_v58 = vsel %vm7725_vm14, 1.0, %v10026_v6 }
 0x6c1   : >> { %9082 = vmatpush1.msk.msra.mxu0 %vm8033_vm5, %v7798_v40  ;;  %9150 = vmatpush1.msk.msra.mxu1 %vm7730_vm4, %v10025_v4  ;;  %vm7723_vm4 = vcmp.le.f32.partialorder %v16005_v28, %v15962_v59  ;;  %vm8026_vm5 = vcmp.le.f32.partialorder %v15999_v48, %v15972_v39 }
 0x6c2   : >> { %9083 = vmatprep.subr.msk.mxu0 %vm8032_vm6, %v7797_v14  ;;  %9151 = vmatprep.subr.msk.mxu1 %vm7729_vm7, %v10025_v4  ;;  %vm7722_vm7 = vcmp.le.f32.partialorder %v16002_v54, %v15962_v59  ;;  %vm8025_vm6 = vcmp.le.f32.partialorder %v16009_v57, %v15972_v39  ;;  %v7788_v39 = vsel %vm7724_vm0, 1.0, %v10026_v6 }
 0x6c3   : >> { %9084 = vmatpush1.msk.msra.mxu0 %vm8031_vm9, %v7796_v25  ;;  %9152 = vmatpush1.msk.msra.mxu1 %vm7728_vm8, %v10025_v4  ;;  %vm7721_vm8 = vcmp.le.f32.partialorder %v16005_v28, %v15966_v42  ;;  %vm8024_vm9 = vcmp.le.f32.partialorder %v15999_v48, %v15976_v37  ;;  %v7786_v61 = vsel %vm7722_vm7, 1.0, %v10026_v6 }
 0x6c4   : >> { %v16152_v30 = vpop.permute.xlu1 %7684  ;;  %9085 = vmatprep.subr.msk.mxu0 %vm8030_vm11, %v7795_v36  ;;  %9153 = vmatprep.subr.msk.mxu1 %vm7727_vm10, %v10025_v4  ;;  %v16166_v47 = vpop.permute.xlu0 %7988  ;;  %vm7720_vm10 = vcmp.le.f32.partialorder %v16002_v54, %v15966_v42  ;;  %vm8023_vm11 = vcmp.le.f32.partialorder %v16009_v57, %v15976_v37  ;;  %v7787_v37 = vsel %vm7723_vm4, 1.0, %v10026_v6  ;;  %v7785_v59 = vsel %vm7721_vm8, 1.0, %v10026_v6 }
 0x6c5   : >> { %9086 = vmatpush1.msk.msra.mxu0 %vm8029_vm13, %v7794_v5  ;;  %9154 = vmatpush1.msk.msra.mxu1 %vm7726_vm12, %v10025_v4  ;;  %vm7719_vm12 = vcmp.le.f32.partialorder %v16005_v28, %v15954_v43  ;;  %vm8022_vm13 = vcmp.le.f32.partialorder %v15999_v48, %v15964_v62 }
 0x6c6   : >> { %9087 = vmatprep.subr.msk.mxu0 %vm8028_vm15, %v7793_v38  ;;  %9155 = vmatprep.subr.msk.mxu1 %vm7725_vm14, %v10025_v4  ;;  %vm7718_vm14 = vcmp.le.f32.partialorder %v16002_v54, %v15954_v43  ;;  %vm8021_vm15 = vcmp.le.f32.partialorder %v16009_v57, %v15964_v62  ;;  %v7784_v62 = vsel %vm7720_vm10, 1.0, %v10026_v6 }
 0x6c7   : >> { %9088 = vmatpush1.msk.msra.mxu0 %vm8027_vm2, %v7792_v16  ;;  %9156 = vmatpush1.msk.msra.mxu1 %vm7724_vm0, %v10025_v4  ;;  %vm7717_vm0 = vcmp.le.f32.partialorder %v16005_v28, %v15958_v24  ;;  %vm8020_vm2 = vcmp.le.f32.partialorder %v15999_v48, %v15968_v0  ;;  %v7782_v52 = vsel %vm7718_vm14, 1.0, %v10026_v6 }
 0x6c8   : >> { %v16204_v22 = vpop.permute.xlu1 %7699  ;;  %9089 = vmatprep.subr.msk.mxu0 %vm8026_vm5, %v7791_v19  ;;  %9157 = vmatprep.subr.msk.mxu1 %vm7723_vm4, %v10025_v4  ;;  %v16218_v12 = vpop.permute.xlu0 %7983  ;;  %vm7716_vm4 = vcmp.le.f32.partialorder %v16002_v54, %v15958_v24  ;;  %vm8019_vm5 = vcmp.le.f32.partialorder %v16009_v57, %v15968_v0  ;;  %v7783_v0 = vsel %vm7719_vm12, 1.0, %v10026_v6  ;;  %v7781_v43 = vsel %vm7717_vm0, 1.0, %v10026_v6 }
 0x6c9   : >> { %9090 = vmatpush1.msk.msra.mxu0 %vm8025_vm6, %v7790_v51  ;;  %9158 = vmatpush1.msk.msra.mxu1 %vm7722_vm7, %v10025_v4  ;;  %vm7715_vm7 = vcmp.le.f32.partialorder %v16005_v28, %v15944_v50  ;;  %vm8018_vm6 = vcmp.le.f32.partialorder %v15999_v48, %v15956_v53 }
 0x6ca   : >> { %9091 = vmatprep.subr.msk.mxu0 %vm8024_vm9, %v7789_v58  ;;  %9159 = vmatprep.subr.msk.mxu1 %vm7721_vm8, %v10025_v4  ;;  %vm7714_vm8 = vcmp.le.f32.partialorder %v16002_v54, %v15944_v50  ;;  %vm8017_vm9 = vcmp.le.f32.partialorder %v16009_v57, %v15956_v53  ;;  %v7780_v53 = vsel %vm7716_vm4, 1.0, %v10026_v6 }
 0x6cb   : >> { %9092 = vmatpush1.msk.msra.mxu0 %vm8023_vm11, %v7788_v39  ;;  %9160 = vmatpush1.msk.msra.mxu1 %vm7720_vm10, %v10025_v4  ;;  %vm7713_vm10 = vcmp.le.f32.partialorder %v16005_v28, %v15950_v7  ;;  %vm8016_vm11 = vcmp.le.f32.partialorder %v15999_v48, %v15960_v18  ;;  %v7778_v33 = vsel %vm7714_vm8, 1.0, %v10026_v6 }
 0x6cc   : >> { %v16256_v2 = vpop.permute.xlu1 %7694  ;;  %9093 = vmatprep.subr.msk.mxu0 %vm8022_vm13, %v7787_v37  ;;  %9161 = vmatprep.subr.msk.mxu1 %vm7719_vm12, %v10025_v4  ;;  %v16270_v1 = vpop.permute.xlu0 %7998  ;;  %vm7712_vm12 = vcmp.le.f32.partialorder %v16002_v54, %v15950_v7  ;;  %vm8015_vm13 = vcmp.le.f32.partialorder %v16009_v57, %v15960_v18  ;;  %v7779_v18 = vsel %vm7715_vm7, 1.0, %v10026_v6  ;;  %v7777_v50 = vsel %vm7713_vm10, 1.0, %v10026_v6 }
 0x6cd   : >> { %9094 = vmatpush1.msk.msra.mxu0 %vm8021_vm15, %v7786_v61  ;;  %9162 = vmatpush1.msk.msra.mxu1 %vm7718_vm14, %v10025_v4  ;;  %vm8013_vm14 = vcmp.le.f32.partialorder %v16009_v57, %v15946_v29  ;;  %vm8014_vm15 = vcmp.le.f32.partialorder %v15999_v48, %v15946_v29  ;;  %v7776_v3 = vsel %vm7712_vm12, 1.0, %v10026_v6  ;;  %v8153_v37 = vrot.slane %v15938_v55, %v17603_v8 }
 0x6ce   : >> { %9095 = vmatprep.subr.msk.mxu0 %vm8020_vm2, %v7785_v59  ;;  %9163 = vmatprep.subr.msk.mxu1 %vm7717_vm0, %v10025_v4 }
 0x6cf   : >> { %9096 = vmatpush1.msk.msra.mxu0 %vm8019_vm5, %v7784_v62  ;;  %9164 = vmatpush1.msk.msra.mxu1 %vm7716_vm4, %v10025_v4 }
 0x6d0   : >> { %v7710_v42 = vpop.permute.xlu1 %7709  ;;  %9097 = vmatprep.subr.msk.mxu0 %vm8018_vm6, %v7783_v0  ;;  %9165 = vmatprep.subr.msk.mxu1 %vm7715_vm7, %v10025_v4  ;;  %v16320_v26 = vpop.permute.xlu0 %7993  ;;  %vm8012_vm7 = vcmp.le.f32.partialorder %v15999_v48, %v15952_v60  ;;  %vm8011_vm6 = vcmp.le.f32.partialorder %v16009_v57, %v15952_v60 }
 0x6d1   : >> { %9098 = vmatpush1.msk.msra.mxu0 %vm8017_vm9, %v7782_v52  ;;  %9166 = vmatpush1.msk.msra.mxu1 %vm7714_vm8, %v10025_v4  ;;  %vm7775_vm0 = vcmp.le.f32.partialorder %v16005_v28, %v7710_v42  ;;  %vm7774_vm2 = vcmp.le.f32.partialorder %v16002_v54, %v7710_v42  ;;  %vm7771_vm8 = vcmp.le.f32.partialorder %v16005_v28, %v16204_v22 }
 0x6d2   : >> { %9099 = vmatprep.subr.msk.mxu0 %vm8016_vm11, %v7781_v43  ;;  %9167 = vmatprep.subr.msk.mxu1 %vm7713_vm10, %v10025_v4  ;;  %v7839_v29 = vsel %vm7775_vm0, 1.0, %v10026_v6  ;;  %vm7770_vm10 = vcmp.le.f32.partialorder %v16002_v54, %v16204_v22  ;;  %v7838_v60 = vsel %vm7774_vm2, 1.0, %v10026_v6  ;;  %v7835_v9 = vsel %vm7771_vm8, 1.0, %v10026_v6 }
 0x6d3   : >> { %9100 = vmatpush1.msk.msra.mxu0 %vm8015_vm13, %v7780_v53  ;;  %9168 = vmatpush1.msk.msra.mxu1 %vm7712_vm12, %v10025_v4  ;;  %vm7769_vm12 = vcmp.le.f32.partialorder %v16005_v28, %v16256_v2  ;;  %v7834_v44 = vsel %vm7770_vm10, 1.0, %v10026_v6 }
 0x6d4   : >> { %v7705_v24 = vpop.permute.xlu1 %7704  ;;  %9101 = vmatprep.subr.msk.mxu0 %vm8014_vm15, %v7779_v18  ;;  %v8009_v13 = vpop.permute.xlu0 %8008  ;;  %9169 = vmatprep.subr.msk.mxu1 %vm7775_vm0, %v10025_v4  ;;  %vm7768_vm15 = vcmp.le.f32.partialorder %v16002_v54, %v16256_v2  ;;  %vm7767_vm0 = vcmp.le.f32.partialorder %v16005_v28, %v16100_v49  ;;  %v7833_v10 = vsel %vm7769_vm12, 1.0, %v10026_v6 }
 0x6d5   : >> { %vm7772_vm4 = vcmp.le.f32.partialorder %v16002_v54, %v7705_v24  ;;  %vm7773_vm5 = vcmp.le.f32.partialorder %v16005_v28, %v7705_v24  ;;  %9102 = vmatpush1.msk.msra.mxu0 %vm8013_vm14, %v7778_v33  ;;  %9170 = vmatpush2.msk.msra.mxu1 %vm7774_vm2, %v10025_v4  ;;  %vm8074_vm9 = vcmp.le.f32.partialorder %v15999_v48, %v8009_v13  ;;  %v7832_v15 = vsel %vm7768_vm15, 1.0, %v10026_v6 }
 0x6d6   : >> { %9103 = vmatprep.subr.msk.mxu0 %vm8012_vm7, %v7777_v50  ;;  %9171 = vmatprep.subr.msk.mxu1 %vm7773_vm5, %v10025_v4  ;;  %vm8073_vm11 = vcmp.le.f32.partialorder %v16009_v57, %v8009_v13  ;;  %v7837_v35 = vsel %vm7773_vm5, 1.0, %v10026_v6  ;;  %v7836_v17 = vsel %vm7772_vm4, 1.0, %v10026_v6  ;;  %vm8070_vm2 = vcmp.le.f32.partialorder %v15999_v48, %v16270_v1 }
 0x6d7   : >> { %9104 = vmatpush1.msk.msra.mxu0 %vm8011_vm6, %v7776_v3  ;;  %9172 = vmatpush2.msk.msra.mxu1 %vm7772_vm4, %v10025_v4  ;;  %vm7766_vm4 = vcmp.le.f32.partialorder %v16002_v54, %v16100_v49  ;;  %vm8069_vm5 = vcmp.le.f32.partialorder %v16009_v57, %v16270_v1  ;;  %vm7765_vm7 = vcmp.le.f32.partialorder %v16005_v28, %v16152_v30  ;;  %v7831_v63 = vsel %vm7767_vm0, 1.0, %v10026_v6 }
 0x6d8   : >> { %v16399_v7 = vpop.permute.xlu1 %7664  ;;  %v8004_v20 = vpop.permute.xlu0 %8003  ;;  %9105 = vmatprep.subr.msk.mxu0 %vm8074_vm9, %v7839_v29  ;;  %9173 = vmatprep.subr.msk.mxu1 %vm7771_vm8, %v10025_v4  ;;  %vm8068_vm6 = vcmp.le.f32.partialorder %v15999_v48, %v16320_v26  ;;  %vm7764_vm8 = vcmp.le.f32.partialorder %v16002_v54, %v16152_v30  ;;  %vm8067_vm9 = vcmp.le.f32.partialorder %v16009_v57, %v16320_v26  ;;  %v7830_v31 = vsel %vm7766_vm4, 1.0, %v10026_v6  ;;  %v17604_v29 = vld [vmem:[#allocation101_spill] sm:$0xff] }
 0x6d9   : >> { %vm8071_vm13 = vcmp.le.f32.partialorder %v16009_v57, %v8004_v20  ;;  %vm8072_vm14 = vcmp.le.f32.partialorder %v15999_v48, %v8004_v20  ;;  %9106 = vmatpush2.msk.msra.mxu0 %vm8073_vm11, %v7838_v60  ;;  %9174 = vmatpush2.msk.msra.mxu1 %vm7770_vm10, %v10025_v4  ;;  %vm7763_vm10 = vcmp.le.f32.partialorder %v16005_v28, %v16025_v34  ;;  %v7829_v14 = vsel %vm7765_vm7, 1.0, %v10026_v6 }
 0x6da   : >> { %9107 = vmatprep.subr.msk.mxu0 %vm8072_vm14, %v7837_v35  ;;  %9175 = vmatprep.subr.msk.mxu1 %vm7769_vm12, %v10025_v4  ;;  %vm8066_vm11 = vcmp.le.f32.partialorder %v15999_v48, %v16166_v47  ;;  %vm7762_vm12 = vcmp.le.f32.partialorder %v16002_v54, %v16025_v34  ;;  %vm7761_vm14 = vcmp.le.f32.partialorder %v16005_v28, %v16052_v11  ;;  %v7828_v49 = vsel %vm7764_vm8, 1.0, %v10026_v6 }
 0x6db   : >> { %9108 = vmatpush2.msk.msra.mxu0 %vm8071_vm13, %v7836_v17  ;;  %9176 = vmatpush2.msk.msra.mxu1 %vm7768_vm15, %v10025_v4  ;;  %vm8065_vm13 = vcmp.le.f32.partialorder %v16009_v57, %v16166_v47  ;;  %vm8064_vm15 = vcmp.le.f32.partialorder %v15999_v48, %v16218_v12  ;;  %v7827_v25 = vsel %vm7763_vm10, 1.0, %v10026_v6  ;;  %v7826_v30 = vsel %vm7762_vm12, 1.0, %v10026_v6 }
 0x6dc   : >> { %v16443_v46 = vpop.permute.xlu1 %7659  ;;  %v16453_v56 = vpop.permute.xlu0 %7968  ;;  %9109 = vmatprep.subr.msk.mxu0 %vm8070_vm2, %v7835_v9  ;;  %9177 = vmatprep.subr.msk.mxu1 %vm7767_vm0, %v10025_v4  ;;  %vm7760_vm0 = vcmp.le.f32.partialorder %v16002_v54, %v16052_v11  ;;  %vm8063_vm2 = vcmp.le.f32.partialorder %v16009_v57, %v16218_v12  ;;  %v7825_v47 = vsel %vm7761_vm14, 1.0, %v10026_v6 }
 0x6dd   : >> { %9110 = vmatpush2.msk.msra.mxu0 %vm8069_vm5, %v7834_v44  ;;  %9178 = vmatpush2.msk.msra.mxu1 %vm7766_vm4, %v10025_v4  ;;  %vm7759_vm4 = vcmp.le.f32.partialorder %v16005_v28, %v16018_v21  ;;  %vm8062_vm5 = vcmp.le.f32.partialorder %v15999_v48, %v16064_v41  ;;  %v7824_v34 = vsel %vm7760_vm0, 1.0, %v10026_v6 }
 0x6de   : >> { %9111 = vmatprep.subr.msk.mxu0 %vm8068_vm6, %v7833_v10  ;;  %9179 = vmatprep.subr.msk.mxu1 %vm7765_vm7, %v10025_v4  ;;  %vm7758_vm7 = vcmp.le.f32.partialorder %v16002_v54, %v16018_v21  ;;  %vm8061_vm6 = vcmp.le.f32.partialorder %v16009_v57, %v16064_v41  ;;  %v7823_v41 = vsel %vm7759_vm4, 1.0, %v10026_v6 }
 0x6df   : >> { %9112 = vmatpush2.msk.msra.mxu0 %vm8067_vm9, %v7832_v15  ;;  %9180 = vmatpush2.msk.msra.mxu1 %vm7764_vm8, %v10025_v4  ;;  %vm8060_vm8 = vcmp.le.f32.partialorder %v15999_v48, %v16114_v23  ;;  %vm7757_vm9 = vcmp.le.f32.partialorder %v16005_v28, %v16399_v7 }
 0x6e0   : >> { %v16495_v27 = vpop.permute.xlu1 %7654  ;;  %v7964_v40 = vpop.permute.xlu0 %7963  ;;  %9113 = vmatprep.subr.msk.mxu0 %vm8066_vm11, %v7831_v63  ;;  %9181 = vmatprep.subr.msk.mxu1 %vm7763_vm10, %v10025_v4  ;;  %vm8059_vm10 = vcmp.le.f32.partialorder %v16009_v57, %v16114_v23  ;;  %vm7756_vm11 = vcmp.le.f32.partialorder %v16002_v54, %v16399_v7  ;;  %v7822_v23 = vsel %vm7758_vm7, 1.0, %v10026_v6  ;;  %v7821_v16 = vsel %vm7757_vm9, 1.0, %v10026_v6 }
 0x6e1   : >> { %9114 = vmatpush2.msk.msra.mxu0 %vm8065_vm13, %v7830_v31  ;;  %9182 = vmatpush2.msk.msra.mxu1 %vm7762_vm12, %v10025_v4  ;;  %vm8058_vm12 = vcmp.le.f32.partialorder %v15999_v48, %v16453_v56  ;;  %vm7755_vm13 = vcmp.le.f32.partialorder %v16005_v28, %v16443_v46  ;;  %v7820_v21 = vsel %vm7756_vm11, 1.0, %v10026_v6 }
 0x6e2   : >> { %9115 = vmatprep.subr.msk.mxu0 %vm8064_vm15, %v7829_v14  ;;  %9183 = vmatprep.subr.msk.mxu1 %vm7761_vm14, %v10025_v4  ;;  %vm8057_vm14 = vcmp.le.f32.partialorder %v16009_v57, %v16453_v56  ;;  %vm7754_vm15 = vcmp.le.f32.partialorder %v16002_v54, %v16443_v46  ;;  %v7819_v19 = vsel %vm7755_vm13, 1.0, %v10026_v6 }
 0x6e3   : >> { %9116 = vmatpush2.msk.msra.mxu0 %vm8063_vm2, %v7828_v49  ;;  %9184 = vmatpush2.msk.msra.mxu1 %vm7760_vm0, %v10025_v4  ;;  %vm8056_vm0 = vcmp.le.f32.partialorder %v15999_v48, %v7964_v40  ;;  %vm7753_vm2 = vcmp.le.f32.partialorder %v16005_v28, %v16495_v27  ;;  %v7818_v51 = vsel %vm7754_vm15, 1.0, %v10026_v6 }
 0x6e4   : >> { %v16545_v36 = vpop.permute.xlu1 %7649  ;;  %v7959_v5 = vpop.permute.xlu0 %7958  ;;  %9117 = vmatprep.subr.msk.mxu0 %vm8062_vm5, %v7827_v25  ;;  %9185 = vmatprep.subr.msk.mxu1 %vm7759_vm4, %v10025_v4  ;;  %vm8055_vm4 = vcmp.le.f32.partialorder %v16009_v57, %v7964_v40  ;;  %vm7752_vm5 = vcmp.le.f32.partialorder %v16002_v54, %v16495_v27  ;;  %v7817_v58 = vsel %vm7753_vm2, 1.0, %v10026_v6 }
 0x6e5   : >> { %9118 = vmatpush2.msk.msra.mxu0 %vm8061_vm6, %v7826_v30  ;;  %9186 = vmatpush2.msk.msra.mxu1 %vm7758_vm7, %v10025_v4  ;;  %vm8054_vm7 = vcmp.le.f32.partialorder %v15999_v48, %v7959_v5  ;;  %vm7751_vm6 = vcmp.le.f32.partialorder %v16005_v28, %v16545_v36  ;;  %v7816_v39 = vsel %vm7752_vm5, 1.0, %v10026_v6 }
 0x6e6   : >> { %9119 = vmatprep.subr.msk.mxu0 %vm8060_vm8, %v7825_v47  ;;  %9187 = vmatprep.subr.msk.mxu1 %vm7757_vm9, %v10025_v4  ;;  %vm8053_vm8 = vcmp.le.f32.partialorder %v16009_v57, %v7959_v5  ;;  %vm7750_vm9 = vcmp.le.f32.partialorder %v16002_v54, %v16545_v36  ;;  %v7815_v2 = vsel %vm7751_vm6, 1.0, %v10026_v6 }
 0x6e7   : >> { %9120 = vmatpush2.msk.msra.mxu0 %vm8059_vm10, %v7824_v34  ;;  %9188 = vmatpush2.msk.msra.mxu1 %vm7756_vm11, %v10025_v4  ;;  %v7814_v55 = vsel %vm7750_vm9, 1.0, %v10026_v6 }
 0x6e8   : >> { %v7645_v11 = vpop.permute.xlu1 %7644  ;;  %v7954_v38 = vpop.permute.xlu0 %7953  ;;  %9121 = vmatprep.subr.msk.mxu0 %vm8058_vm12, %v7823_v41  ;;  %9189 = vmatprep.subr.msk.mxu1 %vm7755_vm13, %v10025_v4 }
 0x6e9   : >> { %9122 = vmatpush2.msk.msra.mxu0 %vm8057_vm14, %v7822_v23  ;;  %9190 = vmatpush2.msk.msra.mxu1 %vm7754_vm15, %v10025_v4  ;;  %vm8052_vm10 = vcmp.le.f32.partialorder %v15999_v48, %v7954_v38  ;;  %vm7749_vm11 = vcmp.le.f32.partialorder %v16005_v28, %v7645_v11  ;;  %vm8051_vm12 = vcmp.le.f32.partialorder %v16009_v57, %v7954_v38 }
 0x6ea   : >> { %9123 = vmatprep.subr.msk.mxu0 %vm8056_vm0, %v7821_v16  ;;  %9191 = vmatprep.subr.msk.mxu1 %vm7753_vm2, %v10025_v4  ;;  %vm7748_vm13 = vcmp.le.f32.partialorder %v16002_v54, %v7645_v11  ;;  %v7813_v1 = vsel %vm7749_vm11, 1.0, %v10026_v6 }
 0x6eb   : >> { %9124 = vmatpush2.msk.msra.mxu0 %vm8055_vm4, %v7820_v21  ;;  %9192 = vmatpush2.msk.msra.mxu1 %vm7752_vm5, %v10025_v4  ;;  %v7812_v59 = vsel %vm7748_vm13, 1.0, %v10026_v6 }
 0x6ec   : >> { %v7640_v22 = vpop.permute.xlu1 %7639  ;;  %v7949_v12 = vpop.permute.xlu0 %7948  ;;  %9125 = vmatprep.subr.msk.mxu0 %vm8054_vm7, %v7819_v19  ;;  %9193 = vmatprep.subr.msk.mxu1 %vm7751_vm6, %v10025_v4 }
 0x6ed   : >> { %9126 = vmatpush2.msk.msra.mxu0 %vm8053_vm8, %v7818_v51  ;;  %9194 = vmatpush2.msk.msra.mxu1 %vm7750_vm9, %v10025_v4  ;;  %vm8050_vm14 = vcmp.le.f32.partialorder %v15999_v48, %v7949_v12  ;;  %vm7746_vm15 = vcmp.le.f32.partialorder %v16002_v54, %v7640_v22  ;;  %vm7747_vm0 = vcmp.le.f32.partialorder %v16005_v28, %v7640_v22 }
 0x6ee   : >> { %9127 = vmatprep.subr.msk.mxu0 %vm8052_vm10, %v7817_v58  ;;  %9195 = vmatprep.subr.msk.mxu1 %vm7749_vm11, %v10025_v4  ;;  %vm8049_vm2 = vcmp.le.f32.partialorder %v16009_v57, %v7949_v12  ;;  %v7811_v42 = vsel %vm7747_vm0, 1.0, %v10026_v6  ;;  %v7810_v52 = vsel %vm7746_vm15, 1.0, %v10026_v6 }
 0x6ef   : >> { %9128 = vmatpush2.msk.msra.mxu0 %vm8051_vm12, %v7816_v39  ;;  %9196 = vmatpush2.msk.msra.mxu1 %vm7748_vm13, %v10025_v4 }
 0x6f0   : >> { %v7635_v61 = vpop.permute.xlu1 %7634  ;;  %v7944_v8 = vpop.permute.xlu0 %7943  ;;  %9129 = vmatprep.subr.msk.mxu0 %vm8050_vm14, %v7815_v2  ;;  %9197 = vmatprep.subr.msk.mxu1 %vm7747_vm0, %v10025_v4 }
 0x6f1   : >> { %vm7744_vm4 = vcmp.le.f32.partialorder %v16002_v54, %v7635_v61  ;;  %vm7745_vm5 = vcmp.le.f32.partialorder %v16005_v28, %v7635_v61  ;;  %vm8047_vm7 = vcmp.le.f32.partialorder %v16009_v57, %v7944_v8  ;;  %vm8048_vm6 = vcmp.le.f32.partialorder %v15999_v48, %v7944_v8  ;;  %9130 = vmatpush2.msk.msra.mxu0 %vm8049_vm2, %v7814_v55 }
 0x6f2   : >> { %9198 = vmatpush2.msk.msra.mxu1 %vm7746_vm15, %v10025_v4  ;;  %9131 = vmatprep.subr.msk.mxu0 %vm8048_vm6, %v7813_v1  ;;  %v7808_v26 = vsel %vm7744_vm4, 1.0, %v10026_v6  ;;  %v8140_v54 = vstv %s8139_s17 }
 0x6f3   : >> { %9199 = vmatprep.subr.msk.mxu1 %vm7745_vm5, %v10025_v4  ;;  %9132 = vmatpush2.msk.msra.mxu0 %vm8047_vm7, %v7812_v59  ;;  %vm8141_vm12 = vcmp.ne.s32.totalorder %v17604_v29, %v8140_v54 }
 0x6f4   : >> { %9200 = vmatpush2.msk.msra.mxu1 %vm7744_vm4, %v10025_v4  ;;  %v7939_v62 = vpop.permute.xlu0 %7938  ;;  %v7934_v0 = vpop.permute.xlu1 %7933  ;;  %v7809_v4 = vsel %vm7745_vm5, 1.0, %v10026_v6  ;;  %vm8143_vm13 = vmand %vm8141_vm12, %vm1336_vm3 }
 0x6f5   : >> { %8300 = vmatmul.mubr.f32.vlgmr.msra.gmra.mxu1 %v8153_v37  ;;  %vm8045_vm8 = vcmp.le.f32.partialorder %v16009_v57, %v7939_v62  ;;  %vm8046_vm9 = vcmp.le.f32.partialorder %v15999_v48, %v7939_v62  ;;  %vm8044_vm10 = vcmp.le.f32.partialorder %v15999_v48, %v7934_v0  ;;  %vm8043_vm11 = vcmp.le.f32.partialorder %v16009_v57, %v7934_v0 }
 0x6f6   : >> { %9133 = vmatprep.subr.msk.mxu0 %vm8046_vm9, %v7811_v42  ;;  %v9072_v9 = vsel %vm8143_vm13, 1.0, %v10026_v6 }
 0x6f7   : >> { %9134 = vmatpush2.msk.msra.mxu0 %vm8045_vm8, %v7810_v52 }
 0x6f8   : >> { %9135 = vmatprep.subr.msk.mxu0 %vm8044_vm10, %v7809_v4 }
 0x6f9   : >> { %9136 = vmatpush2.msk.msra.mxu0 %vm8043_vm11, %v7808_v26 }
 0x6fa   : >> { %8225 = vmatmul.mubr.f32.vlgmr.msra.gmra.mxu0 %v8153_v37 }
 0x7b5   : >> { %v8301_v43 = vpop.f32.mrf.mxu1 }
 0x7b6   : >> { %v8302_v53 = vadd.f32 1e-07, %v8301_v43 }
 0x7b7   : >> { %v8303_v18 = vpop.f32.mrf.mxu1 }
 0x7b8   : >> { %9890 = vlog2.f32 %v8302_v53  ;;  %v8304_v28 = vadd.f32 1e-07, %v8303_v18 }
 0x7ba   : >> { %9892 = vlog2.f32 %v8304_v28  ;;  %v8226_v24 = vpop.f32.mrf.mxu0 }
 0x7bb   : >> { %v8227_v48 = vadd.f32 1e-07, %v8226_v24 }
 0x7bc   : >> { %v8228_v33 = vpop.f32.mrf.mxu0 }
 0x7bd   : >> { %9894 = vlog2.f32 %v8227_v48  ;;  %v8229_v13 = vadd.f32 1e-07, %v8228_v33 }
 0x7bf   : >> { %9896 = vlog2.f32 %v8229_v13 }
 0x7c5   : >> { %v9891_v57 = vpop.eup %9890 }
 0x7c6   : >> { %v8307_v50 = vmul.f32 0.6931472, %v9891_v57 }
 0x7c7   : >> { %v9893_v3 = vpop.eup %9892 }
 0x7c8   : >> { %v8310_v7 = vmul.f32 0.9, %v8307_v50  ;;  %v8309_v60 = vmul.f32 0.6931472, %v9893_v3 }
 0x7ca   : >> { %v9895_v20 = vpop.eup %9894  ;;  %v8311_v46 = vmul.f32 0.9, %v8309_v60 }
 0x7cb   : >> { %v8232_v35 = vmul.f32 0.6931472, %v9895_v20 }
 0x7cc   : >> { %v9897_v17 = vpop.eup %9896 }
 0x7cd   : >> { %v8312_v44 = vadd.f32 %v8310_v7, %v8232_v35  ;;  %v8234_v56 = vmul.f32 0.6931472, %v9897_v17 }
 0x7cf   : >> { %v8314_v10 = vmul.f32 %v9072_v9, %v8312_v44  ;;  %v8313_v15 = vadd.f32 %v8311_v46, %v8234_v56 }
 0x7d1   : >> { %v8316_v63 = vadd.f32 %v10002_v32, %v8314_v10   ;;  %v8315_v27 = vmul.f32 0.0, %v8313_v15  ;;  %6962 = sbr.rel (!%p6959_p2) target bundleno = 1305 (0x519), region = 107 }
 0x7d3   : >> { %v8317_v31 = vadd.f32 %v9998_v45, %v8315_v27   ;;  %v17606_v32 = vmov %v8316_v63  ;;  %v17608_v28 = vmov (%p6959_p2), %v8316_v63 }
 0x7d5   : >> { %v17605_v45 = vmov %v8317_v31  ;;  %v17607_v54 = vmov (%p6959_p2), %v8317_v31 }
 0x7d6 PF: > { %v17609_v32 = vld [vmem:[#allocation103_spill] sm:$0xff]  ;;  %v10027_v40 = vmov 1966171168   ;;  %v8321_v36 = vcombine.low %v10014_v28, %v10010_v54  ;;  %v17611_v47 = vld [vmem:[#allocation12_spill] sm:$0xff]  ;;  %vm8379_vm3 = vcmask 1040384   ;;  %v17613_v51 = vld [vmem:[#allocation13_spill] sm:$0xff]  ;;  %s16762_s21 = scalar_lea.hbm %s16813_s7, %s11542_s16  ;;  %v10014_v28 = vphi %v15803_v28, %v17608_v28   ;;  %v10010_v54 = vphi %v15801_v54, %v17607_v54  }
 0x7d7   : > { %v8338_v6 = vmul.f32 1.9, %v17609_v32  ;;  %v8323_v14 = vunpack.c.l.s4 %v10027_v40  ;;  %v17610_v49 = vld [vmem:[#allocation63_spill] sm:$0xff]  ;;  %v8318_v11 = vld [vmem:[#allocation2] sm:$0x3]  ;;  %v17614_v58 = vld [vmem:[#allocation14_spill] sm:$0xff] }
 0x7d8   : > { %v8339_v25 = vmul.f32 1.9, %v17610_v49  ;;  %v17615_v52 = vld [vmem:[#allocation101_spill] sm:$0xff]  ;;  %s8413_s18 = sshll.u32 %s328_s30, 4  ;;  %s8400_s8 = scalar_lea.sflag [#allocation9], %s326_s15  ;;  %s8414_s18 = int_to_ptr.vmem [resolvable:$true] %s8413_s18 }
 0x7d9   : > { %v8324_v30 = vunpack.c.0.s8 %v8323_v14  ;;  %vm8394_vm14 = vcmp.eq.s32.totalorder %v17615_v52, 0  ;;  %s9898_s10 = scalar_lea.vmem %s8414_s18, 128  ;;  %s10028_s12 = smov [#allocation8]  }
 0x7da   : > { %v8342_v5 = vcombine.low %v8338_v6, %v8339_v25  ;;  %p9899_p3 = scmp.ne.s32.totalorder %s8414_s18, %s9898_s10  ;;  %s9902_s17 = sshll.u32 %s10028_s12, 4  ;;  %s9903_s17 = int_to_ptr.vmem [resolvable:$false] %s9902_s17 }
 0x7db   : > { %v8327_v45 = vsub.s32 %v8324_v30, %v17611_v47  ;;  %p9905_p7 = scmp.lt.s32.totalorder %s8414_s18, %s9903_s17 }
 0x7dc   : > { %p9900_p5 = pnand %p9899_p3, %p10109_p4 }
 0x7dd   : > { %v8328_v34 = vrot.slane %v8321_v36, %v8327_v45  ;;  %v8349_v41 = vrot.slane %v8342_v5, %v8327_v45 }
 0x7de   : > { %p9901_p6 = pneg %p9900_p5 }
 0x7df   : > { %v8335_v23 = vrot.slane %v8328_v34, %v8327_v45  ;;  %v8356_v38 = vrot.slane %v8349_v41, %v8327_v45 }
 0x7e1   : > { %v8337_v16 = vadd.f32 %v8335_v23, %v8318_v11 }
 0x7e3   : > { %v8358_v21 = vsub.f32 %v8337_v16, %v8356_v38 }
 0x7e5   : > { %8363 = vst.msk [vmem:[#allocation2] sm:$0x3] %vm10487_vm1, %v8358_v21  ;;  %vm8393_vm1 = vcmp.eq.s32.totalorder %v17611_v47, 0 }
 0x7e6   : > { %vm8395_vm15 = vmand %vm8393_vm1, %vm8394_vm14 }
 0x7ec   : > { %v8367_v22 = vld [vmem:[#allocation2] sm:$0x3] }
 0x7ed   : > { %v8372_v12 = vrot.slane %v8367_v22, %v17613_v51  ;;  %v8376_v39 = vrot.slane %v8367_v22, %v17614_v58 }
 0x7ef   : > { %v8380_v37 = vsel %vm8379_vm3, %v8372_v12, 0.0  ;;  %v8381_v2 = vsel %vm8379_vm3, %v8376_v39, 0.0 }
 0x7f0   : > { %v8382_v61 = vadd.f32 %v8381_v2, %v8380_v37 }
 0x7f2   : > { %8383 = vadd.xlane.f32.xlu0 %v8382_v61 }
 0x87b   : > { %v8384_v55 = vpop.xlane.xlu0 %8383 }
 0x87c   : > { %v8385_v8 = vrot.slane %v8384_v55, 4 }
 0x87e   : > { %v8386_v1 = vadd.f32 %v8385_v8, %v8384_v55 }
 0x880   : > { %v8387_v59 = vrot.slane %v8386_v1, 2 }
 0x882   : > { %v8388_v62 = vadd.f32 %v8387_v59, %v8386_v1 }
 0x884   : > { %v8389_v0 = vrot.slane %v8388_v62, 1 }
 0x886   : > { %v8390_v42 = vadd.f32 %v8389_v0, %v8388_v62 }
 0x888   : > { %9472 = vpush %v8390_v42 }
 0x8b9   : > { %s9473_s19 = spop %9472 }
 0x8ba   : > { %s8392_s27 = smul.f32 0.0002480159, %s9473_s19  ;;  %s9904_s19 = scalar_lea.vmem %s9903_s17, 256 }
 0x8bb   : > { %p9906_p9 = scmp.lt.s32.totalorder %s9904_s19, %s9898_s10 }
 0x8bc   : > { %v8396_v4 = vstv %s8392_s27 }
 0x8bd   : > { %v8397_v26 = vsel %vm8395_vm15, %v8396_v4, 0.0  ;;  %p9907_p10 = por %p9906_p9, %p9905_p7 }
 0x8be   : > { %8398 = vst [vmem:[%s328_s30] sm:$0xff] %v8397_v26 }
 0x8bf   : > { %p9908_p11 = pnand %p9907_p10, %p9901_p6 }
 0x8c1   : > { %9911 = shalt.err (!%p9908_p11)
}
 0x8c2   : > { %s9912_s23 = scalar_lea.hbm %s16762_s21, 128  ;;  %s9916_s30 = scalar_lea.hbm %s16813_s7, 256 }
 0x8c3   : > { %p9913_p12 = scmp.ne.s32.totalorder %s16762_s21, %s9912_s23  ;;  %p9917_p1 = scmp.lt.s32.totalorder %s16762_s21, %s16813_s7 }
 0x8c4   : > { %p9918_p2 = scmp.lt.s32.totalorder %s9916_s30, %s9912_s23 }
 0x8c5   : > { %p9914_p13 = pnand %p9913_p12, %p10109_p4 }
 0x8c6   : > { %p9919_p3 = por %p9918_p2, %p9917_p1 }
 0x8c7   : > { %p9915_p0 = pneg %p9914_p13 }
 0x8c9   : > { %p9920_p5 = pnand %p9919_p3, %p9915_p0 }
 0x8cb   : > { %9923 = shalt.err (!%p9920_p5)
}
 0x8cc   : > { %9474 = dma.vmem_to_hbm [thread:$0]  (%p10109_p4), %s8414_s18, 128, %s16762_s21, %s8400_s8  }
 0x8cd PF: > { %p9480_p6 = scmp.ge.s32.totalorder %s9994_s29, 2  ;;  %s8425_s20 = sand.u32 1, %s9974_s24  }
 0x8ce   : > { %s8426_s10 = scalar_lea.sflag [#allocation9], %s8425_s20 }
 0x8cf   : > { %p9477_p7 = pnand %p9480_p6, %p10116_p8 }
 0x8d1   : > { %p9478_p9 = pneg %p9477_p7 }
 0x8d3   : > { %9969 = dma.done.wait (%p9478_p9), %s8426_s10, 128  }
 0x8d4   : > { %9971 = vsyncadd (%p9478_p9), %s8426_s10, 4294967168  ;;  %s20_s29 = sadd.s32 1, %s9994_s29   ;;  %s17616_s24 = smov %s9978_s25 }
 0x8d5   : > { %p17_p10 = scmp.ge.s32.totalorder %s20_s29, 4   ;;  %s17617_s25 = smov %s9982_s26 }
 0x8d6   : > { %s17618_s26 = smov %s10122_s14  ;;  %s17619_s27 = smov %s9990_s28 }
 0x8d7   : > { %s17620_s28 = smov %s17622_s9  ;;  %19 = sbr.rel (!%p17_p10) target bundleno = 4 (0x4), region = 118 }
 0x8dc   :  { %8431 = vsyncpa [#allocation9], 1 }
 0x8dd   :  { %8433 = vsyncpa [#allocation9 + $0x1], 1 }

</bundles_post_ra>
